<compile_context>
chip_gen: v7x
topology: tpu7x:2x2x1
jax: 0.10.0
libtpu: 0.0.40
codegen_flags: <defaults>
</compile_context>

<pallas_src>
import functools

import numpy as np
import jax
import jax.numpy as jnp
from jax.experimental import pallas as pl
from jax.experimental.pallas import tpu as pltpu

CLASSES = 10
CHANNELS = 1
ATTN_DIM = 16                                     # channel_num in the PyTorch module
ATTN_SCALE = float(ATTN_DIM ** (-0.5))
BN_EVAL_SCALE = float(1.0 / np.sqrt(1.0 + 1e-5))  # BN(eval) w/ default running stats

CONV_CFG = (
    dict(k=5, cin=CHANNELS, cout=16,      pool=True,  bn=False),
    dict(k=5, cin=16,       cout=32,      pool=True,  bn=True),
    dict(k=3, cin=32,       cout=64,      pool=True,  bn=True),
    dict(k=3, cin=64,       cout=128,     pool=False, bn=True),
    dict(k=3, cin=128,      cout=CLASSES, pool=False, bn=True),
)

CONV_TILE_M = 4096   # lane-tile target; VMEM per step stays << 32 MiB scoped (v7x-safe)


def _round_up(x, m):
    return ((x + m - 1) // m) * m


# --------------------------- conv matmul kernel ------------------------------

def _convT_kernel(w_ref, p_ref, b_ref, o_ref):
    # out^T tile = relu(W_T @ patches^T + b); bf16 inputs, f32 accumulation.
    acc = jnp.dot(w_ref[...], p_ref[...], preferred_element_type=jnp.float32)
    acc = jnp.maximum(acc + b_ref[...], 0.0)
    o_ref[...] = acc.astype(o_ref.dtype)


def conv_matmul_T(wT, pT, b, *, tile_m=CONV_TILE_M):
    """out^T = relu(wT @ pT + b); wT:(N,K) bf16, pT:(K,M) bf16, b:(N,1) f32."""
    N, K = wT.shape
    M = pT.shape[1]
    n_tiles = pl.cdiv(M, tile_m)
    tm = _round_up(pl.cdiv(M, n_tiles), 128)      # lane-dense output tiles
    m_pad = n_tiles * tm
    if m_pad != M:
        pT = jnp.pad(pT, ((0, 0), (0, m_pad - M)))
    out = pl.pallas_call(
        _convT_kernel,
        out_shape=jax.ShapeDtypeStruct((N, m_pad), jnp.bfloat16),
        grid=(n_tiles,),
        in_specs=[
            pl.BlockSpec((N, K), lambda i: (0, 0)),
            pl.BlockSpec((K, tm), lambda i: (0, i)),
            pl.BlockSpec((N, 1), lambda i: (0, 0)),
        ],
        out_specs=pl.BlockSpec((N, tm), lambda i: (0, i)),
        compiler_params=pltpu.CompilerParams(dimension_semantics=("parallel",)),
    )(wT, pT, b)
    return out[:, :M] if m_pad != M else out


# --------------------------- fused attention + MLP tail ----------------------

def _tail_kernel(imgf_ref, ascf_ref, attw_ref,
                 w1f_ref, b1f_ref, w2f_ref, b2f_ref,
                 w1s_ref, b1s_ref, w2s_ref, b2s_ref,
                 conf1_ref, conf2_ref, lfi_ref, lfa_ref, li_ref, la_ref,
                 *, scale, dim):
    imgf = imgf_ref[...]                              # (L, D) f32
    ascf = ascf_ref[...]

    def attention(q_in, k_in, v_in, idx):
        base = 3 * idx
        q = jnp.dot(q_in, attw_ref[base + 0], preferred_element_type=jnp.float32)
        k = jnp.dot(k_in, attw_ref[base + 1], preferred_element_type=jnp.float32)
        v = jnp.dot(v_in, attw_ref[base + 2], preferred_element_type=jnp.float32)
        s = jnp.dot(q, k.T, preferred_element_type=jnp.float32)
        s = s - jnp.max(s, axis=-1, keepdims=True)
        e = jnp.exp(s)
        p = e / jnp.sum(e, axis=-1, keepdims=True)    # softmax == confusion matrix
        out = jnp.dot(scale * p, v, preferred_element_type=jnp.float32)
        return p, out

    conf1, asc2img = attention(ascf, imgf, imgf, 0)
    conf2, img2asc = attention(imgf, ascf, ascf, 1)
    conf1_ref[...] = conf1
    conf2_ref[...] = conf2

    def head_fused(att, feat, idx):
        # concat([att, feat], -1) @ w1 == att @ w1[:D] + feat @ w1[D:]
        w1 = w1f_ref[idx]                             # (2*dim, hidden)
        h = jnp.dot(att, w1[:dim], preferred_element_type=jnp.float32)
        h = h + jnp.dot(feat, w1[dim:], preferred_element_type=jnp.float32)
        h = jnp.maximum(h + b1f_ref[idx], 0.0)        # fc1 + ReLU
        # fc2 has out_features=1 -> fused VPU reduction instead of a matmul.
        return jnp.sum(h * w2f_ref[idx], axis=-1, keepdims=True) + b2f_ref[idx]

    def head_single(feat, idx):
        h = jnp.dot(feat, w1s_ref[idx], preferred_element_type=jnp.float32)
        h = jnp.maximum(h + b1s_ref[idx], 0.0)
        return jnp.sum(h * w2s_ref[idx], axis=-1, keepdims=True) + b2s_ref[idx]

    lfi_ref[...] = head_fused(asc2img, imgf, 0)       # proj1(fuse_img)
    lfa_ref[...] = head_fused(img2asc, ascf, 1)       # proj2(fuse_asc)
    li_ref[...] = head_single(imgf, 0)                # proj3(img_feature)
    la_ref[...] = head_single(ascf, 1)                # proj4(asc_feature)


def fused_tail(img_feature, asc_feature, tp, *, scale):
    B, L, D = img_feature.shape
    feat_spec = pl.BlockSpec((None, L, D), lambda b: (b, 0, 0))

    def rep(a):
        if a.ndim == 2:
            return pl.BlockSpec(a.shape, lambda b: (0, 0))
        return pl.BlockSpec(a.shape, lambda b: (0, 0, 0))

    out_shapes = (
        jax.ShapeDtypeStruct((B, L, L), jnp.float32),   # confusion_mat  (asc2img)
        jax.ShapeDtypeStruct((B, L, L), jnp.float32),   # confusion_mat2 (img2asc)
        jax.ShapeDtypeStruct((B, L, 1), jnp.float32),   # logits_fuse_img
        jax.ShapeDtypeStruct((B, L, 1), jnp.float32),   # logits_fuse_asc
        jax.ShapeDtypeStruct((B, L, 1), jnp.float32),   # logits_img
        jax.ShapeDtypeStruct((B, L, 1), jnp.float32),   # logits_asc
    )
    out_specs = (
        pl.BlockSpec((None, L, L), lambda b: (b, 0, 0)),
        pl.BlockSpec((None, L, L), lambda b: (b, 0, 0)),
        pl.BlockSpec((None, L, 1), lambda b: (b, 0, 0)),
        pl.BlockSpec((None, L, 1), lambda b: (b, 0, 0)),
        pl.BlockSpec((None, L, 1), lambda b: (b, 0, 0)),
        pl.BlockSpec((None, L, 1), lambda b: (b, 0, 0)),
    )
    conf1, conf2, lfi, lfa, li, la = pl.pallas_call(
        functools.partial(_tail_kernel, scale=scale, dim=D),
        out_shape=out_shapes,
        grid=(B,),
        in_specs=[feat_spec, feat_spec,
                  rep(tp["attw"]),
                  rep(tp["w1f"]), rep(tp["b1f"]), rep(tp["w2f"]), rep(tp["b2f"]),
                  rep(tp["w1s"]), rep(tp["b1s"]), rep(tp["w2s"]), rep(tp["b2s"])],
        out_specs=out_specs,
        compiler_params=pltpu.CompilerParams(dimension_semantics=("parallel",)),
    )(img_feature, asc_feature, tp["attw"],
      tp["w1f"], tp["b1f"], tp["w2f"], tp["b2f"],
      tp["w1s"], tp["b1s"], tp["w2s"], tp["b2s"])
    return conf1, conf2, lfi[..., 0], lfa[..., 0], li[..., 0], la[..., 0]


# --------------------------- conv stack (glue + kernel calls) ----------------

def conv_stack(x_nchw, weights):
    """Equivalent of layer_img / layer_asc.  x: (B, C, H, W) NCHW float32."""
    B = x_nchw.shape[0]
    # Work in channel-major (C, B, H, W) bf16 so the transposed-matmul output
    # layout (cout, B*Ho*Wo) feeds the next layer with zero transposes.
    x = jnp.transpose(x_nchw, (1, 0, 2, 3)).astype(jnp.bfloat16)
    for cfg, (wT, b) in zip(CONV_CFG, weights):
        k, cout = cfg["k"], cfg["cout"]
        C, _, H, W = x.shape
        Ho, Wo = H - k + 1, W - k + 1
        # im2col^T: (C*k*k, B*Ho*Wo), K ordered (cin, kh, kw).
        # TODO(synk): an implicit-GEMM (in-kernel shifted-window K reduction)
        # would avoid materializing the patch tensor in HBM entirely.
        cols = [x[:, :, i:i + Ho, j:j + Wo] for i in range(k) for j in range(k)]
        pT = jnp.stack(cols, axis=1).reshape(C * k * k, B * Ho * Wo)
        yT = conv_matmul_T(wT, pT, b)                      # (cout, B*Ho*Wo) bf16
        y = yT.reshape(cout, B, Ho, Wo)
        if cfg["pool"]:                                    # 2x2 max pool, floor mode
            Hp, Wp = Ho // 2, Wo // 2
            y = y[:, :, :Hp * 2, :Wp * 2].reshape(cout, B, Hp, 2, Wp, 2).max(axis=(3, 5))
        x = y
        # TODO(synk): nn.Dropout between conv4 and conv5 is identity in eval mode.
    C, _, Hf, Wf = x.shape
    feat = jnp.transpose(x, (1, 0, 2, 3)).reshape(B, C, Hf * Wf)   # Flatten(start_dim=2)
    return feat.astype(jnp.float32)


def network_forward(x, asc, params):
    img_feature = conv_stack(x, params["layer_img"])       # (B, classes, 16)
    asc_feature = conv_stack(asc, params["layer_asc"])     # (B, classes, 16)
    conf1, conf2, lfi, lfa, li, la = fused_tail(
        img_feature, asc_feature, params["tail"], scale=ATTN_SCALE)
    return (lfi, lfa, li, la, conf1, conf2)


# --------------------------- deterministic init ------------------------------

def _kaiming(key, shape, fan_in):
    return jax.random.normal(key, shape, jnp.float32) * np.sqrt(2.0 / fan_in)


def init_params(key):
    keys = iter(jax.random.split(key, 64))

    def conv_params():
        ws = []
        for cfg in CONV_CFG:
            k, cin, cout = cfg["k"], cfg["cin"], cfg["cout"]
            fan_in = k * k * cin
            w = _kaiming(next(keys), (cout, fan_in), fan_in)   # transposed (N, K) layout
            b = jnp.zeros((cout, 1), jnp.float32)
            if cfg["bn"]:
                # Fold eval-mode BatchNorm (default running stats) into w and b.
                w = w * BN_EVAL_SCALE
                b = b * BN_EVAL_SCALE
            ws.append((w.astype(jnp.bfloat16), b))
        return ws

    def attn_w():   # to_q / to_k / to_v, stored as (in, out), bias=False
        return _kaiming(next(keys), (3, ATTN_DIM, ATTN_DIM), ATTN_DIM)

    def mlp_p(din, dh):
        return (_kaiming(next(keys), (din, dh), din),          # fc1 weight (in, hidden)
                jnp.zeros((dh,), jnp.float32),                 # fc1 bias
                _kaiming(next(keys), (dh,), dh),               # fc2 weight row (hidden,)
                jnp.zeros((1,), jnp.float32))                  # fc2 bias

    hidden = CLASSES * ATTN_DIM
    p1 = mlp_p(2 * ATTN_DIM, hidden)
    p2 = mlp_p(2 * ATTN_DIM, hidden)
    p3 = mlp_p(ATTN_DIM, hidden)
    p4 = mlp_p(ATTN_DIM, hidden)

    tail = dict(
        attw=jnp.concatenate([attn_w(), attn_w()], axis=0),    # (6,16,16): asc2img, img2asc
        w1f=jnp.stack([p1[0], p2[0]]), b1f=jnp.stack([p1[1], p2[1]]),
        w2f=jnp.stack([p1[2], p2[2]]), b2f=jnp.stack([p1[3], p2[3]]),
        w1s=jnp.stack([p3[0], p4[0]]), b1s=jnp.stack([p3[1], p4[1]]),
        w2s=jnp.stack([p3[2], p4[2]]), b2s=jnp.stack([p3[3], p4[3]]),
    )
    return dict(layer_img=conv_params(), layer_asc=conv_params(), tail=tail)


# --------------------------- main --------------------------------------------

if __name__ == "__main__":
    key = jax.random.PRNGKey(0)
    pkey, xkey, akey = jax.random.split(key, 3)
    params = init_params(pkey)

    # 88x88 inputs so the conv stack ends at 4x4 -> flattened L = 16 = ATTN_DIM.
    B, H, W = 2, 88, 88
    x = jax.random.normal(xkey, (B, CHANNELS, H, W), jnp.float32)
    asc = jax.random.normal(akey, (B, CHANNELS, H, W), jnp.float32)

    fwd = jax.jit(network_forward)
    outs = fwd(x, asc, params)
    jax.block_until_ready(outs)

    lfi, lfa, li, la, c1, c2 = outs
    assert lfi.shape == (B, CLASSES) and lfa.shape == (B, CLASSES)
    assert li.shape == (B, CLASSES) and la.shape == (B, CLASSES)
    assert c1.shape == (B, CLASSES, CLASSES) and c2.shape == (B, CLASSES, CLASSES)
    assert all(bool(jnp.all(jnp.isfinite(o))) for o in outs)
    print("KERNEL_OK")
</pallas_src>

<mosaic_0001>
module attributes {stable_mosaic.version = 11 : i64} {
  func.func @_convT_kernel(%arg0: i32, %arg1: memref<16x25xbf16, #tpu.memory_space<vmem>>, %arg2: memref<25x3584xbf16, #tpu.memory_space<vmem>>, %arg3: memref<16x1xf32, #tpu.memory_space<vmem>>, %arg4: memref<16x3584xbf16, #tpu.memory_space<vmem>>) attributes {dimension_semantics = [#tpu.dimension_semantics<parallel>], iteration_bounds = array<i64: 4>, scalar_prefetch = 0 : i64, scratch_operands = 0 : i64, tpu.core_type = #tpu.core_type<tc>, window_params = [{pipeline_mode = #tpu.pipeline_mode<synchronous>, transform_indices = @transform_0, window_bounds = array<i64: 16, 25>}, {transform_indices = @transform_1, window_bounds = array<i64: 25, 3584>}, {pipeline_mode = #tpu.pipeline_mode<synchronous>, transform_indices = @transform_2, window_bounds = array<i64: 16, 1>}, {transform_indices = @transform_3, window_bounds = array<i64: 16, 3584>}]} {
    %c0 = arith.constant 0 : index
    %c0_0 = arith.constant 0 : index
    %0 = vector.load %arg1[%c0, %c0_0] : memref<16x25xbf16, #tpu.memory_space<vmem>>, vector<16x25xbf16>
    %c0_1 = arith.constant 0 : index
    %c0_2 = arith.constant 0 : index
    %1 = vector.load %arg2[%c0_1, %c0_2] : memref<25x3584xbf16, #tpu.memory_space<vmem>>, vector<25x3584xbf16>
    %cst = arith.constant dense<0.000000e+00> : vector<16x3584xf32>
    %2 = tpu.matmul %0, %1, %cst {dimension_numbers = #tpu.dot_dimension_numbers<[1], [0], [0], [1], [0, 0, 1, 1], [], []>} : vector<16x25xbf16>, vector<25x3584xbf16>, vector<16x3584xf32> -> vector<16x3584xf32>
    %c0_3 = arith.constant 0 : index
    %c0_4 = arith.constant 0 : index
    %3 = vector.load %arg3[%c0_3, %c0_4] : memref<16x1xf32, #tpu.memory_space<vmem>>, vector<16x1xf32>
    %4 = vector.broadcast %3 : vector<16x1xf32> to vector<16x3584xf32>
    %5 = arith.addf %2, %4 : vector<16x3584xf32>
    %cst_5 = arith.constant 0.000000e+00 : f32
    %6 = vector.broadcast %cst_5 : f32 to vector<16x3584xf32>
    %7 = arith.maximumf %5, %6 : vector<16x3584xf32>
    %8 = arith.truncf %7 : vector<16x3584xf32> to vector<16x3584xbf16>
    %c0_6 = arith.constant 0 : index
    %c0_7 = arith.constant 0 : index
    %9 = vector.load %arg4[%c0_6, %c0_7] : memref<16x3584xbf16, #tpu.memory_space<vmem>>, vector<16x3584xbf16>
    tpu.vector_store %arg4[%c0_6, %c0_7], %8 {strides = array<i32>} : memref<16x3584xbf16, #tpu.memory_space<vmem>>, vector<16x3584xbf16>,
    return
  }
  func.func @transform_0(%arg0: i32) -> (i32, i32) {
    %c0_i32 = arith.constant 0 : i32
    %c0_i32_0 = arith.constant 0 : i32
    %c0_i32_1 = arith.constant 0 : i32
    return %c0_i32, %c0_i32_0 : i32, i32
  }
  func.func @transform_1(%arg0: i32) -> (i32, i32) {
    %c0_i32 = arith.constant 0 : i32
    %c0_i32_0 = arith.constant 0 : i32
    return %c0_i32, %arg0 : i32, i32
  }
  func.func @transform_2(%arg0: i32) -> (i32, i32) {
    %c0_i32 = arith.constant 0 : i32
    %c0_i32_0 = arith.constant 0 : i32
    %c0_i32_1 = arith.constant 0 : i32
    return %c0_i32, %c0_i32_0 : i32, i32
  }
  func.func @transform_3(%arg0: i32) -> (i32, i32) {
    %c0_i32 = arith.constant 0 : i32
    %c0_i32_0 = arith.constant 0 : i32
    return %c0_i32, %arg0 : i32, i32
  }
}

module attributes {stable_mosaic.version = 11 : i64} {
  func.func @_convT_kernel(%arg0: i32, %arg1: memref<32x400xbf16, #tpu.memory_space<vmem>>, %arg2: memref<400x2944xbf16, #tpu.memory_space<vmem>>, %arg3: memref<32x1xf32, #tpu.memory_space<vmem>>, %arg4: memref<32x2944xbf16, #tpu.memory_space<vmem>>) attributes {dimension_semantics = [#tpu.dimension_semantics<parallel>], iteration_bounds = array<i64: 1>, scalar_prefetch = 0 : i64, scratch_operands = 0 : i64, tpu.core_type = #tpu.core_type<tc>, window_params = [{pipeline_mode = #tpu.pipeline_mode<synchronous>, transform_indices = @transform_0, window_bounds = array<i64: 32, 400>}, {transform_indices = @transform_1, window_bounds = array<i64: 400, 2944>}, {pipeline_mode = #tpu.pipeline_mode<synchronous>, transform_indices = @transform_2, window_bounds = array<i64: 32, 1>}, {transform_indices = @transform_3, window_bounds = array<i64: 32, 2944>}]} {
    %c0 = arith.constant 0 : index
    %c0_0 = arith.constant 0 : index
    %0 = vector.load %arg1[%c0, %c0_0] : memref<32x400xbf16, #tpu.memory_space<vmem>>, vector<32x400xbf16>
    %c0_1 = arith.constant 0 : index
    %c0_2 = arith.constant 0 : index
    %1 = vector.load %arg2[%c0_1, %c0_2] : memref<400x2944xbf16, #tpu.memory_space<vmem>>, vector<400x2944xbf16>
    %cst = arith.constant dense<0.000000e+00> : vector<32x2944xf32>
    %2 = tpu.matmul %0, %1, %cst {dimension_numbers = #tpu.dot_dimension_numbers<[1], [0], [0], [1], [0, 0, 1, 1], [], []>} : vector<32x400xbf16>, vector<400x2944xbf16>, vector<32x2944xf32> -> vector<32x2944xf32>
    %c0_3 = arith.constant 0 : index
    %c0_4 = arith.constant 0 : index
    %3 = vector.load %arg3[%c0_3, %c0_4] : memref<32x1xf32, #tpu.memory_space<vmem>>, vector<32x1xf32>
    %4 = vector.broadcast %3 : vector<32x1xf32> to vector<32x2944xf32>
    %5 = arith.addf %2, %4 : vector<32x2944xf32>
    %cst_5 = arith.constant 0.000000e+00 : f32
    %6 = vector.broadcast %cst_5 : f32 to vector<32x2944xf32>
    %7 = arith.maximumf %5, %6 : vector<32x2944xf32>
    %8 = arith.truncf %7 : vector<32x2944xf32> to vector<32x2944xbf16>
    %c0_6 = arith.constant 0 : index
    %c0_7 = arith.constant 0 : index
    %9 = vector.load %arg4[%c0_6, %c0_7] : memref<32x2944xbf16, #tpu.memory_space<vmem>>, vector<32x2944xbf16>
    tpu.vector_store %arg4[%c0_6, %c0_7], %8 {strides = array<i32>} : memref<32x2944xbf16, #tpu.memory_space<vmem>>, vector<32x2944xbf16>,
    return
  }
  func.func @transform_0(%arg0: i32) -> (i32, i32) {
    %c0_i32 = arith.constant 0 : i32
    %c0_i32_0 = arith.constant 0 : i32
    %c0_i32_1 = arith.constant 0 : i32
    return %c0_i32, %c0_i32_0 : i32, i32
  }
  func.func @transform_1(%arg0: i32) -> (i32, i32) {
    %c0_i32 = arith.constant 0 : i32
    %c0_i32_0 = arith.constant 0 : i32
    return %c0_i32, %arg0 : i32, i32
  }
  func.func @transform_2(%arg0: i32) -> (i32, i32) {
    %c0_i32 = arith.constant 0 : i32
    %c0_i32_0 = arith.constant 0 : i32
    %c0_i32_1 = arith.constant 0 : i32
    return %c0_i32, %c0_i32_0 : i32, i32
  }
  func.func @transform_3(%arg0: i32) -> (i32, i32) {
    %c0_i32 = arith.constant 0 : i32
    %c0_i32_0 = arith.constant 0 : i32
    return %c0_i32, %arg0 : i32, i32
  }
}

module attributes {stable_mosaic.version = 11 : i64} {
  func.func @_convT_kernel(%arg0: i32, %arg1: memref<64x288xbf16, #tpu.memory_space<vmem>>, %arg2: memref<288x640xbf16, #tpu.memory_space<vmem>>, %arg3: memref<64x1xf32, #tpu.memory_space<vmem>>, %arg4: memref<64x640xbf16, #tpu.memory_space<vmem>>) attributes {dimension_semantics = [#tpu.dimension_semantics<parallel>], iteration_bounds = array<i64: 1>, scalar_prefetch = 0 : i64, scratch_operands = 0 : i64, tpu.core_type = #tpu.core_type<tc>, window_params = [{pipeline_mode = #tpu.pipeline_mode<synchronous>, transform_indices = @transform_0, window_bounds = array<i64: 64, 288>}, {transform_indices = @transform_1, window_bounds = array<i64: 288, 640>}, {pipeline_mode = #tpu.pipeline_mode<synchronous>, transform_indices = @transform_2, window_bounds = array<i64: 64, 1>}, {transform_indices = @transform_3, window_bounds = array<i64: 64, 640>}]} {
    %c0 = arith.constant 0 : index
    %c0_0 = arith.constant 0 : index
    %0 = vector.load %arg1[%c0, %c0_0] : memref<64x288xbf16, #tpu.memory_space<vmem>>, vector<64x288xbf16>
    %c0_1 = arith.constant 0 : index
    %c0_2 = arith.constant 0 : index
    %1 = vector.load %arg2[%c0_1, %c0_2] : memref<288x640xbf16, #tpu.memory_space<vmem>>, vector<288x640xbf16>
    %cst = arith.constant dense<0.000000e+00> : vector<64x640xf32>
    %2 = tpu.matmul %0, %1, %cst {dimension_numbers = #tpu.dot_dimension_numbers<[1], [0], [0], [1], [0, 0, 1, 1], [], []>} : vector<64x288xbf16>, vector<288x640xbf16>, vector<64x640xf32> -> vector<64x640xf32>
    %c0_3 = arith.constant 0 : index
    %c0_4 = arith.constant 0 : index
    %3 = vector.load %arg3[%c0_3, %c0_4] : memref<64x1xf32, #tpu.memory_space<vmem>>, vector<64x1xf32>
    %4 = vector.broadcast %3 : vector<64x1xf32> to vector<64x640xf32>
    %5 = arith.addf %2, %4 : vector<64x640xf32>
    %cst_5 = arith.constant 0.000000e+00 : f32
    %6 = vector.broadcast %cst_5 : f32 to vector<64x640xf32>
    %7 = arith.maximumf %5, %6 : vector<64x640xf32>
    %8 = arith.truncf %7 : vector<64x640xf32> to vector<64x640xbf16>
    %c0_6 = arith.constant 0 : index
    %c0_7 = arith.constant 0 : index
    %9 = vector.load %arg4[%c0_6, %c0_7] : memref<64x640xbf16, #tpu.memory_space<vmem>>, vector<64x640xbf16>
    tpu.vector_store %arg4[%c0_6, %c0_7], %8 {strides = array<i32>} : memref<64x640xbf16, #tpu.memory_space<vmem>>, vector<64x640xbf16>,
    return
  }
  func.func @transform_0(%arg0: i32) -> (i32, i32) {
    %c0_i32 = arith.constant 0 : i32
    %c0_i32_0 = arith.constant 0 : i32
    %c0_i32_1 = arith.constant 0 : i32
    return %c0_i32, %c0_i32_0 : i32, i32
  }
  func.func @transform_1(%arg0: i32) -> (i32, i32) {
    %c0_i32 = arith.constant 0 : i32
    %c0_i32_0 = arith.constant 0 : i32
    return %c0_i32, %arg0 : i32, i32
  }
  func.func @transform_2(%arg0: i32) -> (i32, i32) {
    %c0_i32 = arith.constant 0 : i32
    %c0_i32_0 = arith.constant 0 : i32
    %c0_i32_1 = arith.constant 0 : i32
    return %c0_i32, %c0_i32_0 : i32, i32
  }
  func.func @transform_3(%arg0: i32) -> (i32, i32) {
    %c0_i32 = arith.constant 0 : i32
    %c0_i32_0 = arith.constant 0 : i32
    return %c0_i32, %arg0 : i32, i32
  }
}

module attributes {stable_mosaic.version = 11 : i64} {
  func.func @_convT_kernel(%arg0: i32, %arg1: memref<128x576xbf16, #tpu.memory_space<vmem>>, %arg2: memref<576x128xbf16, #tpu.memory_space<vmem>>, %arg3: memref<128x1xf32, #tpu.memory_space<vmem>>, %arg4: memref<128x128xbf16, #tpu.memory_space<vmem>>) attributes {dimension_semantics = [#tpu.dimension_semantics<parallel>], iteration_bounds = array<i64: 1>, scalar_prefetch = 0 : i64, scratch_operands = 0 : i64, tpu.core_type = #tpu.core_type<tc>, window_params = [{pipeline_mode = #tpu.pipeline_mode<synchronous>, transform_indices = @transform_0, window_bounds = array<i64: 128, 576>}, {transform_indices = @transform_1, window_bounds = array<i64: 576, 128>}, {pipeline_mode = #tpu.pipeline_mode<synchronous>, transform_indices = @transform_2, window_bounds = array<i64: 128, 1>}, {transform_indices = @transform_3, window_bounds = array<i64: 128, 128>}]} {
    %c0 = arith.constant 0 : index
    %c0_0 = arith.constant 0 : index
    %0 = vector.load %arg1[%c0, %c0_0] : memref<128x576xbf16, #tpu.memory_space<vmem>>, vector<128x576xbf16>
    %c0_1 = arith.constant 0 : index
    %c0_2 = arith.constant 0 : index
    %1 = vector.load %arg2[%c0_1, %c0_2] : memref<576x128xbf16, #tpu.memory_space<vmem>>, vector<576x128xbf16>
    %cst = arith.constant dense<0.000000e+00> : vector<128x128xf32>
    %2 = tpu.matmul %0, %1, %cst {dimension_numbers = #tpu.dot_dimension_numbers<[1], [0], [0], [1], [0, 0, 1, 1], [], []>} : vector<128x576xbf16>, vector<576x128xbf16>, vector<128x128xf32> -> vector<128x128xf32>
    %c0_3 = arith.constant 0 : index
    %c0_4 = arith.constant 0 : index
    %3 = vector.load %arg3[%c0_3, %c0_4] : memref<128x1xf32, #tpu.memory_space<vmem>>, vector<128x1xf32>
    %4 = vector.broadcast %3 : vector<128x1xf32> to vector<128x128xf32>
    %5 = arith.addf %2, %4 : vector<128x128xf32>
    %cst_5 = arith.constant 0.000000e+00 : f32
    %6 = vector.broadcast %cst_5 : f32 to vector<128x128xf32>
    %7 = arith.maximumf %5, %6 : vector<128x128xf32>
    %8 = arith.truncf %7 : vector<128x128xf32> to vector<128x128xbf16>
    %c0_6 = arith.constant 0 : index
    %c0_7 = arith.constant 0 : index
    %9 = vector.load %arg4[%c0_6, %c0_7] : memref<128x128xbf16, #tpu.memory_space<vmem>>, vector<128x128xbf16>
    tpu.vector_store %arg4[%c0_6, %c0_7], %8 {strides = array<i32>} : memref<128x128xbf16, #tpu.memory_space<vmem>>, vector<128x128xbf16>,
    return
  }
  func.func @transform_0(%arg0: i32) -> (i32, i32) {
    %c0_i32 = arith.constant 0 : i32
    %c0_i32_0 = arith.constant 0 : i32
    %c0_i32_1 = arith.constant 0 : i32
    return %c0_i32, %c0_i32_0 : i32, i32
  }
  func.func @transform_1(%arg0: i32) -> (i32, i32) {
    %c0_i32 = arith.constant 0 : i32
    %c0_i32_0 = arith.constant 0 : i32
    return %c0_i32, %arg0 : i32, i32
  }
  func.func @transform_2(%arg0: i32) -> (i32, i32) {
    %c0_i32 = arith.constant 0 : i32
    %c0_i32_0 = arith.constant 0 : i32
    %c0_i32_1 = arith.constant 0 : i32
    return %c0_i32, %c0_i32_0 : i32, i32
  }
  func.func @transform_3(%arg0: i32) -> (i32, i32) {
    %c0_i32 = arith.constant 0 : i32
    %c0_i32_0 = arith.constant 0 : i32
    return %c0_i32, %arg0 : i32, i32
  }
}

module attributes {stable_mosaic.version = 11 : i64} {
  func.func @_convT_kernel(%arg0: i32, %arg1: memref<10x1152xbf16, #tpu.memory_space<vmem>>, %arg2: memref<1152x128xbf16, #tpu.memory_space<vmem>>, %arg3: memref<10x1xf32, #tpu.memory_space<vmem>>, %arg4: memref<10x128xbf16, #tpu.memory_space<vmem>>) attributes {dimension_semantics = [#tpu.dimension_semantics<parallel>], iteration_bounds = array<i64: 1>, scalar_prefetch = 0 : i64, scratch_operands = 0 : i64, tpu.core_type = #tpu.core_type<tc>, window_params = [{pipeline_mode = #tpu.pipeline_mode<synchronous>, transform_indices = @transform_0, window_bounds = array<i64: 10, 1152>}, {transform_indices = @transform_1, window_bounds = array<i64: 1152, 128>}, {pipeline_mode = #tpu.pipeline_mode<synchronous>, transform_indices = @transform_2, window_bounds = array<i64: 10, 1>}, {transform_indices = @transform_3, window_bounds = array<i64: 10, 128>}]} {
    %c0 = arith.constant 0 : index
    %c0_0 = arith.constant 0 : index
    %0 = vector.load %arg1[%c0, %c0_0] : memref<10x1152xbf16, #tpu.memory_space<vmem>>, vector<10x1152xbf16>
    %c0_1 = arith.constant 0 : index
    %c0_2 = arith.constant 0 : index
    %1 = vector.load %arg2[%c0_1, %c0_2] : memref<1152x128xbf16, #tpu.memory_space<vmem>>, vector<1152x128xbf16>
    %cst = arith.constant dense<0.000000e+00> : vector<10x128xf32>
    %2 = tpu.matmul %0, %1, %cst {dimension_numbers = #tpu.dot_dimension_numbers<[1], [0], [0], [1], [0, 0, 1, 1], [], []>} : vector<10x1152xbf16>, vector<1152x128xbf16>, vector<10x128xf32> -> vector<10x128xf32>
    %c0_3 = arith.constant 0 : index
    %c0_4 = arith.constant 0 : index
    %3 = vector.load %arg3[%c0_3, %c0_4] : memref<10x1xf32, #tpu.memory_space<vmem>>, vector<10x1xf32>
    %4 = vector.broadcast %3 : vector<10x1xf32> to vector<10x128xf32>
    %5 = arith.addf %2, %4 : vector<10x128xf32>
    %cst_5 = arith.constant 0.000000e+00 : f32
    %6 = vector.broadcast %cst_5 : f32 to vector<10x128xf32>
    %7 = arith.maximumf %5, %6 : vector<10x128xf32>
    %8 = arith.truncf %7 : vector<10x128xf32> to vector<10x128xbf16>
    %c0_6 = arith.constant 0 : index
    %c0_7 = arith.constant 0 : index
    %9 = vector.load %arg4[%c0_6, %c0_7] : memref<10x128xbf16, #tpu.memory_space<vmem>>, vector<10x128xbf16>
    tpu.vector_store %arg4[%c0_6, %c0_7], %8 {strides = array<i32>} : memref<10x128xbf16, #tpu.memory_space<vmem>>, vector<10x128xbf16>,
    return
  }
  func.func @transform_0(%arg0: i32) -> (i32, i32) {
    %c0_i32 = arith.constant 0 : i32
    %c0_i32_0 = arith.constant 0 : i32
    %c0_i32_1 = arith.constant 0 : i32
    return %c0_i32, %c0_i32_0 : i32, i32
  }
  func.func @transform_1(%arg0: i32) -> (i32, i32) {
    %c0_i32 = arith.constant 0 : i32
    %c0_i32_0 = arith.constant 0 : i32
    return %c0_i32, %arg0 : i32, i32
  }
  func.func @transform_2(%arg0: i32) -> (i32, i32) {
    %c0_i32 = arith.constant 0 : i32
    %c0_i32_0 = arith.constant 0 : i32
    %c0_i32_1 = arith.constant 0 : i32
    return %c0_i32, %c0_i32_0 : i32, i32
  }
  func.func @transform_3(%arg0: i32) -> (i32, i32) {
    %c0_i32 = arith.constant 0 : i32
    %c0_i32_0 = arith.constant 0 : i32
    return %c0_i32, %arg0 : i32, i32
  }
}

module attributes {stable_mosaic.version = 11 : i64} {
  func.func @_convT_kernel(%arg0: i32, %arg1: memref<16x25xbf16, #tpu.memory_space<vmem>>, %arg2: memref<25x3584xbf16, #tpu.memory_space<vmem>>, %arg3: memref<16x1xf32, #tpu.memory_space<vmem>>, %arg4: memref<16x3584xbf16, #tpu.memory_space<vmem>>) attributes {dimension_semantics = [#tpu.dimension_semantics<parallel>], iteration_bounds = array<i64: 4>, scalar_prefetch = 0 : i64, scratch_operands = 0 : i64, tpu.core_type = #tpu.core_type<tc>, window_params = [{pipeline_mode = #tpu.pipeline_mode<synchronous>, transform_indices = @transform_0, window_bounds = array<i64: 16, 25>}, {transform_indices = @transform_1, window_bounds = array<i64: 25, 3584>}, {pipeline_mode = #tpu.pipeline_mode<synchronous>, transform_indices = @transform_2, window_bounds = array<i64: 16, 1>}, {transform_indices = @transform_3, window_bounds = array<i64: 16, 3584>}]} {
    %c0 = arith.constant 0 : index
    %c0_0 = arith.constant 0 : index
    %0 = vector.load %arg1[%c0, %c0_0] : memref<16x25xbf16, #tpu.memory_space<vmem>>, vector<16x25xbf16>
    %c0_1 = arith.constant 0 : index
    %c0_2 = arith.constant 0 : index
    %1 = vector.load %arg2[%c0_1, %c0_2] : memref<25x3584xbf16, #tpu.memory_space<vmem>>, vector<25x3584xbf16>
    %cst = arith.constant dense<0.000000e+00> : vector<16x3584xf32>
    %2 = tpu.matmul %0, %1, %cst {dimension_numbers = #tpu.dot_dimension_numbers<[1], [0], [0], [1], [0, 0, 1, 1], [], []>} : vector<16x25xbf16>, vector<25x3584xbf16>, vector<16x3584xf32> -> vector<16x3584xf32>
    %c0_3 = arith.constant 0 : index
    %c0_4 = arith.constant 0 : index
    %3 = vector.load %arg3[%c0_3, %c0_4] : memref<16x1xf32, #tpu.memory_space<vmem>>, vector<16x1xf32>
    %4 = vector.broadcast %3 : vector<16x1xf32> to vector<16x3584xf32>
    %5 = arith.addf %2, %4 : vector<16x3584xf32>
    %cst_5 = arith.constant 0.000000e+00 : f32
    %6 = vector.broadcast %cst_5 : f32 to vector<16x3584xf32>
    %7 = arith.maximumf %5, %6 : vector<16x3584xf32>
    %8 = arith.truncf %7 : vector<16x3584xf32> to vector<16x3584xbf16>
    %c0_6 = arith.constant 0 : index
    %c0_7 = arith.constant 0 : index
    %9 = vector.load %arg4[%c0_6, %c0_7] : memref<16x3584xbf16, #tpu.memory_space<vmem>>, vector<16x3584xbf16>
    tpu.vector_store %arg4[%c0_6, %c0_7], %8 {strides = array<i32>} : memref<16x3584xbf16, #tpu.memory_space<vmem>>, vector<16x3584xbf16>,
    return
  }
  func.func @transform_0(%arg0: i32) -> (i32, i32) {
    %c0_i32 = arith.constant 0 : i32
    %c0_i32_0 = arith.constant 0 : i32
    %c0_i32_1 = arith.constant 0 : i32
    return %c0_i32, %c0_i32_0 : i32, i32
  }
  func.func @transform_1(%arg0: i32) -> (i32, i32) {
    %c0_i32 = arith.constant 0 : i32
    %c0_i32_0 = arith.constant 0 : i32
    return %c0_i32, %arg0 : i32, i32
  }
  func.func @transform_2(%arg0: i32) -> (i32, i32) {
    %c0_i32 = arith.constant 0 : i32
    %c0_i32_0 = arith.constant 0 : i32
    %c0_i32_1 = arith.constant 0 : i32
    return %c0_i32, %c0_i32_0 : i32, i32
  }
  func.func @transform_3(%arg0: i32) -> (i32, i32) {
    %c0_i32 = arith.constant 0 : i32
    %c0_i32_0 = arith.constant 0 : i32
    return %c0_i32, %arg0 : i32, i32
  }
}

module attributes {stable_mosaic.version = 11 : i64} {
  func.func @_tail_kernel(%arg0: i32, %arg1: memref<1x10x16xf32, #tpu.memory_space<vmem>>, %arg2: memref<1x10x16xf32, #tpu.memory_space<vmem>>, %arg3: memref<6x16x16xf32, #tpu.memory_space<vmem>>, %arg4: memref<2x32x160xf32, #tpu.memory_space<vmem>>, %arg5: memref<2x160xf32, #tpu.memory_space<vmem>>, %arg6: memref<2x160xf32, #tpu.memory_space<vmem>>, %arg7: memref<2x1xf32, #tpu.memory_space<vmem>>, %arg8: memref<2x16x160xf32, #tpu.memory_space<vmem>>, %arg9: memref<2x160xf32, #tpu.memory_space<vmem>>, %arg10: memref<2x160xf32, #tpu.memory_space<vmem>>, %arg11: memref<2x1xf32, #tpu.memory_space<vmem>>, %arg12: memref<1x10x10xf32, #tpu.memory_space<vmem>>, %arg13: memref<1x10x10xf32, #tpu.memory_space<vmem>>, %arg14: memref<1x10x1xf32, #tpu.memory_space<vmem>>, %arg15: memref<1x10x1xf32, #tpu.memory_space<vmem>>, %arg16: memref<1x10x1xf32, #tpu.memory_space<vmem>>, %arg17: memref<1x10x1xf32, #tpu.memory_space<vmem>>) attributes {dimension_semantics = [#tpu.dimension_semantics<parallel>], iteration_bounds = array<i64: 2>, scalar_prefetch = 0 : i64, scratch_operands = 0 : i64, tpu.core_type = #tpu.core_type<tc>, window_params = [{transform_indices = @transform_0, window_bounds = array<i64: 1, 10, 16>}, {transform_indices = @transform_1, window_bounds = array<i64: 1, 10, 16>}, {pipeline_mode = #tpu.pipeline_mode<synchronous>, transform_indices = @transform_2, window_bounds = array<i64: 6, 16, 16>}, {pipeline_mode = #tpu.pipeline_mode<synchronous>, transform_indices = @transform_3, window_bounds = array<i64: 2, 32, 160>}, {pipeline_mode = #tpu.pipeline_mode<synchronous>, transform_indices = @transform_4, window_bounds = array<i64: 2, 160>}, {pipeline_mode = #tpu.pipeline_mode<synchronous>, transform_indices = @transform_5, window_bounds = array<i64: 2, 160>}, {pipeline_mode = #tpu.pipeline_mode<synchronous>, transform_indices = @transform_6, window_bounds = array<i64: 2, 1>}, {pipeline_mode = #tpu.pipeline_mode<synchronous>, transform_indices = @transform_7, window_bounds = array<i64: 2, 16, 160>}, {pipeline_mode = #tpu.pipeline_mode<synchronous>, transform_indices = @transform_8, window_bounds = array<i64: 2, 160>}, {pipeline_mode = #tpu.pipeline_mode<synchronous>, transform_indices = @transform_9, window_bounds = array<i64: 2, 160>}, {pipeline_mode = #tpu.pipeline_mode<synchronous>, transform_indices = @transform_10, window_bounds = array<i64: 2, 1>}, {transform_indices = @transform_11, window_bounds = array<i64: 1, 10, 10>}, {transform_indices = @transform_12, window_bounds = array<i64: 1, 10, 10>}, {transform_indices = @transform_13, window_bounds = array<i64: 1, 10, 1>}, {transform_indices = @transform_14, window_bounds = array<i64: 1, 10, 1>}, {transform_indices = @transform_15, window_bounds = array<i64: 1, 10, 1>}, {transform_indices = @transform_16, window_bounds = array<i64: 1, 10, 1>}]} {
    %c0 = arith.constant 0 : index
    %c0_0 = arith.constant 0 : index
    %c0_1 = arith.constant 0 : index
    %0 = vector.load %arg1[%c0, %c0_0, %c0_1] : memref<1x10x16xf32, #tpu.memory_space<vmem>>, vector<1x10x16xf32>
    %1 = vector.shape_cast %0 : vector<1x10x16xf32> to vector<10x16xf32>
    %c0_2 = arith.constant 0 : index
    %c0_3 = arith.constant 0 : index
    %c0_4 = arith.constant 0 : index
    %2 = vector.load %arg2[%c0_2, %c0_3, %c0_4] : memref<1x10x16xf32, #tpu.memory_space<vmem>>, vector<1x10x16xf32>
    %3 = vector.shape_cast %2 : vector<1x10x16xf32> to vector<10x16xf32>
    %c0_5 = arith.constant 0 : index
    %c0_6 = arith.constant 0 : index
    %c0_7 = arith.constant 0 : index
    %4 = vector.load %arg3[%c0_5, %c0_6, %c0_7] : memref<6x16x16xf32, #tpu.memory_space<vmem>>, vector<1x16x16xf32>
    %5 = vector.shape_cast %4 : vector<1x16x16xf32> to vector<16x16xf32>
    %cst = arith.constant dense<0.000000e+00> : vector<10x16xf32>
    %6 = tpu.matmul %3, %5, %cst {dimension_numbers = #tpu.dot_dimension_numbers<[1], [0], [0], [1], [0, 0, 1, 1], [], []>} : vector<10x16xf32>, vector<16x16xf32>, vector<10x16xf32> -> vector<10x16xf32>
    %c1 = arith.constant 1 : index
    %c0_8 = arith.constant 0 : index
    %c0_9 = arith.constant 0 : index
    %7 = vector.load %arg3[%c1, %c0_8, %c0_9] : memref<6x16x16xf32, #tpu.memory_space<vmem>>, vector<1x16x16xf32>
    %8 = vector.shape_cast %7 : vector<1x16x16xf32> to vector<16x16xf32>
    %cst_10 = arith.constant dense<0.000000e+00> : vector<10x16xf32>
    %9 = tpu.matmul %1, %8, %cst_10 {dimension_numbers = #tpu.dot_dimension_numbers<[1], [0], [0], [1], [0, 0, 1, 1], [], []>} : vector<10x16xf32>, vector<16x16xf32>, vector<10x16xf32> -> vector<10x16xf32>
    %c2 = arith.constant 2 : index
    %c0_11 = arith.constant 0 : index
    %c0_12 = arith.constant 0 : index
    %10 = vector.load %arg3[%c2, %c0_11, %c0_12] : memref<6x16x16xf32, #tpu.memory_space<vmem>>, vector<1x16x16xf32>
    %11 = vector.shape_cast %10 : vector<1x16x16xf32> to vector<16x16xf32>
    %cst_13 = arith.constant dense<0.000000e+00> : vector<10x16xf32>
    %12 = tpu.matmul %1, %11, %cst_13 {dimension_numbers = #tpu.dot_dimension_numbers<[1], [0], [0], [1], [0, 0, 1, 1], [], []>} : vector<10x16xf32>, vector<16x16xf32>, vector<10x16xf32> -> vector<10x16xf32>
    %13 = tpu.transpose %9, [1, 0] : vector<10x16xf32> -> vector<16x10xf32>
    %cst_14 = arith.constant dense<0.000000e+00> : vector<10x10xf32>
    %14 = tpu.matmul %6, %13, %cst_14 {dimension_numbers = #tpu.dot_dimension_numbers<[1], [0], [0], [1], [0, 0, 1, 1], [], []>} : vector<10x16xf32>, vector<16x10xf32>, vector<10x10xf32> -> vector<10x10xf32>
    %cst_15 = arith.constant dense<0xFF800000> : vector<10xf32>
    %15 = vector.multi_reduction <maximumf>, %14, %cst_15 [1] : vector<10x10xf32> to vector<10xf32>
    %16 = vector.shape_cast %15 : vector<10xf32> to vector<10x1xf32>
    %17 = vector.broadcast %16 : vector<10x1xf32> to vector<10x10xf32>
    %18 = arith.subf %14, %17 : vector<10x10xf32>
    %19 = math.exp %18 : vector<10x10xf32>
    %cst_16 = arith.constant dense<0.000000e+00> : vector<10xf32>
    %20 = vector.multi_reduction <add>, %19, %cst_16 [1] : vector<10x10xf32> to vector<10xf32>
    %21 = vector.shape_cast %20 : vector<10xf32> to vector<10x1xf32>
    %22 = vector.broadcast %21 : vector<10x1xf32> to vector<10x10xf32>
    %23 = arith.divf %19, %22 : vector<10x10xf32>
    %cst_17 = arith.constant 2.500000e-01 : f32
    %24 = vector.broadcast %cst_17 : f32 to vector<10x10xf32>
    %25 = arith.mulf %24, %23 : vector<10x10xf32>
    %cst_18 = arith.constant dense<0.000000e+00> : vector<10x16xf32>
    %26 = tpu.matmul %25, %12, %cst_18 {dimension_numbers = #tpu.dot_dimension_numbers<[1], [0], [0], [1], [0, 0, 1, 1], [], []>} : vector<10x10xf32>, vector<10x16xf32>, vector<10x16xf32> -> vector<10x16xf32>
    %c3 = arith.constant 3 : index
    %c0_19 = arith.constant 0 : index
    %c0_20 = arith.constant 0 : index
    %27 = vector.load %arg3[%c3, %c0_19, %c0_20] : memref<6x16x16xf32, #tpu.memory_space<vmem>>, vector<1x16x16xf32>
    %28 = vector.shape_cast %27 : vector<1x16x16xf32> to vector<16x16xf32>
    %cst_21 = arith.constant dense<0.000000e+00> : vector<10x16xf32>
    %29 = tpu.matmul %1, %28, %cst_21 {dimension_numbers = #tpu.dot_dimension_numbers<[1], [0], [0], [1], [0, 0, 1, 1], [], []>} : vector<10x16xf32>, vector<16x16xf32>, vector<10x16xf32> -> vector<10x16xf32>
    %c4 = arith.constant 4 : index
    %c0_22 = arith.constant 0 : index
    %c0_23 = arith.constant 0 : index
    %30 = vector.load %arg3[%c4, %c0_22, %c0_23] : memref<6x16x16xf32, #tpu.memory_space<vmem>>, vector<1x16x16xf32>
    %31 = vector.shape_cast %30 : vector<1x16x16xf32> to vector<16x16xf32>
    %cst_24 = arith.constant dense<0.000000e+00> : vector<10x16xf32>
    %32 = tpu.matmul %3, %31, %cst_24 {dimension_numbers = #tpu.dot_dimension_numbers<[1], [0], [0], [1], [0, 0, 1, 1], [], []>} : vector<10x16xf32>, vector<16x16xf32>, vector<10x16xf32> -> vector<10x16xf32>
    %c5 = arith.constant 5 : index
    %c0_25 = arith.constant 0 : index
    %c0_26 = arith.constant 0 : index
    %33 = vector.load %arg3[%c5, %c0_25, %c0_26] : memref<6x16x16xf32, #tpu.memory_space<vmem>>, vector<1x16x16xf32>
    %34 = vector.shape_cast %33 : vector<1x16x16xf32> to vector<16x16xf32>
    %cst_27 = arith.constant dense<0.000000e+00> : vector<10x16xf32>
    %35 = tpu.matmul %3, %34, %cst_27 {dimension_numbers = #tpu.dot_dimension_numbers<[1], [0], [0], [1], [0, 0, 1, 1], [], []>} : vector<10x16xf32>, vector<16x16xf32>, vector<10x16xf32> -> vector<10x16xf32>
    %36 = tpu.transpose %32, [1, 0] : vector<10x16xf32> -> vector<16x10xf32>
    %cst_28 = arith.constant dense<0.000000e+00> : vector<10x10xf32>
    %37 = tpu.matmul %29, %36, %cst_28 {dimension_numbers = #tpu.dot_dimension_numbers<[1], [0], [0], [1], [0, 0, 1, 1], [], []>} : vector<10x16xf32>, vector<16x10xf32>, vector<10x10xf32> -> vector<10x10xf32>
    %cst_29 = arith.constant dense<0xFF800000> : vector<10xf32>
    %38 = vector.multi_reduction <maximumf>, %37, %cst_29 [1] : vector<10x10xf32> to vector<10xf32>
    %39 = vector.shape_cast %38 : vector<10xf32> to vector<10x1xf32>
    %40 = vector.broadcast %39 : vector<10x1xf32> to vector<10x10xf32>
    %41 = arith.subf %37, %40 : vector<10x10xf32>
    %42 = math.exp %41 : vector<10x10xf32>
    %cst_30 = arith.constant dense<0.000000e+00> : vector<10xf32>
    %43 = vector.multi_reduction <add>, %42, %cst_30 [1] : vector<10x10xf32> to vector<10xf32>
    %44 = vector.shape_cast %43 : vector<10xf32> to vector<10x1xf32>
    %45 = vector.broadcast %44 : vector<10x1xf32> to vector<10x10xf32>
    %46 = arith.divf %42, %45 : vector<10x10xf32>
    %cst_31 = arith.constant 2.500000e-01 : f32
    %47 = vector.broadcast %cst_31 : f32 to vector<10x10xf32>
    %48 = arith.mulf %47, %46 : vector<10x10xf32>
    %cst_32 = arith.constant dense<0.000000e+00> : vector<10x16xf32>
    %49 = tpu.matmul %48, %35, %cst_32 {dimension_numbers = #tpu.dot_dimension_numbers<[1], [0], [0], [1], [0, 0, 1, 1], [], []>} : vector<10x10xf32>, vector<10x16xf32>, vector<10x16xf32> -> vector<10x16xf32>
    %c0_33 = arith.constant 0 : index
    %c0_34 = arith.constant 0 : index
    %c0_35 = arith.constant 0 : index
    %50 = vector.load %arg12[%c0_33, %c0_34, %c0_35] : memref<1x10x10xf32, #tpu.memory_space<vmem>>, vector<1x10x10xf32>
    %51 = vector.shape_cast %50 : vector<1x10x10xf32> to vector<10x10xf32>
    %52 = vector.shape_cast %23 : vector<10x10xf32> to vector<1x10x10xf32>
    tpu.vector_store %arg12[%c0_33, %c0_34, %c0_35], %52 {strides = array<i32>} : memref<1x10x10xf32, #tpu.memory_space<vmem>>, vector<1x10x10xf32>,
    %c0_36 = arith.constant 0 : index
    %c0_37 = arith.constant 0 : index
    %c0_38 = arith.constant 0 : index
    %53 = vector.load %arg13[%c0_36, %c0_37, %c0_38] : memref<1x10x10xf32, #tpu.memory_space<vmem>>, vector<1x10x10xf32>
    %54 = vector.shape_cast %53 : vector<1x10x10xf32> to vector<10x10xf32>
    %55 = vector.shape_cast %46 : vector<10x10xf32> to vector<1x10x10xf32>
    tpu.vector_store %arg13[%c0_36, %c0_37, %c0_38], %55 {strides = array<i32>} : memref<1x10x10xf32, #tpu.memory_space<vmem>>, vector<1x10x10xf32>,
    %c0_39 = arith.constant 0 : index
    %c0_40 = arith.constant 0 : index
    %c0_41 = arith.constant 0 : index
    %56 = vector.load %arg4[%c0_39, %c0_40, %c0_41] : memref<2x32x160xf32, #tpu.memory_space<vmem>>, vector<1x32x160xf32>
    %57 = vector.shape_cast %56 : vector<1x32x160xf32> to vector<32x160xf32>
    %58 = vector.extract_strided_slice %57 {offsets = [0, 0], sizes = [16, 160], strides = [1, 1]} : vector<32x160xf32> to vector<16x160xf32>
    %cst_42 = arith.constant dense<0.000000e+00> : vector<10x160xf32>
    %59 = tpu.matmul %26, %58, %cst_42 {dimension_numbers = #tpu.dot_dimension_numbers<[1], [0], [0], [1], [0, 0, 1, 1], [], []>} : vector<10x16xf32>, vector<16x160xf32>, vector<10x160xf32> -> vector<10x160xf32>
    %60 = vector.extract_strided_slice %57 {offsets = [16, 0], sizes = [16, 160], strides = [1, 1]} : vector<32x160xf32> to vector<16x160xf32>
    %cst_43 = arith.constant dense<0.000000e+00> : vector<10x160xf32>
    %61 = tpu.matmul %1, %60, %cst_43 {dimension_numbers = #tpu.dot_dimension_numbers<[1], [0], [0], [1], [0, 0, 1, 1], [], []>} : vector<10x16xf32>, vector<16x160xf32>, vector<10x160xf32> -> vector<10x160xf32>
    %62 = arith.addf %59, %61 : vector<10x160xf32>
    %c0_44 = arith.constant 0 : index
    %c0_45 = arith.constant 0 : index
    %63 = vector.load %arg5[%c0_44, %c0_45] : memref<2x160xf32, #tpu.memory_space<vmem>>, vector<1x160xf32>
    %64 = vector.shape_cast %63 : vector<1x160xf32> to vector<160xf32>
    %65 = vector.shape_cast %64 : vector<160xf32> to vector<1x160xf32>
    %66 = vector.broadcast %65 : vector<1x160xf32> to vector<10x160xf32>
    %67 = arith.addf %62, %66 : vector<10x160xf32>
    %cst_46 = arith.constant 0.000000e+00 : f32
    %68 = vector.broadcast %cst_46 : f32 to vector<10x160xf32>
    %69 = arith.maximumf %67, %68 : vector<10x160xf32>
    %c0_47 = arith.constant 0 : index
    %c0_48 = arith.constant 0 : index
    %70 = vector.load %arg6[%c0_47, %c0_48] : memref<2x160xf32, #tpu.memory_space<vmem>>, vector<1x160xf32>
    %71 = vector.shape_cast %70 : vector<1x160xf32> to vector<160xf32>
    %72 = vector.shape_cast %71 : vector<160xf32> to vector<1x160xf32>
    %73 = vector.broadcast %72 : vector<1x160xf32> to vector<10x160xf32>
    %74 = arith.mulf %69, %73 : vector<10x160xf32>
    %cst_49 = arith.constant dense<0.000000e+00> : vector<10xf32>
    %75 = vector.multi_reduction <add>, %74, %cst_49 [1] : vector<10x160xf32> to vector<10xf32>
    %76 = vector.shape_cast %75 : vector<10xf32> to vector<10x1xf32>
    %c0_50 = arith.constant 0 : index
    %c0_51 = arith.constant 0 : index
    %77 = vector.load %arg7[%c0_50, %c0_51] : memref<2x1xf32, #tpu.memory_space<vmem>>, vector<1x1xf32>
    %78 = vector.shape_cast %77 : vector<1x1xf32> to vector<1xf32>
    %79 = vector.shape_cast %78 : vector<1xf32> to vector<1x1xf32>
    %80 = vector.broadcast %79 : vector<1x1xf32> to vector<10x1xf32>
    %81 = arith.addf %76, %80 : vector<10x1xf32>
    %c0_52 = arith.constant 0 : index
    %c0_53 = arith.constant 0 : index
    %c0_54 = arith.constant 0 : index
    %82 = vector.load %arg14[%c0_52, %c0_53, %c0_54] : memref<1x10x1xf32, #tpu.memory_space<vmem>>, vector<1x10x1xf32>
    %83 = vector.shape_cast %82 : vector<1x10x1xf32> to vector<10x1xf32>
    %84 = vector.shape_cast %81 : vector<10x1xf32> to vector<1x10x1xf32>
    tpu.vector_store %arg14[%c0_52, %c0_53, %c0_54], %84 {strides = array<i32>} : memref<1x10x1xf32, #tpu.memory_space<vmem>>, vector<1x10x1xf32>,
    %c1_55 = arith.constant 1 : index
    %c0_56 = arith.constant 0 : index
    %c0_57 = arith.constant 0 : index
    %85 = vector.load %arg4[%c1_55, %c0_56, %c0_57] : memref<2x32x160xf32, #tpu.memory_space<vmem>>, vector<1x32x160xf32>
    %86 = vector.shape_cast %85 : vector<1x32x160xf32> to vector<32x160xf32>
    %87 = vector.extract_strided_slice %86 {offsets = [0, 0], sizes = [16, 160], strides = [1, 1]} : vector<32x160xf32> to vector<16x160xf32>
    %cst_58 = arith.constant dense<0.000000e+00> : vector<10x160xf32>
    %88 = tpu.matmul %49, %87, %cst_58 {dimension_numbers = #tpu.dot_dimension_numbers<[1], [0], [0], [1], [0, 0, 1, 1], [], []>} : vector<10x16xf32>, vector<16x160xf32>, vector<10x160xf32> -> vector<10x160xf32>
    %89 = vector.extract_strided_slice %86 {offsets = [16, 0], sizes = [16, 160], strides = [1, 1]} : vector<32x160xf32> to vector<16x160xf32>
    %cst_59 = arith.constant dense<0.000000e+00> : vector<10x160xf32>
    %90 = tpu.matmul %3, %89, %cst_59 {dimension_numbers = #tpu.dot_dimension_numbers<[1], [0], [0], [1], [0, 0, 1, 1], [], []>} : vector<10x16xf32>, vector<16x160xf32>, vector<10x160xf32> -> vector<10x160xf32>
    %91 = arith.addf %88, %90 : vector<10x160xf32>
    %c1_60 = arith.constant 1 : index
    %c0_61 = arith.constant 0 : index
    %92 = vector.load %arg5[%c1_60, %c0_61] : memref<2x160xf32, #tpu.memory_space<vmem>>, vector<1x160xf32>
    %93 = vector.shape_cast %92 : vector<1x160xf32> to vector<160xf32>
    %94 = vector.shape_cast %93 : vector<160xf32> to vector<1x160xf32>
    %95 = vector.broadcast %94 : vector<1x160xf32> to vector<10x160xf32>
    %96 = arith.addf %91, %95 : vector<10x160xf32>
    %cst_62 = arith.constant 0.000000e+00 : f32
    %97 = vector.broadcast %cst_62 : f32 to vector<10x160xf32>
    %98 = arith.maximumf %96, %97 : vector<10x160xf32>
    %c1_63 = arith.constant 1 : index
    %c0_64 = arith.constant 0 : index
    %99 = vector.load %arg6[%c1_63, %c0_64] : memref<2x160xf32, #tpu.memory_space<vmem>>, vector<1x160xf32>
    %100 = vector.shape_cast %99 : vector<1x160xf32> to vector<160xf32>
    %101 = vector.shape_cast %100 : vector<160xf32> to vector<1x160xf32>
    %102 = vector.broadcast %101 : vector<1x160xf32> to vector<10x160xf32>
    %103 = arith.mulf %98, %102 : vector<10x160xf32>
    %cst_65 = arith.constant dense<0.000000e+00> : vector<10xf32>
    %104 = vector.multi_reduction <add>, %103, %cst_65 [1] : vector<10x160xf32> to vector<10xf32>
    %105 = vector.shape_cast %104 : vector<10xf32> to vector<10x1xf32>
    %c1_66 = arith.constant 1 : index
    %c0_67 = arith.constant 0 : index
    %106 = vector.load %arg7[%c1_66, %c0_67] : memref<2x1xf32, #tpu.memory_space<vmem>>, vector<1x1xf32>
    %107 = vector.shape_cast %106 : vector<1x1xf32> to vector<1xf32>
    %108 = vector.shape_cast %107 : vector<1xf32> to vector<1x1xf32>
    %109 = vector.broadcast %108 : vector<1x1xf32> to vector<10x1xf32>
    %110 = arith.addf %105, %109 : vector<10x1xf32>
    %c0_68 = arith.constant 0 : index
    %c0_69 = arith.constant 0 : index
    %c0_70 = arith.constant 0 : index
    %111 = vector.load %arg15[%c0_68, %c0_69, %c0_70] : memref<1x10x1xf32, #tpu.memory_space<vmem>>, vector<1x10x1xf32>
    %112 = vector.shape_cast %111 : vector<1x10x1xf32> to vector<10x1xf32>
    %113 = vector.shape_cast %110 : vector<10x1xf32> to vector<1x10x1xf32>
    tpu.vector_store %arg15[%c0_68, %c0_69, %c0_70], %113 {strides = array<i32>} : memref<1x10x1xf32, #tpu.memory_space<vmem>>, vector<1x10x1xf32>,
    %c0_71 = arith.constant 0 : index
    %c0_72 = arith.constant 0 : index
    %c0_73 = arith.constant 0 : index
    %114 = vector.load %arg8[%c0_71, %c0_72, %c0_73] : memref<2x16x160xf32, #tpu.memory_space<vmem>>, vector<1x16x160xf32>
    %115 = vector.shape_cast %114 : vector<1x16x160xf32> to vector<16x160xf32>
    %cst_74 = arith.constant dense<0.000000e+00> : vector<10x160xf32>
    %116 = tpu.matmul %1, %115, %cst_74 {dimension_numbers = #tpu.dot_dimension_numbers<[1], [0], [0], [1], [0, 0, 1, 1], [], []>} : vector<10x16xf32>, vector<16x160xf32>, vector<10x160xf32> -> vector<10x160xf32>
    %c0_75 = arith.constant 0 : index
    %c0_76 = arith.constant 0 : index
    %117 = vector.load %arg9[%c0_75, %c0_76] : memref<2x160xf32, #tpu.memory_space<vmem>>, vector<1x160xf32>
    %118 = vector.shape_cast %117 : vector<1x160xf32> to vector<160xf32>
    %119 = vector.shape_cast %118 : vector<160xf32> to vector<1x160xf32>
    %120 = vector.broadcast %119 : vector<1x160xf32> to vector<10x160xf32>
    %121 = arith.addf %116, %120 : vector<10x160xf32>
    %cst_77 = arith.constant 0.000000e+00 : f32
    %122 = vector.broadcast %cst_77 : f32 to vector<10x160xf32>
    %123 = arith.maximumf %121, %122 : vector<10x160xf32>
    %c0_78 = arith.constant 0 : index
    %c0_79 = arith.constant 0 : index
    %124 = vector.load %arg10[%c0_78, %c0_79] : memref<2x160xf32, #tpu.memory_space<vmem>>, vector<1x160xf32>
    %125 = vector.shape_cast %124 : vector<1x160xf32> to vector<160xf32>
    %126 = vector.shape_cast %125 : vector<160xf32> to vector<1x160xf32>
    %127 = vector.broadcast %126 : vector<1x160xf32> to vector<10x160xf32>
    %128 = arith.mulf %123, %127 : vector<10x160xf32>
    %cst_80 = arith.constant dense<0.000000e+00> : vector<10xf32>
    %129 = vector.multi_reduction <add>, %128, %cst_80 [1] : vector<10x160xf32> to vector<10xf32>
    %130 = vector.shape_cast %129 : vector<10xf32> to vector<10x1xf32>
    %c0_81 = arith.constant 0 : index
    %c0_82 = arith.constant 0 : index
    %131 = vector.load %arg11[%c0_81, %c0_82] : memref<2x1xf32, #tpu.memory_space<vmem>>, vector<1x1xf32>
    %132 = vector.shape_cast %131 : vector<1x1xf32> to vector<1xf32>
    %133 = vector.shape_cast %132 : vector<1xf32> to vector<1x1xf32>
    %134 = vector.broadcast %133 : vector<1x1xf32> to vector<10x1xf32>
    %135 = arith.addf %130, %134 : vector<10x1xf32>
    %c0_83 = arith.constant 0 : index
    %c0_84 = arith.constant 0 : index
    %c0_85 = arith.constant 0 : index
    %136 = vector.load %arg16[%c0_83, %c0_84, %c0_85] : memref<1x10x1xf32, #tpu.memory_space<vmem>>, vector<1x10x1xf32>
    %137 = vector.shape_cast %136 : vector<1x10x1xf32> to vector<10x1xf32>
    %138 = vector.shape_cast %135 : vector<10x1xf32> to vector<1x10x1xf32>
    tpu.vector_store %arg16[%c0_83, %c0_84, %c0_85], %138 {strides = array<i32>} : memref<1x10x1xf32, #tpu.memory_space<vmem>>, vector<1x10x1xf32>,
    %c1_86 = arith.constant 1 : index
    %c0_87 = arith.constant 0 : index
    %c0_88 = arith.constant 0 : index
    %139 = vector.load %arg8[%c1_86, %c0_87, %c0_88] : memref<2x16x160xf32, #tpu.memory_space<vmem>>, vector<1x16x160xf32>
    %140 = vector.shape_cast %139 : vector<1x16x160xf32> to vector<16x160xf32>
    %cst_89 = arith.constant dense<0.000000e+00> : vector<10x160xf32>
    %141 = tpu.matmul %3, %140, %cst_89 {dimension_numbers = #tpu.dot_dimension_numbers<[1], [0], [0], [1], [0, 0, 1, 1], [], []>} : vector<10x16xf32>, vector<16x160xf32>, vector<10x160xf32> -> vector<10x160xf32>
    %c1_90 = arith.constant 1 : index
    %c0_91 = arith.constant 0 : index
    %142 = vector.load %arg9[%c1_90, %c0_91] : memref<2x160xf32, #tpu.memory_space<vmem>>, vector<1x160xf32>
    %143 = vector.shape_cast %142 : vector<1x160xf32> to vector<160xf32>
    %144 = vector.shape_cast %143 : vector<160xf32> to vector<1x160xf32>
    %145 = vector.broadcast %144 : vector<1x160xf32> to vector<10x160xf32>
    %146 = arith.addf %141, %145 : vector<10x160xf32>
    %cst_92 = arith.constant 0.000000e+00 : f32
    %147 = vector.broadcast %cst_92 : f32 to vector<10x160xf32>
    %148 = arith.maximumf %146, %147 : vector<10x160xf32>
    %c1_93 = arith.constant 1 : index
    %c0_94 = arith.constant 0 : index
    %149 = vector.load %arg10[%c1_93, %c0_94] : memref<2x160xf32, #tpu.memory_space<vmem>>, vector<1x160xf32>
    %150 = vector.shape_cast %149 : vector<1x160xf32> to vector<160xf32>
    %151 = vector.shape_cast %150 : vector<160xf32> to vector<1x160xf32>
    %152 = vector.broadcast %151 : vector<1x160xf32> to vector<10x160xf32>
    %153 = arith.mulf %148, %152 : vector<10x160xf32>
    %cst_95 = arith.constant dense<0.000000e+00> : vector<10xf32>
    %154 = vector.multi_reduction <add>, %153, %cst_95 [1] : vector<10x160xf32> to vector<10xf32>
    %155 = vector.shape_cast %154 : vector<10xf32> to vector<10x1xf32>
    %c1_96 = arith.constant 1 : index
    %c0_97 = arith.constant 0 : index
    %156 = vector.load %arg11[%c1_96, %c0_97] : memref<2x1xf32, #tpu.memory_space<vmem>>, vector<1x1xf32>
    %157 = vector.shape_cast %156 : vector<1x1xf32> to vector<1xf32>
    %158 = vector.shape_cast %157 : vector<1xf32> to vector<1x1xf32>
    %159 = vector.broadcast %158 : vector<1x1xf32> to vector<10x1xf32>
    %160 = arith.addf %155, %159 : vector<10x1xf32>
    %c0_98 = arith.constant 0 : index
    %c0_99 = arith.constant 0 : index
    %c0_100 = arith.constant 0 : index
    %161 = vector.load %arg17[%c0_98, %c0_99, %c0_100] : memref<1x10x1xf32, #tpu.memory_space<vmem>>, vector<1x10x1xf32>
    %162 = vector.shape_cast %161 : vector<1x10x1xf32> to vector<10x1xf32>
    %163 = vector.shape_cast %160 : vector<10x1xf32> to vector<1x10x1xf32>
    tpu.vector_store %arg17[%c0_98, %c0_99, %c0_100], %163 {strides = array<i32>} : memref<1x10x1xf32, #tpu.memory_space<vmem>>, vector<1x10x1xf32>,
    return
  }
  func.func @transform_0(%arg0: i32) -> (i32, i32, i32) {
    %c0_i32 = arith.constant 0 : i32
    %c0_i32_0 = arith.constant 0 : i32
    %c0_i32_1 = arith.constant 0 : i32
    return %arg0, %c0_i32, %c0_i32_0 : i32, i32, i32
  }
  func.func @transform_1(%arg0: i32) -> (i32, i32, i32) {
    %c0_i32 = arith.constant 0 : i32
    %c0_i32_0 = arith.constant 0 : i32
    %c0_i32_1 = arith.constant 0 : i32
    return %arg0, %c0_i32, %c0_i32_0 : i32, i32, i32
  }
  func.func @transform_2(%arg0: i32) -> (i32, i32, i32) {
    %c0_i32 = arith.constant 0 : i32
    %c0_i32_0 = arith.constant 0 : i32
    %c0_i32_1 = arith.constant 0 : i32
    %c0_i32_2 = arith.constant 0 : i32
    return %c0_i32, %c0_i32_0, %c0_i32_1 : i32, i32, i32
  }
  func.func @transform_3(%arg0: i32) -> (i32, i32, i32) {
    %c0_i32 = arith.constant 0 : i32
    %c0_i32_0 = arith.constant 0 : i32
    %c0_i32_1 = arith.constant 0 : i32
    %c0_i32_2 = arith.constant 0 : i32
    return %c0_i32, %c0_i32_0, %c0_i32_1 : i32, i32, i32
  }
  func.func @transform_4(%arg0: i32) -> (i32, i32) {
    %c0_i32 = arith.constant 0 : i32
    %c0_i32_0 = arith.constant 0 : i32
    %c0_i32_1 = arith.constant 0 : i32
    return %c0_i32, %c0_i32_0 : i32, i32
  }
  func.func @transform_5(%arg0: i32) -> (i32, i32) {
    %c0_i32 = arith.constant 0 : i32
    %c0_i32_0 = arith.constant 0 : i32
    %c0_i32_1 = arith.constant 0 : i32
    return %c0_i32, %c0_i32_0 : i32, i32
  }
  func.func @transform_6(%arg0: i32) -> (i32, i32) {
    %c0_i32 = arith.constant 0 : i32
    %c0_i32_0 = arith.constant 0 : i32
    %c0_i32_1 = arith.constant 0 : i32
    return %c0_i32, %c0_i32_0 : i32, i32
  }
  func.func @transform_7(%arg0: i32) -> (i32, i32, i32) {
    %c0_i32 = arith.constant 0 : i32
    %c0_i32_0 = arith.constant 0 : i32
    %c0_i32_1 = arith.constant 0 : i32
    %c0_i32_2 = arith.constant 0 : i32
    return %c0_i32, %c0_i32_0, %c0_i32_1 : i32, i32, i32
  }
  func.func @transform_8(%arg0: i32) -> (i32, i32) {
    %c0_i32 = arith.constant 0 : i32
    %c0_i32_0 = arith.constant 0 : i32
    %c0_i32_1 = arith.constant 0 : i32
    return %c0_i32, %c0_i32_0 : i32, i32
  }
  func.func @transform_9(%arg0: i32) -> (i32, i32) {
    %c0_i32 = arith.constant 0 : i32
    %c0_i32_0 = arith.constant 0 : i32
    %c0_i32_1 = arith.constant 0 : i32
    return %c0_i32, %c0_i32_0 : i32, i32
  }
  func.func @transform_10(%arg0: i32) -> (i32, i32) {
    %c0_i32 = arith.constant 0 : i32
    %c0_i32_0 = arith.constant 0 : i32
    %c0_i32_1 = arith.constant 0 : i32
    return %c0_i32, %c0_i32_0 : i32, i32
  }
  func.func @transform_11(%arg0: i32) -> (i32, i32, i32) {
    %c0_i32 = arith.constant 0 : i32
    %c0_i32_0 = arith.constant 0 : i32
    %c0_i32_1 = arith.constant 0 : i32
    return %arg0, %c0_i32, %c0_i32_0 : i32, i32, i32
  }
  func.func @transform_12(%arg0: i32) -> (i32, i32, i32) {
    %c0_i32 = arith.constant 0 : i32
    %c0_i32_0 = arith.constant 0 : i32
    %c0_i32_1 = arith.constant 0 : i32
    return %arg0, %c0_i32, %c0_i32_0 : i32, i32, i32
  }
  func.func @transform_13(%arg0: i32) -> (i32, i32, i32) {
    %c0_i32 = arith.constant 0 : i32
    %c0_i32_0 = arith.constant 0 : i32
    %c0_i32_1 = arith.constant 0 : i32
    return %arg0, %c0_i32, %c0_i32_0 : i32, i32, i32
  }
  func.func @transform_14(%arg0: i32) -> (i32, i32, i32) {
    %c0_i32 = arith.constant 0 : i32
    %c0_i32_0 = arith.constant 0 : i32
    %c0_i32_1 = arith.constant 0 : i32
    return %arg0, %c0_i32, %c0_i32_0 : i32, i32, i32
  }
  func.func @transform_15(%arg0: i32) -> (i32, i32, i32) {
    %c0_i32 = arith.constant 0 : i32
    %c0_i32_0 = arith.constant 0 : i32
    %c0_i32_1 = arith.constant 0 : i32
    return %arg0, %c0_i32, %c0_i32_0 : i32, i32, i32
  }
  func.func @transform_16(%arg0: i32) -> (i32, i32, i32) {
    %c0_i32 = arith.constant 0 : i32
    %c0_i32_0 = arith.constant 0 : i32
    %c0_i32_1 = arith.constant 0 : i32
    return %arg0, %c0_i32, %c0_i32_0 : i32, i32, i32
  }
}

</mosaic_0001>

<bundles_post_ra>
// kernel: network_forward.16
= control target key start
LH: loop header
LB: loop body
LE: loop exit
PB: predicated region body
PF: predicated region fallthrough
CT: control target
= control target key end

     0   :  { %8 = vsyncpa [#allocation3], 0  ;;  %s2084_s12 = smov 0   ;;  %s2086_s13 = smov 0   ;;  %s2592_s0 = inlined_call_operand.hbm [shape: bf16[16,25], index: 0, kind: input, shape index: {}]   ;;  %s2593_s1 = inlined_call_operand.vmem [shape: bf16[25,14336], index: 1, kind: input, shape index: {}]   ;;  %s2594_s2 = inlined_call_operand.vmem [shape: f32[16,1], index: 2, kind: input, shape index: {}]   ;;  %s2595_s3 = inlined_call_operand.vmem [shape: bf16[16,14336], index: 3, kind: output, shape index: {}]  }
   0x1   :  { %s2088_s14 = smov 0  }
   0x2 LB: > { %s2100_s15 = sadd.s32 4294967295, %s2057_s14   ;;  %s2103_s16 = sadd.s32 1, %s2057_s14   ;;  %s2057_s14 = sphi %s2088_s14, %s2609_s14   ;;  %s2053_s13 = sphi %s2086_s13, %s2608_s13   ;;  %s2049_s12 = sphi %s2084_s12, %s2607_s12  }
   0x3   : > { %s39_s17 = ssub.s32 %s2057_s14, %s2103_s16  ;;  %s42_s18 = sadd.s32 1, %s2053_s13 }
   0x4   : > { %p40_p0 = scmp.eq.s32.totalorder %s39_s17, 0  ;;  %p49_p1 = scmp.ne.s32.totalorder %s2053_s13, %s2049_s12 }
   0x5   : > { %p50_p2 = scmp.eq.s32.totalorder %s2057_s14, 0  ;;  %p100_p3 = scmp.eq.s32.totalorder %s2100_s15, 3 }
   0x6   : > { %s2113_s19 = scalar_select %p40_p0, %s2053_s13, %s42_s18  }
   0x7   : > { %p2115_p4 = por %p50_p2, %p49_p1  ;;  %p2119_p5 = por %p100_p3, %p49_p1 }
   0x8   : > { %p1737_p6 = scmp.ge.s32.totalorder %s2057_s14, 1  ;;  %p113_p7 = scmp.lt.s32.totalorder %s2057_s14, 5 }
   0x9   : > { %s2598_s20 = scalar_select %p2115_p4, 1, 0 }
   0xa   : > { %s2599_s21 = scalar_select %p2119_p5, 1, 0 }
   0xb   : > { %p2596_p8 = scmp.eq.s32.totalorder %s2100_s15, 0  ;;  %p2126_p9 = pnand %p1737_p6, %p113_p7 }
   0xc   : > { %s2059_s23 = smov [#allocation2]   ;;  %s2003_s28 = scalar_lea.hbm %s2592_s0, 128 }
   0xd   : > { %s2600_s22 = scalar_select %p2126_p9, 1, 0 }
   0xe   : > { %s125_s24 = sshll.u32 %s2059_s23, 4  ;;  %p1882_p10 = pneg %p2126_p9  ;;  %s126_s24 = int_to_ptr.vmem [resolvable:$true] %s125_s24 }
   0xf   : > { %p2004_p12 = scmp.ne.s32.totalorder %s2592_s0, %s2003_s28  ;;  %p2010_p2 = scmp.lt.u32.totalorder %s2003_s28, %s2592_s0 }
  0x10   : > { %p2134_p11 = pnand %p2596_p8, %p1882_p10 }
  0x12   : > { %p2005_p13 = pneg %p2134_p11 }
  0x14   : > { %p2006_p0 = pnand %p2005_p13, %p2004_p12 }
  0x16   : > { %p2007_p1 = pneg %p2006_p0 }
  0x18   : > { %p2012_p3 = pnand %p2010_p2, %p2007_p1 }
  0x1a   : > { %2015 = shalt.err (!%p2012_p3)
}
  0x1b   : > { %s2016_s6 = scalar_lea.vmem %s126_s24, 128  ;;  %p2024_p8 = scmp.lt.s32.totalorder %s126_s24, %s126_s24 }
  0x1c   : > { %p2017_p6 = scmp.ne.s32.totalorder %s126_s24, %s2016_s6  ;;  %p2025_p5 = scmp.lt.s32.totalorder %s2016_s6, %s2016_s6 }
  0x1e   : > { %p2019_p7 = pnand %p2017_p6, %p2005_p13  ;;  %p2026_p9 = por %p2025_p5, %p2024_p8 }
  0x20   : > { %p2020_p10 = pneg %p2019_p7 }
  0x22   : > { %p2027_p4 = pnand %p2026_p9, %p2020_p10 }
  0x24   : > { %2030 = shalt.err (!%p2027_p4)
}
  0x25   : > { %s2060_s7 = smov 64   ;;  %s2061_s8 = smov 4  }
  0x26   : > { %1885 = dma.hbm_to_vmem [thread:$0]  (!%p2134_p11), %s2592_s0, 128, %s126_s24, [#allocation3], %s2060_s7, %s2060_s7, %s2061_s8  }
  0x27   : > { %p1739_p12 = scmp.ge.s32.totalorder %s2057_s14, 4 }
  0x28   : > { %p2602_p0 = scmp.ne.s32.totalorder (!%p1739_p12), %s2598_s20, 0 }
  0x29   : > { %138 = sbr.rel (%p1739_p12) target bundleno = 81 (0x51), region = 24 }
  0x30   : > { %141 = sbr.rel (!%p2602_p0) target bundleno = 81 (0x51), region = 28  ;;  %s143_s11 = sand.u32 (%p2602_p0), 1, %s2053_s13  }
  0x31   : > { %s1845_s17 = smul.u32 (%p2602_p0), 112, %s2057_s14 }
  0x32   : > { %s1875_s18 = smul.u32 (%p2602_p0), 448, %s143_s11 }
  0x33   : > { %s2162_s27 = scalar_lea.vmem (%p2602_p0), %s2593_s1, %s1845_s17 }
  0x34   : > { %v161_v0 = vld [vmem:[%s2162_s27] sm:$0xff] (%p2602_p0)  ;;  %v163_v1 = vld [vmem:[%s2162_s27 + $0x8] sm:$0xff] (%p2602_p0)  ;;  %v165_v2 = vld [vmem:[%s2162_s27 + $0x10] sm:$0xff] (%p2602_p0)  ;;  %s2167_s20 = scalar_lea.vmem (%p2602_p0), [#allocation4], %s1875_s18 }
  0x35   : > { %162 = vst [vmem:[%s2167_s20] sm:$0xff] (%p2602_p0), %v161_v0  ;;  %164 = vst [vmem:[%s2167_s20 + $0x8] sm:$0xff] (%p2602_p0), %v163_v1  ;;  %v167_v3 = vld [vmem:[%s2162_s27 + $0x18] sm:$0xff] (%p2602_p0)  ;;  %v169_v4 = vld [vmem:[%s2162_s27 + $0x20] sm:$0xff] (%p2602_p0) }
  0x36   : > { %166 = vst [vmem:[%s2167_s20 + $0x10] sm:$0xff] (%p2602_p0), %v165_v2  ;;  %v171_v5 = vld [vmem:[%s2162_s27 + $0x28] sm:$0xff] (%p2602_p0)  ;;  %168 = vst [vmem:[%s2167_s20 + $0x18] sm:$0xff] (%p2602_p0), %v167_v3  ;;  %v173_v6 = vld [vmem:[%s2162_s27 + $0x30] sm:$0xff] (%p2602_p0) }
  0x37   : > { %170 = vst [vmem:[%s2167_s20 + $0x20] sm:$0xff] %v169_v4  ;;  %172 = vst [vmem:[%s2167_s20 + $0x28] sm:$0xff] %v171_v5  ;;  %v175_v7 = vld [vmem:[%s2162_s27 + $0x38] sm:$0xff]  ;;  %v177_v8 = vld [vmem:[%s2162_s27 + $0x40] sm:$0xff] }
  0x38   : > { %174 = vst [vmem:[%s2167_s20 + $0x30] sm:$0xff] %v173_v6  ;;  %176 = vst [vmem:[%s2167_s20 + $0x38] sm:$0xff] %v175_v7  ;;  %v179_v9 = vld [vmem:[%s2162_s27 + $0x48] sm:$0xff]  ;;  %v181_v10 = vld [vmem:[%s2162_s27 + $0x50] sm:$0xff] }
  0x39   : > { %178 = vst [vmem:[%s2167_s20 + $0x40] sm:$0xff] %v177_v8  ;;  %v183_v11 = vld [vmem:[%s2162_s27 + $0x58] sm:$0xff]  ;;  %180 = vst [vmem:[%s2167_s20 + $0x48] sm:$0xff] %v179_v9  ;;  %v185_v12 = vld [vmem:[%s2162_s27 + $0x60] sm:$0xff] }
  0x3a   : > { %182 = vst [vmem:[%s2167_s20 + $0x50] sm:$0xff] %v181_v10  ;;  %184 = vst [vmem:[%s2167_s20 + $0x58] sm:$0xff] %v183_v11  ;;  %v187_v13 = vld [vmem:[%s2162_s27 + $0x68] sm:$0xff]  ;;  %v189_v14 = vld [vmem:[%s2162_s27 + $0x1c0] sm:$0xff] }
  0x3b   : > { %186 = vst [vmem:[%s2167_s20 + $0x60] sm:$0xff] %v185_v12  ;;  %188 = vst [vmem:[%s2167_s20 + $0x68] sm:$0xff] %v187_v13  ;;  %v191_v15 = vld [vmem:[%s2162_s27 + $0x1c8] sm:$0xff]  ;;  %v193_v16 = vld [vmem:[%s2162_s27 + $0x1d0] sm:$0xff] }
  0x3c   : > { %190 = vst [vmem:[%s2167_s20 + $0x70] sm:$0xff] %v189_v14  ;;  %v195_v17 = vld [vmem:[%s2162_s27 + $0x1d8] sm:$0xff]  ;;  %192 = vst [vmem:[%s2167_s20 + $0x78] sm:$0xff] %v191_v15  ;;  %v197_v18 = vld [vmem:[%s2162_s27 + $0x1e0] sm:$0xff] }
  0x3d   : > { %194 = vst [vmem:[%s2167_s20 + $0x80] sm:$0xff] %v193_v16  ;;  %196 = vst [vmem:[%s2167_s20 + $0x88] sm:$0xff] %v195_v17  ;;  %v199_v19 = vld [vmem:[%s2162_s27 + $0x1e8] sm:$0xff]  ;;  %v201_v20 = vld [vmem:[%s2162_s27 + $0x1f0] sm:$0xff] }
  0x3e   : > { %198 = vst [vmem:[%s2167_s20 + $0x90] sm:$0xff] %v197_v18  ;;  %200 = vst [vmem:[%s2167_s20 + $0x98] sm:$0xff] %v199_v19  ;;  %v203_v21 = vld [vmem:[%s2162_s27 + $0x1f8] sm:$0xff]  ;;  %v205_v22 = vld [vmem:[%s2162_s27 + $0x200] sm:$0xff] }
  0x3f   : > { %202 = vst [vmem:[%s2167_s20 + $0xa0] sm:$0xff] %v201_v20  ;;  %v207_v23 = vld [vmem:[%s2162_s27 + $0x208] sm:$0xff]  ;;  %204 = vst [vmem:[%s2167_s20 + $0xa8] sm:$0xff] %v203_v21  ;;  %v209_v24 = vld [vmem:[%s2162_s27 + $0x210] sm:$0xff] }
  0x40   : > { %206 = vst [vmem:[%s2167_s20 + $0xb0] sm:$0xff] %v205_v22  ;;  %208 = vst [vmem:[%s2167_s20 + $0xb8] sm:$0xff] %v207_v23  ;;  %v211_v25 = vld [vmem:[%s2162_s27 + $0x218] sm:$0xff]  ;;  %v213_v26 = vld [vmem:[%s2162_s27 + $0x220] sm:$0xff] }
  0x41   : > { %210 = vst [vmem:[%s2167_s20 + $0xc0] sm:$0xff] %v209_v24  ;;  %212 = vst [vmem:[%s2167_s20 + $0xc8] sm:$0xff] %v211_v25  ;;  %v215_v27 = vld [vmem:[%s2162_s27 + $0x228] sm:$0xff]  ;;  %v217_v28 = vld [vmem:[%s2162_s27 + $0x380] sm:$0xff] }
  0x42   : > { %214 = vst [vmem:[%s2167_s20 + $0xd0] sm:$0xff] %v213_v26  ;;  %v219_v29 = vld [vmem:[%s2162_s27 + $0x388] sm:$0xff]  ;;  %216 = vst [vmem:[%s2167_s20 + $0xd8] sm:$0xff] %v215_v27  ;;  %v221_v30 = vld [vmem:[%s2162_s27 + $0x390] sm:$0xff] }
  0x43   : > { %218 = vst [vmem:[%s2167_s20 + $0xe0] sm:$0xff] %v217_v28  ;;  %220 = vst [vmem:[%s2167_s20 + $0xe8] sm:$0xff] %v219_v29  ;;  %v223_v31 = vld [vmem:[%s2162_s27 + $0x398] sm:$0xff]  ;;  %v225_v32 = vld [vmem:[%s2162_s27 + $0x3a0] sm:$0xff] }
  0x44   : > { %222 = vst [vmem:[%s2167_s20 + $0xf0] sm:$0xff] %v221_v30  ;;  %224 = vst [vmem:[%s2167_s20 + $0xf8] sm:$0xff] %v223_v31  ;;  %v227_v33 = vld [vmem:[%s2162_s27 + $0x3a8] sm:$0xff]  ;;  %v229_v34 = vld [vmem:[%s2162_s27 + $0x3b0] sm:$0xff] }
  0x45   : > { %226 = vst [vmem:[%s2167_s20 + $0x100] sm:$0xff] %v225_v32  ;;  %v231_v35 = vld [vmem:[%s2162_s27 + $0x3b8] sm:$0xff]  ;;  %228 = vst [vmem:[%s2167_s20 + $0x108] sm:$0xff] %v227_v33  ;;  %v233_v36 = vld [vmem:[%s2162_s27 + $0x3c0] sm:$0xff] }
  0x46   : > { %230 = vst [vmem:[%s2167_s20 + $0x110] sm:$0xff] %v229_v34  ;;  %232 = vst [vmem:[%s2167_s20 + $0x118] sm:$0xff] %v231_v35  ;;  %v235_v37 = vld [vmem:[%s2162_s27 + $0x3c8] sm:$0xff]  ;;  %v237_v38 = vld [vmem:[%s2162_s27 + $0x3d0] sm:$0xff] }
  0x47   : > { %234 = vst [vmem:[%s2167_s20 + $0x120] sm:$0xff] %v233_v36  ;;  %236 = vst [vmem:[%s2167_s20 + $0x128] sm:$0xff] %v235_v37  ;;  %v239_v39 = vld [vmem:[%s2162_s27 + $0x3d8] sm:$0xff]  ;;  %v241_v40 = vld [vmem:[%s2162_s27 + $0x3e0] sm:$0xff] }
  0x48   : > { %238 = vst [vmem:[%s2167_s20 + $0x130] sm:$0xff] %v237_v38  ;;  %v243_v41 = vld [vmem:[%s2162_s27 + $0x3e8] sm:$0xff]  ;;  %240 = vst [vmem:[%s2167_s20 + $0x138] sm:$0xff] %v239_v39  ;;  %v245_v42 = vld [vmem:[%s2162_s27 + $0x540] sm:$0xff] }
  0x49   : > { %242 = vst [vmem:[%s2167_s20 + $0x140] sm:$0xff] %v241_v40  ;;  %244 = vst [vmem:[%s2167_s20 + $0x148] sm:$0xff] %v243_v41  ;;  %v247_v43 = vld [vmem:[%s2162_s27 + $0x548] sm:$0xff]  ;;  %v249_v44 = vld [vmem:[%s2162_s27 + $0x550] sm:$0xff] }
  0x4a   : > { %246 = vst [vmem:[%s2167_s20 + $0x150] sm:$0xff] %v245_v42  ;;  %248 = vst [vmem:[%s2167_s20 + $0x158] sm:$0xff] %v247_v43  ;;  %v251_v45 = vld [vmem:[%s2162_s27 + $0x558] sm:$0xff]  ;;  %v253_v46 = vld [vmem:[%s2162_s27 + $0x560] sm:$0xff] }
  0x4b   : > { %250 = vst [vmem:[%s2167_s20 + $0x160] sm:$0xff] %v249_v44  ;;  %v255_v47 = vld [vmem:[%s2162_s27 + $0x568] sm:$0xff]  ;;  %252 = vst [vmem:[%s2167_s20 + $0x168] sm:$0xff] %v251_v45  ;;  %v257_v48 = vld [vmem:[%s2162_s27 + $0x570] sm:$0xff] }
  0x4c   : > { %254 = vst [vmem:[%s2167_s20 + $0x170] sm:$0xff] %v253_v46  ;;  %256 = vst [vmem:[%s2167_s20 + $0x178] sm:$0xff] %v255_v47  ;;  %v259_v49 = vld [vmem:[%s2162_s27 + $0x578] sm:$0xff]  ;;  %v261_v50 = vld [vmem:[%s2162_s27 + $0x580] sm:$0xff] }
  0x4d   : > { %258 = vst [vmem:[%s2167_s20 + $0x180] sm:$0xff] %v257_v48  ;;  %260 = vst [vmem:[%s2167_s20 + $0x188] sm:$0xff] %v259_v49  ;;  %v263_v51 = vld [vmem:[%s2162_s27 + $0x588] sm:$0xff]  ;;  %v265_v52 = vld [vmem:[%s2162_s27 + $0x590] sm:$0xff] }
  0x4e   : > { %262 = vst [vmem:[%s2167_s20 + $0x190] sm:$0xff] %v261_v50  ;;  %v267_v53 = vld [vmem:[%s2162_s27 + $0x598] sm:$0xff]  ;;  %264 = vst [vmem:[%s2167_s20 + $0x198] sm:$0xff] %v263_v51  ;;  %v269_v54 = vld [vmem:[%s2162_s27 + $0x5a0] sm:$0xff] }
  0x4f   : > { %266 = vst [vmem:[%s2167_s20 + $0x1a0] sm:$0xff] %v265_v52  ;;  %268 = vst [vmem:[%s2167_s20 + $0x1a8] sm:$0xff] %v267_v53  ;;  %v271_v55 = vld [vmem:[%s2162_s27 + $0x5a8] sm:$0xff] }
  0x50   : > { %270 = vst [vmem:[%s2167_s20 + $0x1b0] sm:$0xff] %v269_v54  ;;  %272 = vst [vmem:[%s2167_s20 + $0x1b8] sm:$0xff] %v271_v55 }
  0x51 PF: > { %p2603_p4 = scmp.ne.s32.totalorder %s2600_s22, 0 }
  0x52   : > { %p2604_p5 = scmp.eq.s32.totalorder (!%p2603_p4), %s2100_s15, 0 }
  0x53   : > { %281 = sbr.rel (%p2603_p4) target bundleno = 382 (0x17e), region = 51 }
  0x5a   : > { %2044 = dma.done.wait (%p2604_p5), [#allocation3], 128   ;;  %p2605_p8 = pmov %p2604_p5 }
  0x5b   : > { %s288_s14 = sand.u32 1, %s2049_s12   ;;  %v2062_v56 = vmov 0   ;;  %vm644_vm0 = vcmask 1043456   ;;  %vm645_vm1 = vcmask 1044480   ;;  %v2063_v57 = vmov 65535   ;;  %v2304_v6 = vld [vmem:[#allocation2] sm:$0xff]  }
  0x5c   : > { %2046 = vsyncadd (%p2605_p8), [#allocation3], 4294967168  ;;  %s1876_s24 = smul.u32 448, %s288_s14  ;;  %764 = vmatprep.mubr.bf16.mxu0 %v2062_v56  ;;  %807 = vmatprep.mubr.bf16.mxu1 %v2062_v56  ;;  %v646_v58 = vsel %vm644_vm0, 4294967295, %v2063_v57  ;;  %vm640_vm2 = vcmask 203776   ;;  %p2606_p9 = scmp.ne.s32.totalorder %s2599_s21, 0 }
  0x5d   : > { %1917 = vset.pattern.permute.xlu0 %v2062_v56  ;;  %v2296_v63 = vsel %vm645_vm1, %v646_v58, 0  ;;  %s1877_s4 = smul.u32 224, %s288_s14 }
  0x5e   : > { %s2290_s22 = scalar_lea.vmem [#allocation4], %s1876_s24  ;;  %s1874_s5 = smul.u32 (%p2606_p9), 112, %s2100_s15 }
  0x5f   : > { %v1918_v59 = vld [vmem:[%s2290_s22 + $0x4] ss:$112 sps:$4 sm:$0xff]   ;;  %v1920_v60 = vld [vmem:[%s2290_s22 + $0xc] ss:$112 sps:$4 sm:$0xff]   ;;  %v1922_v61 = vld [vmem:[%s2290_s22] ss:$112 sps:$4 sm:$0xff]  }
  0x60   : > { %732 = vmatprep.subr.bf16.mxu0 %v1918_v59  ;;  %v1923_v62 = vld [vmem:[%s2290_s22 + $0x8] ss:$112 sps:$4 sm:$0xff]   ;;  %775 = vmatprep.subr.bf16.mxu1 %v1920_v60  ;;  %v1924_v0 = vld [vmem:[%s2290_s22 + $0xe4] ss:$112 sps:$4 sm:$0x1f]   ;;  %s2440_s12 = scalar_lea.vmem [#allocation5], %s1877_s4  ;;  %s2530_s7 = scalar_lea.vmem (%p2606_p9), %s2595_s3, %s1874_s5 }
  0x61   : > { %733 = vmatpush1.bf16.msra.mxu0 %v1922_v61  ;;  %776 = vmatpush1.bf16.msra.mxu1 %v1923_v62  ;;  %v1926_v1 = vld [vmem:[%s2290_s22 + $0xec] ss:$112 sps:$4 sm:$0x1f]   ;;  %v652_v2 = vand.u32 %v1924_v0, %v2296_v63  ;;  %v1928_v3 = vld [vmem:[%s2290_s22 + $0xe0] ss:$112 sps:$4 sm:$0x1f]  }
  0x62   : > { %v1929_v4 = vld [vmem:[%s2290_s22 + $0xe8] ss:$112 sps:$4 sm:$0x1f]   ;;  %v658_v5 = vand.u32 %v1926_v1, %v2296_v63  ;;  %v649_v7 = vand.u32 %v1928_v3, %v2296_v63  ;;  %v1931_v9 = vld [vmem:[%s2290_s22 + $0x10] ss:$112 sps:$4 sm:$0xff]  }
  0x63   : > { %734 = vmatprep.subr.bf16.mxu0 %v652_v2  ;;  %v655_v8 = vand.u32 %v1929_v4, %v2296_v63  ;;  %v1933_v10 = vld [vmem:[%s2290_s22 + $0x14] ss:$112 sps:$4 sm:$0xff]   ;;  %v1934_v11 = vld [vmem:[%s2290_s22 + $0x18] ss:$112 sps:$4 sm:$0xff]   ;;  %v1936_v12 = vld [vmem:[%s2290_s22 + $0x1c] ss:$112 sps:$4 sm:$0xff]  }
  0x64   : > { %777 = vmatprep.subr.bf16.mxu1 %v658_v5  ;;  %v1937_v13 = vld [vmem:[%s2290_s22 + $0xf0] ss:$112 sps:$4 sm:$0x1f]   ;;  %v1939_v14 = vld [vmem:[%s2290_s22 + $0xf4] ss:$112 sps:$4 sm:$0x1f]  }
  0x65   : > { %735 = vmatpush1.bf16.msra.mxu0 %v649_v7  ;;  %778 = vmatpush1.bf16.msra.mxu1 %v655_v8  ;;  %v1940_v15 = vld [vmem:[%s2290_s22 + $0xf8] ss:$112 sps:$4 sm:$0x1f]   ;;  %v664_v16 = vand.u32 %v1939_v14, %v2296_v63  ;;  %v1942_v17 = vld [vmem:[%s2290_s22 + $0xfc] ss:$112 sps:$4 sm:$0x1f]   ;;  %v661_v18 = vand.u32 %v1937_v13, %v2296_v63 }
  0x66   : > { %818 = vmatprep.subr.bf16.mxu0 %v1933_v10  ;;  %861 = vmatprep.subr.bf16.mxu1 %v1936_v12  ;;  %v667_v19 = vand.u32 %v1940_v15, %v2296_v63  ;;  %v670_v20 = vand.u32 %v1942_v17, %v2296_v63  ;;  %v1945_v21 = vld [vmem:[%s2290_s22 + $0x24] ss:$112 sps:$4 sm:$0xff]   ;;  %v1948_v22 = vld [vmem:[%s2290_s22 + $0x2c] ss:$112 sps:$4 sm:$0xff]   ;;  %v1943_v23 = vld [vmem:[%s2290_s22 + $0x20] ss:$112 sps:$4 sm:$0xff]  }
  0x67   : > { %v1946_v24 = vld [vmem:[%s2290_s22 + $0x28] ss:$112 sps:$4 sm:$0xff]   ;;  %v1949_v25 = vld [vmem:[%s2290_s22 + $0x100] ss:$112 sps:$4 sm:$0x1f]  }
  0x68   : > { %1800 = vmatmul.mubr.msk.bf16.vlgmr.msra.gmra.mrb[0].mxu0 %vm640_vm2, %v2304_v6  ;;  %1801 = vmatmul.mubr.msk.bf16.vlgmr.msra.gmra.mrb[0].mxu1 %vm640_vm2, %v2304_v6  ;;  %v1951_v26 = vld [vmem:[%s2290_s22 + $0x104] ss:$112 sps:$4 sm:$0x1f]   ;;  %v1952_v27 = vld [vmem:[%s2290_s22 + $0x108] ss:$112 sps:$4 sm:$0x1f]   ;;  %v673_v32 = vand.u32 %v1949_v25, %v2296_v63 }
  0x69   : > { %819 = vmatpush1.bf16.msra.mxu0 %v1931_v9  ;;  %862 = vmatpush1.bf16.msra.mxu1 %v1934_v11  ;;  %v1954_v28 = vld [vmem:[%s2290_s22 + $0x10c] ss:$112 sps:$4 sm:$0x1f]   ;;  %v676_v29 = vand.u32 %v1951_v26, %v2296_v63  ;;  %v1957_v31 = vld [vmem:[%s2290_s22 + $0x34] ss:$112 sps:$4 sm:$0xff]   ;;  %v679_v33 = vand.u32 %v1952_v27, %v2296_v63 }
  0x6a   : > { %820 = vmatprep.subr.bf16.mxu0 %v664_v16  ;;  %850 = vmatprep.mubr.bf16.mxu0 %v2062_v56  ;;  %v682_v30 = vand.u32 %v1954_v28, %v2296_v63  ;;  %v1960_v34 = vld [vmem:[%s2290_s22 + $0x3c] ss:$112 sps:$4 sm:$0xff]   ;;  %v1963_v35 = vld [vmem:[%s2290_s22 + $0x114] ss:$112 sps:$4 sm:$0x1f]  }
  0x6b   : > { %893 = vmatprep.mubr.bf16.mxu1 %v2062_v56  ;;  %863 = vmatprep.subr.bf16.mxu1 %v670_v20  ;;  %v1955_v36 = vld [vmem:[%s2290_s22 + $0x30] ss:$112 sps:$4 sm:$0xff]   ;;  %v1966_v37 = vld [vmem:[%s2290_s22 + $0x11c] ss:$112 sps:$4 sm:$0x1f]   ;;  %v688_v41 = vand.u32 %v1963_v35, %v2296_v63 }
  0x6c   : > { %v1958_v38 = vld [vmem:[%s2290_s22 + $0x38] ss:$112 sps:$4 sm:$0xff]   ;;  %v1961_v39 = vld [vmem:[%s2290_s22 + $0x110] ss:$112 sps:$4 sm:$0x1f]   ;;  %v694_v42 = vand.u32 %v1966_v37, %v2296_v63 }
  0x6d   : > { %821 = vmatpush1.bf16.msra.mxu0 %v661_v18  ;;  %864 = vmatpush1.bf16.msra.mxu1 %v667_v19  ;;  %v1964_v40 = vld [vmem:[%s2290_s22 + $0x118] ss:$112 sps:$4 sm:$0x1f]   ;;  %v1969_v43 = vld [vmem:[%s2290_s22 + $0x44] ss:$112 sps:$4 sm:$0xff]   ;;  %v685_v44 = vand.u32 %v1961_v39, %v2296_v63 }
  0x6e   : > { %904 = vmatprep.subr.bf16.mxu0 %v1945_v21  ;;  %947 = vmatprep.subr.bf16.mxu1 %v1948_v22  ;;  %v691_v45 = vand.u32 %v1964_v40, %v2296_v63  ;;  %v1975_v46 = vld [vmem:[%s2290_s22 + $0x124] ss:$112 sps:$4 sm:$0x1f]   ;;  %v1972_v47 = vld [vmem:[%s2290_s22 + $0x4c] ss:$112 sps:$4 sm:$0xff]  }
  0x6f   : > { %v1978_v48 = vld [vmem:[%s2290_s22 + $0x12c] ss:$112 sps:$4 sm:$0x1f]   ;;  %v1967_v49 = vld [vmem:[%s2290_s22 + $0x40] ss:$112 sps:$4 sm:$0xff]   ;;  %v700_v53 = vand.u32 %v1975_v46, %v2296_v63 }
  0x70   : > { %1802 = vmatmul.mubr.msk.bf16.vlgmr.msra.gmra.mrb[4].mxu0 %vm640_vm2, %v2304_v6  ;;  %1803 = vmatmul.mubr.msk.bf16.vlgmr.msra.gmra.mrb[4].mxu1 %vm640_vm2, %v2304_v6  ;;  %v1970_v50 = vld [vmem:[%s2290_s22 + $0x48] ss:$112 sps:$4 sm:$0xff]   ;;  %v1973_v51 = vld [vmem:[%s2290_s22 + $0x120] ss:$112 sps:$4 sm:$0x1f]   ;;  %v706_v54 = vand.u32 %v1978_v48, %v2296_v63 }
  0x71   : > { %905 = vmatpush1.bf16.msra.mxu0 %v1943_v23  ;;  %948 = vmatpush1.bf16.msra.mxu1 %v1946_v24  ;;  %v1976_v52 = vld [vmem:[%s2290_s22 + $0x128] ss:$112 sps:$4 sm:$0x1f]   ;;  %v1981_v55 = vld [vmem:[%s2290_s22 + $0x54] ss:$112 sps:$4 sm:$0xff]   ;;  %v697_v57 = vand.u32 %v1973_v51, %v2296_v63 }
  0x72   : > { %906 = vmatprep.subr.bf16.mxu0 %v676_v29  ;;  %949 = vmatprep.subr.bf16.mxu1 %v682_v30  ;;  %v703_v58 = vand.u32 %v1976_v52, %v2296_v63  ;;  %v1984_v59 = vld [vmem:[%s2290_s22 + $0x5c] ss:$112 sps:$4 sm:$0xff]   ;;  %v1987_v60 = vld [vmem:[%s2290_s22 + $0x134] ss:$112 sps:$4 sm:$0x1f]  }
  0x73   : > { %936 = vmatprep.mubr.bf16.mxu0 %v2062_v56  ;;  %979 = vmatprep.mubr.bf16.mxu1 %v2062_v56  ;;  %v1990_v61 = vld [vmem:[%s2290_s22 + $0x13c] ss:$112 sps:$4 sm:$0x1f]   ;;  %v1979_v0 = vld [vmem:[%s2290_s22 + $0x50] ss:$112 sps:$4 sm:$0xff]   ;;  %v712_v4 = vand.u32 %v1987_v60, %v2296_v63 }
  0x74   : > { %v371_v62 = vld [vmem:[%s2594_s2] sm:$0xff]  ;;  %v1985_v2 = vld [vmem:[%s2290_s22 + $0x130] ss:$112 sps:$4 sm:$0x1f]   ;;  %v718_v5 = vand.u32 %v1990_v61, %v2296_v63  ;;  %v1993_v9 = vld [vmem:[%s2290_s22 + $0x64] ss:$112 sps:$4 sm:$0xff]  }
  0x75   : > { %907 = vmatpush1.bf16.msra.mxu0 %v673_v32  ;;  %950 = vmatpush1.bf16.msra.mxu1 %v679_v33  ;;  %v1982_v1 = vld [vmem:[%s2290_s22 + $0x58] ss:$112 sps:$4 sm:$0xff]   ;;  %v709_v7 = vand.u32 %v1985_v2, %v2296_v63  ;;  %v1996_v10 = vld [vmem:[%s2290_s22 + $0x6c] ss:$112 sps:$4 sm:$0xff]   ;;  %v372_v11 = vld [vmem:[%s2594_s2 + $0x8] sm:$0xff] }
  0x76   : > { %990 = vmatprep.subr.bf16.mxu0 %v1957_v31  ;;  %1033 = vmatprep.subr.bf16.mxu1 %v1960_v34  ;;  %v1988_v3 = vld [vmem:[%s2290_s22 + $0x138] ss:$112 sps:$4 sm:$0x1f]   ;;  %v1999_v12 = vld [vmem:[%s2290_s22 + $0x144] ss:$112 sps:$4 sm:$0x1f]  }
  0x77   : > { %375 = vperm.xlu0 %1917, %v371_v62   ;;  %v715_v8 = vand.u32 %v1988_v3, %v2296_v63  ;;  %v2002_v13 = vld [vmem:[%s2290_s22 + $0x14c] ss:$112 sps:$4 sm:$0x1f]   ;;  %v1991_v14 = vld [vmem:[%s2290_s22 + $0x60] ss:$112 sps:$4 sm:$0xff]   ;;  %v724_v18 = vand.u32 %v1999_v12, %v2296_v63 }
  0x78   : > { %1804 = vmatmul.mubr.msk.bf16.vlgmr.msra.gmra.mrb[8].mxu0 %vm640_vm2, %v2304_v6  ;;  %1805 = vmatmul.mubr.msk.bf16.vlgmr.msra.gmra.mrb[8].mxu1 %vm640_vm2, %v2304_v6  ;;  %v1994_v15 = vld [vmem:[%s2290_s22 + $0x68] ss:$112 sps:$4 sm:$0xff]   ;;  %v1997_v16 = vld [vmem:[%s2290_s22 + $0x140] ss:$112 sps:$4 sm:$0x1f]   ;;  %v730_v19 = vand.u32 %v2002_v13, %v2296_v63 }
  0x79   : > { %991 = vmatpush1.bf16.msra.mxu0 %v1955_v36  ;;  %1034 = vmatpush1.bf16.msra.mxu1 %v1958_v38  ;;  %v2000_v17 = vld [vmem:[%s2290_s22 + $0x148] ss:$112 sps:$4 sm:$0x1f]   ;;  %v721_v20 = vand.u32 %v1997_v16, %v2296_v63 }
  0x7a   : > { %992 = vmatprep.subr.bf16.mxu0 %v688_v41  ;;  %1035 = vmatprep.subr.bf16.mxu1 %v694_v42  ;;  %v727_v21 = vand.u32 %v2000_v17, %v2296_v63 }
  0x7b   : > { %1022 = vmatprep.mubr.bf16.mxu0 %v2062_v56  ;;  %1065 = vmatprep.mubr.bf16.mxu1 %v2062_v56 }
  0x7c   : > { %380 = vperm.xlu0 %1917, %v372_v11  }
  0x7d   : > { %993 = vmatpush1.bf16.msra.mxu0 %v685_v44  ;;  %1036 = vmatpush1.bf16.msra.mxu1 %v691_v45 }
  0x7e   : > { %1076 = vmatprep.subr.bf16.mxu0 %v1969_v43  ;;  %1119 = vmatprep.subr.bf16.mxu1 %v1972_v47 }
  0x80   : > { %1806 = vmatmul.mubr.msk.bf16.vlgmr.msra.gmra.mrb[12].mxu0 %vm640_vm2, %v2304_v6  ;;  %1807 = vmatmul.mubr.msk.bf16.vlgmr.msra.gmra.mrb[12].mxu1 %vm640_vm2, %v2304_v6 }
  0x81   : > { %1077 = vmatpush1.bf16.msra.mxu0 %v1967_v49  ;;  %1120 = vmatpush1.bf16.msra.mxu1 %v1970_v50 }
  0x82   : > { %1078 = vmatprep.subr.bf16.mxu0 %v700_v53  ;;  %1121 = vmatprep.subr.bf16.mxu1 %v706_v54 }
  0x83   : > { %1108 = vmatprep.mubr.bf16.mxu0 %v2062_v56  ;;  %1151 = vmatprep.mubr.bf16.mxu1 %v2062_v56 }
  0x85   : > { %1079 = vmatpush1.bf16.msra.mxu0 %v697_v57  ;;  %1122 = vmatpush1.bf16.msra.mxu1 %v703_v58 }
  0x86   : > { %1162 = vmatprep.subr.bf16.mxu0 %v1981_v55  ;;  %1205 = vmatprep.subr.bf16.mxu1 %v1984_v59 }
  0x88   : > { %1808 = vmatmul.mubr.msk.bf16.vlgmr.msra.gmra.mrb[16].mxu0 %vm640_vm2, %v2304_v6  ;;  %1809 = vmatmul.mubr.msk.bf16.vlgmr.msra.gmra.mrb[16].mxu1 %vm640_vm2, %v2304_v6 }
  0x89   : > { %1163 = vmatpush1.bf16.msra.mxu0 %v1979_v0  ;;  %1206 = vmatpush1.bf16.msra.mxu1 %v1982_v1 }
  0x8a   : > { %1164 = vmatprep.subr.bf16.mxu0 %v712_v4  ;;  %1207 = vmatprep.subr.bf16.mxu1 %v718_v5 }
  0x8b   : > { %1194 = vmatprep.mubr.bf16.mxu0 %v2062_v56  ;;  %1237 = vmatprep.mubr.bf16.mxu1 %v2062_v56 }
  0x8d   : > { %1165 = vmatpush1.bf16.msra.mxu0 %v709_v7  ;;  %1208 = vmatpush1.bf16.msra.mxu1 %v715_v8 }
  0x8e   : > { %1248 = vmatprep.subr.bf16.mxu0 %v1993_v9  ;;  %1291 = vmatprep.subr.bf16.mxu1 %v1996_v10 }
  0x90   : > { %1810 = vmatmul.mubr.msk.bf16.vlgmr.msra.gmra.mrb[20].mxu0 %vm640_vm2, %v2304_v6  ;;  %1811 = vmatmul.mubr.msk.bf16.vlgmr.msra.gmra.mrb[20].mxu1 %vm640_vm2, %v2304_v6 }
  0x91   : > { %1249 = vmatpush1.bf16.msra.mxu0 %v1991_v14  ;;  %1292 = vmatpush1.bf16.msra.mxu1 %v1994_v15 }
  0x92   : > { %1250 = vmatprep.subr.bf16.mxu0 %v724_v18  ;;  %1293 = vmatprep.subr.bf16.mxu1 %v730_v19 }
  0x93   : > { %1280 = vmatprep.mubr.bf16.mxu0 %v2062_v56  ;;  %1323 = vmatprep.mubr.bf16.mxu1 %v2062_v56 }
  0x95   : > { %1251 = vmatpush1.bf16.msra.mxu0 %v721_v20  ;;  %1294 = vmatpush1.bf16.msra.mxu1 %v727_v21 }
  0x98   : > { %1812 = vmatmul.mubr.msk.bf16.vlgmr.msra.gmra.mrb[24].mxu0 %vm640_vm2, %v2304_v6  ;;  %1813 = vmatmul.mubr.msk.bf16.vlgmr.msra.gmra.mrb[24].mxu1 %vm640_vm2, %v2304_v6 }
  0xf6   : > { %v2426_v22 = vpop.permute.xlu0 %375 }
  0xfb   : > { %v2428_v23 = vpop.permute.xlu0 %380 }
 0x13b   : > { %v766_v24 = vpop.f32.mrb[0].mxu0  ;;  %v809_v63 = vpop.f32.mrb[0].mxu1 }
 0x13c   : > { %v767_v25 = vadd.f32 %v766_v24, %v2426_v22  ;;  %v810_v26 = vadd.f32 %v809_v63, %v2426_v22  ;;  %v768_v56 = vpop.f32.mrb[1].mxu0  ;;  %v811_v27 = vpop.f32.mrb[1].mxu1 }
 0x13d   : > { %v769_v28 = vadd.f32 %v768_v56, %v2426_v22  ;;  %v812_v29 = vadd.f32 %v811_v27, %v2426_v22  ;;  %v770_v30 = vpop.f32.mrb[2].mxu0  ;;  %v813_v6 = vpop.f32.mrb[2].mxu1 }
 0x13e   : > { %v1334_v31 = vmax.f32 %v767_v25, 0.0  ;;  %v1336_v32 = vmax.f32 %v810_v26, 0.0  ;;  %v771_v33 = vadd.f32 %v770_v30, %v2428_v23  ;;  %v814_v34 = vadd.f32 %v813_v6, %v2428_v23  ;;  %v772_v35 = vpop.f32.mrb[3].mxu0  ;;  %v815_v36 = vpop.f32.mrb[3].mxu1 }
 0x13f   : > { %v1335_v37 = vmax.f32 %v769_v28, 0.0  ;;  %v1337_v38 = vmax.f32 %v812_v29, 0.0  ;;  %v773_v39 = vadd.f32 %v772_v35, %v2428_v23  ;;  %v816_v40 = vadd.f32 %v815_v36, %v2428_v23 }
 0x140   : > { %v1362_v41 = vmax.f32 %v771_v33, 0.0  ;;  %v1364_v42 = vmax.f32 %v814_v34, 0.0 }
 0x141   : > { %v1846_v43 = vpack.c.bf16 %v1335_v37, %v1334_v31  ;;  %v1847_v44 = vpack.c.bf16 %v1337_v38, %v1336_v32  ;;  %v1363_v45 = vmax.f32 %v773_v39, 0.0  ;;  %v1365_v46 = vmax.f32 %v816_v40, 0.0 }
 0x143   : > { %1558 = vst [vmem:[%s2440_s12] sm:$0xff] %v1846_v43  ;;  %1559 = vst [vmem:[%s2440_s12 + $0x8] sm:$0xff] %v1847_v44  ;;  %v1860_v47 = vpack.c.bf16 %v1363_v45, %v1362_v41  ;;  %v1861_v48 = vpack.c.bf16 %v1365_v46, %v1364_v42  ;;  %v852_v49 = vpop.f32.mrb[4].mxu0  ;;  %v895_v50 = vpop.f32.mrb[4].mxu1 }
 0x144   : > { %v853_v51 = vadd.f32 %v852_v49, %v2426_v22  ;;  %v896_v52 = vadd.f32 %v895_v50, %v2426_v22  ;;  %v854_v53 = vpop.f32.mrb[5].mxu0  ;;  %v897_v54 = vpop.f32.mrb[5].mxu1 }
 0x145   : > { %1572 = vst [vmem:[%s2440_s12 + $0x70] sm:$0xff] %v1860_v47  ;;  %1573 = vst [vmem:[%s2440_s12 + $0x78] sm:$0xff] %v1861_v48  ;;  %v855_v55 = vadd.f32 %v854_v53, %v2426_v22  ;;  %v898_v57 = vadd.f32 %v897_v54, %v2426_v22  ;;  %v856_v58 = vpop.f32.mrb[6].mxu0  ;;  %v899_v59 = vpop.f32.mrb[6].mxu1 }
 0x146   : > { %v1338_v60 = vmax.f32 %v853_v51, 0.0  ;;  %v1340_v61 = vmax.f32 %v896_v52, 0.0  ;;  %v857_v62 = vadd.f32 %v856_v58, %v2428_v23  ;;  %v900_v0 = vadd.f32 %v899_v59, %v2428_v23  ;;  %v858_v1 = vpop.f32.mrb[7].mxu0  ;;  %v901_v2 = vpop.f32.mrb[7].mxu1 }
 0x147   : > { %v1339_v3 = vmax.f32 %v855_v55, 0.0  ;;  %v1341_v4 = vmax.f32 %v898_v57, 0.0  ;;  %v859_v5 = vadd.f32 %v858_v1, %v2428_v23  ;;  %v902_v7 = vadd.f32 %v901_v2, %v2428_v23 }
 0x148   : > { %v1366_v8 = vmax.f32 %v857_v62, 0.0  ;;  %v1368_v9 = vmax.f32 %v900_v0, 0.0 }
 0x149   : > { %v1848_v10 = vpack.c.bf16 %v1339_v3, %v1338_v60  ;;  %v1849_v11 = vpack.c.bf16 %v1341_v4, %v1340_v61  ;;  %v1367_v12 = vmax.f32 %v859_v5, 0.0  ;;  %v1369_v13 = vmax.f32 %v902_v7, 0.0 }
 0x14b   : > { %1560 = vst [vmem:[%s2440_s12 + $0x10] sm:$0xff] %v1848_v10  ;;  %1561 = vst [vmem:[%s2440_s12 + $0x18] sm:$0xff] %v1849_v11  ;;  %v1862_v14 = vpack.c.bf16 %v1367_v12, %v1366_v8  ;;  %v1863_v15 = vpack.c.bf16 %v1369_v13, %v1368_v9  ;;  %v938_v16 = vpop.f32.mrb[8].mxu0  ;;  %v981_v17 = vpop.f32.mrb[8].mxu1 }
 0x14c   : > { %v939_v18 = vadd.f32 %v938_v16, %v2426_v22  ;;  %v982_v19 = vadd.f32 %v981_v17, %v2426_v22  ;;  %v940_v20 = vpop.f32.mrb[9].mxu0  ;;  %v983_v21 = vpop.f32.mrb[9].mxu1 }
 0x14d   : > { %1574 = vst [vmem:[%s2440_s12 + $0x80] sm:$0xff] %v1862_v14  ;;  %1575 = vst [vmem:[%s2440_s12 + $0x88] sm:$0xff] %v1863_v15  ;;  %v941_v24 = vadd.f32 %v940_v20, %v2426_v22  ;;  %v984_v63 = vadd.f32 %v983_v21, %v2426_v22  ;;  %v942_v25 = vpop.f32.mrb[10].mxu0  ;;  %v985_v26 = vpop.f32.mrb[10].mxu1 }
 0x14e   : > { %v1342_v56 = vmax.f32 %v939_v18, 0.0  ;;  %v1344_v27 = vmax.f32 %v982_v19, 0.0  ;;  %v943_v28 = vadd.f32 %v942_v25, %v2428_v23  ;;  %v986_v29 = vadd.f32 %v985_v26, %v2428_v23  ;;  %v944_v30 = vpop.f32.mrb[11].mxu0  ;;  %v987_v6 = vpop.f32.mrb[11].mxu1 }
 0x14f   : > { %v1343_v31 = vmax.f32 %v941_v24, 0.0  ;;  %v1345_v32 = vmax.f32 %v984_v63, 0.0  ;;  %v945_v33 = vadd.f32 %v944_v30, %v2428_v23  ;;  %v988_v34 = vadd.f32 %v987_v6, %v2428_v23 }
 0x150   : > { %v1370_v35 = vmax.f32 %v943_v28, 0.0  ;;  %v1372_v36 = vmax.f32 %v986_v29, 0.0 }
 0x151   : > { %v1850_v37 = vpack.c.bf16 %v1343_v31, %v1342_v56  ;;  %v1851_v38 = vpack.c.bf16 %v1345_v32, %v1344_v27  ;;  %v1371_v39 = vmax.f32 %v945_v33, 0.0  ;;  %v1373_v40 = vmax.f32 %v988_v34, 0.0 }
 0x153   : > { %1562 = vst [vmem:[%s2440_s12 + $0x20] sm:$0xff] %v1850_v37  ;;  %1563 = vst [vmem:[%s2440_s12 + $0x28] sm:$0xff] %v1851_v38  ;;  %v1864_v41 = vpack.c.bf16 %v1371_v39, %v1370_v35  ;;  %v1865_v42 = vpack.c.bf16 %v1373_v40, %v1372_v36  ;;  %v1024_v43 = vpop.f32.mrb[12].mxu0  ;;  %v1067_v44 = vpop.f32.mrb[12].mxu1 }
 0x154   : > { %v1025_v45 = vadd.f32 %v1024_v43, %v2426_v22  ;;  %v1068_v46 = vadd.f32 %v1067_v44, %v2426_v22  ;;  %v1026_v47 = vpop.f32.mrb[13].mxu0  ;;  %v1069_v48 = vpop.f32.mrb[13].mxu1 }
 0x155   : > { %1576 = vst [vmem:[%s2440_s12 + $0x90] sm:$0xff] %v1864_v41  ;;  %1577 = vst [vmem:[%s2440_s12 + $0x98] sm:$0xff] %v1865_v42  ;;  %v1027_v49 = vadd.f32 %v1026_v47, %v2426_v22  ;;  %v1070_v50 = vadd.f32 %v1069_v48, %v2426_v22  ;;  %v1028_v51 = vpop.f32.mrb[14].mxu0  ;;  %v1071_v52 = vpop.f32.mrb[14].mxu1 }
 0x156   : > { %v1346_v53 = vmax.f32 %v1025_v45, 0.0  ;;  %v1348_v54 = vmax.f32 %v1068_v46, 0.0  ;;  %v1029_v55 = vadd.f32 %v1028_v51, %v2428_v23  ;;  %v1072_v57 = vadd.f32 %v1071_v52, %v2428_v23  ;;  %v1030_v58 = vpop.f32.mrb[15].mxu0  ;;  %v1073_v59 = vpop.f32.mrb[15].mxu1 }
 0x157   : > { %v1347_v60 = vmax.f32 %v1027_v49, 0.0  ;;  %v1349_v61 = vmax.f32 %v1070_v50, 0.0  ;;  %v1031_v62 = vadd.f32 %v1030_v58, %v2428_v23  ;;  %v1074_v0 = vadd.f32 %v1073_v59, %v2428_v23 }
 0x158   : > { %v1374_v1 = vmax.f32 %v1029_v55, 0.0  ;;  %v1376_v2 = vmax.f32 %v1072_v57, 0.0 }
 0x159   : > { %v1852_v3 = vpack.c.bf16 %v1347_v60, %v1346_v53  ;;  %v1853_v4 = vpack.c.bf16 %v1349_v61, %v1348_v54  ;;  %v1375_v5 = vmax.f32 %v1031_v62, 0.0  ;;  %v1377_v7 = vmax.f32 %v1074_v0, 0.0 }
 0x15b   : > { %1564 = vst [vmem:[%s2440_s12 + $0x30] sm:$0xff] %v1852_v3  ;;  %1565 = vst [vmem:[%s2440_s12 + $0x38] sm:$0xff] %v1853_v4  ;;  %v1866_v8 = vpack.c.bf16 %v1375_v5, %v1374_v1  ;;  %v1867_v9 = vpack.c.bf16 %v1377_v7, %v1376_v2  ;;  %v1110_v10 = vpop.f32.mrb[16].mxu0  ;;  %v1153_v11 = vpop.f32.mrb[16].mxu1 }
 0x15c   : > { %v1111_v12 = vadd.f32 %v1110_v10, %v2426_v22  ;;  %v1154_v13 = vadd.f32 %v1153_v11, %v2426_v22  ;;  %v1112_v14 = vpop.f32.mrb[17].mxu0  ;;  %v1155_v15 = vpop.f32.mrb[17].mxu1 }
 0x15d   : > { %1578 = vst [vmem:[%s2440_s12 + $0xa0] sm:$0xff] %v1866_v8  ;;  %1579 = vst [vmem:[%s2440_s12 + $0xa8] sm:$0xff] %v1867_v9  ;;  %v1113_v16 = vadd.f32 %v1112_v14, %v2426_v22  ;;  %v1156_v17 = vadd.f32 %v1155_v15, %v2426_v22  ;;  %v1114_v18 = vpop.f32.mrb[18].mxu0  ;;  %v1157_v19 = vpop.f32.mrb[18].mxu1 }
 0x15e   : > { %v1350_v20 = vmax.f32 %v1111_v12, 0.0  ;;  %v1352_v21 = vmax.f32 %v1154_v13, 0.0  ;;  %v1115_v24 = vadd.f32 %v1114_v18, %v2428_v23  ;;  %v1158_v63 = vadd.f32 %v1157_v19, %v2428_v23  ;;  %v1116_v25 = vpop.f32.mrb[19].mxu0  ;;  %v1159_v26 = vpop.f32.mrb[19].mxu1 }
 0x15f   : > { %v1351_v56 = vmax.f32 %v1113_v16, 0.0  ;;  %v1353_v27 = vmax.f32 %v1156_v17, 0.0  ;;  %v1117_v28 = vadd.f32 %v1116_v25, %v2428_v23  ;;  %v1160_v29 = vadd.f32 %v1159_v26, %v2428_v23 }
 0x160   : > { %v1378_v30 = vmax.f32 %v1115_v24, 0.0  ;;  %v1380_v6 = vmax.f32 %v1158_v63, 0.0 }
 0x161   : > { %v1854_v31 = vpack.c.bf16 %v1351_v56, %v1350_v20  ;;  %v1855_v32 = vpack.c.bf16 %v1353_v27, %v1352_v21  ;;  %v1379_v33 = vmax.f32 %v1117_v28, 0.0  ;;  %v1381_v34 = vmax.f32 %v1160_v29, 0.0 }
 0x163   : > { %1566 = vst [vmem:[%s2440_s12 + $0x40] sm:$0xff] %v1854_v31  ;;  %1567 = vst [vmem:[%s2440_s12 + $0x48] sm:$0xff] %v1855_v32  ;;  %v1868_v35 = vpack.c.bf16 %v1379_v33, %v1378_v30  ;;  %v1869_v36 = vpack.c.bf16 %v1381_v34, %v1380_v6  ;;  %v1196_v37 = vpop.f32.mrb[20].mxu0  ;;  %v1239_v38 = vpop.f32.mrb[20].mxu1  ;;  %v1610_v6 = vld [vmem:[%s2440_s12 + $0x8] sm:$0xff] (%p2606_p9)  ;;  %v1612_v31 = vld [vmem:[%s2440_s12 + $0x10] sm:$0xff] (%p2606_p9) }
 0x164   : > { %v1197_v39 = vadd.f32 %v1196_v37, %v2426_v22  ;;  %v1240_v40 = vadd.f32 %v1239_v38, %v2426_v22  ;;  %v1198_v41 = vpop.f32.mrb[21].mxu0  ;;  %v1241_v42 = vpop.f32.mrb[21].mxu1  ;;  %v1614_v32 = vld [vmem:[%s2440_s12 + $0x18] sm:$0xff] (%p2606_p9)  ;;  %v1616_v33 = vld [vmem:[%s2440_s12 + $0x20] sm:$0xff] (%p2606_p9)  ;;  %v1618_v34 = vld [vmem:[%s2440_s12 + $0x28] sm:$0xff] (%p2606_p9)  ;;  %1611 = vst [vmem:[%s2530_s7 + $0x8] sm:$0xff] (%p2606_p9), %v1610_v6 }
 0x165   : > { %1580 = vst [vmem:[%s2440_s12 + $0xb0] sm:$0xff] %v1868_v35  ;;  %1581 = vst [vmem:[%s2440_s12 + $0xb8] sm:$0xff] %v1869_v36  ;;  %v1199_v43 = vadd.f32 %v1198_v41, %v2426_v22  ;;  %v1242_v44 = vadd.f32 %v1241_v42, %v2426_v22  ;;  %v1200_v45 = vpop.f32.mrb[22].mxu0  ;;  %v1243_v46 = vpop.f32.mrb[22].mxu1  ;;  %v1620_v35 = vld [vmem:[%s2440_s12 + $0x30] sm:$0xff] (%p2606_p9)  ;;  %v1622_v36 = vld [vmem:[%s2440_s12 + $0x38] sm:$0xff] (%p2606_p9) }
 0x166   : > { %v1354_v47 = vmax.f32 %v1197_v39, 0.0  ;;  %v1356_v48 = vmax.f32 %v1240_v40, 0.0  ;;  %v1201_v49 = vadd.f32 %v1200_v45, %v2428_v23  ;;  %v1244_v50 = vadd.f32 %v1243_v46, %v2428_v23  ;;  %v1202_v51 = vpop.f32.mrb[23].mxu0  ;;  %v1245_v52 = vpop.f32.mrb[23].mxu1  ;;  %1613 = vst [vmem:[%s2530_s7 + $0x10] sm:$0xff] (%p2606_p9), %v1612_v31  ;;  %1615 = vst [vmem:[%s2530_s7 + $0x18] sm:$0xff] (%p2606_p9), %v1614_v32 }
 0x167   : > { %v1355_v53 = vmax.f32 %v1199_v43, 0.0  ;;  %v1357_v54 = vmax.f32 %v1242_v44, 0.0  ;;  %v1203_v55 = vadd.f32 %v1202_v51, %v2428_v23  ;;  %v1246_v57 = vadd.f32 %v1245_v52, %v2428_v23  ;;  %1617 = vst [vmem:[%s2530_s7 + $0x20] sm:$0xff] (%p2606_p9), %v1616_v33  ;;  %1619 = vst [vmem:[%s2530_s7 + $0x28] sm:$0xff] (%p2606_p9), %v1618_v34  ;;  %v1636_v43 = vld [vmem:[%s2440_s12 + $0x70] sm:$0xff] (%p2606_p9)  ;;  %v1638_v44 = vld [vmem:[%s2440_s12 + $0x78] sm:$0xff] (%p2606_p9) }
 0x168   : > { %v1382_v58 = vmax.f32 %v1201_v49, 0.0  ;;  %v1384_v59 = vmax.f32 %v1244_v50, 0.0  ;;  %1621 = vst [vmem:[%s2530_s7 + $0x30] sm:$0xff] (%p2606_p9), %v1620_v35  ;;  %1623 = vst [vmem:[%s2530_s7 + $0x38] sm:$0xff] (%p2606_p9), %v1622_v36  ;;  %v1640_v45 = vld [vmem:[%s2440_s12 + $0x80] sm:$0xff] (%p2606_p9)  ;;  %v1642_v46 = vld [vmem:[%s2440_s12 + $0x88] sm:$0xff] (%p2606_p9) }
 0x169   : > { %v1856_v60 = vpack.c.bf16 %v1355_v53, %v1354_v47  ;;  %v1857_v61 = vpack.c.bf16 %v1357_v54, %v1356_v48  ;;  %v1383_v62 = vmax.f32 %v1203_v55, 0.0  ;;  %v1385_v0 = vmax.f32 %v1246_v57, 0.0  ;;  %1637 = vst [vmem:[%s2530_s7 + $0x1c0] sm:$0xff] (%p2606_p9), %v1636_v43  ;;  %1639 = vst [vmem:[%s2530_s7 + $0x1c8] sm:$0xff] (%p2606_p9), %v1638_v44  ;;  %v1644_v47 = vld [vmem:[%s2440_s12 + $0x90] sm:$0xff] (%p2606_p9)  ;;  %v1646_v48 = vld [vmem:[%s2440_s12 + $0x98] sm:$0xff] (%p2606_p9) }
 0x16a   : > { %v1624_v37 = vld [vmem:[%s2440_s12 + $0x40] sm:$0xff] (%p2606_p9)  ;;  %v1626_v38 = vld [vmem:[%s2440_s12 + $0x48] sm:$0xff] (%p2606_p9)  ;;  %1641 = vst [vmem:[%s2530_s7 + $0x1d0] sm:$0xff] (%p2606_p9), %v1640_v45  ;;  %1643 = vst [vmem:[%s2530_s7 + $0x1d8] sm:$0xff] (%p2606_p9), %v1642_v46 }
 0x16b   : > { %1568 = vst [vmem:[%s2440_s12 + $0x50] sm:$0xff] %v1856_v60  ;;  %1569 = vst [vmem:[%s2440_s12 + $0x58] sm:$0xff] %v1857_v61  ;;  %v1870_v1 = vpack.c.bf16 %v1383_v62, %v1382_v58  ;;  %v1871_v2 = vpack.c.bf16 %v1385_v0, %v1384_v59  ;;  %v1282_v3 = vpop.f32.mrb[24].mxu0  ;;  %v1325_v4 = vpop.f32.mrb[24].mxu1  ;;  %v1648_v49 = vld [vmem:[%s2440_s12 + $0xa0] sm:$0xff] (%p2606_p9)  ;;  %v1650_v50 = vld [vmem:[%s2440_s12 + $0xa8] sm:$0xff] (%p2606_p9) }
 0x16c   : > { %v1283_v5 = vadd.f32 %v1282_v3, %v2426_v22  ;;  %v1326_v7 = vadd.f32 %v1325_v4, %v2426_v22  ;;  %v1284_v8 = vpop.f32.mrb[25].mxu0  ;;  %v1327_v9 = vpop.f32.mrb[25].mxu1  ;;  %1625 = vst [vmem:[%s2530_s7 + $0x40] sm:$0xff] (%p2606_p9), %v1624_v37  ;;  %1627 = vst [vmem:[%s2530_s7 + $0x48] sm:$0xff] (%p2606_p9), %v1626_v38  ;;  %v1652_v51 = vld [vmem:[%s2440_s12 + $0xb0] sm:$0xff] (%p2606_p9)  ;;  %v1654_v52 = vld [vmem:[%s2440_s12 + $0xb8] sm:$0xff] (%p2606_p9) }
 0x16d   : > { %1582 = vst [vmem:[%s2440_s12 + $0xc0] sm:$0xff] %v1870_v1  ;;  %1583 = vst [vmem:[%s2440_s12 + $0xc8] sm:$0xff] %v1871_v2  ;;  %v1285_v10 = vadd.f32 %v1284_v8, %v2426_v22  ;;  %v1328_v11 = vadd.f32 %v1327_v9, %v2426_v22  ;;  %v1286_v12 = vpop.f32.mrb[26].mxu0  ;;  %v1329_v13 = vpop.f32.mrb[26].mxu1 }
 0x16e   : > { %v1358_v14 = vmax.f32 %v1283_v5, 0.0  ;;  %v1360_v15 = vmax.f32 %v1326_v7, 0.0  ;;  %v1287_v16 = vadd.f32 %v1286_v12, %v2428_v23  ;;  %v1330_v17 = vadd.f32 %v1329_v13, %v2428_v23  ;;  %v1288_v18 = vpop.f32.mrb[27].mxu0  ;;  %v1331_v19 = vpop.f32.mrb[27].mxu1  ;;  %1645 = vst [vmem:[%s2530_s7 + $0x1e0] sm:$0xff] (%p2606_p9), %v1644_v47  ;;  %1647 = vst [vmem:[%s2530_s7 + $0x1e8] sm:$0xff] (%p2606_p9), %v1646_v48 }
 0x16f   : > { %v1359_v20 = vmax.f32 %v1285_v10, 0.0  ;;  %v1361_v21 = vmax.f32 %v1328_v11, 0.0  ;;  %v1289_v24 = vadd.f32 %v1288_v18, %v2428_v23  ;;  %v1332_v22 = vadd.f32 %v1331_v19, %v2428_v23  ;;  %1592 = sbr.rel (!%p2606_p9) target bundleno = 382 (0x17e), region = 63  ;;  %v1608_v23 = vld [vmem:[%s2440_s12] sm:$0xff] (%p2606_p9)  ;;  %1649 = vst [vmem:[%s2530_s7 + $0x1f0] sm:$0xff] (%p2606_p9), %v1648_v49  ;;  %1651 = vst [vmem:[%s2530_s7 + $0x1f8] sm:$0xff] (%p2606_p9), %v1650_v50 }
 0x170   : > { %v1386_v63 = vmax.f32 %v1287_v16, 0.0  ;;  %v1388_v25 = vmax.f32 %v1330_v17, 0.0  ;;  %1609 = vst [vmem:[%s2530_s7] sm:$0xff] (%p2606_p9), %v1608_v23  ;;  %1653 = vst [vmem:[%s2530_s7 + $0x200] sm:$0xff] (%p2606_p9), %v1652_v51 }
 0x171   : > { %v1858_v26 = vpack.c.bf16 %v1359_v20, %v1358_v14  ;;  %v1859_v56 = vpack.c.bf16 %v1361_v21, %v1360_v15  ;;  %v1387_v27 = vmax.f32 %v1289_v24, 0.0  ;;  %v1389_v28 = vmax.f32 %v1332_v22, 0.0  ;;  %1655 = vst [vmem:[%s2530_s7 + $0x208] sm:$0xff] (%p2606_p9), %v1654_v52 }
 0x172   : > { %v1628_v39 = vld [vmem:[%s2440_s12 + $0x50] sm:$0xff] (%p2606_p9)  ;;  %v1630_v40 = vld [vmem:[%s2440_s12 + $0x58] sm:$0xff] (%p2606_p9) }
 0x173   : > { %1570 = vst [vmem:[%s2440_s12 + $0x60] sm:$0xff] %v1858_v26  ;;  %1571 = vst [vmem:[%s2440_s12 + $0x68] sm:$0xff] %v1859_v56  ;;  %v1872_v29 = vpack.c.bf16 %v1387_v27, %v1386_v63  ;;  %v1873_v30 = vpack.c.bf16 %v1389_v28, %v1388_v25 }
 0x174   : > { %1629 = vst [vmem:[%s2530_s7 + $0x50] sm:$0xff] (%p2606_p9), %v1628_v39  ;;  %1631 = vst [vmem:[%s2530_s7 + $0x58] sm:$0xff] (%p2606_p9), %v1630_v40  ;;  %v1656_v53 = vld [vmem:[%s2440_s12 + $0xc0] sm:$0xff] (%p2606_p9)  ;;  %v1658_v54 = vld [vmem:[%s2440_s12 + $0xc8] sm:$0xff] (%p2606_p9) }
 0x175   : > { %1584 = vst [vmem:[%s2440_s12 + $0xd0] sm:$0xff] %v1872_v29  ;;  %1585 = vst [vmem:[%s2440_s12 + $0xd8] sm:$0xff] %v1873_v30 }
 0x176   : > { %1657 = vst [vmem:[%s2530_s7 + $0x210] sm:$0xff] %v1656_v53  ;;  %1659 = vst [vmem:[%s2530_s7 + $0x218] sm:$0xff] %v1658_v54 }
 0x17a   : > { %v1632_v41 = vld [vmem:[%s2440_s12 + $0x60] sm:$0xff]  ;;  %v1634_v42 = vld [vmem:[%s2440_s12 + $0x68] sm:$0xff] }
 0x17b   : > { %1633 = vst [vmem:[%s2530_s7 + $0x60] sm:$0xff] %v1632_v41  ;;  %1635 = vst [vmem:[%s2530_s7 + $0x68] sm:$0xff] %v1634_v42 }
 0x17c   : > { %v1660_v55 = vld [vmem:[%s2440_s12 + $0xd0] sm:$0xff]  ;;  %v1662_v57 = vld [vmem:[%s2440_s12 + $0xd8] sm:$0xff] }
 0x17d   : > { %1661 = vst [vmem:[%s2530_s7 + $0x220] sm:$0xff] %v1660_v55  ;;  %1663 = vst [vmem:[%s2530_s7 + $0x228] sm:$0xff] %v1662_v57 }
 0x17e PF: > { %p11_p11 = scmp.ge.s32.totalorder %s2103_s16, 6   ;;  %s2607_s12 = smov %s2053_s13 }
 0x17f   : > { %s2608_s13 = smov %s2113_s19  ;;  %s2609_s14 = smov %s2103_s16 }
 0x180   :  { %13 = sbr.rel (!%p11_p11) target bundleno = 2 (0x2), region = 118 }
 0x187   :  { %1679 = vsyncpa [#allocation3], 1 }
 0x188   :  { %1681 = vsyncpa [#allocation3 + $0x1], 1 }

// kernel: network_forward.17
= control target key start
LH: loop header
LB: loop body
LE: loop exit
PB: predicated region body
PF: predicated region fallthrough
CT: control target
= control target key end

     0   :  { %v7068_v59 = vmov 0   ;;  %vm3585_vm0 = vcmask 130048   ;;  %s9321_s1 = inlined_call_operand.vmem [shape: bf16[400,2944], index: 1, kind: input, shape index: {}]   ;;  %s9322_s0 = inlined_call_operand.vmem [shape: bf16[32,400], index: 0, kind: input, shape index: {}]   ;;  %s9323_s2 = inlined_call_operand.vmem [shape: f32[32,1], index: 2, kind: input, shape index: {}]   ;;  %s9324_s3 = inlined_call_operand.vmem [shape: bf16[32,2944], index: 3, kind: output, shape index: {}]  }
   0x1   :  { %v6190_v0 = vld [vmem:[%s9321_s1 + $0x4] ss:$92 sps:$4 sm:$0xff]   ;;  %v6192_v1 = vld [vmem:[%s9321_s1 + $0xc] ss:$92 sps:$4 sm:$0xff]   ;;  %v6196_v4 = vld [vmem:[%s9321_s1 + $0xbc] ss:$92 sps:$4 sm:$0xff]   ;;  %6188 = vset.pattern.permute.xlu0 %v7068_v59  ;;  %6189 = vset.pattern.permute.xlu1 %v7068_v59 }
   0x2   :  { %3592 = vmatprep.subr.bf16.mxu0 %v6190_v0  ;;  %v6194_v2 = vld [vmem:[%s9321_s1] ss:$92 sps:$4 sm:$0xff]   ;;  %v6195_v3 = vld [vmem:[%s9321_s1 + $0x8] ss:$92 sps:$4 sm:$0xff]   ;;  %3698 = vmatprep.subr.bf16.mxu1 %v6192_v1  ;;  %v6200_v6 = vld [vmem:[%s9321_s1 + $0xb8] ss:$92 sps:$4 sm:$0xff]  }
   0x3   :  { %3593 = vmatpush1.bf16.msra.mxu0 %v6194_v2  ;;  %3699 = vmatpush1.bf16.msra.mxu1 %v6195_v3  ;;  %v6198_v5 = vld [vmem:[%s9321_s1 + $0xc4] ss:$92 sps:$4 sm:$0xff]   ;;  %v6202_v8 = vld [vmem:[%s9321_s1 + $0x174] ss:$92 sps:$4 sm:$0xff]   ;;  %v6204_v9 = vld [vmem:[%s9321_s1 + $0x17c] ss:$92 sps:$4 sm:$0xff]  }
   0x4   :  { %3594 = vmatprep.subr.bf16.mxu0 %v6196_v4  ;;  %v6201_v7 = vld [vmem:[%s9321_s1 + $0xc0] ss:$92 sps:$4 sm:$0xff]   ;;  %3700 = vmatprep.subr.bf16.mxu1 %v6198_v5  ;;  %v6206_v10 = vld [vmem:[%s9321_s1 + $0x170] ss:$92 sps:$4 sm:$0xff]   ;;  %v6207_v11 = vld [vmem:[%s9321_s1 + $0x178] ss:$92 sps:$4 sm:$0xff]  }
   0x5   :  { %v6208_v12 = vld [vmem:[%s9321_s1 + $0x22c] ss:$92 sps:$4 sm:$0xff]   ;;  %v6210_v13 = vld [vmem:[%s9321_s1 + $0x234] ss:$92 sps:$4 sm:$0xff]   ;;  %v6214_v16 = vld [vmem:[%s9321_s1 + $0x2e4] ss:$92 sps:$4 sm:$0xff]  }
   0x6   :  { %v6212_v14 = vld [vmem:[%s9321_s1 + $0x228] ss:$92 sps:$4 sm:$0xff]   ;;  %v6213_v15 = vld [vmem:[%s9321_s1 + $0x230] ss:$92 sps:$4 sm:$0xff]   ;;  %v6218_v18 = vld [vmem:[%s9321_s1 + $0x2e0] ss:$92 sps:$4 sm:$0xff]  }
   0x7   :  { %3595 = vmatpush1.bf16.msra.mxu0 %v6200_v6  ;;  %3701 = vmatpush1.bf16.msra.mxu1 %v6201_v7  ;;  %v6216_v17 = vld [vmem:[%s9321_s1 + $0x2ec] ss:$92 sps:$4 sm:$0xff]   ;;  %v6220_v20 = vld [vmem:[%s9321_s1 + $0x39c] ss:$92 sps:$4 sm:$0xff]   ;;  %v6222_v21 = vld [vmem:[%s9321_s1 + $0x3a4] ss:$92 sps:$4 sm:$0xff]  }
   0x8   :  { %3596 = vmatprep.subr.bf16.mxu0 %v6202_v8  ;;  %3702 = vmatprep.subr.bf16.mxu1 %v6204_v9  ;;  %v6219_v19 = vld [vmem:[%s9321_s1 + $0x2e8] ss:$92 sps:$4 sm:$0xff]   ;;  %v6224_v22 = vld [vmem:[%s9321_s1 + $0x398] ss:$92 sps:$4 sm:$0xff]   ;;  %v6225_v23 = vld [vmem:[%s9321_s1 + $0x3a0] ss:$92 sps:$4 sm:$0xff]  }
   0x9   :  { %v6226_v24 = vld [vmem:[%s9321_s1 + $0x454] ss:$92 sps:$4 sm:$0xff]   ;;  %v6228_v25 = vld [vmem:[%s9321_s1 + $0x45c] ss:$92 sps:$4 sm:$0xff]   ;;  %v6232_v28 = vld [vmem:[%s9321_s1 + $0x50c] ss:$92 sps:$4 sm:$0xff]  }
   0xa   :  { %v6230_v26 = vld [vmem:[%s9321_s1 + $0x450] ss:$92 sps:$4 sm:$0xff]   ;;  %v6231_v27 = vld [vmem:[%s9321_s1 + $0x458] ss:$92 sps:$4 sm:$0xff]   ;;  %v6236_v30 = vld [vmem:[%s9321_s1 + $0x508] ss:$92 sps:$4 sm:$0xff]  }
   0xb   :  { %3597 = vmatpush1.bf16.msra.mxu0 %v6206_v10  ;;  %3703 = vmatpush1.bf16.msra.mxu1 %v6207_v11  ;;  %v6234_v29 = vld [vmem:[%s9321_s1 + $0x514] ss:$92 sps:$4 sm:$0xff]   ;;  %v6238_v32 = vld [vmem:[%s9321_s1 + $0x5c4] ss:$92 sps:$4 sm:$0xff]   ;;  %v6240_v33 = vld [vmem:[%s9321_s1 + $0x5cc] ss:$92 sps:$4 sm:$0xff]  }
   0xc   :  { %3598 = vmatprep.subr.bf16.mxu0 %v6208_v12  ;;  %3704 = vmatprep.subr.bf16.mxu1 %v6210_v13  ;;  %v6237_v31 = vld [vmem:[%s9321_s1 + $0x510] ss:$92 sps:$4 sm:$0xff]   ;;  %v6242_v34 = vld [vmem:[%s9321_s1 + $0x5c0] ss:$92 sps:$4 sm:$0xff]   ;;  %v6243_v35 = vld [vmem:[%s9321_s1 + $0x5c8] ss:$92 sps:$4 sm:$0xff]  }
   0xd   :  { %v6244_v36 = vld [vmem:[%s9321_s1 + $0x67c] ss:$92 sps:$4 sm:$0xff]   ;;  %v6246_v37 = vld [vmem:[%s9321_s1 + $0x684] ss:$92 sps:$4 sm:$0xff]   ;;  %v6250_v40 = vld [vmem:[%s9321_s1 + $0x734] ss:$92 sps:$4 sm:$0xff]  }
   0xe   :  { %v6248_v38 = vld [vmem:[%s9321_s1 + $0x678] ss:$92 sps:$4 sm:$0xff]   ;;  %v6249_v39 = vld [vmem:[%s9321_s1 + $0x680] ss:$92 sps:$4 sm:$0xff]   ;;  %v6254_v42 = vld [vmem:[%s9321_s1 + $0x730] ss:$92 sps:$4 sm:$0xff]  }
   0xf   :  { %3599 = vmatpush1.bf16.msra.mxu0 %v6212_v14  ;;  %3705 = vmatpush1.bf16.msra.mxu1 %v6213_v15  ;;  %v6252_v41 = vld [vmem:[%s9321_s1 + $0x73c] ss:$92 sps:$4 sm:$0xff]   ;;  %v6256_v44 = vld [vmem:[%s9321_s1 + $0x7ec] ss:$92 sps:$4 sm:$0xff]   ;;  %v6258_v45 = vld [vmem:[%s9321_s1 + $0x7f4] ss:$92 sps:$4 sm:$0xff]  }
  0x10   :  { %3600 = vmatprep.subr.bf16.mxu0 %v6214_v16  ;;  %3706 = vmatprep.subr.bf16.mxu1 %v6216_v17  ;;  %v6255_v43 = vld [vmem:[%s9321_s1 + $0x738] ss:$92 sps:$4 sm:$0xff]   ;;  %v6260_v46 = vld [vmem:[%s9321_s1 + $0x7e8] ss:$92 sps:$4 sm:$0xff]   ;;  %v6261_v48 = vld [vmem:[%s9321_s1 + $0x7f0] ss:$92 sps:$4 sm:$0xff]  }
  0x11   :  { %v7233_v47 = vld [vmem:[%s9322_s0 + $0x4] ss:$16 sps:$4 sm:$0xff]   ;;  %v6264_v50 = vld [vmem:[%s9321_s1 + $0x8ac] ss:$92 sps:$4 sm:$0xff]   ;;  %v6266_v51 = vld [vmem:[%s9321_s1 + $0x8a0] ss:$92 sps:$4 sm:$0xff]  }
  0x12   :  { %v6262_v49 = vld [vmem:[%s9321_s1 + $0x8a4] ss:$92 sps:$4 sm:$0xff]   ;;  %3624 = vmatprep.mubr.bf16.mxu0 %v7233_v47  ;;  %3730 = vmatprep.mubr.bf16.mxu1 %v7233_v47  ;;  %v6268_v53 = vld [vmem:[%s9321_s1 + $0x95c] ss:$92 sps:$4 sm:$0xff]   ;;  %v6274_v57 = vld [vmem:[%s9321_s1 + $0xa14] ss:$92 sps:$4 sm:$0xff]  }
  0x13   :  { %3601 = vmatpush1.bf16.msra.mxu0 %v6218_v18  ;;  %3707 = vmatpush1.bf16.msra.mxu1 %v6219_v19  ;;  %v6267_v52 = vld [vmem:[%s9321_s1 + $0x8a8] ss:$92 sps:$4 sm:$0xff]   ;;  %v6272_v55 = vld [vmem:[%s9321_s1 + $0x958] ss:$92 sps:$4 sm:$0xff]   ;;  %v6273_v56 = vld [vmem:[%s9321_s1 + $0x960] ss:$92 sps:$4 sm:$0xff]  }
  0x14   :  { %3602 = vmatprep.subr.bf16.mxu0 %v6220_v20  ;;  %3708 = vmatprep.subr.bf16.mxu1 %v6222_v21  ;;  %v6270_v54 = vld [vmem:[%s9321_s1 + $0x964] ss:$92 sps:$4 sm:$0xff]   ;;  %v6276_v58 = vld [vmem:[%s9321_s1 + $0xa1c] ss:$92 sps:$4 sm:$0xff]   ;;  %v6278_v60 = vld [vmem:[%s9321_s1 + $0xa10] ss:$92 sps:$4 sm:$0xff]  }
  0x15   :  { %v6279_v61 = vld [vmem:[%s9321_s1 + $0xa18] ss:$92 sps:$4 sm:$0xff]   ;;  %v6280_v62 = vld [vmem:[%s9321_s1 + $0xacc] ss:$92 sps:$4 sm:$0xff]   ;;  %v6290_v2 = vld [vmem:[%s9321_s1 + $0xb84] ss:$92 sps:$4 sm:$0xff]  }
  0x16   :  { %v6282_v63 = vld [vmem:[%s9321_s1 + $0xad4] ss:$92 sps:$4 sm:$0xff]   ;;  %v6284_v0 = vld [vmem:[%s9321_s1 + $0xac8] ss:$92 sps:$4 sm:$0xff]   ;;  %v6288_v4 = vld [vmem:[%s9321_s1 + $0xb80] ss:$92 sps:$4 sm:$0xff]  }
  0x17   :  { %3603 = vmatpush1.bf16.msra.mxu0 %v6224_v22  ;;  %3709 = vmatpush1.bf16.msra.mxu1 %v6225_v23  ;;  %v6285_v1 = vld [vmem:[%s9321_s1 + $0xad0] ss:$92 sps:$4 sm:$0xff]   ;;  %v6291_v5 = vld [vmem:[%s9321_s1 + $0xb88] ss:$92 sps:$4 sm:$0xff]   ;;  %v6297_v7 = vld [vmem:[%s9321_s1 + $0xc3c] ss:$92 sps:$4 sm:$0xff]  }
  0x18   :  { %3604 = vmatprep.subr.bf16.mxu0 %v6226_v24  ;;  %3710 = vmatprep.subr.bf16.mxu1 %v6228_v25  ;;  %v6293_v3 = vld [vmem:[%s9321_s1 + $0xb8c] ss:$92 sps:$4 sm:$0xff]   ;;  %v7305_v6 = vld [vmem:[%s9322_s0] ss:$16 sps:$4 sm:$0xff]   ;;  %v7316_v9 = vld [vmem:[%s9322_s0 + $0x24] ss:$16 sps:$4 sm:$0xff]  }
  0x19   :  { %v6300_v8 = vld [vmem:[%s9321_s1 + $0xc44] ss:$92 sps:$4 sm:$0xff]   ;;  %v6295_v10 = vld [vmem:[%s9321_s1 + $0xc38] ss:$92 sps:$4 sm:$0xff]   ;;  %v6301_v14 = vld [vmem:[%s9321_s1 + $0xcf0] ss:$92 sps:$4 sm:$0xff]  }
  0x1a   :  { %v6298_v11 = vld [vmem:[%s9321_s1 + $0xc40] ss:$92 sps:$4 sm:$0xff]   ;;  %v6303_v12 = vld [vmem:[%s9321_s1 + $0xcf4] ss:$92 sps:$4 sm:$0xff]   ;;  %v6309_v17 = vld [vmem:[%s9321_s1 + $0xdac] ss:$92 sps:$4 sm:$0xff]  }
  0x1b   :  { %3605 = vmatpush1.bf16.msra.mxu0 %v6230_v26  ;;  %3711 = vmatpush1.bf16.msra.mxu1 %v6231_v27  ;;  %v6306_v13 = vld [vmem:[%s9321_s1 + $0xcfc] ss:$92 sps:$4 sm:$0xff]   ;;  %v7343_v16 = vld [vmem:[%s9322_s0 + $0x20] ss:$16 sps:$4 sm:$0xff]   ;;  %v6307_v20 = vld [vmem:[%s9321_s1 + $0xda8] ss:$92 sps:$4 sm:$0xff]  }
  0x1c   :  { %3606 = vmatprep.subr.bf16.mxu0 %v6232_v28  ;;  %3712 = vmatprep.subr.bf16.mxu1 %v6234_v29  ;;  %v6304_v15 = vld [vmem:[%s9321_s1 + $0xcf8] ss:$92 sps:$4 sm:$0xff]   ;;  %v7354_v19 = vld [vmem:[%s9322_s0 + $0xc] ss:$16 sps:$4 sm:$0xff]   ;;  %v6315_v22 = vld [vmem:[%s9321_s1 + $0xe64] ss:$92 sps:$4 sm:$0xff]  }
  0x1d   :  { %v6312_v18 = vld [vmem:[%s9321_s1 + $0xdb4] ss:$92 sps:$4 sm:$0xff]   ;;  %v6318_v23 = vld [vmem:[%s9321_s1 + $0xe6c] ss:$92 sps:$4 sm:$0xff]   ;;  %v6313_v24 = vld [vmem:[%s9321_s1 + $0xe60] ss:$92 sps:$4 sm:$0xff]  }
  0x1e   :  { %v6310_v21 = vld [vmem:[%s9321_s1 + $0xdb0] ss:$92 sps:$4 sm:$0xff]   ;;  %v6316_v25 = vld [vmem:[%s9321_s1 + $0xe68] ss:$92 sps:$4 sm:$0xff]   ;;  %v6321_v26 = vld [vmem:[%s9321_s1 + $0xf1c] ss:$92 sps:$4 sm:$0xff]  }
  0x1f   :  { %3607 = vmatpush1.bf16.msra.mxu0 %v6236_v30  ;;  %3713 = vmatpush1.bf16.msra.mxu1 %v6237_v31  ;;  %v6324_v27 = vld [vmem:[%s9321_s1 + $0xf24] ss:$92 sps:$4 sm:$0xff]   ;;  %v6319_v28 = vld [vmem:[%s9321_s1 + $0xf18] ss:$92 sps:$4 sm:$0xff]  }
  0x20   :  { %3608 = vmatprep.subr.bf16.mxu0 %v6238_v32  ;;  %3714 = vmatprep.subr.bf16.mxu1 %v6240_v33  ;;  %v6322_v29 = vld [vmem:[%s9321_s1 + $0xf20] ss:$92 sps:$4 sm:$0xff]   ;;  %v6327_v30 = vld [vmem:[%s9321_s1 + $0xfd4] ss:$92 sps:$4 sm:$0xff]  }
  0x21   :  { %v6330_v31 = vld [vmem:[%s9321_s1 + $0xfdc] ss:$92 sps:$4 sm:$0xff]   ;;  %v6325_v32 = vld [vmem:[%s9321_s1 + $0xfd0] ss:$92 sps:$4 sm:$0xff]  }
  0x22   :  { %v6328_v33 = vld [vmem:[%s9321_s1 + $0xfd8] ss:$92 sps:$4 sm:$0xff]  }
  0x23   :  { %3609 = vmatpush1.bf16.msra.mxu0 %v6242_v34  ;;  %3715 = vmatpush1.bf16.msra.mxu1 %v6243_v35  ;;  %v6336_v34 = vld [vmem:[%s9321_s1 + $0x108c] ss:$92 sps:$4 sm:$0xff]   ;;  %v6339_v35 = vld [vmem:[%s9321_s1 + $0x1094] ss:$92 sps:$4 sm:$0xff]  }
  0x24   :  { %3610 = vmatprep.subr.bf16.mxu0 %v6244_v36  ;;  %3716 = vmatprep.subr.bf16.mxu1 %v6246_v37  ;;  %v6334_v36 = vld [vmem:[%s9321_s1 + $0x1088] ss:$92 sps:$4 sm:$0xff]   ;;  %v6337_v37 = vld [vmem:[%s9321_s1 + $0x1090] ss:$92 sps:$4 sm:$0xff]  }
  0x27   :  { %3611 = vmatpush1.bf16.msra.mxu0 %v6248_v38  ;;  %3717 = vmatpush1.bf16.msra.mxu1 %v6249_v39  ;;  %v6342_v38 = vld [vmem:[%s9321_s1 + $0x1144] ss:$92 sps:$4 sm:$0xff]   ;;  %v6345_v39 = vld [vmem:[%s9321_s1 + $0x114c] ss:$92 sps:$4 sm:$0xff]  }
  0x28   :  { %3612 = vmatprep.subr.bf16.mxu0 %v6250_v40  ;;  %3718 = vmatprep.subr.bf16.mxu1 %v6252_v41  ;;  %v6340_v40 = vld [vmem:[%s9321_s1 + $0x1140] ss:$92 sps:$4 sm:$0xff]   ;;  %v6343_v41 = vld [vmem:[%s9321_s1 + $0x1148] ss:$92 sps:$4 sm:$0xff]  }
  0x2b   :  { %3613 = vmatpush1.bf16.msra.mxu0 %v6254_v42  ;;  %3719 = vmatpush1.bf16.msra.mxu1 %v6255_v43  ;;  %v6351_v42 = vld [vmem:[%s9321_s1 + $0x14] ss:$92 sps:$4 sm:$0xff]   ;;  %v6354_v43 = vld [vmem:[%s9321_s1 + $0x1c] ss:$92 sps:$4 sm:$0xff]  }
  0x2c   :  { %3614 = vmatprep.subr.bf16.mxu0 %v6256_v44  ;;  %3720 = vmatprep.subr.bf16.mxu1 %v6258_v45  ;;  %v7437_v44 = vld [vmem:[%s9322_s0 + $0x8] ss:$16 sps:$4 sm:$0xff]   ;;  %v6349_v45 = vld [vmem:[%s9321_s1 + $0x10] ss:$92 sps:$4 sm:$0xff]  }
  0x2f   :  { %3615 = vmatpush1.bf16.msra.mxu0 %v6260_v46  ;;  %3721 = vmatpush1.bf16.msra.mxu1 %v6261_v48  ;;  %v6352_v46 = vld [vmem:[%s9321_s1 + $0x18] ss:$92 sps:$4 sm:$0xff]   ;;  %v6357_v48 = vld [vmem:[%s9321_s1 + $0xcc] ss:$92 sps:$4 sm:$0xff]  }
  0x30   :  { %3616 = vmatprep.subr.bf16.mxu0 %v6262_v49  ;;  %3722 = vmatprep.subr.bf16.mxu1 %v6264_v50  ;;  %v6360_v49 = vld [vmem:[%s9321_s1 + $0xd4] ss:$92 sps:$4 sm:$0xff]   ;;  %v7454_v50 = vld [vmem:[%s9322_s0 + $0x2c] ss:$16 sps:$4 sm:$0xff]  }
  0x33   :  { %3617 = vmatpush1.bf16.msra.mxu0 %v6266_v51  ;;  %3723 = vmatpush1.bf16.msra.mxu1 %v6267_v52  ;;  %v6355_v51 = vld [vmem:[%s9321_s1 + $0xc8] ss:$92 sps:$4 sm:$0xff]   ;;  %v6358_v52 = vld [vmem:[%s9321_s1 + $0xd0] ss:$92 sps:$4 sm:$0xff]  }
  0x34   :  { %3618 = vmatprep.subr.bf16.mxu0 %v6268_v53  ;;  %3724 = vmatprep.subr.bf16.mxu1 %v6270_v54  ;;  %v6366_v53 = vld [vmem:[%s9321_s1 + $0x184] ss:$92 sps:$4 sm:$0xff]   ;;  %v6369_v54 = vld [vmem:[%s9321_s1 + $0x18c] ss:$92 sps:$4 sm:$0xff]  }
  0x37   :  { %3619 = vmatpush1.bf16.msra.mxu0 %v6272_v55  ;;  %3725 = vmatpush1.bf16.msra.mxu1 %v6273_v56  ;;  %v7475_v55 = vld [vmem:[%s9322_s0 + $0x28] ss:$16 sps:$4 sm:$0xff]   ;;  %v6364_v56 = vld [vmem:[%s9321_s1 + $0x180] ss:$92 sps:$4 sm:$0xff]  }
  0x38   :  { %3620 = vmatprep.subr.bf16.mxu0 %v6274_v57  ;;  %3726 = vmatprep.subr.bf16.mxu1 %v6276_v58  ;;  %v6367_v57 = vld [vmem:[%s9321_s1 + $0x188] ss:$92 sps:$4 sm:$0xff]   ;;  %v6372_v58 = vld [vmem:[%s9321_s1 + $0x23c] ss:$92 sps:$4 sm:$0xff]  }
  0x3b   :  { %3621 = vmatpush1.bf16.msra.mxu0 %v6278_v60  ;;  %3727 = vmatpush1.bf16.msra.mxu1 %v6279_v61  ;;  %v6375_v60 = vld [vmem:[%s9321_s1 + $0x244] ss:$92 sps:$4 sm:$0xff]   ;;  %v6370_v61 = vld [vmem:[%s9321_s1 + $0x238] ss:$92 sps:$4 sm:$0xff]  }
  0x3c   :  { %3622 = vmatprep.subr.bf16.mxu0 %v6280_v62  ;;  %3728 = vmatprep.subr.bf16.mxu1 %v6282_v63  ;;  %v6373_v62 = vld [vmem:[%s9321_s1 + $0x240] ss:$92 sps:$4 sm:$0xff]   ;;  %v6378_v63 = vld [vmem:[%s9321_s1 + $0x2f4] ss:$92 sps:$4 sm:$0xff]  }
  0x3f   :  { %3623 = vmatpush1.bf16.msra.mxu0 %v6284_v0  ;;  %3729 = vmatpush1.bf16.msra.mxu1 %v6285_v1  ;;  %v6381_v0 = vld [vmem:[%s9321_s1 + $0x2fc] ss:$92 sps:$4 sm:$0xff]   ;;  %v6376_v1 = vld [vmem:[%s9321_s1 + $0x2f0] ss:$92 sps:$4 sm:$0xff]  }
  0x40   :  { %3645 = vmatprep.subr.bf16.mxu0 %v6290_v2  ;;  %3751 = vmatprep.subr.bf16.mxu1 %v6293_v3  ;;  %v6379_v2 = vld [vmem:[%s9321_s1 + $0x2f8] ss:$92 sps:$4 sm:$0xff]   ;;  %v6384_v3 = vld [vmem:[%s9321_s1 + $0x3ac] ss:$92 sps:$4 sm:$0xff]  }
  0x42   :  { %3625 = vmatmul.mubr.bf16.vlgmr.msra.gmra.mrb[0].mxu0 %v7305_v6  ;;  %3731 = vmatmul.mubr.bf16.vlgmr.msra.gmra.mrb[0].mxu1 %v7305_v6 }
  0x43   :  { %3646 = vmatpush1.bf16.msra.mxu0 %v6288_v4  ;;  %3752 = vmatpush1.bf16.msra.mxu1 %v6291_v5  ;;  %v6382_v4 = vld [vmem:[%s9321_s1 + $0x3a8] ss:$92 sps:$4 sm:$0xff]   ;;  %v6385_v5 = vld [vmem:[%s9321_s1 + $0x3b0] ss:$92 sps:$4 sm:$0xff]  }
  0x44   :  { %3647 = vmatprep.subr.bf16.mxu0 %v6297_v7  ;;  %3753 = vmatprep.subr.bf16.mxu1 %v6300_v8  ;;  %v6390_v7 = vld [vmem:[%s9321_s1 + $0x464] ss:$92 sps:$4 sm:$0xff]   ;;  %v6393_v8 = vld [vmem:[%s9321_s1 + $0x46c] ss:$92 sps:$4 sm:$0xff]  }
  0x45   :  { %3634 = vmatprep.mubr.bf16.mxu0 %v7316_v9  ;;  %3740 = vmatprep.mubr.bf16.mxu1 %v7316_v9 }
  0x47   :  { %3648 = vmatpush1.bf16.msra.mxu0 %v6295_v10  ;;  %3754 = vmatpush1.bf16.msra.mxu1 %v6298_v11  ;;  %v6388_v10 = vld [vmem:[%s9321_s1 + $0x460] ss:$92 sps:$4 sm:$0xff]   ;;  %v6391_v11 = vld [vmem:[%s9321_s1 + $0x468] ss:$92 sps:$4 sm:$0xff]  }
  0x48   :  { %3649 = vmatprep.subr.bf16.mxu0 %v6303_v12  ;;  %3755 = vmatprep.subr.bf16.mxu1 %v6306_v13  ;;  %v6396_v12 = vld [vmem:[%s9321_s1 + $0x51c] ss:$92 sps:$4 sm:$0xff]   ;;  %v6399_v13 = vld [vmem:[%s9321_s1 + $0x524] ss:$92 sps:$4 sm:$0xff]  }
  0x4a   :  { %3635 = vmatmul.mubr.bf16.gmra.mrb[4].mxu0 %v7343_v16  ;;  %3741 = vmatmul.mubr.bf16.gmra.mrb[4].mxu1 %v7343_v16 }
  0x4b   :  { %3650 = vmatpush1.bf16.msra.mxu0 %v6301_v14  ;;  %3756 = vmatpush1.bf16.msra.mxu1 %v6304_v15  ;;  %v6394_v14 = vld [vmem:[%s9321_s1 + $0x518] ss:$92 sps:$4 sm:$0xff]   ;;  %v6397_v15 = vld [vmem:[%s9321_s1 + $0x520] ss:$92 sps:$4 sm:$0xff]  }
  0x4c   :  { %3651 = vmatprep.subr.bf16.mxu0 %v6309_v17  ;;  %3757 = vmatprep.subr.bf16.mxu1 %v6312_v18  ;;  %v623_v17 = vld [vmem:[%s9323_s2] sm:$0xff]  ;;  %v6402_v18 = vld [vmem:[%s9321_s1 + $0x5d4] ss:$92 sps:$4 sm:$0xff]  }
  0x4d   :  { %5863 = vmatprep.mubr.msk.bf16.mxu0 %vm3585_vm0, %v7354_v19  ;;  %5865 = vmatprep.mubr.msk.bf16.mxu1 %vm3585_vm0, %v7354_v19 }
  0x4e   :  { %629 = vperm.xlu0 %6188, %v623_v17   ;;  %v6486_v17 = vld [vmem:[%s9321_s1 + $0xfe4] ss:$92 sps:$4 sm:$0xff]  }
  0x4f   :  { %3652 = vmatpush1.bf16.msra.mxu0 %v6307_v20  ;;  %3758 = vmatpush1.bf16.msra.mxu1 %v6310_v21  ;;  %v6405_v20 = vld [vmem:[%s9321_s1 + $0x5dc] ss:$92 sps:$4 sm:$0xff]   ;;  %v624_v21 = vld [vmem:[%s9323_s2 + $0x8] sm:$0xff] }
  0x50   :  { %3653 = vmatprep.subr.bf16.mxu0 %v6315_v22  ;;  %3759 = vmatprep.subr.bf16.mxu1 %v6318_v23  ;;  %v6400_v22 = vld [vmem:[%s9321_s1 + $0x5d0] ss:$92 sps:$4 sm:$0xff]   ;;  %v6403_v23 = vld [vmem:[%s9321_s1 + $0x5d8] ss:$92 sps:$4 sm:$0xff]  }
  0x52   :  { %634 = vperm.xlu0 %6188, %v624_v21   ;;  %v6487_v21 = vld [vmem:[%s9321_s1 + $0xfe8] ss:$92 sps:$4 sm:$0xff]  }
  0x53   :  { %3654 = vmatpush1.bf16.msra.mxu0 %v6313_v24  ;;  %3760 = vmatpush1.bf16.msra.mxu1 %v6316_v25  ;;  %v6408_v24 = vld [vmem:[%s9321_s1 + $0x68c] ss:$92 sps:$4 sm:$0xff]   ;;  %v6411_v25 = vld [vmem:[%s9321_s1 + $0x694] ss:$92 sps:$4 sm:$0xff]  }
  0x54   :  { %3655 = vmatprep.subr.bf16.mxu0 %v6321_v26  ;;  %3761 = vmatprep.subr.bf16.mxu1 %v6324_v27  ;;  %v625_v26 = vld [vmem:[%s9323_s2 + $0x10] sm:$0xff]  ;;  %v6406_v27 = vld [vmem:[%s9321_s1 + $0x688] ss:$92 sps:$4 sm:$0xff]  }
  0x55   :  { %639 = vperm.xlu1 %6189, %v625_v26   ;;  %v6498_v26 = vld [vmem:[%s9321_s1 + $0x1154] ss:$92 sps:$4 sm:$0xff]  }
  0x57   :  { %3656 = vmatpush1.bf16.msra.mxu0 %v6319_v28  ;;  %3762 = vmatpush1.bf16.msra.mxu1 %v6322_v29  ;;  %v6409_v28 = vld [vmem:[%s9321_s1 + $0x690] ss:$92 sps:$4 sm:$0xff]   ;;  %v6414_v29 = vld [vmem:[%s9321_s1 + $0x744] ss:$92 sps:$4 sm:$0xff]  }
  0x58   :  { %3657 = vmatprep.subr.bf16.mxu0 %v6327_v30  ;;  %3763 = vmatprep.subr.bf16.mxu1 %v6330_v31  ;;  %v6417_v30 = vld [vmem:[%s9321_s1 + $0x74c] ss:$92 sps:$4 sm:$0xff]   ;;  %v626_v31 = vld [vmem:[%s9323_s2 + $0x18] sm:$0xff] }
  0x59   :  { %644 = vperm.xlu1 %6189, %v626_v31   ;;  %v6507_v31 = vld [vmem:[%s9321_s1 + $0x2c] ss:$92 sps:$4 sm:$0xff]  }
  0x5b   :  { %3658 = vmatpush1.bf16.msra.mxu0 %v6325_v32  ;;  %3764 = vmatpush1.bf16.msra.mxu1 %v6328_v33  ;;  %v6412_v32 = vld [vmem:[%s9321_s1 + $0x740] ss:$92 sps:$4 sm:$0xff]   ;;  %v6415_v33 = vld [vmem:[%s9321_s1 + $0x748] ss:$92 sps:$4 sm:$0xff]  }
  0x5c   :  { %3659 = vmatprep.subr.bf16.mxu0 %v6336_v34  ;;  %3765 = vmatprep.subr.bf16.mxu1 %v6339_v35  ;;  %v6420_v34 = vld [vmem:[%s9321_s1 + $0x7fc] ss:$92 sps:$4 sm:$0xff]   ;;  %v6423_v35 = vld [vmem:[%s9321_s1 + $0x804] ss:$92 sps:$4 sm:$0xff]  }
  0x5f   :  { %3660 = vmatpush1.bf16.msra.mxu0 %v6334_v36  ;;  %3766 = vmatpush1.bf16.msra.mxu1 %v6337_v37  ;;  %v6418_v36 = vld [vmem:[%s9321_s1 + $0x7f8] ss:$92 sps:$4 sm:$0xff]   ;;  %v6421_v37 = vld [vmem:[%s9321_s1 + $0x800] ss:$92 sps:$4 sm:$0xff]  }
  0x60   :  { %3661 = vmatprep.subr.bf16.mxu0 %v6342_v38  ;;  %3767 = vmatprep.subr.bf16.mxu1 %v6345_v39  ;;  %v6426_v38 = vld [vmem:[%s9321_s1 + $0x8b4] ss:$92 sps:$4 sm:$0xff]   ;;  %v6429_v39 = vld [vmem:[%s9321_s1 + $0x8bc] ss:$92 sps:$4 sm:$0xff]  }
  0x63   :  { %3662 = vmatpush1.bf16.msra.mxu0 %v6340_v40  ;;  %3768 = vmatpush1.bf16.msra.mxu1 %v6343_v41  ;;  %v6424_v40 = vld [vmem:[%s9321_s1 + $0x8b0] ss:$92 sps:$4 sm:$0xff]   ;;  %v6427_v41 = vld [vmem:[%s9321_s1 + $0x8b8] ss:$92 sps:$4 sm:$0xff]  }
  0x64   :  { %3804 = vmatprep.subr.bf16.mxu0 %v6351_v42  ;;  %3910 = vmatprep.subr.bf16.mxu1 %v6354_v43  ;;  %v6432_v42 = vld [vmem:[%s9321_s1 + $0x96c] ss:$92 sps:$4 sm:$0xff]   ;;  %v6435_v43 = vld [vmem:[%s9321_s1 + $0x974] ss:$92 sps:$4 sm:$0xff]  }
  0x66   :  { %3678 = vmatmul.mubr.bf16.vlgmr.msra.gmra.mrb[0].mxu0 %v7437_v44  ;;  %3784 = vmatmul.mubr.bf16.vlgmr.msra.gmra.mrb[0].mxu1 %v7437_v44 }
  0x67   :  { %3805 = vmatpush1.bf16.msra.mxu0 %v6349_v45  ;;  %3911 = vmatpush1.bf16.msra.mxu1 %v6352_v46  ;;  %v6430_v45 = vld [vmem:[%s9321_s1 + $0x968] ss:$92 sps:$4 sm:$0xff]   ;;  %v6433_v46 = vld [vmem:[%s9321_s1 + $0x970] ss:$92 sps:$4 sm:$0xff]  }
  0x68   :  { %3806 = vmatprep.subr.bf16.mxu0 %v6357_v48  ;;  %3912 = vmatprep.subr.bf16.mxu1 %v6360_v49  ;;  %v6438_v48 = vld [vmem:[%s9321_s1 + $0xa24] ss:$92 sps:$4 sm:$0xff]   ;;  %v6441_v49 = vld [vmem:[%s9321_s1 + $0xa2c] ss:$92 sps:$4 sm:$0xff]  }
  0x69   :  { %5864 = vmatprep.mubr.msk.bf16.mxu0 %vm3585_vm0, %v7454_v50  ;;  %5866 = vmatprep.mubr.msk.bf16.mxu1 %vm3585_vm0, %v7454_v50 }
  0x6b   :  { %3807 = vmatpush1.bf16.msra.mxu0 %v6355_v51  ;;  %3913 = vmatpush1.bf16.msra.mxu1 %v6358_v52  ;;  %v6436_v51 = vld [vmem:[%s9321_s1 + $0xa20] ss:$92 sps:$4 sm:$0xff]   ;;  %v6439_v52 = vld [vmem:[%s9321_s1 + $0xa28] ss:$92 sps:$4 sm:$0xff]  }
  0x6c   :  { %3808 = vmatprep.subr.bf16.mxu0 %v6366_v53  ;;  %3914 = vmatprep.subr.bf16.mxu1 %v6369_v54  ;;  %v6444_v53 = vld [vmem:[%s9321_s1 + $0xadc] ss:$92 sps:$4 sm:$0xff]   ;;  %v6447_v54 = vld [vmem:[%s9321_s1 + $0xae4] ss:$92 sps:$4 sm:$0xff]  }
  0x6e   :  { %3688 = vmatmul.mubr.bf16.gmra.mrb[4].mxu0 %v7475_v55  ;;  %3794 = vmatmul.mubr.bf16.gmra.mrb[4].mxu1 %v7475_v55 }
  0x6f   :  { %3809 = vmatpush1.bf16.msra.mxu0 %v6364_v56  ;;  %3915 = vmatpush1.bf16.msra.mxu1 %v6367_v57  ;;  %v6442_v56 = vld [vmem:[%s9321_s1 + $0xad8] ss:$92 sps:$4 sm:$0xff]   ;;  %v6445_v57 = vld [vmem:[%s9321_s1 + $0xae0] ss:$92 sps:$4 sm:$0xff]  }
  0x70   :  { %3810 = vmatprep.subr.bf16.mxu0 %v6372_v58  ;;  %3916 = vmatprep.subr.bf16.mxu1 %v6375_v60  ;;  %v6450_v58 = vld [vmem:[%s9321_s1 + $0xb94] ss:$92 sps:$4 sm:$0xff]   ;;  %v6453_v60 = vld [vmem:[%s9321_s1 + $0xb9c] ss:$92 sps:$4 sm:$0xff]  }
  0x71   :  { %3836 = vmatprep.mubr.bf16.mxu0 %v7233_v47  ;;  %3942 = vmatprep.mubr.bf16.mxu1 %v7233_v47  ;;  %v6387_v47 = vld [vmem:[%s9321_s1 + $0x3b4] ss:$92 sps:$4 sm:$0xff]  }
  0x73   :  { %3811 = vmatpush1.bf16.msra.mxu0 %v6370_v61  ;;  %3917 = vmatpush1.bf16.msra.mxu1 %v6373_v62  ;;  %v6448_v61 = vld [vmem:[%s9321_s1 + $0xb90] ss:$92 sps:$4 sm:$0xff]   ;;  %v6451_v62 = vld [vmem:[%s9321_s1 + $0xb98] ss:$92 sps:$4 sm:$0xff]  }
  0x74   :  { %3812 = vmatprep.subr.bf16.mxu0 %v6378_v63  ;;  %3918 = vmatprep.subr.bf16.mxu1 %v6381_v0  ;;  %v6456_v63 = vld [vmem:[%s9321_s1 + $0xc4c] ss:$92 sps:$4 sm:$0xff]   ;;  %v6459_v0 = vld [vmem:[%s9321_s1 + $0xc54] ss:$92 sps:$4 sm:$0xff]  }
  0x77   :  { %3813 = vmatpush1.bf16.msra.mxu0 %v6376_v1  ;;  %3919 = vmatpush1.bf16.msra.mxu1 %v6379_v2  ;;  %v6454_v1 = vld [vmem:[%s9321_s1 + $0xc48] ss:$92 sps:$4 sm:$0xff]   ;;  %v6457_v2 = vld [vmem:[%s9321_s1 + $0xc50] ss:$92 sps:$4 sm:$0xff]  }
  0x78   :  { %3814 = vmatprep.subr.bf16.mxu0 %v6384_v3  ;;  %3920 = vmatprep.subr.bf16.mxu1 %v6387_v47  ;;  %v6462_v3 = vld [vmem:[%s9321_s1 + $0xd04] ss:$92 sps:$4 sm:$0xff]  }
  0x79   :  { %v6460_v47 = vld [vmem:[%s9321_s1 + $0xd00] ss:$92 sps:$4 sm:$0xff]  }
  0x7b   :  { %3815 = vmatpush1.bf16.msra.mxu0 %v6382_v4  ;;  %3921 = vmatpush1.bf16.msra.mxu1 %v6385_v5  ;;  %v6463_v4 = vld [vmem:[%s9321_s1 + $0xd08] ss:$92 sps:$4 sm:$0xff]   ;;  %v6468_v5 = vld [vmem:[%s9321_s1 + $0xdbc] ss:$92 sps:$4 sm:$0xff]  }
  0x7c   :  { %3816 = vmatprep.subr.bf16.mxu0 %v6390_v7  ;;  %3922 = vmatprep.subr.bf16.mxu1 %v6393_v8  ;;  %v6466_v7 = vld [vmem:[%s9321_s1 + $0xdb8] ss:$92 sps:$4 sm:$0xff]   ;;  %v6469_v8 = vld [vmem:[%s9321_s1 + $0xdc0] ss:$92 sps:$4 sm:$0xff]  }
  0x7f   :  { %3817 = vmatpush1.bf16.msra.mxu0 %v6388_v10  ;;  %3923 = vmatpush1.bf16.msra.mxu1 %v6391_v11  ;;  %v6474_v10 = vld [vmem:[%s9321_s1 + $0xe74] ss:$92 sps:$4 sm:$0xff]   ;;  %v6477_v11 = vld [vmem:[%s9321_s1 + $0xe7c] ss:$92 sps:$4 sm:$0xff]  }
  0x80   :  { %3818 = vmatprep.subr.bf16.mxu0 %v6396_v12  ;;  %3924 = vmatprep.subr.bf16.mxu1 %v6399_v13  ;;  %v6475_v12 = vld [vmem:[%s9321_s1 + $0xe78] ss:$92 sps:$4 sm:$0xff]   ;;  %v6480_v13 = vld [vmem:[%s9321_s1 + $0xf2c] ss:$92 sps:$4 sm:$0xff]  }
  0x83   :  { %3819 = vmatpush1.bf16.msra.mxu0 %v6394_v14  ;;  %3925 = vmatpush1.bf16.msra.mxu1 %v6397_v15  ;;  %v6478_v14 = vld [vmem:[%s9321_s1 + $0xf28] ss:$92 sps:$4 sm:$0xff]   ;;  %v6481_v15 = vld [vmem:[%s9321_s1 + $0xf30] ss:$92 sps:$4 sm:$0xff]  }
  0x84   :  { %3820 = vmatprep.subr.bf16.mxu0 %v6402_v18  ;;  %3926 = vmatprep.subr.bf16.mxu1 %v6405_v20  ;;  %v6489_v18 = vld [vmem:[%s9321_s1 + $0xfec] ss:$92 sps:$4 sm:$0xff]   ;;  %v6484_v20 = vld [vmem:[%s9321_s1 + $0xfe0] ss:$92 sps:$4 sm:$0xff]  }
  0x87   :  { %3821 = vmatpush1.bf16.msra.mxu0 %v6400_v22  ;;  %3927 = vmatpush1.bf16.msra.mxu1 %v6403_v23  ;;  %v6492_v22 = vld [vmem:[%s9321_s1 + $0x109c] ss:$92 sps:$4 sm:$0xff]   ;;  %v6495_v23 = vld [vmem:[%s9321_s1 + $0x10a4] ss:$92 sps:$4 sm:$0xff]  }
  0x88   :  { %3822 = vmatprep.subr.bf16.mxu0 %v6408_v24  ;;  %3928 = vmatprep.subr.bf16.mxu1 %v6411_v25  ;;  %v6490_v24 = vld [vmem:[%s9321_s1 + $0x1098] ss:$92 sps:$4 sm:$0xff]   ;;  %v6493_v25 = vld [vmem:[%s9321_s1 + $0x10a0] ss:$92 sps:$4 sm:$0xff]  }
  0x8b   :  { %3823 = vmatpush1.bf16.msra.mxu0 %v6406_v27  ;;  %3929 = vmatpush1.bf16.msra.mxu1 %v6409_v28  ;;  %v6501_v27 = vld [vmem:[%s9321_s1 + $0x115c] ss:$92 sps:$4 sm:$0xff]   ;;  %v6496_v28 = vld [vmem:[%s9321_s1 + $0x1150] ss:$92 sps:$4 sm:$0xff]  }
  0x8c   :  { %3824 = vmatprep.subr.bf16.mxu0 %v6414_v29  ;;  %3930 = vmatprep.subr.bf16.mxu1 %v6417_v30  ;;  %v6499_v29 = vld [vmem:[%s9321_s1 + $0x1158] ss:$92 sps:$4 sm:$0xff]   ;;  %v6504_v30 = vld [vmem:[%s9321_s1 + $0x24] ss:$92 sps:$4 sm:$0xff]  }
  0x8f   :  { %3825 = vmatpush1.bf16.msra.mxu0 %v6412_v32  ;;  %3931 = vmatpush1.bf16.msra.mxu1 %v6415_v33  ;;  %v6502_v32 = vld [vmem:[%s9321_s1 + $0x20] ss:$92 sps:$4 sm:$0xff]   ;;  %v6505_v33 = vld [vmem:[%s9321_s1 + $0x28] ss:$92 sps:$4 sm:$0xff]  }
  0x90   :  { %3826 = vmatprep.subr.bf16.mxu0 %v6420_v34  ;;  %3932 = vmatprep.subr.bf16.mxu1 %v6423_v35  ;;  %v6510_v34 = vld [vmem:[%s9321_s1 + $0xdc] ss:$92 sps:$4 sm:$0xff]   ;;  %v6513_v35 = vld [vmem:[%s9321_s1 + $0xe4] ss:$92 sps:$4 sm:$0xff]  }
  0x93   :  { %3827 = vmatpush1.bf16.msra.mxu0 %v6418_v36  ;;  %3933 = vmatpush1.bf16.msra.mxu1 %v6421_v37  ;;  %v6508_v36 = vld [vmem:[%s9321_s1 + $0xd8] ss:$92 sps:$4 sm:$0xff]   ;;  %v6511_v37 = vld [vmem:[%s9321_s1 + $0xe0] ss:$92 sps:$4 sm:$0xff]  }
  0x94   :  { %3828 = vmatprep.subr.bf16.mxu0 %v6426_v38  ;;  %3934 = vmatprep.subr.bf16.mxu1 %v6429_v39  ;;  %v6516_v38 = vld [vmem:[%s9321_s1 + $0x194] ss:$92 sps:$4 sm:$0xff]  }
  0x95   :  { %v6514_v39 = vld [vmem:[%s9321_s1 + $0x190] ss:$92 sps:$4 sm:$0xff]  }
  0x97   :  { %3829 = vmatpush1.bf16.msra.mxu0 %v6424_v40  ;;  %3935 = vmatpush1.bf16.msra.mxu1 %v6427_v41  ;;  %v6517_v40 = vld [vmem:[%s9321_s1 + $0x198] ss:$92 sps:$4 sm:$0xff]   ;;  %v6522_v41 = vld [vmem:[%s9321_s1 + $0x24c] ss:$92 sps:$4 sm:$0xff]  }
  0x98   :  { %3830 = vmatprep.subr.bf16.mxu0 %v6432_v42  ;;  %3936 = vmatprep.subr.bf16.mxu1 %v6435_v43  ;;  %v6520_v42 = vld [vmem:[%s9321_s1 + $0x248] ss:$92 sps:$4 sm:$0xff]   ;;  %v6523_v43 = vld [vmem:[%s9321_s1 + $0x250] ss:$92 sps:$4 sm:$0xff]  }
  0x9b   :  { %3831 = vmatpush1.bf16.msra.mxu0 %v6430_v45  ;;  %3937 = vmatpush1.bf16.msra.mxu1 %v6433_v46  ;;  %v6528_v45 = vld [vmem:[%s9321_s1 + $0x304] ss:$92 sps:$4 sm:$0xff]   ;;  %v6531_v46 = vld [vmem:[%s9321_s1 + $0x30c] ss:$92 sps:$4 sm:$0xff]  }
  0x9c   :  { %3832 = vmatprep.subr.bf16.mxu0 %v6438_v48  ;;  %3938 = vmatprep.subr.bf16.mxu1 %v6441_v49  ;;  %v7840_v48 = vld [vmem:[%s9322_s0 + $0x4] ss:$16 sps:$4 sm:$0xff]  }
  0x9d   :  { %v6529_v49 = vld [vmem:[%s9321_s1 + $0x308] ss:$92 sps:$4 sm:$0xff]  }
  0x9f   :  { %3833 = vmatpush1.bf16.msra.mxu0 %v6436_v51  ;;  %3939 = vmatpush1.bf16.msra.mxu1 %v6439_v52  ;;  %v6534_v51 = vld [vmem:[%s9321_s1 + $0x3bc] ss:$92 sps:$4 sm:$0xff]   ;;  %v6537_v52 = vld [vmem:[%s9321_s1 + $0x3c4] ss:$92 sps:$4 sm:$0xff]  }
  0xa0   :  { %3834 = vmatprep.subr.bf16.mxu0 %v6444_v53  ;;  %3940 = vmatprep.subr.bf16.mxu1 %v6447_v54  ;;  %v6532_v53 = vld [vmem:[%s9321_s1 + $0x3b8] ss:$92 sps:$4 sm:$0xff]   ;;  %v6535_v54 = vld [vmem:[%s9321_s1 + $0x3c0] ss:$92 sps:$4 sm:$0xff]  }
  0xa3   :  { %3835 = vmatpush1.bf16.msra.mxu0 %v6442_v56  ;;  %3941 = vmatpush1.bf16.msra.mxu1 %v6445_v57  ;;  %v6540_v56 = vld [vmem:[%s9321_s1 + $0x474] ss:$92 sps:$4 sm:$0xff]   ;;  %v6543_v57 = vld [vmem:[%s9321_s1 + $0x47c] ss:$92 sps:$4 sm:$0xff]  }
  0xa4   :  { %3857 = vmatprep.subr.bf16.mxu0 %v6450_v58  ;;  %3963 = vmatprep.subr.bf16.mxu1 %v6453_v60  ;;  %v6538_v58 = vld [vmem:[%s9321_s1 + $0x470] ss:$92 sps:$4 sm:$0xff]   ;;  %v6541_v60 = vld [vmem:[%s9321_s1 + $0x478] ss:$92 sps:$4 sm:$0xff]  }
  0xa6   :  { %3837 = vmatmul.mubr.bf16.vlgmr.msra.gmra.mrb[8].mxu0 %v7305_v6  ;;  %3943 = vmatmul.mubr.bf16.vlgmr.msra.gmra.mrb[8].mxu1 %v7305_v6  ;;  %v6465_v6 = vld [vmem:[%s9321_s1 + $0xd0c] ss:$92 sps:$4 sm:$0xff]  }
  0xa7   :  { %3858 = vmatpush1.bf16.msra.mxu0 %v6448_v61  ;;  %3964 = vmatpush1.bf16.msra.mxu1 %v6451_v62  ;;  %v6546_v61 = vld [vmem:[%s9321_s1 + $0x52c] ss:$92 sps:$4 sm:$0xff]   ;;  %v6549_v62 = vld [vmem:[%s9321_s1 + $0x534] ss:$92 sps:$4 sm:$0xff]  }
  0xa8   :  { %3859 = vmatprep.subr.bf16.mxu0 %v6456_v63  ;;  %3965 = vmatprep.subr.bf16.mxu1 %v6459_v0  ;;  %v6544_v63 = vld [vmem:[%s9321_s1 + $0x528] ss:$92 sps:$4 sm:$0xff]   ;;  %v6547_v0 = vld [vmem:[%s9321_s1 + $0x530] ss:$92 sps:$4 sm:$0xff]  }
  0xa9   :  { %3846 = vmatprep.mubr.bf16.mxu0 %v7316_v9  ;;  %3952 = vmatprep.mubr.bf16.mxu1 %v7316_v9  ;;  %v6471_v9 = vld [vmem:[%s9321_s1 + $0xdc4] ss:$92 sps:$4 sm:$0xff]  }
  0xab   :  { %3860 = vmatpush1.bf16.msra.mxu0 %v6454_v1  ;;  %3966 = vmatpush1.bf16.msra.mxu1 %v6457_v2  ;;  %v6552_v1 = vld [vmem:[%s9321_s1 + $0x5e4] ss:$92 sps:$4 sm:$0xff]   ;;  %v6555_v2 = vld [vmem:[%s9321_s1 + $0x5ec] ss:$92 sps:$4 sm:$0xff]  }
  0xac   :  { %3861 = vmatprep.subr.bf16.mxu0 %v6462_v3  ;;  %3967 = vmatprep.subr.bf16.mxu1 %v6465_v6  ;;  %v6550_v3 = vld [vmem:[%s9321_s1 + $0x5e0] ss:$92 sps:$4 sm:$0xff]   ;;  %v6553_v6 = vld [vmem:[%s9321_s1 + $0x5e8] ss:$92 sps:$4 sm:$0xff]  }
  0xae   :  { %3847 = vmatmul.mubr.bf16.gmra.mrb[12].mxu0 %v7343_v16  ;;  %3953 = vmatmul.mubr.bf16.gmra.mrb[12].mxu1 %v7343_v16  ;;  %v6472_v16 = vld [vmem:[%s9321_s1 + $0xe70] ss:$92 sps:$4 sm:$0xff]  }
  0xaf   :  { %3862 = vmatpush1.bf16.msra.mxu0 %v6460_v47  ;;  %3968 = vmatpush1.bf16.msra.mxu1 %v6463_v4  ;;  %v6558_v47 = vld [vmem:[%s9321_s1 + $0x69c] ss:$92 sps:$4 sm:$0xff]   ;;  %v6561_v4 = vld [vmem:[%s9321_s1 + $0x6a4] ss:$92 sps:$4 sm:$0xff]  }
  0xb0   :  { %3863 = vmatprep.subr.bf16.mxu0 %v6468_v5  ;;  %3969 = vmatprep.subr.bf16.mxu1 %v6471_v9  ;;  %v6556_v5 = vld [vmem:[%s9321_s1 + $0x698] ss:$92 sps:$4 sm:$0xff]   ;;  %v6559_v9 = vld [vmem:[%s9321_s1 + $0x6a0] ss:$92 sps:$4 sm:$0xff]  }
  0xb1   :  { %5867 = vmatprep.mubr.msk.bf16.mxu0 %vm3585_vm0, %v7354_v19  ;;  %5869 = vmatprep.mubr.msk.bf16.mxu1 %vm3585_vm0, %v7354_v19  ;;  %v6483_v19 = vld [vmem:[%s9321_s1 + $0xf34] ss:$92 sps:$4 sm:$0xff]  }
  0xb3   :  { %3864 = vmatpush1.bf16.msra.mxu0 %v6466_v7  ;;  %3970 = vmatpush1.bf16.msra.mxu1 %v6469_v8  ;;  %v6564_v7 = vld [vmem:[%s9321_s1 + $0x754] ss:$92 sps:$4 sm:$0xff]   ;;  %v6567_v8 = vld [vmem:[%s9321_s1 + $0x75c] ss:$92 sps:$4 sm:$0xff]  }
  0xb4   :  { %3865 = vmatprep.subr.bf16.mxu0 %v6474_v10  ;;  %3971 = vmatprep.subr.bf16.mxu1 %v6477_v11  ;;  %v6562_v10 = vld [vmem:[%s9321_s1 + $0x750] ss:$92 sps:$4 sm:$0xff]   ;;  %v6565_v11 = vld [vmem:[%s9321_s1 + $0x758] ss:$92 sps:$4 sm:$0xff]  }
  0xb7   :  { %3866 = vmatpush1.bf16.msra.mxu0 %v6472_v16  ;;  %3972 = vmatpush1.bf16.msra.mxu1 %v6475_v12  ;;  %v6570_v16 = vld [vmem:[%s9321_s1 + $0x80c] ss:$92 sps:$4 sm:$0xff]   ;;  %v6573_v12 = vld [vmem:[%s9321_s1 + $0x814] ss:$92 sps:$4 sm:$0xff]  }
  0xb8   :  { %3867 = vmatprep.subr.bf16.mxu0 %v6480_v13  ;;  %3973 = vmatprep.subr.bf16.mxu1 %v6483_v19  ;;  %v6568_v13 = vld [vmem:[%s9321_s1 + $0x808] ss:$92 sps:$4 sm:$0xff]   ;;  %v6571_v19 = vld [vmem:[%s9321_s1 + $0x810] ss:$92 sps:$4 sm:$0xff]  }
  0xbb   :  { %3868 = vmatpush1.bf16.msra.mxu0 %v6478_v14  ;;  %3974 = vmatpush1.bf16.msra.mxu1 %v6481_v15  ;;  %v6576_v14 = vld [vmem:[%s9321_s1 + $0x8c4] ss:$92 sps:$4 sm:$0xff]   ;;  %v6579_v15 = vld [vmem:[%s9321_s1 + $0x8cc] ss:$92 sps:$4 sm:$0xff]  }
  0xbc   :  { %3869 = vmatprep.subr.bf16.mxu0 %v6486_v17  ;;  %3975 = vmatprep.subr.bf16.mxu1 %v6489_v18  ;;  %v6574_v17 = vld [vmem:[%s9321_s1 + $0x8c0] ss:$92 sps:$4 sm:$0xff]   ;;  %v6577_v18 = vld [vmem:[%s9321_s1 + $0x8c8] ss:$92 sps:$4 sm:$0xff]  }
  0xbf   :  { %3870 = vmatpush1.bf16.msra.mxu0 %v6484_v20  ;;  %3976 = vmatpush1.bf16.msra.mxu1 %v6487_v21  ;;  %v6582_v20 = vld [vmem:[%s9321_s1 + $0x97c] ss:$92 sps:$4 sm:$0xff]   ;;  %v6585_v21 = vld [vmem:[%s9321_s1 + $0x984] ss:$92 sps:$4 sm:$0xff]  }
  0xc0   :  { %3871 = vmatprep.subr.bf16.mxu0 %v6492_v22  ;;  %3977 = vmatprep.subr.bf16.mxu1 %v6495_v23  ;;  %v6580_v22 = vld [vmem:[%s9321_s1 + $0x978] ss:$92 sps:$4 sm:$0xff]   ;;  %v6583_v23 = vld [vmem:[%s9321_s1 + $0x980] ss:$92 sps:$4 sm:$0xff]  }
  0xc3   :  { %3872 = vmatpush1.bf16.msra.mxu0 %v6490_v24  ;;  %3978 = vmatpush1.bf16.msra.mxu1 %v6493_v25  ;;  %v6588_v24 = vld [vmem:[%s9321_s1 + $0xa34] ss:$92 sps:$4 sm:$0xff]   ;;  %v6591_v25 = vld [vmem:[%s9321_s1 + $0xa3c] ss:$92 sps:$4 sm:$0xff]  }
  0xc4   :  { %3873 = vmatprep.subr.bf16.mxu0 %v6498_v26  ;;  %3979 = vmatprep.subr.bf16.mxu1 %v6501_v27  ;;  %v6586_v26 = vld [vmem:[%s9321_s1 + $0xa30] ss:$92 sps:$4 sm:$0xff]   ;;  %v6589_v27 = vld [vmem:[%s9321_s1 + $0xa38] ss:$92 sps:$4 sm:$0xff]  }
  0xc7   :  { %3874 = vmatpush1.bf16.msra.mxu0 %v6496_v28  ;;  %3980 = vmatpush1.bf16.msra.mxu1 %v6499_v29  ;;  %v6594_v28 = vld [vmem:[%s9321_s1 + $0xaec] ss:$92 sps:$4 sm:$0xff]   ;;  %v6597_v29 = vld [vmem:[%s9321_s1 + $0xaf4] ss:$92 sps:$4 sm:$0xff]  }
  0xc8   :  { %4016 = vmatprep.subr.bf16.mxu0 %v6504_v30  ;;  %4122 = vmatprep.subr.bf16.mxu1 %v6507_v31  ;;  %v6592_v30 = vld [vmem:[%s9321_s1 + $0xae8] ss:$92 sps:$4 sm:$0xff]   ;;  %v6595_v31 = vld [vmem:[%s9321_s1 + $0xaf0] ss:$92 sps:$4 sm:$0xff]  }
  0xca   :  { %3890 = vmatmul.mubr.bf16.vlgmr.msra.gmra.mrb[8].mxu0 %v7437_v44  ;;  %3996 = vmatmul.mubr.bf16.vlgmr.msra.gmra.mrb[8].mxu1 %v7437_v44  ;;  %v6519_v44 = vld [vmem:[%s9321_s1 + $0x19c] ss:$92 sps:$4 sm:$0xff]  }
  0xcb   :  { %4017 = vmatpush1.bf16.msra.mxu0 %v6502_v32  ;;  %4123 = vmatpush1.bf16.msra.mxu1 %v6505_v33  ;;  %v6600_v32 = vld [vmem:[%s9321_s1 + $0xba4] ss:$92 sps:$4 sm:$0xff]   ;;  %v6603_v33 = vld [vmem:[%s9321_s1 + $0xbac] ss:$92 sps:$4 sm:$0xff]  }
  0xcc   :  { %4018 = vmatprep.subr.bf16.mxu0 %v6510_v34  ;;  %4124 = vmatprep.subr.bf16.mxu1 %v6513_v35  ;;  %v6598_v34 = vld [vmem:[%s9321_s1 + $0xba0] ss:$92 sps:$4 sm:$0xff]   ;;  %v6601_v35 = vld [vmem:[%s9321_s1 + $0xba8] ss:$92 sps:$4 sm:$0xff]  }
  0xcd   :  { %5868 = vmatprep.mubr.msk.bf16.mxu0 %vm3585_vm0, %v7454_v50  ;;  %5870 = vmatprep.mubr.msk.bf16.mxu1 %vm3585_vm0, %v7454_v50  ;;  %v6525_v50 = vld [vmem:[%s9321_s1 + $0x254] ss:$92 sps:$4 sm:$0xff]  }
  0xcf   :  { %4019 = vmatpush1.bf16.msra.mxu0 %v6508_v36  ;;  %4125 = vmatpush1.bf16.msra.mxu1 %v6511_v37  ;;  %v6606_v36 = vld [vmem:[%s9321_s1 + $0xc5c] ss:$92 sps:$4 sm:$0xff]   ;;  %v6609_v37 = vld [vmem:[%s9321_s1 + $0xc64] ss:$92 sps:$4 sm:$0xff]  }
  0xd0   :  { %4020 = vmatprep.subr.bf16.mxu0 %v6516_v38  ;;  %4126 = vmatprep.subr.bf16.mxu1 %v6519_v44  ;;  %v8003_v38 = vld [vmem:[%s9322_s0] ss:$16 sps:$4 sm:$0xff]   ;;  %v6604_v44 = vld [vmem:[%s9321_s1 + $0xc58] ss:$92 sps:$4 sm:$0xff]  }
  0xd2   :  { %3900 = vmatmul.mubr.bf16.gmra.mrb[12].mxu0 %v7475_v55  ;;  %4006 = vmatmul.mubr.bf16.gmra.mrb[12].mxu1 %v7475_v55  ;;  %v6526_v55 = vld [vmem:[%s9321_s1 + $0x300] ss:$92 sps:$4 sm:$0xff]  }
  0xd3   :  { %4021 = vmatpush1.bf16.msra.mxu0 %v6514_v39  ;;  %4127 = vmatpush1.bf16.msra.mxu1 %v6517_v40  ;;  %v6607_v39 = vld [vmem:[%s9321_s1 + $0xc60] ss:$92 sps:$4 sm:$0xff]   ;;  %v6612_v40 = vld [vmem:[%s9321_s1 + $0xd14] ss:$92 sps:$4 sm:$0xff]  }
  0xd4   :  { %4022 = vmatprep.subr.bf16.mxu0 %v6522_v41  ;;  %4128 = vmatprep.subr.bf16.mxu1 %v6525_v50  ;;  %v6615_v41 = vld [vmem:[%s9321_s1 + $0xd1c] ss:$92 sps:$4 sm:$0xff]   ;;  %v8022_v50 = vld [vmem:[%s9322_s0 + $0x24] ss:$16 sps:$4 sm:$0xff]  }
  0xd5   :  { %4048 = vmatprep.mubr.bf16.mxu0 %v7840_v48  ;;  %4154 = vmatprep.mubr.bf16.mxu1 %v7840_v48 }
  0xd7   :  { %4023 = vmatpush1.bf16.msra.mxu0 %v6520_v42  ;;  %4129 = vmatpush1.bf16.msra.mxu1 %v6523_v43  ;;  %v6610_v42 = vld [vmem:[%s9321_s1 + $0xd10] ss:$92 sps:$4 sm:$0xff]   ;;  %v6613_v43 = vld [vmem:[%s9321_s1 + $0xd18] ss:$92 sps:$4 sm:$0xff]  }
  0xd8   :  { %4024 = vmatprep.subr.bf16.mxu0 %v6528_v45  ;;  %4130 = vmatprep.subr.bf16.mxu1 %v6531_v46  ;;  %v6618_v45 = vld [vmem:[%s9321_s1 + $0xdcc] ss:$92 sps:$4 sm:$0xff]   ;;  %v6621_v46 = vld [vmem:[%s9321_s1 + $0xdd4] ss:$92 sps:$4 sm:$0xff]  }
  0xdb   :  { %4025 = vmatpush1.bf16.msra.mxu0 %v6526_v55  ;;  %4131 = vmatpush1.bf16.msra.mxu1 %v6529_v49  ;;  %v6616_v55 = vld [vmem:[%s9321_s1 + $0xdc8] ss:$92 sps:$4 sm:$0xff]   ;;  %v6619_v49 = vld [vmem:[%s9321_s1 + $0xdd0] ss:$92 sps:$4 sm:$0xff]  }
  0xdc   :  { %4026 = vmatprep.subr.bf16.mxu0 %v6534_v51  ;;  %4132 = vmatprep.subr.bf16.mxu1 %v6537_v52  ;;  %v8047_v51 = vld [vmem:[%s9322_s0 + $0x20] ss:$16 sps:$4 sm:$0xff]  }
  0xdd   :  { %v6624_v52 = vld [vmem:[%s9321_s1 + $0xe84] ss:$92 sps:$4 sm:$0xff]  }
  0xdf   :  { %4027 = vmatpush1.bf16.msra.mxu0 %v6532_v53  ;;  %4133 = vmatpush1.bf16.msra.mxu1 %v6535_v54  ;;  %v6627_v53 = vld [vmem:[%s9321_s1 + $0xe8c] ss:$92 sps:$4 sm:$0xff]   ;;  %v6622_v54 = vld [vmem:[%s9321_s1 + $0xe80] ss:$92 sps:$4 sm:$0xff]  }
  0xe0   :  { %4028 = vmatprep.subr.bf16.mxu0 %v6540_v56  ;;  %4134 = vmatprep.subr.bf16.mxu1 %v6543_v57  ;;  %v6625_v56 = vld [vmem:[%s9321_s1 + $0xe88] ss:$92 sps:$4 sm:$0xff]   ;;  %v8066_v57 = vld [vmem:[%s9322_s0 + $0xc] ss:$16 sps:$4 sm:$0xff]  }
  0xe3   :  { %4029 = vmatpush1.bf16.msra.mxu0 %v6538_v58  ;;  %4135 = vmatpush1.bf16.msra.mxu1 %v6541_v60  ;;  %v6630_v58 = vld [vmem:[%s9321_s1 + $0xf3c] ss:$92 sps:$4 sm:$0xff]   ;;  %v6633_v60 = vld [vmem:[%s9321_s1 + $0xf44] ss:$92 sps:$4 sm:$0xff]  }
  0xe4   :  { %4030 = vmatprep.subr.bf16.mxu0 %v6546_v61  ;;  %4136 = vmatprep.subr.bf16.mxu1 %v6549_v62  ;;  %v6628_v61 = vld [vmem:[%s9321_s1 + $0xf38] ss:$92 sps:$4 sm:$0xff]   ;;  %v6631_v62 = vld [vmem:[%s9321_s1 + $0xf40] ss:$92 sps:$4 sm:$0xff]  }
  0xe7   :  { %4031 = vmatpush1.bf16.msra.mxu0 %v6544_v63  ;;  %4137 = vmatpush1.bf16.msra.mxu1 %v6547_v0  ;;  %v6636_v63 = vld [vmem:[%s9321_s1 + $0xff4] ss:$92 sps:$4 sm:$0xff]   ;;  %v6639_v0 = vld [vmem:[%s9321_s1 + $0xffc] ss:$92 sps:$4 sm:$0xff]  }
  0xe8   :  { %4032 = vmatprep.subr.bf16.mxu0 %v6552_v1  ;;  %4138 = vmatprep.subr.bf16.mxu1 %v6555_v2  ;;  %v6634_v1 = vld [vmem:[%s9321_s1 + $0xff0] ss:$92 sps:$4 sm:$0xff]   ;;  %v6637_v2 = vld [vmem:[%s9321_s1 + $0xff8] ss:$92 sps:$4 sm:$0xff]  }
  0xeb   :  { %4033 = vmatpush1.bf16.msra.mxu0 %v6550_v3  ;;  %4139 = vmatpush1.bf16.msra.mxu1 %v6553_v6  ;;  %v6642_v3 = vld [vmem:[%s9321_s1 + $0x10ac] ss:$92 sps:$4 sm:$0xff]   ;;  %v6645_v6 = vld [vmem:[%s9321_s1 + $0x10b4] ss:$92 sps:$4 sm:$0xff]  }
  0xec   :  { %4034 = vmatprep.subr.bf16.mxu0 %v6558_v47  ;;  %4140 = vmatprep.subr.bf16.mxu1 %v6561_v4  ;;  %v6640_v47 = vld [vmem:[%s9321_s1 + $0x10a8] ss:$92 sps:$4 sm:$0xff]   ;;  %v6643_v4 = vld [vmem:[%s9321_s1 + $0x10b0] ss:$92 sps:$4 sm:$0xff]  }
  0xef   :  { %4035 = vmatpush1.bf16.msra.mxu0 %v6556_v5  ;;  %4141 = vmatpush1.bf16.msra.mxu1 %v6559_v9  ;;  %v6648_v5 = vld [vmem:[%s9321_s1 + $0x1164] ss:$92 sps:$4 sm:$0xff]   ;;  %v6651_v9 = vld [vmem:[%s9321_s1 + $0x116c] ss:$92 sps:$4 sm:$0xff]  }
  0xf0   :  { %4036 = vmatprep.subr.bf16.mxu0 %v6564_v7  ;;  %4142 = vmatprep.subr.bf16.mxu1 %v6567_v8  ;;  %v6646_v7 = vld [vmem:[%s9321_s1 + $0x1160] ss:$92 sps:$4 sm:$0xff]   ;;  %v6649_v8 = vld [vmem:[%s9321_s1 + $0x1168] ss:$92 sps:$4 sm:$0xff]  }
  0xf3   :  { %4037 = vmatpush1.bf16.msra.mxu0 %v6562_v10  ;;  %4143 = vmatpush1.bf16.msra.mxu1 %v6565_v11  ;;  %v6654_v10 = vld [vmem:[%s9321_s1 + $0x34] ss:$92 sps:$4 sm:$0xff]   ;;  %v6657_v11 = vld [vmem:[%s9321_s1 + $0x3c] ss:$92 sps:$4 sm:$0xff]  }
  0xf4   :  { %4038 = vmatprep.subr.bf16.mxu0 %v6570_v16  ;;  %4144 = vmatprep.subr.bf16.mxu1 %v6573_v12  ;;  %v6652_v16 = vld [vmem:[%s9321_s1 + $0x30] ss:$92 sps:$4 sm:$0xff]   ;;  %v6655_v12 = vld [vmem:[%s9321_s1 + $0x38] ss:$92 sps:$4 sm:$0xff]  }
  0xf7   :  { %4039 = vmatpush1.bf16.msra.mxu0 %v6568_v13  ;;  %4145 = vmatpush1.bf16.msra.mxu1 %v6571_v19  ;;  %v6660_v13 = vld [vmem:[%s9321_s1 + $0xec] ss:$92 sps:$4 sm:$0xff]   ;;  %v6663_v19 = vld [vmem:[%s9321_s1 + $0xf4] ss:$92 sps:$4 sm:$0xff]  }
  0xf8   :  { %4040 = vmatprep.subr.bf16.mxu0 %v6576_v14  ;;  %4146 = vmatprep.subr.bf16.mxu1 %v6579_v15  ;;  %v8141_v14 = vld [vmem:[%s9322_s0 + $0x8] ss:$16 sps:$4 sm:$0xff]  }
  0xf9   :  { %v6658_v15 = vld [vmem:[%s9321_s1 + $0xe8] ss:$92 sps:$4 sm:$0xff]  }
  0xfb   :  { %4041 = vmatpush1.bf16.msra.mxu0 %v6574_v17  ;;  %4147 = vmatpush1.bf16.msra.mxu1 %v6577_v18  ;;  %v6661_v17 = vld [vmem:[%s9321_s1 + $0xf0] ss:$92 sps:$4 sm:$0xff]   ;;  %v6666_v18 = vld [vmem:[%s9321_s1 + $0x1a4] ss:$92 sps:$4 sm:$0xff]  }
  0xfc   :  { %4042 = vmatprep.subr.bf16.mxu0 %v6582_v20  ;;  %4148 = vmatprep.subr.bf16.mxu1 %v6585_v21  ;;  %v6669_v20 = vld [vmem:[%s9321_s1 + $0x1ac] ss:$92 sps:$4 sm:$0xff]  }
  0xfd   :  { %v8160_v21 = vld [vmem:[%s9322_s0 + $0x2c] ss:$16 sps:$4 sm:$0xff]  }
  0xff   :  { %4043 = vmatpush1.bf16.msra.mxu0 %v6580_v22  ;;  %4149 = vmatpush1.bf16.msra.mxu1 %v6583_v23  ;;  %v8166_v22 = vpop.permute.xlu0 %629  ;;  %v6664_v23 = vld [vmem:[%s9321_s1 + $0x1a0] ss:$92 sps:$4 sm:$0xff]  }
 0x100   :  { %4044 = vmatprep.subr.bf16.mxu0 %v6588_v24  ;;  %4150 = vmatprep.subr.bf16.mxu1 %v6591_v25  ;;  %v6667_v24 = vld [vmem:[%s9321_s1 + $0x1a8] ss:$92 sps:$4 sm:$0xff]   ;;  %v6672_v25 = vld [vmem:[%s9321_s1 + $0x25c] ss:$92 sps:$4 sm:$0xff]  }
 0x103   :  { %4045 = vmatpush1.bf16.msra.mxu0 %v6586_v26  ;;  %4151 = vmatpush1.bf16.msra.mxu1 %v6589_v27  ;;  %v6675_v26 = vld [vmem:[%s9321_s1 + $0x264] ss:$92 sps:$4 sm:$0xff]   ;;  %v8183_v27 = vld [vmem:[%s9322_s0 + $0x28] ss:$16 sps:$4 sm:$0xff]  }
 0x104   :  { %4046 = vmatprep.subr.bf16.mxu0 %v6594_v28  ;;  %4152 = vmatprep.subr.bf16.mxu1 %v6597_v29  ;;  %v6670_v28 = vld [vmem:[%s9321_s1 + $0x258] ss:$92 sps:$4 sm:$0xff]   ;;  %v6673_v29 = vld [vmem:[%s9321_s1 + $0x260] ss:$92 sps:$4 sm:$0xff]  }
 0x107   :  { %4047 = vmatpush1.bf16.msra.mxu0 %v6592_v30  ;;  %4153 = vmatpush1.bf16.msra.mxu1 %v6595_v31  ;;  %v8193_v30 = vpop.permute.xlu0 %634  ;;  %v6678_v31 = vld [vmem:[%s9321_s1 + $0x314] ss:$92 sps:$4 sm:$0xff]  }
 0x108   :  { %4069 = vmatprep.subr.bf16.mxu0 %v6600_v32  ;;  %4175 = vmatprep.subr.bf16.mxu1 %v6603_v33  ;;  %v6681_v32 = vld [vmem:[%s9321_s1 + $0x31c] ss:$92 sps:$4 sm:$0xff]   ;;  %v8201_v33 = vpop.permute.xlu1 %639 }
 0x10a   :  { %4049 = vmatmul.mubr.bf16.vlgmr.msra.gmra.mrb[16].mxu0 %v8003_v38  ;;  %4155 = vmatmul.mubr.bf16.vlgmr.msra.gmra.mrb[16].mxu1 %v8003_v38 }
 0x10b   :  { %4070 = vmatpush1.bf16.msra.mxu0 %v6598_v34  ;;  %4176 = vmatpush1.bf16.msra.mxu1 %v6601_v35 }
 0x10c   :  { %4071 = vmatprep.subr.bf16.mxu0 %v6606_v36  ;;  %4177 = vmatprep.subr.bf16.mxu1 %v6609_v37  ;;  %v6676_v36 = vld [vmem:[%s9321_s1 + $0x310] ss:$92 sps:$4 sm:$0xff]  }
 0x10d   :  { %4058 = vmatprep.mubr.bf16.mxu0 %v8022_v50  ;;  %4164 = vmatprep.mubr.bf16.mxu1 %v8022_v50 }
 0x10f   :  { %4072 = vmatpush1.bf16.msra.mxu0 %v6604_v44  ;;  %4178 = vmatpush1.bf16.msra.mxu1 %v6607_v39 }
 0x110   :  { %4073 = vmatprep.subr.bf16.mxu0 %v6612_v40  ;;  %4179 = vmatprep.subr.bf16.mxu1 %v6615_v41 }
 0x112   :  { %4059 = vmatmul.mubr.bf16.gmra.mrb[20].mxu0 %v8047_v51  ;;  %4165 = vmatmul.mubr.bf16.gmra.mrb[20].mxu1 %v8047_v51 }
 0x113   :  { %4074 = vmatpush1.bf16.msra.mxu0 %v6610_v42  ;;  %4180 = vmatpush1.bf16.msra.mxu1 %v6613_v43 }
 0x114   :  { %4075 = vmatprep.subr.bf16.mxu0 %v6618_v45  ;;  %4181 = vmatprep.subr.bf16.mxu1 %v6621_v46  ;;  %v6679_v46 = vld [vmem:[%s9321_s1 + $0x318] ss:$92 sps:$4 sm:$0xff]  }
 0x115   :  { %5871 = vmatprep.mubr.msk.bf16.mxu0 %vm3585_vm0, %v8066_v57  ;;  %5873 = vmatprep.mubr.msk.bf16.mxu1 %vm3585_vm0, %v8066_v57 }
 0x117   :  { %4076 = vmatpush1.bf16.msra.mxu0 %v6616_v55  ;;  %4182 = vmatpush1.bf16.msra.mxu1 %v6619_v49 }
 0x118   :  { %4077 = vmatprep.subr.bf16.mxu0 %v6624_v52  ;;  %4183 = vmatprep.subr.bf16.mxu1 %v6627_v53 }
 0x11b   :  { %4078 = vmatpush1.bf16.msra.mxu0 %v6622_v54  ;;  %4184 = vmatpush1.bf16.msra.mxu1 %v6625_v56 }
 0x11c   :  { %4079 = vmatprep.subr.bf16.mxu0 %v6630_v58  ;;  %4185 = vmatprep.subr.bf16.mxu1 %v6633_v60  ;;  %v6687_v58 = vld [vmem:[%s9321_s1 + $0x3d4] ss:$92 sps:$4 sm:$0xff]  }
 0x11f   :  { %4080 = vmatpush1.bf16.msra.mxu0 %v6628_v61  ;;  %4186 = vmatpush1.bf16.msra.mxu1 %v6631_v62 }
 0x120   :  { %4081 = vmatprep.subr.bf16.mxu0 %v6636_v63  ;;  %4187 = vmatprep.subr.bf16.mxu1 %v6639_v0 }
 0x123   :  { %4082 = vmatpush1.bf16.msra.mxu0 %v6634_v1  ;;  %4188 = vmatpush1.bf16.msra.mxu1 %v6637_v2 }
 0x124   :  { %4083 = vmatprep.subr.bf16.mxu0 %v6642_v3  ;;  %4189 = vmatprep.subr.bf16.mxu1 %v6645_v6 }
 0x127   :  { %4084 = vmatpush1.bf16.msra.mxu0 %v6640_v47  ;;  %4190 = vmatpush1.bf16.msra.mxu1 %v6643_v4  ;;  %v6682_v4 = vld [vmem:[%s9321_s1 + $0x3c8] ss:$92 sps:$4 sm:$0xff]  }
 0x128   :  { %4085 = vmatprep.subr.bf16.mxu0 %v6648_v5  ;;  %4191 = vmatprep.subr.bf16.mxu1 %v6651_v9  ;;  %v6685_v5 = vld [vmem:[%s9321_s1 + $0x3d0] ss:$92 sps:$4 sm:$0xff]   ;;  %v8231_v9 = vpop.permute.xlu1 %644 }
 0x12b   :  { %4086 = vmatpush1.bf16.msra.mxu0 %v6646_v7  ;;  %4192 = vmatpush1.bf16.msra.mxu1 %v6649_v8  ;;  %v6690_v7 = vld [vmem:[%s9321_s1 + $0x484] ss:$92 sps:$4 sm:$0xff]   ;;  %v6693_v8 = vld [vmem:[%s9321_s1 + $0x48c] ss:$92 sps:$4 sm:$0xff]  }
 0x12c   :  { %4228 = vmatprep.subr.bf16.mxu0 %v6654_v10  ;;  %4334 = vmatprep.subr.bf16.mxu1 %v6657_v11 }
 0x12e   :  { %4102 = vmatmul.mubr.bf16.vlgmr.msra.gmra.mrb[16].mxu0 %v8141_v14  ;;  %4208 = vmatmul.mubr.bf16.vlgmr.msra.gmra.mrb[16].mxu1 %v8141_v14 }
 0x12f   :  { %4229 = vmatpush1.bf16.msra.mxu0 %v6652_v16  ;;  %4335 = vmatpush1.bf16.msra.mxu1 %v6655_v12  ;;  %v6688_v12 = vld [vmem:[%s9321_s1 + $0x480] ss:$92 sps:$4 sm:$0xff]  }
 0x130   :  { %4230 = vmatprep.subr.bf16.mxu0 %v6660_v13  ;;  %4336 = vmatprep.subr.bf16.mxu1 %v6663_v19 }
 0x131   :  { %5872 = vmatprep.mubr.msk.bf16.mxu0 %vm3585_vm0, %v8160_v21  ;;  %5874 = vmatprep.mubr.msk.bf16.mxu1 %vm3585_vm0, %v8160_v21 }
 0x133   :  { %4231 = vmatpush1.bf16.msra.mxu0 %v6658_v15  ;;  %4337 = vmatpush1.bf16.msra.mxu1 %v6661_v17 }
 0x134   :  { %4232 = vmatprep.subr.bf16.mxu0 %v6666_v18  ;;  %4338 = vmatprep.subr.bf16.mxu1 %v6669_v20 }
 0x136   :  { %4112 = vmatmul.mubr.bf16.gmra.mrb[20].mxu0 %v8183_v27  ;;  %4218 = vmatmul.mubr.bf16.gmra.mrb[20].mxu1 %v8183_v27 }
 0x137   :  { %4233 = vmatpush1.bf16.msra.mxu0 %v6664_v23  ;;  %4339 = vmatpush1.bf16.msra.mxu1 %v6667_v24  ;;  %v6691_v24 = vld [vmem:[%s9321_s1 + $0x488] ss:$92 sps:$4 sm:$0xff]  }
 0x138   :  { %4234 = vmatprep.subr.bf16.mxu0 %v6672_v25  ;;  %4340 = vmatprep.subr.bf16.mxu1 %v6675_v26  ;;  %v6696_v25 = vld [vmem:[%s9321_s1 + $0x53c] ss:$92 sps:$4 sm:$0xff]  }
 0x139   :  { %v3679_v34 = vpop.f32.mrb[0].mxu0  ;;  %v3785_v35 = vpop.f32.mrb[0].mxu1  ;;  %4260 = vmatprep.mubr.bf16.mxu0 %v7840_v48  ;;  %4366 = vmatprep.mubr.bf16.mxu1 %v7840_v48  ;;  %v6684_v48 = vld [vmem:[%s9321_s1 + $0x3cc] ss:$92 sps:$4 sm:$0xff]  }
 0x13a   :  { %v6011_v37 = vadd.f32 %v3679_v34, %v8166_v22  ;;  %v6019_v44 = vadd.f32 %v3785_v35, %v8166_v22  ;;  %v3681_v39 = vpop.f32.mrb[1].mxu0  ;;  %v3787_v40 = vpop.f32.mrb[1].mxu1  ;;  %v6699_v34 = vld [vmem:[%s9321_s1 + $0x544] ss:$92 sps:$4 sm:$0xff]  }
 0x13b   :  { %v6012_v41 = vadd.f32 %v3681_v39, %v8166_v22  ;;  %v6020_v42 = vadd.f32 %v3787_v40, %v8166_v22  ;;  %v3683_v43 = vpop.f32.mrb[2].mxu0  ;;  %v3789_v45 = vpop.f32.mrb[2].mxu1  ;;  %4235 = vmatpush1.bf16.msra.mxu0 %v6670_v28  ;;  %4341 = vmatpush1.bf16.msra.mxu1 %v6673_v29 }
 0x13c   :  { %v4856_v55 = vmax.f32 %v6011_v37, 0.0  ;;  %v4858_v49 = vmax.f32 %v6019_v44, 0.0  ;;  %v6013_v52 = vadd.f32 %v3683_v43, %v8193_v30  ;;  %v6021_v53 = vadd.f32 %v3789_v45, %v8193_v30  ;;  %v3685_v54 = vpop.f32.mrb[3].mxu0  ;;  %v3791_v56 = vpop.f32.mrb[3].mxu1  ;;  %4236 = vmatprep.subr.bf16.mxu0 %v6678_v31  ;;  %4342 = vmatprep.subr.bf16.mxu1 %v6681_v32 }
 0x13d   :  { %v4857_v60 = vmax.f32 %v6012_v41, 0.0  ;;  %v4859_v61 = vmax.f32 %v6020_v42, 0.0  ;;  %v6014_v62 = vadd.f32 %v3685_v54, %v8193_v30  ;;  %v6022_v63 = vadd.f32 %v3791_v56, %v8193_v30  ;;  %v6705_v54 = vld [vmem:[%s9321_s1 + $0x5fc] ss:$92 sps:$4 sm:$0xff]  }
 0x13e   :  { %v4879_v0 = vmax.f32 %v6013_v52, 0.0  ;;  %v4881_v1 = vmax.f32 %v6021_v53, 0.0  ;;  %v6702_v53 = vld [vmem:[%s9321_s1 + $0x5f4] ss:$92 sps:$4 sm:$0xff]  }
 0x13f   :  { %v5935_v2 = vpack.c.bf16 %v4857_v60, %v4856_v55  ;;  %v5936_v3 = vpack.c.bf16 %v4859_v61, %v4858_v49  ;;  %v4880_v6 = vmax.f32 %v6014_v62, 0.0  ;;  %v4882_v47 = vmax.f32 %v6022_v63, 0.0  ;;  %4237 = vmatpush1.bf16.msra.mxu0 %v6676_v36  ;;  %4343 = vmatpush1.bf16.msra.mxu1 %v6679_v46  ;;  %v6697_v55 = vld [vmem:[%s9321_s1 + $0x540] ss:$92 sps:$4 sm:$0xff]   ;;  %v6700_v60 = vld [vmem:[%s9321_s1 + $0x5f0] ss:$92 sps:$4 sm:$0xff]  }
 0x140   :  { %4238 = vmatprep.subr.bf16.mxu0 %v6684_v48  ;;  %4344 = vmatprep.subr.bf16.mxu1 %v6687_v58  ;;  %v6694_v48 = vld [vmem:[%s9321_s1 + $0x538] ss:$92 sps:$4 sm:$0xff]   ;;  %v6708_v62 = vld [vmem:[%s9321_s1 + $0x6ac] ss:$92 sps:$4 sm:$0xff]  }
 0x141   :  { %5228 = vst [vmem:[%s9324_s3] sm:$0xff] %v5935_v2  ;;  %5229 = vst [vmem:[%s9324_s3 + $0x8] sm:$0xff] %v5936_v3  ;;  %v5947_v10 = vpack.c.bf16 %v4880_v6, %v4879_v0  ;;  %v5948_v11 = vpack.c.bf16 %v4882_v47, %v4881_v1  ;;  %v3689_v16 = vpop.f32.mrb[4].mxu0  ;;  %v3795_v13 = vpop.f32.mrb[4].mxu1  ;;  %v6703_v61 = vld [vmem:[%s9321_s1 + $0x5f8] ss:$92 sps:$4 sm:$0xff]  }
 0x142   :  { %v6015_v19 = vadd.f32 %v3689_v16, %v8201_v33  ;;  %v3691_v15 = vpop.f32.mrb[5].mxu0  ;;  %v6023_v17 = vadd.f32 %v3795_v13, %v8201_v33  ;;  %v3797_v18 = vpop.f32.mrb[5].mxu1  ;;  %v6711_v63 = vld [vmem:[%s9321_s1 + $0x6b4] ss:$92 sps:$4 sm:$0xff]   ;;  %v6706_v0 = vld [vmem:[%s9321_s1 + $0x6a8] ss:$92 sps:$4 sm:$0xff]  }
 0x143   :  { %5240 = vst [vmem:[%s9324_s3 + $0x5c] sm:$0xff] %v5947_v10  ;;  %5241 = vst [vmem:[%s9324_s3 + $0x64] sm:$0xff] %v5948_v11  ;;  %v6016_v20 = vadd.f32 %v3691_v15, %v8201_v33  ;;  %v3693_v23 = vpop.f32.mrb[6].mxu0  ;;  %4239 = vmatpush1.bf16.msra.mxu0 %v6682_v4  ;;  %4345 = vmatpush1.bf16.msra.mxu1 %v6685_v5  ;;  %v6024_v26 = vadd.f32 %v3797_v18, %v8201_v33  ;;  %v3799_v28 = vpop.f32.mrb[6].mxu1  ;;  %v6709_v1 = vld [vmem:[%s9321_s1 + $0x6b0] ss:$92 sps:$4 sm:$0xff]  }
 0x144   :  { %v4902_v29 = vmax.f32 %v6015_v19, 0.0  ;;  %v6017_v31 = vadd.f32 %v3693_v23, %v8231_v9  ;;  %v3695_v32 = vpop.f32.mrb[7].mxu0  ;;  %4240 = vmatprep.subr.bf16.mxu0 %v6690_v7  ;;  %4346 = vmatprep.subr.bf16.mxu1 %v6693_v8  ;;  %v4904_v35 = vmax.f32 %v6023_v17, 0.0  ;;  %v6025_v36 = vadd.f32 %v3799_v28, %v8231_v9  ;;  %v3801_v37 = vpop.f32.mrb[7].mxu1  ;;  %v6714_v2 = vld [vmem:[%s9321_s1 + $0x764] ss:$92 sps:$4 sm:$0xff]  }
 0x145   :  { %v4903_v44 = vmax.f32 %v6016_v20, 0.0  ;;  %v6018_v39 = vadd.f32 %v3695_v32, %v8231_v9  ;;  %v4905_v40 = vmax.f32 %v6024_v26, 0.0  ;;  %v6026_v41 = vadd.f32 %v3801_v37, %v8231_v9  ;;  %v6717_v3 = vld [vmem:[%s9321_s1 + $0x76c] ss:$92 sps:$4 sm:$0xff]   ;;  %v6712_v6 = vld [vmem:[%s9321_s1 + $0x760] ss:$92 sps:$4 sm:$0xff]  }
 0x146   :  { %v4925_v42 = vmax.f32 %v6017_v31, 0.0  ;;  %v4927_v43 = vmax.f32 %v6025_v36, 0.0  ;;  %v6715_v47 = vld [vmem:[%s9321_s1 + $0x768] ss:$92 sps:$4 sm:$0xff]   ;;  %v6720_v4 = vld [vmem:[%s9321_s1 + $0x81c] ss:$92 sps:$4 sm:$0xff]  }
 0x147   :  { %v5959_v45 = vpack.c.bf16 %v4903_v44, %v4902_v29  ;;  %v4926_v46 = vmax.f32 %v6018_v39, 0.0  ;;  %4241 = vmatpush1.bf16.msra.mxu0 %v6688_v12  ;;  %4347 = vmatpush1.bf16.msra.mxu1 %v6691_v24  ;;  %v5960_v49 = vpack.c.bf16 %v4905_v40, %v4904_v35  ;;  %v4928_v52 = vmax.f32 %v6026_v41, 0.0  ;;  %v6723_v5 = vld [vmem:[%s9321_s1 + $0x824] ss:$92 sps:$4 sm:$0xff]   ;;  %v6718_v7 = vld [vmem:[%s9321_s1 + $0x818] ss:$92 sps:$4 sm:$0xff]  }
 0x148   :  { %4242 = vmatprep.subr.bf16.mxu0 %v6696_v25  ;;  %4348 = vmatprep.subr.bf16.mxu1 %v6699_v34  ;;  %v6721_v8 = vld [vmem:[%s9321_s1 + $0x820] ss:$92 sps:$4 sm:$0xff]   ;;  %v6726_v10 = vld [vmem:[%s9321_s1 + $0x8d4] ss:$92 sps:$4 sm:$0xff]   ;;  %v6732_v13 = vld [vmem:[%s9321_s1 + $0x98c] ss:$92 sps:$4 sm:$0xff]  }
 0x149   :  { %5252 = vst [vmem:[%s9324_s3 + $0xb8] sm:$0xff] %v5959_v45  ;;  %v5971_v56 = vpack.c.bf16 %v4926_v46, %v4925_v42  ;;  %5253 = vst [vmem:[%s9324_s3 + $0xc0] sm:$0xff] %v5960_v49  ;;  %v5972_v58 = vpack.c.bf16 %v4928_v52, %v4927_v43  ;;  %v6729_v11 = vld [vmem:[%s9321_s1 + $0x8dc] ss:$92 sps:$4 sm:$0xff]   ;;  %v6724_v16 = vld [vmem:[%s9321_s1 + $0x8d0] ss:$92 sps:$4 sm:$0xff]  }
 0x14a   :  { %v6727_v12 = vld [vmem:[%s9321_s1 + $0x8d8] ss:$92 sps:$4 sm:$0xff]   ;;  %v6730_v15 = vld [vmem:[%s9321_s1 + $0x988] ss:$92 sps:$4 sm:$0xff]   ;;  %v6733_v17 = vld [vmem:[%s9321_s1 + $0x990] ss:$92 sps:$4 sm:$0xff]  }
 0x14b   :  { %5264 = vst [vmem:[%s9324_s3 + $0x114] sm:$0xff] %v5971_v56  ;;  %4243 = vmatpush1.bf16.msra.mxu0 %v6694_v48  ;;  %4349 = vmatpush1.bf16.msra.mxu1 %v6697_v55  ;;  %5265 = vst [vmem:[%s9324_s3 + $0x11c] sm:$0xff] %v5972_v58  ;;  %v6735_v19 = vld [vmem:[%s9321_s1 + $0x994] ss:$92 sps:$4 sm:$0xff]   ;;  %v6738_v18 = vld [vmem:[%s9321_s1 + $0xa44] ss:$92 sps:$4 sm:$0xff]  }
 0x14c   :  { %4244 = vmatprep.subr.bf16.mxu0 %v6702_v53  ;;  %4350 = vmatprep.subr.bf16.mxu1 %v6705_v54  ;;  %v6741_v20 = vld [vmem:[%s9321_s1 + $0xa4c] ss:$92 sps:$4 sm:$0xff]   ;;  %v6736_v23 = vld [vmem:[%s9321_s1 + $0xa40] ss:$92 sps:$4 sm:$0xff]   ;;  %v6742_v28 = vld [vmem:[%s9321_s1 + $0xaf8] ss:$92 sps:$4 sm:$0xff]  }
 0x14d   :  { %v6739_v24 = vld [vmem:[%s9321_s1 + $0xa48] ss:$92 sps:$4 sm:$0xff]   ;;  %v6744_v25 = vld [vmem:[%s9321_s1 + $0xafc] ss:$92 sps:$4 sm:$0xff]   ;;  %v6750_v31 = vld [vmem:[%s9321_s1 + $0xbb4] ss:$92 sps:$4 sm:$0xff]  }
 0x14e   :  { %v6747_v26 = vld [vmem:[%s9321_s1 + $0xb04] ss:$92 sps:$4 sm:$0xff]   ;;  %v6753_v32 = vld [vmem:[%s9321_s1 + $0xbbc] ss:$92 sps:$4 sm:$0xff]   ;;  %v6748_v34 = vld [vmem:[%s9321_s1 + $0xbb0] ss:$92 sps:$4 sm:$0xff]  }
 0x14f   :  { %4245 = vmatpush1.bf16.msra.mxu0 %v6700_v60  ;;  %4351 = vmatpush1.bf16.msra.mxu1 %v6703_v61  ;;  %v6745_v29 = vld [vmem:[%s9321_s1 + $0xb00] ss:$92 sps:$4 sm:$0xff]   ;;  %v6751_v35 = vld [vmem:[%s9321_s1 + $0xbb8] ss:$92 sps:$4 sm:$0xff]   ;;  %v6756_v36 = vld [vmem:[%s9321_s1 + $0xc6c] ss:$92 sps:$4 sm:$0xff]  }
 0x150   :  { %4246 = vmatprep.subr.bf16.mxu0 %v6708_v62  ;;  %4352 = vmatprep.subr.bf16.mxu1 %v6711_v63  ;;  %v6759_v37 = vld [vmem:[%s9321_s1 + $0xc74] ss:$92 sps:$4 sm:$0xff]   ;;  %v6754_v44 = vld [vmem:[%s9321_s1 + $0xc68] ss:$92 sps:$4 sm:$0xff]   ;;  %v6760_v41 = vld [vmem:[%s9321_s1 + $0xd20] ss:$92 sps:$4 sm:$0xff]  }
 0x151   :  { %v6757_v39 = vld [vmem:[%s9321_s1 + $0xc70] ss:$92 sps:$4 sm:$0xff]   ;;  %v6762_v40 = vld [vmem:[%s9321_s1 + $0xd24] ss:$92 sps:$4 sm:$0xff]   ;;  %v6768_v43 = vld [vmem:[%s9321_s1 + $0xddc] ss:$92 sps:$4 sm:$0xff]  }
 0x152   :  { %v6763_v42 = vld [vmem:[%s9321_s1 + $0xd28] ss:$92 sps:$4 sm:$0xff]   ;;  %v6766_v46 = vld [vmem:[%s9321_s1 + $0xdd8] ss:$92 sps:$4 sm:$0xff]   ;;  %v6781_v54 = vld [vmem:[%s9321_s1 + $0xf50] ss:$92 sps:$4 sm:$0xff]  }
 0x153   :  { %4247 = vmatpush1.bf16.msra.mxu0 %v6706_v0  ;;  %4353 = vmatpush1.bf16.msra.mxu1 %v6709_v1  ;;  %v6771_v45 = vld [vmem:[%s9321_s1 + $0xde4] ss:$92 sps:$4 sm:$0xff]   ;;  %v6774_v48 = vld [vmem:[%s9321_s1 + $0xe94] ss:$92 sps:$4 sm:$0xff]   ;;  %v6777_v55 = vld [vmem:[%s9321_s1 + $0xe9c] ss:$92 sps:$4 sm:$0xff]  }
 0x154   :  { %4248 = vmatprep.subr.bf16.mxu0 %v6714_v2  ;;  %4354 = vmatprep.subr.bf16.mxu1 %v6717_v3  ;;  %v6775_v49 = vld [vmem:[%s9321_s1 + $0xe98] ss:$92 sps:$4 sm:$0xff]   ;;  %v6780_v52 = vld [vmem:[%s9321_s1 + $0xf4c] ss:$92 sps:$4 sm:$0xff]   ;;  %v6786_v56 = vld [vmem:[%s9321_s1 + $0x1004] ss:$92 sps:$4 sm:$0xff]  }
 0x155   :  { %v6778_v53 = vld [vmem:[%s9321_s1 + $0xf48] ss:$92 sps:$4 sm:$0xff]   ;;  %v6784_v60 = vld [vmem:[%s9321_s1 + $0x1000] ss:$92 sps:$4 sm:$0xff]   ;;  %v6790_v0 = vld [vmem:[%s9321_s1 + $0x10b8] ss:$92 sps:$4 sm:$0xff]  }
 0x156   :  { %v6789_v58 = vld [vmem:[%s9321_s1 + $0x100c] ss:$92 sps:$4 sm:$0xff]   ;;  %v6792_v62 = vld [vmem:[%s9321_s1 + $0x10bc] ss:$92 sps:$4 sm:$0xff]   ;;  %v6795_v63 = vld [vmem:[%s9321_s1 + $0x10c4] ss:$92 sps:$4 sm:$0xff]  }
 0x157   :  { %4249 = vmatpush1.bf16.msra.mxu0 %v6712_v6  ;;  %4355 = vmatpush1.bf16.msra.mxu1 %v6715_v47  ;;  %v6787_v61 = vld [vmem:[%s9321_s1 + $0x1008] ss:$92 sps:$4 sm:$0xff]   ;;  %v6793_v1 = vld [vmem:[%s9321_s1 + $0x10c0] ss:$92 sps:$4 sm:$0xff]   ;;  %v6798_v2 = vld [vmem:[%s9321_s1 + $0x1174] ss:$92 sps:$4 sm:$0xff]  }
 0x158   :  { %4250 = vmatprep.subr.bf16.mxu0 %v6720_v4  ;;  %4356 = vmatprep.subr.bf16.mxu1 %v6723_v5  ;;  %v6801_v3 = vld [vmem:[%s9321_s1 + $0x117c] ss:$92 sps:$4 sm:$0xff]   ;;  %v6796_v6 = vld [vmem:[%s9321_s1 + $0x1170] ss:$92 sps:$4 sm:$0xff]   ;;  %v6804_v4 = vld [vmem:[%s9321_s1 + $0x44] ss:$92 sps:$4 sm:$0xff]  }
 0x159   :  { %v6799_v47 = vld [vmem:[%s9321_s1 + $0x1178] ss:$92 sps:$4 sm:$0xff]   ;;  %v6807_v5 = vld [vmem:[%s9321_s1 + $0x4c] ss:$92 sps:$4 sm:$0xff]  }
 0x15b   :  { %4251 = vmatpush1.bf16.msra.mxu0 %v6718_v7  ;;  %4357 = vmatpush1.bf16.msra.mxu1 %v6721_v8  ;;  %v6802_v7 = vld [vmem:[%s9321_s1 + $0x40] ss:$92 sps:$4 sm:$0xff]   ;;  %v6805_v8 = vld [vmem:[%s9321_s1 + $0x48] ss:$92 sps:$4 sm:$0xff]  }
 0x15c   :  { %4252 = vmatprep.subr.bf16.mxu0 %v6726_v10  ;;  %4358 = vmatprep.subr.bf16.mxu1 %v6729_v11  ;;  %v6810_v10 = vld [vmem:[%s9321_s1 + $0xfc] ss:$92 sps:$4 sm:$0xff]   ;;  %v6813_v11 = vld [vmem:[%s9321_s1 + $0x104] ss:$92 sps:$4 sm:$0xff]  }
 0x15f   :  { %4253 = vmatpush1.bf16.msra.mxu0 %v6724_v16  ;;  %4359 = vmatpush1.bf16.msra.mxu1 %v6727_v12  ;;  %v6808_v16 = vld [vmem:[%s9321_s1 + $0xf8] ss:$92 sps:$4 sm:$0xff]   ;;  %v6811_v12 = vld [vmem:[%s9321_s1 + $0x100] ss:$92 sps:$4 sm:$0xff]  }
 0x160   :  { %4254 = vmatprep.subr.bf16.mxu0 %v6732_v13  ;;  %4360 = vmatprep.subr.bf16.mxu1 %v6735_v19  ;;  %v6816_v13 = vld [vmem:[%s9321_s1 + $0x1b4] ss:$92 sps:$4 sm:$0xff]  }
 0x161   :  { %v6814_v19 = vld [vmem:[%s9321_s1 + $0x1b0] ss:$92 sps:$4 sm:$0xff]  }
 0x163   :  { %4255 = vmatpush1.bf16.msra.mxu0 %v6730_v15  ;;  %4361 = vmatpush1.bf16.msra.mxu1 %v6733_v17  ;;  %v6817_v15 = vld [vmem:[%s9321_s1 + $0x1b8] ss:$92 sps:$4 sm:$0xff]   ;;  %v6822_v17 = vld [vmem:[%s9321_s1 + $0x26c] ss:$92 sps:$4 sm:$0xff]  }
 0x164   :  { %4256 = vmatprep.subr.bf16.mxu0 %v6738_v18  ;;  %4362 = vmatprep.subr.bf16.mxu1 %v6741_v20  ;;  %v6820_v18 = vld [vmem:[%s9321_s1 + $0x268] ss:$92 sps:$4 sm:$0xff]   ;;  %v6823_v20 = vld [vmem:[%s9321_s1 + $0x270] ss:$92 sps:$4 sm:$0xff]  }
 0x167   :  { %4257 = vmatpush1.bf16.msra.mxu0 %v6736_v23  ;;  %4363 = vmatpush1.bf16.msra.mxu1 %v6739_v24  ;;  %v6828_v23 = vld [vmem:[%s9321_s1 + $0x324] ss:$92 sps:$4 sm:$0xff]  }
 0x168   :  { %4258 = vmatprep.subr.bf16.mxu0 %v6744_v25  ;;  %4364 = vmatprep.subr.bf16.mxu1 %v6747_v26  ;;  %v8568_v26 = vld [vmem:[%s9322_s0 + $0x4] ss:$16 sps:$4 sm:$0xff]  }
 0x16b   :  { %4259 = vmatpush1.bf16.msra.mxu0 %v6742_v28  ;;  %4365 = vmatpush1.bf16.msra.mxu1 %v6745_v29 }
 0x16c   :  { %4281 = vmatprep.subr.bf16.mxu0 %v6750_v31  ;;  %4387 = vmatprep.subr.bf16.mxu1 %v6753_v32 }
 0x16e   :  { %4261 = vmatmul.mubr.bf16.vlgmr.msra.gmra.mrb[24].mxu0 %v8003_v38  ;;  %4367 = vmatmul.mubr.bf16.vlgmr.msra.gmra.mrb[24].mxu1 %v8003_v38  ;;  %v6765_v38 = vld [vmem:[%s9321_s1 + $0xd2c] ss:$92 sps:$4 sm:$0xff]  }
 0x16f   :  { %4282 = vmatpush1.bf16.msra.mxu0 %v6748_v34  ;;  %4388 = vmatpush1.bf16.msra.mxu1 %v6751_v35  ;;  %v6826_v34 = vld [vmem:[%s9321_s1 + $0x320] ss:$92 sps:$4 sm:$0xff]  }
 0x170   :  { %4283 = vmatprep.subr.bf16.mxu0 %v6756_v36  ;;  %4389 = vmatprep.subr.bf16.mxu1 %v6759_v37 }
 0x171   :  { %4270 = vmatprep.mubr.bf16.mxu0 %v8022_v50  ;;  %4376 = vmatprep.mubr.bf16.mxu1 %v8022_v50  ;;  %v6769_v50 = vld [vmem:[%s9321_s1 + $0xde0] ss:$92 sps:$4 sm:$0xff]  }
 0x173   :  { %4284 = vmatpush1.bf16.msra.mxu0 %v6754_v44  ;;  %4390 = vmatpush1.bf16.msra.mxu1 %v6757_v39  ;;  %v6829_v39 = vld [vmem:[%s9321_s1 + $0x328] ss:$92 sps:$4 sm:$0xff]  }
 0x174   :  { %4285 = vmatprep.subr.bf16.mxu0 %v6762_v40  ;;  %4391 = vmatprep.subr.bf16.mxu1 %v6765_v38  ;;  %v6834_v40 = vld [vmem:[%s9321_s1 + $0x3dc] ss:$92 sps:$4 sm:$0xff]  }
 0x176   :  { %4271 = vmatmul.mubr.bf16.gmra.mrb[28].mxu0 %v8047_v51  ;;  %4377 = vmatmul.mubr.bf16.gmra.mrb[28].mxu1 %v8047_v51  ;;  %v6772_v51 = vld [vmem:[%s9321_s1 + $0xe90] ss:$92 sps:$4 sm:$0xff]  }
 0x177   :  { %4286 = vmatpush1.bf16.msra.mxu0 %v6760_v41  ;;  %4392 = vmatpush1.bf16.msra.mxu1 %v6763_v42 }
 0x178   :  { %4287 = vmatprep.subr.bf16.mxu0 %v6768_v43  ;;  %4393 = vmatprep.subr.bf16.mxu1 %v6771_v45 }
 0x179   :  { %5875 = vmatprep.mubr.msk.bf16.mxu0 %vm3585_vm0, %v8066_v57  ;;  %5877 = vmatprep.mubr.msk.bf16.mxu1 %vm3585_vm0, %v8066_v57  ;;  %v6783_v57 = vld [vmem:[%s9321_s1 + $0xf54] ss:$92 sps:$4 sm:$0xff]  }
 0x17b   :  { %4288 = vmatpush1.bf16.msra.mxu0 %v6766_v46  ;;  %4394 = vmatpush1.bf16.msra.mxu1 %v6769_v50  ;;  %v6837_v50 = vld [vmem:[%s9321_s1 + $0x3e4] ss:$92 sps:$4 sm:$0xff]  }
 0x17c   :  { %4289 = vmatprep.subr.bf16.mxu0 %v6774_v48  ;;  %4395 = vmatprep.subr.bf16.mxu1 %v6777_v55 }
 0x17f   :  { %4290 = vmatpush1.bf16.msra.mxu0 %v6772_v51  ;;  %4396 = vmatpush1.bf16.msra.mxu1 %v6775_v49 }
 0x180   :  { %4291 = vmatprep.subr.bf16.mxu0 %v6780_v52  ;;  %4397 = vmatprep.subr.bf16.mxu1 %v6783_v57 }
 0x183   :  { %4292 = vmatpush1.bf16.msra.mxu0 %v6778_v53  ;;  %4398 = vmatpush1.bf16.msra.mxu1 %v6781_v54 }
 0x184   :  { %4293 = vmatprep.subr.bf16.mxu0 %v6786_v56  ;;  %4399 = vmatprep.subr.bf16.mxu1 %v6789_v58 }
 0x187   :  { %4294 = vmatpush1.bf16.msra.mxu0 %v6784_v60  ;;  %4400 = vmatpush1.bf16.msra.mxu1 %v6787_v61  ;;  %v6832_v60 = vld [vmem:[%s9321_s1 + $0x3d8] ss:$92 sps:$4 sm:$0xff]   ;;  %v6835_v61 = vld [vmem:[%s9321_s1 + $0x3e0] ss:$92 sps:$4 sm:$0xff]  }
 0x188   :  { %4295 = vmatprep.subr.bf16.mxu0 %v6792_v62  ;;  %4401 = vmatprep.subr.bf16.mxu1 %v6795_v63  ;;  %v6840_v62 = vld [vmem:[%s9321_s1 + $0x494] ss:$92 sps:$4 sm:$0xff]   ;;  %v6843_v63 = vld [vmem:[%s9321_s1 + $0x49c] ss:$92 sps:$4 sm:$0xff]  }
 0x18b   :  { %4296 = vmatpush1.bf16.msra.mxu0 %v6790_v0  ;;  %4402 = vmatpush1.bf16.msra.mxu1 %v6793_v1 }
 0x18c   :  { %4297 = vmatprep.subr.bf16.mxu0 %v6798_v2  ;;  %4403 = vmatprep.subr.bf16.mxu1 %v6801_v3 }
 0x18f   :  { %4298 = vmatpush1.bf16.msra.mxu0 %v6796_v6  ;;  %4404 = vmatpush1.bf16.msra.mxu1 %v6799_v47 }
 0x190   :  { %4440 = vmatprep.subr.bf16.mxu0 %v6804_v4  ;;  %4546 = vmatprep.subr.bf16.mxu1 %v6807_v5  ;;  %v6838_v4 = vld [vmem:[%s9321_s1 + $0x490] ss:$92 sps:$4 sm:$0xff]  }
 0x192   :  { %4314 = vmatmul.mubr.bf16.vlgmr.msra.gmra.mrb[24].mxu0 %v8141_v14  ;;  %4420 = vmatmul.mubr.bf16.vlgmr.msra.gmra.mrb[24].mxu1 %v8141_v14  ;;  %v6819_v14 = vld [vmem:[%s9321_s1 + $0x1bc] ss:$92 sps:$4 sm:$0xff]  }
 0x193   :  { %4441 = vmatpush1.bf16.msra.mxu0 %v6802_v7  ;;  %4547 = vmatpush1.bf16.msra.mxu1 %v6805_v8 }
 0x194   :  { %4442 = vmatprep.subr.bf16.mxu0 %v6810_v10  ;;  %4548 = vmatprep.subr.bf16.mxu1 %v6813_v11  ;;  %v6841_v11 = vld [vmem:[%s9321_s1 + $0x498] ss:$92 sps:$4 sm:$0xff]  }
 0x195   :  { %5876 = vmatprep.mubr.msk.bf16.mxu0 %vm3585_vm0, %v8160_v21  ;;  %5878 = vmatprep.mubr.msk.bf16.mxu1 %vm3585_vm0, %v8160_v21  ;;  %v6825_v21 = vld [vmem:[%s9321_s1 + $0x274] ss:$92 sps:$4 sm:$0xff]  }
 0x197   :  { %4443 = vmatpush1.bf16.msra.mxu0 %v6808_v16  ;;  %4549 = vmatpush1.bf16.msra.mxu1 %v6811_v12  ;;  %v6846_v16 = vld [vmem:[%s9321_s1 + $0x54c] ss:$92 sps:$4 sm:$0xff]  }
 0x198   :  { %4444 = vmatprep.subr.bf16.mxu0 %v6816_v13  ;;  %4550 = vmatprep.subr.bf16.mxu1 %v6819_v14 }
 0x19a   :  { %4324 = vmatmul.mubr.bf16.gmra.mrb[28].mxu0 %v8183_v27  ;;  %4430 = vmatmul.mubr.bf16.gmra.mrb[28].mxu1 %v8183_v27  ;;  %v6831_v27 = vld [vmem:[%s9321_s1 + $0x32c] ss:$92 sps:$4 sm:$0xff]  }
 0x19b   :  { %4445 = vmatpush1.bf16.msra.mxu0 %v6814_v19  ;;  %4551 = vmatpush1.bf16.msra.mxu1 %v6817_v15 }
 0x19c   :  { %4446 = vmatprep.subr.bf16.mxu0 %v6822_v17  ;;  %4552 = vmatprep.subr.bf16.mxu1 %v6825_v21  ;;  %v6849_v17 = vld [vmem:[%s9321_s1 + $0x554] ss:$92 sps:$4 sm:$0xff]  }
 0x19d   :  { %v3891_v24 = vpop.f32.mrb[8].mxu0  ;;  %v3997_v25 = vpop.f32.mrb[8].mxu1  ;;  %4472 = vmatprep.mubr.bf16.mxu0 %v8568_v26  ;;  %4578 = vmatprep.mubr.bf16.mxu1 %v8568_v26 }
 0x19e   :  { %v6027_v28 = vadd.f32 %v3891_v24, %v8166_v22  ;;  %v6035_v29 = vadd.f32 %v3997_v25, %v8166_v22  ;;  %v3893_v31 = vpop.f32.mrb[9].mxu0  ;;  %v3999_v32 = vpop.f32.mrb[9].mxu1 }
 0x19f   :  { %v6028_v35 = vadd.f32 %v3893_v31, %v8166_v22  ;;  %v6036_v36 = vadd.f32 %v3999_v32, %v8166_v22  ;;  %v3895_v37 = vpop.f32.mrb[10].mxu0  ;;  %v4001_v44 = vpop.f32.mrb[10].mxu1  ;;  %4447 = vmatpush1.bf16.msra.mxu0 %v6820_v18  ;;  %4553 = vmatpush1.bf16.msra.mxu1 %v6823_v20 }
 0x1a0   :  { %v4860_v38 = vmax.f32 %v6027_v28, 0.0  ;;  %v4862_v41 = vmax.f32 %v6035_v29, 0.0  ;;  %v6029_v42 = vadd.f32 %v3895_v37, %v8193_v30  ;;  %v6037_v43 = vadd.f32 %v4001_v44, %v8193_v30  ;;  %v3897_v45 = vpop.f32.mrb[11].mxu0  ;;  %v4003_v46 = vpop.f32.mrb[11].mxu1  ;;  %4448 = vmatprep.subr.bf16.mxu0 %v6828_v23  ;;  %4554 = vmatprep.subr.bf16.mxu1 %v6831_v27  ;;  %v6852_v44 = vld [vmem:[%s9321_s1 + $0x604] ss:$92 sps:$4 sm:$0xff]  }
 0x1a1   :  { %v4861_v48 = vmax.f32 %v6028_v35, 0.0  ;;  %v4863_v55 = vmax.f32 %v6036_v36, 0.0  ;;  %v6030_v51 = vadd.f32 %v3897_v45, %v8193_v30  ;;  %v6038_v49 = vadd.f32 %v4003_v46, %v8193_v30  ;;  %v6847_v35 = vld [vmem:[%s9321_s1 + $0x550] ss:$92 sps:$4 sm:$0xff]   ;;  %v6861_v45 = vld [vmem:[%s9321_s1 + $0x6c4] ss:$92 sps:$4 sm:$0xff]  }
 0x1a2   :  { %v4883_v52 = vmax.f32 %v6029_v42, 0.0  ;;  %v4885_v57 = vmax.f32 %v6037_v43, 0.0  ;;  %v6853_v42 = vld [vmem:[%s9321_s1 + $0x608] ss:$92 sps:$4 sm:$0xff]   ;;  %v6858_v43 = vld [vmem:[%s9321_s1 + $0x6bc] ss:$92 sps:$4 sm:$0xff]  }
 0x1a3   :  { %v5937_v53 = vpack.c.bf16 %v4861_v48, %v4860_v38  ;;  %v5938_v54 = vpack.c.bf16 %v4863_v55, %v4862_v41  ;;  %v4884_v56 = vmax.f32 %v6030_v51, 0.0  ;;  %v4886_v58 = vmax.f32 %v6038_v49, 0.0  ;;  %4449 = vmatpush1.bf16.msra.mxu0 %v6826_v34  ;;  %4555 = vmatpush1.bf16.msra.mxu1 %v6829_v39  ;;  %v6844_v34 = vld [vmem:[%s9321_s1 + $0x548] ss:$92 sps:$4 sm:$0xff]   ;;  %v6850_v41 = vld [vmem:[%s9321_s1 + $0x600] ss:$92 sps:$4 sm:$0xff]  }
 0x1a4   :  { %4450 = vmatprep.subr.bf16.mxu0 %v6834_v40  ;;  %4556 = vmatprep.subr.bf16.mxu1 %v6837_v50  ;;  %v6855_v39 = vld [vmem:[%s9321_s1 + $0x60c] ss:$92 sps:$4 sm:$0xff]   ;;  %v6856_v46 = vld [vmem:[%s9321_s1 + $0x6b8] ss:$92 sps:$4 sm:$0xff]   ;;  %v6859_v50 = vld [vmem:[%s9321_s1 + $0x6c0] ss:$92 sps:$4 sm:$0xff]  }
 0x1a5   :  { %5230 = vst [vmem:[%s9324_s3 + $0x10] sm:$0xff] %v5937_v53  ;;  %5231 = vst [vmem:[%s9324_s3 + $0x18] sm:$0xff] %v5938_v54  ;;  %v5949_v0 = vpack.c.bf16 %v4884_v56, %v4883_v52  ;;  %v5950_v1 = vpack.c.bf16 %v4886_v58, %v4885_v57  ;;  %v3901_v2 = vpop.f32.mrb[12].mxu0  ;;  %v4007_v3 = vpop.f32.mrb[12].mxu1  ;;  %v6864_v48 = vld [vmem:[%s9321_s1 + $0x774] ss:$92 sps:$4 sm:$0xff]  }
 0x1a6   :  { %v6031_v6 = vadd.f32 %v3901_v2, %v8201_v33  ;;  %v3903_v47 = vpop.f32.mrb[13].mxu0  ;;  %v6039_v5 = vadd.f32 %v4007_v3, %v8201_v33  ;;  %v4009_v7 = vpop.f32.mrb[13].mxu1  ;;  %v6867_v55 = vld [vmem:[%s9321_s1 + $0x77c] ss:$92 sps:$4 sm:$0xff]   ;;  %v6862_v51 = vld [vmem:[%s9321_s1 + $0x770] ss:$92 sps:$4 sm:$0xff]  }
 0x1a7   :  { %5242 = vst [vmem:[%s9324_s3 + $0x6c] sm:$0xff] %v5949_v0  ;;  %5243 = vst [vmem:[%s9324_s3 + $0x74] sm:$0xff] %v5950_v1  ;;  %v6032_v8 = vadd.f32 %v3903_v47, %v8201_v33  ;;  %v3905_v10 = vpop.f32.mrb[14].mxu0  ;;  %4451 = vmatpush1.bf16.msra.mxu0 %v6832_v60  ;;  %4557 = vmatpush1.bf16.msra.mxu1 %v6835_v61  ;;  %v6040_v12 = vadd.f32 %v4009_v7, %v8201_v33  ;;  %v4011_v13 = vpop.f32.mrb[14].mxu1  ;;  %v6865_v49 = vld [vmem:[%s9321_s1 + $0x778] ss:$92 sps:$4 sm:$0xff]  }
 0x1a8   :  { %v4906_v14 = vmax.f32 %v6031_v6, 0.0  ;;  %v6033_v19 = vadd.f32 %v3905_v10, %v8231_v9  ;;  %v3907_v15 = vpop.f32.mrb[15].mxu0  ;;  %4452 = vmatprep.subr.bf16.mxu0 %v6840_v62  ;;  %4558 = vmatprep.subr.bf16.mxu1 %v6843_v63  ;;  %v4908_v21 = vmax.f32 %v6039_v5, 0.0  ;;  %v6041_v18 = vadd.f32 %v4011_v13, %v8231_v9  ;;  %v4013_v20 = vpop.f32.mrb[15].mxu1  ;;  %v6870_v52 = vld [vmem:[%s9321_s1 + $0x82c] ss:$92 sps:$4 sm:$0xff]  }
 0x1a9   :  { %v4907_v23 = vmax.f32 %v6032_v8, 0.0  ;;  %v6034_v27 = vadd.f32 %v3907_v15, %v8231_v9  ;;  %v4909_v24 = vmax.f32 %v6040_v12, 0.0  ;;  %v6042_v25 = vadd.f32 %v4013_v20, %v8231_v9  ;;  %v6873_v57 = vld [vmem:[%s9321_s1 + $0x834] ss:$92 sps:$4 sm:$0xff]   ;;  %v6868_v53 = vld [vmem:[%s9321_s1 + $0x828] ss:$92 sps:$4 sm:$0xff]  }
 0x1aa   :  { %v4929_v28 = vmax.f32 %v6033_v19, 0.0  ;;  %v4931_v29 = vmax.f32 %v6041_v18, 0.0  ;;  %v6871_v54 = vld [vmem:[%s9321_s1 + $0x830] ss:$92 sps:$4 sm:$0xff]   ;;  %v6876_v56 = vld [vmem:[%s9321_s1 + $0x8e4] ss:$92 sps:$4 sm:$0xff]  }
 0x1ab   :  { %v5961_v31 = vpack.c.bf16 %v4907_v23, %v4906_v14  ;;  %v4930_v32 = vmax.f32 %v6034_v27, 0.0  ;;  %4453 = vmatpush1.bf16.msra.mxu0 %v6838_v4  ;;  %4559 = vmatpush1.bf16.msra.mxu1 %v6841_v11  ;;  %v5962_v36 = vpack.c.bf16 %v4909_v24, %v4908_v21  ;;  %v4932_v37 = vmax.f32 %v6042_v25, 0.0  ;;  %v6879_v58 = vld [vmem:[%s9321_s1 + $0x8ec] ss:$92 sps:$4 sm:$0xff]   ;;  %v6874_v60 = vld [vmem:[%s9321_s1 + $0x8e0] ss:$92 sps:$4 sm:$0xff]  }
 0x1ac   :  { %4454 = vmatprep.subr.bf16.mxu0 %v6846_v16  ;;  %4560 = vmatprep.subr.bf16.mxu1 %v6849_v17  ;;  %v6877_v61 = vld [vmem:[%s9321_s1 + $0x8e8] ss:$92 sps:$4 sm:$0xff]   ;;  %v6882_v62 = vld [vmem:[%s9321_s1 + $0x99c] ss:$92 sps:$4 sm:$0xff]   ;;  %v6888_v2 = vld [vmem:[%s9321_s1 + $0xa54] ss:$92 sps:$4 sm:$0xff]  }
 0x1ad   :  { %5254 = vst [vmem:[%s9324_s3 + $0xc8] sm:$0xff] %v5961_v31  ;;  %v5973_v40 = vpack.c.bf16 %v4930_v32, %v4929_v28  ;;  %5255 = vst [vmem:[%s9324_s3 + $0xd0] sm:$0xff] %v5962_v36  ;;  %v5974_v38 = vpack.c.bf16 %v4932_v37, %v4931_v29  ;;  %v6885_v63 = vld [vmem:[%s9321_s1 + $0x9a4] ss:$92 sps:$4 sm:$0xff]   ;;  %v6880_v0 = vld [vmem:[%s9321_s1 + $0x998] ss:$92 sps:$4 sm:$0xff]  }
 0x1ae   :  { %v6883_v1 = vld [vmem:[%s9321_s1 + $0x9a0] ss:$92 sps:$4 sm:$0xff]   ;;  %v6886_v6 = vld [vmem:[%s9321_s1 + $0xa50] ss:$92 sps:$4 sm:$0xff]   ;;  %v6889_v47 = vld [vmem:[%s9321_s1 + $0xa58] ss:$92 sps:$4 sm:$0xff]  }
 0x1af   :  { %5266 = vst [vmem:[%s9324_s3 + $0x124] sm:$0xff] %v5973_v40  ;;  %4455 = vmatpush1.bf16.msra.mxu0 %v6844_v34  ;;  %4561 = vmatpush1.bf16.msra.mxu1 %v6847_v35  ;;  %5267 = vst [vmem:[%s9324_s3 + $0x12c] sm:$0xff] %v5974_v38  ;;  %v6891_v3 = vld [vmem:[%s9321_s1 + $0xa5c] ss:$92 sps:$4 sm:$0xff]   ;;  %v6894_v4 = vld [vmem:[%s9321_s1 + $0xb0c] ss:$92 sps:$4 sm:$0xff]  }
 0x1b0   :  { %4456 = vmatprep.subr.bf16.mxu0 %v6852_v44  ;;  %4562 = vmatprep.subr.bf16.mxu1 %v6855_v39  ;;  %v6897_v5 = vld [vmem:[%s9321_s1 + $0xb14] ss:$92 sps:$4 sm:$0xff]   ;;  %v6892_v7 = vld [vmem:[%s9321_s1 + $0xb08] ss:$92 sps:$4 sm:$0xff]   ;;  %v6898_v16 = vld [vmem:[%s9321_s1 + $0xbc0] ss:$92 sps:$4 sm:$0xff]  }
 0x1b1   :  { %v6895_v8 = vld [vmem:[%s9321_s1 + $0xb10] ss:$92 sps:$4 sm:$0xff]   ;;  %v6900_v10 = vld [vmem:[%s9321_s1 + $0xbc4] ss:$92 sps:$4 sm:$0xff]   ;;  %v6906_v13 = vld [vmem:[%s9321_s1 + $0xc7c] ss:$92 sps:$4 sm:$0xff]  }
 0x1b2   :  { %v6903_v11 = vld [vmem:[%s9321_s1 + $0xbcc] ss:$92 sps:$4 sm:$0xff]   ;;  %v6909_v14 = vld [vmem:[%s9321_s1 + $0xc84] ss:$92 sps:$4 sm:$0xff]   ;;  %v6904_v15 = vld [vmem:[%s9321_s1 + $0xc78] ss:$92 sps:$4 sm:$0xff]  }
 0x1b3   :  { %4457 = vmatpush1.bf16.msra.mxu0 %v6850_v41  ;;  %4563 = vmatpush1.bf16.msra.mxu1 %v6853_v42  ;;  %v6901_v12 = vld [vmem:[%s9321_s1 + $0xbc8] ss:$92 sps:$4 sm:$0xff]   ;;  %v8771_v19 = vld [vmem:[%s9322_s0] ss:$16 sps:$4 sm:$0xff]   ;;  %v6915_v18 = vld [vmem:[%s9321_s1 + $0xd3c] ss:$92 sps:$4 sm:$0xff]  }
 0x1b4   :  { %4458 = vmatprep.subr.bf16.mxu0 %v6858_v43  ;;  %4564 = vmatprep.subr.bf16.mxu1 %v6861_v45  ;;  %v6907_v17 = vld [vmem:[%s9321_s1 + $0xc80] ss:$92 sps:$4 sm:$0xff]   ;;  %v6912_v21 = vld [vmem:[%s9321_s1 + $0xd34] ss:$92 sps:$4 sm:$0xff]   ;;  %v6918_v24 = vld [vmem:[%s9321_s1 + $0xdec] ss:$92 sps:$4 sm:$0xff]  }
 0x1b5   :  { %v8790_v20 = vld [vmem:[%s9322_s0 + $0x24] ss:$16 sps:$4 sm:$0xff]   ;;  %v6910_v23 = vld [vmem:[%s9321_s1 + $0xd30] ss:$92 sps:$4 sm:$0xff]   ;;  %v6922_v36 = vld [vmem:[%s9321_s1 + $0xea0] ss:$92 sps:$4 sm:$0xff]  }
 0x1b6   :  { %v6913_v27 = vld [vmem:[%s9321_s1 + $0xd38] ss:$92 sps:$4 sm:$0xff]   ;;  %v8809_v28 = vld [vmem:[%s9322_s0 + $0x20] ss:$16 sps:$4 sm:$0xff]   ;;  %v6916_v29 = vld [vmem:[%s9321_s1 + $0xde8] ss:$92 sps:$4 sm:$0xff]  }
 0x1b7   :  { %4459 = vmatpush1.bf16.msra.mxu0 %v6856_v46  ;;  %4565 = vmatpush1.bf16.msra.mxu1 %v6859_v50  ;;  %v6921_v25 = vld [vmem:[%s9321_s1 + $0xdf4] ss:$92 sps:$4 sm:$0xff]   ;;  %v6924_v32 = vld [vmem:[%s9321_s1 + $0xea4] ss:$92 sps:$4 sm:$0xff]   ;;  %v6927_v34 = vld [vmem:[%s9321_s1 + $0xeac] ss:$92 sps:$4 sm:$0xff]  }
 0x1b8   :  { %4460 = vmatprep.subr.bf16.mxu0 %v6864_v48  ;;  %4566 = vmatprep.subr.bf16.mxu1 %v6867_v55  ;;  %v6919_v31 = vld [vmem:[%s9321_s1 + $0xdf0] ss:$92 sps:$4 sm:$0xff]   ;;  %v6925_v37 = vld [vmem:[%s9321_s1 + $0xea8] ss:$92 sps:$4 sm:$0xff]   ;;  %v6930_v44 = vld [vmem:[%s9321_s1 + $0xf5c] ss:$92 sps:$4 sm:$0xff]  }
 0x1b9   :  { %v8828_v35 = vld [vmem:[%s9322_s0 + $0xc] ss:$16 sps:$4 sm:$0xff]   ;;  %v6933_v39 = vld [vmem:[%s9321_s1 + $0xf64] ss:$92 sps:$4 sm:$0xff]   ;;  %v6928_v40 = vld [vmem:[%s9321_s1 + $0xf58] ss:$92 sps:$4 sm:$0xff]  }
 0x1ba   :  { %v6931_v38 = vld [vmem:[%s9321_s1 + $0xf60] ss:$92 sps:$4 sm:$0xff]   ;;  %v6936_v41 = vld [vmem:[%s9321_s1 + $0x1014] ss:$92 sps:$4 sm:$0xff]   ;;  %v6942_v46 = vld [vmem:[%s9321_s1 + $0x10cc] ss:$92 sps:$4 sm:$0xff]  }
 0x1bb   :  { %4461 = vmatpush1.bf16.msra.mxu0 %v6862_v51  ;;  %4567 = vmatpush1.bf16.msra.mxu1 %v6865_v49  ;;  %v6939_v42 = vld [vmem:[%s9321_s1 + $0x101c] ss:$92 sps:$4 sm:$0xff]   ;;  %v6934_v43 = vld [vmem:[%s9321_s1 + $0x1010] ss:$92 sps:$4 sm:$0xff]   ;;  %v6940_v48 = vld [vmem:[%s9321_s1 + $0x10c8] ss:$92 sps:$4 sm:$0xff]  }
 0x1bc   :  { %4462 = vmatprep.subr.bf16.mxu0 %v6870_v52  ;;  %4568 = vmatprep.subr.bf16.mxu1 %v6873_v57  ;;  %v6937_v45 = vld [vmem:[%s9321_s1 + $0x1018] ss:$92 sps:$4 sm:$0xff]   ;;  %v6943_v55 = vld [vmem:[%s9321_s1 + $0x10d0] ss:$92 sps:$4 sm:$0xff]   ;;  %v6948_v51 = vld [vmem:[%s9321_s1 + $0x1184] ss:$92 sps:$4 sm:$0xff]  }
 0x1bd   :  { %v6945_v50 = vld [vmem:[%s9321_s1 + $0x10d4] ss:$92 sps:$4 sm:$0xff]   ;;  %v6951_v49 = vld [vmem:[%s9321_s1 + $0x118c] ss:$92 sps:$4 sm:$0xff]   ;;  %v6946_v52 = vld [vmem:[%s9321_s1 + $0x1180] ss:$92 sps:$4 sm:$0xff]  }
 0x1be   :  { %v6949_v57 = vld [vmem:[%s9321_s1 + $0x1188] ss:$92 sps:$4 sm:$0xff]  }
 0x1bf   :  { %4463 = vmatpush1.bf16.msra.mxu0 %v6868_v53  ;;  %4569 = vmatpush1.bf16.msra.mxu1 %v6871_v54  ;;  %v6954_v53 = vld [vmem:[%s9321_s1 + $0x54] ss:$92 sps:$4 sm:$0xff]  }
 0x1c0   :  { %4464 = vmatprep.subr.bf16.mxu0 %v6876_v56  ;;  %4570 = vmatprep.subr.bf16.mxu1 %v6879_v58  ;;  %v6955_v54 = vld [vmem:[%s9321_s1 + $0x618] ss:$92 sps:$4 sm:$0xff]   ;;  %v6952_v56 = vld [vmem:[%s9321_s1 + $0x50] ss:$92 sps:$4 sm:$0xff]  }
 0x1c1   :  { %v6956_v58 = vld [vmem:[%s9321_s1 + $0x58] ss:$92 sps:$4 sm:$0xff]  }
 0x1c3   :  { %4465 = vmatpush1.bf16.msra.mxu0 %v6874_v60  ;;  %4571 = vmatpush1.bf16.msra.mxu1 %v6877_v61  ;;  %v6959_v60 = vld [vmem:[%s9321_s1 + $0x10c] ss:$92 sps:$4 sm:$0xff]  }
 0x1c4   :  { %4466 = vmatprep.subr.bf16.mxu0 %v6882_v62  ;;  %4572 = vmatprep.subr.bf16.mxu1 %v6885_v63  ;;  %v6960_v61 = vld [vmem:[%s9321_s1 + $0x6d0] ss:$92 sps:$4 sm:$0xff]   ;;  %v8909_v62 = vld [vmem:[%s9322_s0 + $0x8] ss:$16 sps:$4 sm:$0xff]  }
 0x1c5   :  { %v6957_v63 = vld [vmem:[%s9321_s1 + $0x108] ss:$92 sps:$4 sm:$0xff]  }
 0x1c7   :  { %4467 = vmatpush1.bf16.msra.mxu0 %v6880_v0  ;;  %4573 = vmatpush1.bf16.msra.mxu1 %v6883_v1  ;;  %v6961_v0 = vld [vmem:[%s9321_s1 + $0x110] ss:$92 sps:$4 sm:$0xff]   ;;  %v6964_v1 = vld [vmem:[%s9321_s1 + $0x1c4] ss:$92 sps:$4 sm:$0xff]  }
 0x1c8   :  { %4468 = vmatprep.subr.bf16.mxu0 %v6888_v2  ;;  %4574 = vmatprep.subr.bf16.mxu1 %v6891_v3  ;;  %v6965_v2 = vld [vmem:[%s9321_s1 + $0x788] ss:$92 sps:$4 sm:$0xff]   ;;  %v8928_v3 = vld [vmem:[%s9322_s0 + $0x2c] ss:$16 sps:$4 sm:$0xff]  }
 0x1cb   :  { %4469 = vmatpush1.bf16.msra.mxu0 %v6886_v6  ;;  %4575 = vmatpush1.bf16.msra.mxu1 %v6889_v47  ;;  %v6962_v6 = vld [vmem:[%s9321_s1 + $0x1c0] ss:$92 sps:$4 sm:$0xff]   ;;  %v6966_v47 = vld [vmem:[%s9321_s1 + $0x1c8] ss:$92 sps:$4 sm:$0xff]  }
 0x1cc   :  { %4470 = vmatprep.subr.bf16.mxu0 %v6894_v4  ;;  %4576 = vmatprep.subr.bf16.mxu1 %v6897_v5  ;;  %v6969_v4 = vld [vmem:[%s9321_s1 + $0x27c] ss:$92 sps:$4 sm:$0xff]  }
 0x1cd   :  { %v6970_v5 = vld [vmem:[%s9321_s1 + $0x840] ss:$92 sps:$4 sm:$0xff]  }
 0x1cf   :  { %4471 = vmatpush1.bf16.msra.mxu0 %v6892_v7  ;;  %4577 = vmatpush1.bf16.msra.mxu1 %v6895_v8  ;;  %v8949_v7 = vld [vmem:[%s9322_s0 + $0x28] ss:$16 sps:$4 sm:$0xff]  }
 0x1d0   :  { %4493 = vmatprep.subr.bf16.mxu0 %v6900_v10  ;;  %4599 = vmatprep.subr.bf16.mxu1 %v6903_v11  ;;  %v6967_v8 = vld [vmem:[%s9321_s1 + $0x278] ss:$92 sps:$4 sm:$0xff]   ;;  %v6971_v10 = vld [vmem:[%s9321_s1 + $0x280] ss:$92 sps:$4 sm:$0xff]  }
 0x1d1   :  { %v6974_v11 = vld [vmem:[%s9321_s1 + $0x334] ss:$92 sps:$4 sm:$0xff]  }
 0x1d2   :  { %4473 = vmatmul.mubr.bf16.vlgmr.msra.gmra.mrb[32].mxu0 %v8771_v19  ;;  %4579 = vmatmul.mubr.bf16.vlgmr.msra.gmra.mrb[32].mxu1 %v8771_v19 }
 0x1d3   :  { %4494 = vmatpush1.bf16.msra.mxu0 %v6898_v16  ;;  %4600 = vmatpush1.bf16.msra.mxu1 %v6901_v12  ;;  %v6975_v16 = vld [vmem:[%s9321_s1 + $0x8f8] ss:$92 sps:$4 sm:$0xff]  }
 0x1d4   :  { %4495 = vmatprep.subr.bf16.mxu0 %v6906_v13  ;;  %4601 = vmatprep.subr.bf16.mxu1 %v6909_v14 }
 0x1d5   :  { %4482 = vmatprep.mubr.bf16.mxu0 %v8790_v20  ;;  %4588 = vmatprep.mubr.bf16.mxu1 %v8790_v20 }
 0x1d7   :  { %4496 = vmatpush1.bf16.msra.mxu0 %v6904_v15  ;;  %4602 = vmatpush1.bf16.msra.mxu1 %v6907_v17 }
 0x1d8   :  { %4497 = vmatprep.subr.bf16.mxu0 %v6912_v21  ;;  %4603 = vmatprep.subr.bf16.mxu1 %v6915_v18  ;;  %v6972_v18 = vld [vmem:[%s9321_s1 + $0x330] ss:$92 sps:$4 sm:$0xff]  }
 0x1da   :  { %4483 = vmatmul.mubr.bf16.gmra.mrb[36].mxu0 %v8809_v28  ;;  %4589 = vmatmul.mubr.bf16.gmra.mrb[36].mxu1 %v8809_v28 }
 0x1db   :  { %4498 = vmatpush1.bf16.msra.mxu0 %v6910_v23  ;;  %4604 = vmatpush1.bf16.msra.mxu1 %v6913_v27 }
 0x1dc   :  { %4499 = vmatprep.subr.bf16.mxu0 %v6918_v24  ;;  %4605 = vmatprep.subr.bf16.mxu1 %v6921_v25 }
 0x1dd   :  { %5879 = vmatprep.mubr.msk.bf16.mxu0 %vm3585_vm0, %v8828_v35  ;;  %5881 = vmatprep.mubr.msk.bf16.mxu1 %vm3585_vm0, %v8828_v35 }
 0x1df   :  { %4500 = vmatpush1.bf16.msra.mxu0 %v6916_v29  ;;  %4606 = vmatpush1.bf16.msra.mxu1 %v6919_v31  ;;  %v6979_v29 = vld [vmem:[%s9321_s1 + $0x3ec] ss:$92 sps:$4 sm:$0xff]  }
 0x1e0   :  { %4501 = vmatprep.subr.bf16.mxu0 %v6924_v32  ;;  %4607 = vmatprep.subr.bf16.mxu1 %v6927_v34 }
 0x1e3   :  { %4502 = vmatpush1.bf16.msra.mxu0 %v6922_v36  ;;  %4608 = vmatpush1.bf16.msra.mxu1 %v6925_v37 }
 0x1e4   :  { %4503 = vmatprep.subr.bf16.mxu0 %v6930_v44  ;;  %4609 = vmatprep.subr.bf16.mxu1 %v6933_v39  ;;  %v6980_v39 = vld [vmem:[%s9321_s1 + $0x9b0] ss:$92 sps:$4 sm:$0xff]  }
 0x1e7   :  { %4504 = vmatpush1.bf16.msra.mxu0 %v6928_v40  ;;  %4610 = vmatpush1.bf16.msra.mxu1 %v6931_v38 }
 0x1e8   :  { %4505 = vmatprep.subr.bf16.mxu0 %v6936_v41  ;;  %4611 = vmatprep.subr.bf16.mxu1 %v6939_v42 }
 0x1eb   :  { %4506 = vmatpush1.bf16.msra.mxu0 %v6934_v43  ;;  %4612 = vmatpush1.bf16.msra.mxu1 %v6937_v45 }
 0x1ec   :  { %4507 = vmatprep.subr.bf16.mxu0 %v6942_v46  ;;  %4613 = vmatprep.subr.bf16.mxu1 %v6945_v50 }
 0x1ef   :  { %4508 = vmatpush1.bf16.msra.mxu0 %v6940_v48  ;;  %4614 = vmatpush1.bf16.msra.mxu1 %v6943_v55 }
 0x1f0   :  { %4509 = vmatprep.subr.bf16.mxu0 %v6948_v51  ;;  %4615 = vmatprep.subr.bf16.mxu1 %v6951_v49  ;;  %v6977_v51 = vld [vmem:[%s9321_s1 + $0x3e8] ss:$92 sps:$4 sm:$0xff]   ;;  %v6981_v49 = vld [vmem:[%s9321_s1 + $0x3f0] ss:$92 sps:$4 sm:$0xff]  }
 0x1f3   :  { %4510 = vmatpush1.bf16.msra.mxu0 %v6946_v52  ;;  %4616 = vmatpush1.bf16.msra.mxu1 %v6949_v57  ;;  %v6984_v52 = vld [vmem:[%s9321_s1 + $0x4a4] ss:$92 sps:$4 sm:$0xff]  }
 0x1f4   :  { %4652 = vmatprep.subr.bf16.mxu0 %v6954_v53  ;;  %5983 = vmatprep.subr.bf16.mxu1 %v6955_v54  ;;  %v6985_v57 = vld [vmem:[%s9321_s1 + $0xa68] ss:$92 sps:$4 sm:$0xff]  }
 0x1f6   :  { %4526 = vmatmul.mubr.bf16.vlgmr.msra.gmra.mrb[32].mxu0 %v8909_v62  ;;  %4632 = vmatmul.mubr.bf16.vlgmr.msra.gmra.mrb[32].mxu1 %v8909_v62 }
 0x1f7   :  { %4653 = vmatpush1.bf16.msra.mxu0 %v6952_v56  ;;  %5984 = vmatpush3.bf16.msra.mxu1 %v6956_v58 }
 0x1f8   :  { %4654 = vmatprep.subr.bf16.mxu0 %v6959_v60  ;;  %5985 = vmatprep.subr.bf16.mxu1 %v6960_v61 }
 0x1f9   :  { %5880 = vmatprep.mubr.msk.bf16.mxu0 %vm3585_vm0, %v8928_v3  ;;  %5882 = vmatprep.mubr.msk.bf16.mxu1 %vm3585_vm0, %v8928_v3 }
 0x1fb   :  { %4655 = vmatpush1.bf16.msra.mxu0 %v6957_v63  ;;  %5986 = vmatpush3.bf16.msra.mxu1 %v6961_v0  ;;  %v6982_v63 = vld [vmem:[%s9321_s1 + $0x4a0] ss:$92 sps:$4 sm:$0xff]  }
 0x1fc   :  { %4656 = vmatprep.subr.bf16.mxu0 %v6964_v1  ;;  %5987 = vmatprep.subr.bf16.mxu1 %v6965_v2 }
 0x1fe   :  { %4536 = vmatmul.mubr.bf16.gmra.mrb[36].mxu0 %v8949_v7  ;;  %4642 = vmatmul.mubr.bf16.gmra.mrb[36].mxu1 %v8949_v7 }
 0x1ff   :  { %4657 = vmatpush1.bf16.msra.mxu0 %v6962_v6  ;;  %5988 = vmatpush3.bf16.msra.mxu1 %v6966_v47  ;;  %v6986_v47 = vld [vmem:[%s9321_s1 + $0x4a8] ss:$92 sps:$4 sm:$0xff]  }
 0x200   :  { %4658 = vmatprep.subr.bf16.mxu0 %v6969_v4  ;;  %5989 = vmatprep.subr.bf16.mxu1 %v6970_v5  ;;  %v6989_v4 = vld [vmem:[%s9321_s1 + $0x55c] ss:$92 sps:$4 sm:$0xff]  }
 0x201   :  { %v4103_v12 = vpop.f32.mrb[16].mxu0  ;;  %v4209_v13 = vpop.f32.mrb[16].mxu1  ;;  %4790 = vmatprep.mubr.bf16.mxu1 %v8568_v26  ;;  %4684 = vmatprep.mubr.bf16.mxu0 %v8568_v26  ;;  %v6976_v26 = vld [vmem:[%s9321_s1 + $0x338] ss:$92 sps:$4 sm:$0xff]  }
 0x202   :  { %v6043_v14 = vadd.f32 %v4103_v12, %v8166_v22  ;;  %v6051_v15 = vadd.f32 %v4209_v13, %v8166_v22  ;;  %v4105_v17 = vpop.f32.mrb[17].mxu0  ;;  %v4211_v21 = vpop.f32.mrb[17].mxu1  ;;  %v6990_v12 = vld [vmem:[%s9321_s1 + $0xb20] ss:$92 sps:$4 sm:$0xff]  }
 0x203   :  { %v6044_v23 = vadd.f32 %v4105_v17, %v8166_v22  ;;  %v6052_v27 = vadd.f32 %v4211_v21, %v8166_v22  ;;  %v4107_v24 = vpop.f32.mrb[18].mxu0  ;;  %v4213_v25 = vpop.f32.mrb[18].mxu1  ;;  %4659 = vmatpush1.bf16.msra.mxu0 %v6967_v8  ;;  %5990 = vmatpush3.bf16.msra.mxu1 %v6971_v10 }
 0x204   :  { %v4864_v31 = vmax.f32 %v6043_v14, 0.0  ;;  %v4866_v32 = vmax.f32 %v6051_v15, 0.0  ;;  %v6045_v34 = vadd.f32 %v4107_v24, %v8193_v30  ;;  %v6053_v36 = vadd.f32 %v4213_v25, %v8193_v30  ;;  %v4109_v37 = vpop.f32.mrb[19].mxu0  ;;  %v4215_v44 = vpop.f32.mrb[19].mxu1  ;;  %4660 = vmatprep.subr.bf16.mxu0 %v6974_v11  ;;  %5991 = vmatprep.subr.bf16.mxu1 %v6975_v16 }
 0x205   :  { %v4865_v40 = vmax.f32 %v6044_v23, 0.0  ;;  %v4867_v38 = vmax.f32 %v6052_v27, 0.0  ;;  %v6046_v41 = vadd.f32 %v4109_v37, %v8193_v30  ;;  %v6054_v42 = vadd.f32 %v4215_v44, %v8193_v30 }
 0x206   :  { %v4887_v43 = vmax.f32 %v6045_v34, 0.0  ;;  %v4889_v45 = vmax.f32 %v6053_v36, 0.0  ;;  %v6994_v36 = vld [vmem:[%s9321_s1 + $0x614] ss:$92 sps:$4 sm:$0xff]  }
 0x207   :  { %v5939_v46 = vpack.c.bf16 %v4865_v40, %v4864_v31  ;;  %v5940_v50 = vpack.c.bf16 %v4867_v38, %v4866_v32  ;;  %v4888_v48 = vmax.f32 %v6046_v41, 0.0  ;;  %v4890_v55 = vmax.f32 %v6054_v42, 0.0  ;;  %4661 = vmatpush1.bf16.msra.mxu0 %v6972_v18  ;;  %5992 = vmatpush3.bf16.msra.mxu1 %v6976_v26  ;;  %v6991_v31 = vld [vmem:[%s9321_s1 + $0x560] ss:$92 sps:$4 sm:$0xff]   ;;  %v6995_v40 = vld [vmem:[%s9321_s1 + $0xbd8] ss:$92 sps:$4 sm:$0xff]  }
 0x208   :  { %4662 = vmatprep.subr.bf16.mxu0 %v6979_v29  ;;  %5993 = vmatprep.subr.bf16.mxu1 %v6980_v39  ;;  %v6987_v29 = vld [vmem:[%s9321_s1 + $0x558] ss:$92 sps:$4 sm:$0xff]   ;;  %v6992_v39 = vld [vmem:[%s9321_s1 + $0x610] ss:$92 sps:$4 sm:$0xff]   ;;  %v6996_v41 = vld [vmem:[%s9321_s1 + $0x6c8] ss:$92 sps:$4 sm:$0xff]  }
 0x209   :  { %5232 = vst [vmem:[%s9324_s3 + $0x20] sm:$0xff] %v5939_v46  ;;  %5233 = vst [vmem:[%s9324_s3 + $0x28] sm:$0xff] %v5940_v50  ;;  %v5951_v53 = vpack.c.bf16 %v4888_v48, %v4887_v43  ;;  %v5952_v54 = vpack.c.bf16 %v4890_v55, %v4889_v45  ;;  %v4113_v56 = vpop.f32.mrb[20].mxu0  ;;  %v4219_v58 = vpop.f32.mrb[20].mxu1  ;;  %v6998_v38 = vld [vmem:[%s9321_s1 + $0x6cc] ss:$92 sps:$4 sm:$0xff]  }
 0x20a   :  { %v6047_v60 = vadd.f32 %v4113_v56, %v8201_v33  ;;  %v4115_v61 = vpop.f32.mrb[21].mxu0  ;;  %v6055_v0 = vadd.f32 %v4219_v58, %v8201_v33  ;;  %v4221_v1 = vpop.f32.mrb[21].mxu1  ;;  %v6999_v42 = vld [vmem:[%s9321_s1 + $0xc90] ss:$92 sps:$4 sm:$0xff]   ;;  %v7002_v43 = vld [vmem:[%s9321_s1 + $0x784] ss:$92 sps:$4 sm:$0xff]  }
 0x20b   :  { %5244 = vst [vmem:[%s9324_s3 + $0x7c] sm:$0xff] %v5951_v53  ;;  %5245 = vst [vmem:[%s9324_s3 + $0x84] sm:$0xff] %v5952_v54  ;;  %v6048_v2 = vadd.f32 %v4115_v61, %v8201_v33  ;;  %v4117_v6 = vpop.f32.mrb[22].mxu0  ;;  %4663 = vmatpush1.bf16.msra.mxu0 %v6977_v51  ;;  %5994 = vmatpush3.bf16.msra.mxu1 %v6981_v49  ;;  %v6056_v5 = vadd.f32 %v4221_v1, %v8201_v33  ;;  %v4223_v8 = vpop.f32.mrb[22].mxu1  ;;  %v7000_v45 = vld [vmem:[%s9321_s1 + $0x780] ss:$92 sps:$4 sm:$0xff]  }
 0x20c   :  { %v4910_v10 = vmax.f32 %v6047_v60, 0.0  ;;  %v6049_v11 = vadd.f32 %v4117_v6, %v8231_v9  ;;  %v4119_v16 = vpop.f32.mrb[23].mxu0  ;;  %4664 = vmatprep.subr.bf16.mxu0 %v6984_v52  ;;  %5995 = vmatprep.subr.bf16.mxu1 %v6985_v57  ;;  %v4912_v13 = vmax.f32 %v6055_v0, 0.0  ;;  %v6057_v14 = vadd.f32 %v4223_v8, %v8231_v9  ;;  %v4225_v15 = vpop.f32.mrb[23].mxu1  ;;  %v7003_v46 = vld [vmem:[%s9321_s1 + $0xd48] ss:$92 sps:$4 sm:$0xff]  }
 0x20d   :  { %v4911_v17 = vmax.f32 %v6048_v2, 0.0  ;;  %v6050_v21 = vadd.f32 %v4119_v16, %v8231_v9  ;;  %v4913_v18 = vmax.f32 %v6056_v5, 0.0  ;;  %v6058_v23 = vadd.f32 %v4225_v15, %v8231_v9  ;;  %v7006_v50 = vld [vmem:[%s9321_s1 + $0x83c] ss:$92 sps:$4 sm:$0xff]   ;;  %v7010_v51 = vld [vmem:[%s9321_s1 + $0x8f4] ss:$92 sps:$4 sm:$0xff]  }
 0x20e   :  { %v4933_v27 = vmax.f32 %v6049_v11, 0.0  ;;  %v4935_v24 = vmax.f32 %v6057_v14, 0.0  ;;  %v7004_v48 = vld [vmem:[%s9321_s1 + $0x838] ss:$92 sps:$4 sm:$0xff]   ;;  %v7007_v55 = vld [vmem:[%s9321_s1 + $0xe00] ss:$92 sps:$4 sm:$0xff]  }
 0x20f   :  { %v5963_v25 = vpack.c.bf16 %v4911_v17, %v4910_v10  ;;  %v4934_v26 = vmax.f32 %v6050_v21, 0.0  ;;  %4665 = vmatpush1.bf16.msra.mxu0 %v6982_v63  ;;  %5996 = vmatpush3.bf16.msra.mxu1 %v6986_v47  ;;  %v5964_v32 = vpack.c.bf16 %v4913_v18, %v4912_v13  ;;  %v4936_v34 = vmax.f32 %v6058_v23, 0.0  ;;  %v7008_v49 = vld [vmem:[%s9321_s1 + $0x8f0] ss:$92 sps:$4 sm:$0xff]   ;;  %v7011_v52 = vld [vmem:[%s9321_s1 + $0xeb8] ss:$92 sps:$4 sm:$0xff]  }
 0x210   :  { %4666 = vmatprep.subr.bf16.mxu0 %v6989_v4  ;;  %5997 = vmatprep.subr.bf16.mxu1 %v6990_v12  ;;  %v7014_v57 = vld [vmem:[%s9321_s1 + $0x9ac] ss:$92 sps:$4 sm:$0xff]   ;;  %v7018_v56 = vld [vmem:[%s9321_s1 + $0xa64] ss:$92 sps:$4 sm:$0xff]   ;;  %v7022_v61 = vld [vmem:[%s9321_s1 + $0xb1c] ss:$92 sps:$4 sm:$0xff]  }
 0x211   :  { %5256 = vst [vmem:[%s9324_s3 + $0xd8] sm:$0xff] %v5963_v25  ;;  %v5975_v37 = vpack.c.bf16 %v4934_v26, %v4933_v27  ;;  %5257 = vst [vmem:[%s9324_s3 + $0xe0] sm:$0xff] %v5964_v32  ;;  %v5976_v44 = vpack.c.bf16 %v4936_v34, %v4935_v24  ;;  %v7012_v53 = vld [vmem:[%s9321_s1 + $0x9a8] ss:$92 sps:$4 sm:$0xff]   ;;  %v7015_v54 = vld [vmem:[%s9321_s1 + $0xf70] ss:$92 sps:$4 sm:$0xff]  }
 0x212   :  { %v7016_v58 = vld [vmem:[%s9321_s1 + $0xa60] ss:$92 sps:$4 sm:$0xff]   ;;  %v7019_v60 = vld [vmem:[%s9321_s1 + $0x1028] ss:$92 sps:$4 sm:$0xff]   ;;  %v7020_v63 = vld [vmem:[%s9321_s1 + $0xb18] ss:$92 sps:$4 sm:$0xff]  }
 0x213   :  { %5268 = vst [vmem:[%s9324_s3 + $0x134] sm:$0xff] %v5975_v37  ;;  %4667 = vmatpush1.bf16.msra.mxu0 %v6987_v29  ;;  %5998 = vmatpush3.bf16.msra.mxu1 %v6991_v31  ;;  %5269 = vst [vmem:[%s9324_s3 + $0x13c] sm:$0xff] %v5976_v44  ;;  %v7023_v0 = vld [vmem:[%s9321_s1 + $0x10e0] ss:$92 sps:$4 sm:$0xff]   ;;  %v7026_v1 = vld [vmem:[%s9321_s1 + $0xbd4] ss:$92 sps:$4 sm:$0xff]  }
 0x214   :  { %4668 = vmatprep.subr.bf16.mxu0 %v6994_v36  ;;  %4807 = vmatprep.subr.bf16.mxu1 %v7068_v59  ;;  %v7024_v2 = vld [vmem:[%s9321_s1 + $0xbd0] ss:$92 sps:$4 sm:$0xff]   ;;  %v7027_v6 = vld [vmem:[%s9321_s1 + $0x1198] ss:$92 sps:$4 sm:$0xff]   ;;  %v7028_v4 = vld [vmem:[%s9321_s1 + $0xc88] ss:$92 sps:$4 sm:$0xff]  }
 0x215   :  { %v7030_v47 = vld [vmem:[%s9321_s1 + $0xc8c] ss:$92 sps:$4 sm:$0xff]   ;;  %v7033_v5 = vld [vmem:[%s9321_s1 + $0xd44] ss:$92 sps:$4 sm:$0xff]   ;;  %v7039_v8 = vld [vmem:[%s9321_s1 + $0xeb4] ss:$92 sps:$4 sm:$0xff]  }
 0x216   :  { %4791 = vmatmul.mubr.bf16.vlgmr.msra.gmra.mrb[40].mxu1 %v8771_v19  ;;  %v7042_v10 = vld [vmem:[%s9321_s1 + $0xf6c] ss:$92 sps:$4 sm:$0xff]   ;;  %v7045_v11 = vld [vmem:[%s9321_s1 + $0x1024] ss:$92 sps:$4 sm:$0xff]   ;;  %v7048_v12 = vld [vmem:[%s9321_s1 + $0x10dc] ss:$92 sps:$4 sm:$0xff]  }
 0x217   :  { %4669 = vmatpush1.bf16.msra.mxu0 %v6992_v39  ;;  %4808 = vmatpush1.bf16.msra.mxu1 %v6995_v40  ;;  %v7043_v16 = vld [vmem:[%s9321_s1 + $0x1020] ss:$92 sps:$4 sm:$0xff]   ;;  %v7046_v13 = vld [vmem:[%s9321_s1 + $0x10d8] ss:$92 sps:$4 sm:$0xff]   ;;  %v7049_v15 = vld [vmem:[%s9321_s1 + $0x1190] ss:$92 sps:$4 sm:$0xff]  }
 0x218   :  { %4670 = vmatprep.subr.bf16.mxu0 %v6998_v38  ;;  %4809 = vmatprep.subr.bf16.mxu1 %v7068_v59  ;;  %v7051_v14 = vld [vmem:[%s9321_s1 + $0x1194] ss:$92 sps:$4 sm:$0xff]  }
 0x219   :  { %4798 = vmatprep.mubr.bf16.mxu1 %v8790_v20 }
 0x21b   :  { %4671 = vmatpush1.bf16.msra.mxu0 %v6996_v41  ;;  %4810 = vmatpush1.bf16.msra.mxu1 %v6999_v42 }
 0x21c   :  { %4672 = vmatprep.subr.bf16.mxu0 %v7002_v43  ;;  %4811 = vmatprep.subr.bf16.mxu1 %v7068_v59 }
 0x21e   :  { %4799 = vmatmul.mubr.bf16.gmra.mrb[44].mxu1 %v8809_v28 }
 0x21f   :  { %4673 = vmatpush1.bf16.msra.mxu0 %v7000_v45  ;;  %4812 = vmatpush1.bf16.msra.mxu1 %v7003_v46 }
 0x220   :  { %4674 = vmatprep.subr.bf16.mxu0 %v7006_v50  ;;  %4813 = vmatprep.subr.bf16.mxu1 %v7068_v59 }
 0x221   :  { %5885 = vmatprep.mubr.msk.bf16.mxu1 %vm3585_vm0, %v8828_v35 }
 0x223   :  { %4675 = vmatpush1.bf16.msra.mxu0 %v7004_v48  ;;  %4814 = vmatpush1.bf16.msra.mxu1 %v7007_v55 }
 0x224   :  { %4676 = vmatprep.subr.bf16.mxu0 %v7010_v51  ;;  %4815 = vmatprep.subr.bf16.mxu1 %v7068_v59 }
 0x227   :  { %4677 = vmatpush1.bf16.msra.mxu0 %v7008_v49  ;;  %4816 = vmatpush1.bf16.msra.mxu1 %v7011_v52 }
 0x228   :  { %4678 = vmatprep.subr.bf16.mxu0 %v7014_v57  ;;  %4817 = vmatprep.subr.bf16.mxu1 %v7068_v59 }
 0x22b   :  { %4679 = vmatpush1.bf16.msra.mxu0 %v7012_v53  ;;  %4818 = vmatpush1.bf16.msra.mxu1 %v7015_v54 }
 0x22c   :  { %4680 = vmatprep.subr.bf16.mxu0 %v7018_v56  ;;  %4819 = vmatprep.subr.bf16.mxu1 %v7068_v59 }
 0x22f   :  { %4681 = vmatpush1.bf16.msra.mxu0 %v7016_v58  ;;  %4820 = vmatpush1.bf16.msra.mxu1 %v7019_v60 }
 0x230   :  { %4682 = vmatprep.subr.bf16.mxu0 %v7022_v61  ;;  %4821 = vmatprep.subr.bf16.mxu1 %v7068_v59 }
 0x233   :  { %4683 = vmatpush1.bf16.msra.mxu0 %v7020_v63  ;;  %4822 = vmatpush1.bf16.msra.mxu1 %v7023_v0 }
 0x234   :  { %4705 = vmatprep.subr.bf16.mxu0 %v7026_v1  ;;  %4823 = vmatprep.subr.bf16.mxu1 %v7068_v59  ;;  %v7031_v59 = vld [vmem:[%s9321_s1 + $0xd40] ss:$92 sps:$4 sm:$0xff]  }
 0x236   :  { %4685 = vmatmul.mubr.bf16.vlgmr.msra.gmra.mrb[40].mxu0 %v8771_v19  ;;  %v7036_v19 = vld [vmem:[%s9321_s1 + $0xdfc] ss:$92 sps:$4 sm:$0xff]  }
 0x237   :  { %4706 = vmatpush1.bf16.msra.mxu0 %v7024_v2  ;;  %4824 = vmatpush1.bf16.msra.mxu1 %v7027_v6 }
 0x238   :  { %4707 = vmatprep.subr.bf16.mxu0 %v7030_v47  ;;  %4694 = vmatprep.mubr.bf16.mxu0 %v8790_v20  ;;  %v7034_v20 = vld [vmem:[%s9321_s1 + $0xdf8] ss:$92 sps:$4 sm:$0xff]  }
 0x23a   :  { %4840 = vmatmul.mubr.bf16.vlgmr.msra.gmra.mrb[48].mxu1 %v8909_v62 }
 0x23b   :  { %4708 = vmatpush1.bf16.msra.mxu0 %v7028_v4  ;;  %5886 = vmatprep.mubr.msk.bf16.mxu1 %vm3585_vm0, %v8928_v3 }
 0x23c   :  { %4709 = vmatprep.subr.bf16.mxu0 %v7033_v5 }
 0x23e   :  { %4695 = vmatmul.mubr.bf16.gmra.mrb[44].mxu0 %v8809_v28  ;;  %v7037_v28 = vld [vmem:[%s9321_s1 + $0xeb0] ss:$92 sps:$4 sm:$0xff]  }
 0x23f   :  { %4710 = vmatpush1.bf16.msra.mxu0 %v7031_v59  ;;  %5883 = vmatprep.mubr.msk.bf16.mxu0 %vm3585_vm0, %v8828_v35  ;;  %v7040_v35 = vld [vmem:[%s9321_s1 + $0xf68] ss:$92 sps:$4 sm:$0xff]  }
 0x240   :  { %4711 = vmatprep.subr.bf16.mxu0 %v7036_v19 }
 0x242   :  { %4848 = vmatmul.mubr.bf16.gmra.mrb[52].mxu1 %v8949_v7 }
 0x243   :  { %4712 = vmatpush1.bf16.msra.mxu0 %v7034_v20 }
 0x244   :  { %4713 = vmatprep.subr.bf16.mxu0 %v7039_v8 }
 0x247   :  { %4714 = vmatpush1.bf16.msra.mxu0 %v7037_v28 }
 0x248   :  { %4715 = vmatprep.subr.bf16.mxu0 %v7042_v10 }
 0x24b   :  { %4716 = vmatpush1.bf16.msra.mxu0 %v7040_v35 }
 0x24c   :  { %4717 = vmatprep.subr.bf16.mxu0 %v7045_v11 }
 0x24f   :  { %4718 = vmatpush1.bf16.msra.mxu0 %v7043_v16 }
 0x250   :  { %4719 = vmatprep.subr.bf16.mxu0 %v7048_v12 }
 0x253   :  { %4720 = vmatpush1.bf16.msra.mxu0 %v7046_v13 }
 0x254   :  { %4721 = vmatprep.subr.bf16.mxu0 %v7051_v14 }
 0x257   :  { %4722 = vmatpush1.bf16.msra.mxu0 %v7049_v15 }
 0x25a   :  { %4738 = vmatmul.mubr.bf16.vlgmr.msra.gmra.mrb[40].mxu0 %v8909_v62 }
 0x25b   :  { %5884 = vmatprep.mubr.msk.bf16.mxu0 %vm3585_vm0, %v8928_v3 }
 0x262   :  { %4748 = vmatmul.mubr.bf16.gmra.mrb[44].mxu0 %v8949_v7 }
 0x265   :  { %v4315_v17 = vpop.f32.mrb[24].mxu0  ;;  %v4421_v21 = vpop.f32.mrb[24].mxu1 }
 0x266   :  { %v6059_v18 = vadd.f32 %v4315_v17, %v8166_v22  ;;  %v6067_v23 = vadd.f32 %v4421_v21, %v8166_v22  ;;  %v4317_v27 = vpop.f32.mrb[25].mxu0  ;;  %v4423_v24 = vpop.f32.mrb[25].mxu1 }
 0x267   :  { %v6060_v25 = vadd.f32 %v4317_v27, %v8166_v22  ;;  %v6068_v26 = vadd.f32 %v4423_v24, %v8166_v22  ;;  %v4319_v29 = vpop.f32.mrb[26].mxu0  ;;  %v4425_v31 = vpop.f32.mrb[26].mxu1 }
 0x268   :  { %v4868_v62 = vmax.f32 %v6059_v18, 0.0  ;;  %v4870_v32 = vmax.f32 %v6067_v23, 0.0  ;;  %v6061_v3 = vadd.f32 %v4319_v29, %v8193_v30  ;;  %v6069_v7 = vadd.f32 %v4425_v31, %v8193_v30  ;;  %v4321_v34 = vpop.f32.mrb[27].mxu0  ;;  %v4427_v36 = vpop.f32.mrb[27].mxu1 }
 0x269   :  { %v4869_v37 = vmax.f32 %v6060_v25, 0.0  ;;  %v4871_v44 = vmax.f32 %v6068_v26, 0.0  ;;  %v6062_v39 = vadd.f32 %v4321_v34, %v8193_v30  ;;  %v6070_v40 = vadd.f32 %v4427_v36, %v8193_v30 }
 0x26a   :  { %v4891_v38 = vmax.f32 %v6061_v3, 0.0  ;;  %v4893_v41 = vmax.f32 %v6069_v7, 0.0 }
 0x26b   :  { %v5941_v42 = vpack.c.bf16 %v4869_v37, %v4868_v62  ;;  %v5942_v43 = vpack.c.bf16 %v4871_v44, %v4870_v32  ;;  %v4892_v45 = vmax.f32 %v6062_v39, 0.0  ;;  %v4894_v46 = vmax.f32 %v6070_v40, 0.0 }
 0x26d   :  { %5234 = vst [vmem:[%s9324_s3 + $0x30] sm:$0xff] %v5941_v42  ;;  %5235 = vst [vmem:[%s9324_s3 + $0x38] sm:$0xff] %v5942_v43  ;;  %v5953_v50 = vpack.c.bf16 %v4892_v45, %v4891_v38  ;;  %v5954_v48 = vpack.c.bf16 %v4894_v46, %v4893_v41  ;;  %v4325_v55 = vpop.f32.mrb[28].mxu0  ;;  %v4431_v51 = vpop.f32.mrb[28].mxu1 }
 0x26e   :  { %v6063_v49 = vadd.f32 %v4325_v55, %v8201_v33  ;;  %v4327_v52 = vpop.f32.mrb[29].mxu0  ;;  %v6071_v57 = vadd.f32 %v4431_v51, %v8201_v33  ;;  %v4433_v53 = vpop.f32.mrb[29].mxu1 }
 0x26f   :  { %5246 = vst [vmem:[%s9324_s3 + $0x8c] sm:$0xff] %v5953_v50  ;;  %5247 = vst [vmem:[%s9324_s3 + $0x94] sm:$0xff] %v5954_v48  ;;  %v6064_v54 = vadd.f32 %v4327_v52, %v8201_v33  ;;  %v4329_v56 = vpop.f32.mrb[30].mxu0  ;;  %v6072_v58 = vadd.f32 %v4433_v53, %v8201_v33  ;;  %v4435_v60 = vpop.f32.mrb[30].mxu1 }
 0x270   :  { %v4914_v61 = vmax.f32 %v6063_v49, 0.0  ;;  %v6065_v63 = vadd.f32 %v4329_v56, %v8231_v9  ;;  %v4331_v0 = vpop.f32.mrb[31].mxu0  ;;  %v4916_v1 = vmax.f32 %v6071_v57, 0.0  ;;  %v6073_v2 = vadd.f32 %v4435_v60, %v8231_v9  ;;  %v4437_v6 = vpop.f32.mrb[31].mxu1 }
 0x271   :  { %v4915_v47 = vmax.f32 %v6064_v54, 0.0  ;;  %v6066_v4 = vadd.f32 %v4331_v0, %v8231_v9  ;;  %v4917_v5 = vmax.f32 %v6072_v58, 0.0  ;;  %v6074_v59 = vadd.f32 %v4437_v6, %v8231_v9 }
 0x272   :  { %v4937_v19 = vmax.f32 %v6065_v63, 0.0  ;;  %v4939_v20 = vmax.f32 %v6073_v2, 0.0 }
 0x273   :  { %v5965_v8 = vpack.c.bf16 %v4915_v47, %v4914_v61  ;;  %v4938_v28 = vmax.f32 %v6066_v4, 0.0  ;;  %v5966_v10 = vpack.c.bf16 %v4917_v5, %v4916_v1  ;;  %v4940_v35 = vmax.f32 %v6074_v59, 0.0 }
 0x275   :  { %5258 = vst [vmem:[%s9324_s3 + $0xe8] sm:$0xff] %v5965_v8  ;;  %v5977_v11 = vpack.c.bf16 %v4938_v28, %v4937_v19  ;;  %5259 = vst [vmem:[%s9324_s3 + $0xf0] sm:$0xff] %v5966_v10  ;;  %v5978_v16 = vpack.c.bf16 %v4940_v35, %v4939_v20 }
 0x277   :  { %5270 = vst [vmem:[%s9324_s3 + $0x144] sm:$0xff] %v5977_v11  ;;  %5271 = vst [vmem:[%s9324_s3 + $0x14c] sm:$0xff] %v5978_v16 }
 0x2c9   :  { %v4527_v12 = vpop.f32.mrb[32].mxu0  ;;  %v4633_v13 = vpop.f32.mrb[32].mxu1 }
 0x2ca   :  { %v6075_v14 = vadd.f32 %v4527_v12, %v8166_v22  ;;  %v6083_v15 = vadd.f32 %v4633_v13, %v8166_v22  ;;  %v4529_v17 = vpop.f32.mrb[33].mxu0  ;;  %v4635_v21 = vpop.f32.mrb[33].mxu1 }
 0x2cb   :  { %v6076_v18 = vadd.f32 %v4529_v17, %v8166_v22  ;;  %v6084_v23 = vadd.f32 %v4635_v21, %v8166_v22  ;;  %v4531_v27 = vpop.f32.mrb[34].mxu0  ;;  %v4637_v24 = vpop.f32.mrb[34].mxu1 }
 0x2cc   :  { %v4872_v25 = vmax.f32 %v6075_v14, 0.0  ;;  %v4874_v26 = vmax.f32 %v6083_v15, 0.0  ;;  %v6077_v29 = vadd.f32 %v4531_v27, %v8193_v30  ;;  %v6085_v31 = vadd.f32 %v4637_v24, %v8193_v30  ;;  %v4533_v62 = vpop.f32.mrb[35].mxu0  ;;  %v4639_v32 = vpop.f32.mrb[35].mxu1 }
 0x2cd   :  { %v4873_v3 = vmax.f32 %v6076_v18, 0.0  ;;  %v4875_v7 = vmax.f32 %v6084_v23, 0.0  ;;  %v6078_v34 = vadd.f32 %v4533_v62, %v8193_v30  ;;  %v6086_v36 = vadd.f32 %v4639_v32, %v8193_v30 }
 0x2ce   :  { %v4895_v37 = vmax.f32 %v6077_v29, 0.0  ;;  %v4897_v44 = vmax.f32 %v6085_v31, 0.0 }
 0x2cf   :  { %v5943_v39 = vpack.c.bf16 %v4873_v3, %v4872_v25  ;;  %v5944_v40 = vpack.c.bf16 %v4875_v7, %v4874_v26  ;;  %v4896_v38 = vmax.f32 %v6078_v34, 0.0  ;;  %v4898_v41 = vmax.f32 %v6086_v36, 0.0 }
 0x2d1   :  { %5236 = vst [vmem:[%s9324_s3 + $0x40] sm:$0xff] %v5943_v39  ;;  %5237 = vst [vmem:[%s9324_s3 + $0x48] sm:$0xff] %v5944_v40  ;;  %v5955_v42 = vpack.c.bf16 %v4896_v38, %v4895_v37  ;;  %v5956_v43 = vpack.c.bf16 %v4898_v41, %v4897_v44  ;;  %v4537_v45 = vpop.f32.mrb[36].mxu0  ;;  %v4643_v46 = vpop.f32.mrb[36].mxu1 }
 0x2d2   :  { %v6079_v50 = vadd.f32 %v4537_v45, %v8201_v33  ;;  %v4539_v48 = vpop.f32.mrb[37].mxu0  ;;  %v6087_v55 = vadd.f32 %v4643_v46, %v8201_v33  ;;  %v4645_v51 = vpop.f32.mrb[37].mxu1 }
 0x2d3   :  { %5248 = vst [vmem:[%s9324_s3 + $0x9c] sm:$0xff] %v5955_v42  ;;  %5249 = vst [vmem:[%s9324_s3 + $0xa4] sm:$0xff] %v5956_v43  ;;  %v6080_v49 = vadd.f32 %v4539_v48, %v8201_v33  ;;  %v4541_v52 = vpop.f32.mrb[38].mxu0  ;;  %v6088_v57 = vadd.f32 %v4645_v51, %v8201_v33  ;;  %v4647_v53 = vpop.f32.mrb[38].mxu1 }
 0x2d4   :  { %v4918_v54 = vmax.f32 %v6079_v50, 0.0  ;;  %v6081_v56 = vadd.f32 %v4541_v52, %v8231_v9  ;;  %v4543_v58 = vpop.f32.mrb[39].mxu0  ;;  %v4920_v60 = vmax.f32 %v6087_v55, 0.0  ;;  %v6089_v61 = vadd.f32 %v4647_v53, %v8231_v9  ;;  %v4649_v63 = vpop.f32.mrb[39].mxu1 }
 0x2d5   :  { %v4919_v0 = vmax.f32 %v6080_v49, 0.0  ;;  %v6082_v1 = vadd.f32 %v4543_v58, %v8231_v9  ;;  %v4921_v2 = vmax.f32 %v6088_v57, 0.0  ;;  %v6090_v6 = vadd.f32 %v4649_v63, %v8231_v9 }
 0x2d6   :  { %v4941_v47 = vmax.f32 %v6081_v56, 0.0  ;;  %v4943_v4 = vmax.f32 %v6089_v61, 0.0 }
 0x2d7   :  { %v5967_v5 = vpack.c.bf16 %v4919_v0, %v4918_v54  ;;  %v4942_v59 = vmax.f32 %v6082_v1, 0.0  ;;  %v5968_v19 = vpack.c.bf16 %v4921_v2, %v4920_v60  ;;  %v4944_v20 = vmax.f32 %v6090_v6, 0.0 }
 0x2d9   :  { %5260 = vst [vmem:[%s9324_s3 + $0xf8] sm:$0xff] %v5967_v5  ;;  %v5979_v8 = vpack.c.bf16 %v4942_v59, %v4941_v47  ;;  %5261 = vst [vmem:[%s9324_s3 + $0x100] sm:$0xff] %v5968_v19  ;;  %v5980_v28 = vpack.c.bf16 %v4944_v20, %v4943_v4 }
 0x2db   :  { %5272 = vst [vmem:[%s9324_s3 + $0x154] sm:$0xff] %v5979_v8  ;;  %5273 = vst [vmem:[%s9324_s3 + $0x15c] sm:$0xff] %v5980_v28 }
 0x2e9   :  { %v5999_v10 = vpop.f32.mrb[40].mxu1 }
 0x2ea   :  { %v6000_v35 = vpop.f32.mrb[41].mxu1 }
 0x2eb   :  { %v6001_v11 = vadd.f32 %v6000_v35, %v5999_v10  ;;  %v6002_v16 = vpop.f32.mrb[42].mxu1 }
 0x2ec   :  { %v6003_v12 = vpop.f32.mrb[43].mxu1 }
 0x2ed   :  { %v6004_v13 = vadd.f32 %v6003_v12, %v6002_v16  ;;  %v4793_v27 = vadd.f32 %v6001_v11, %v8166_v22 }
 0x2ef   :  { %v4796_v24 = vadd.f32 %v6004_v13, %v8193_v30 }
 0x2f1   :  { %v6005_v14 = vpop.f32.mrb[44].mxu1 }
 0x2f2   :  { %v6006_v15 = vpop.f32.mrb[45].mxu1 }
 0x2f3   :  { %v6007_v17 = vadd.f32 %v6006_v15, %v6005_v14  ;;  %v6008_v21 = vpop.f32.mrb[46].mxu1 }
 0x2f4   :  { %v6009_v18 = vpop.f32.mrb[47].mxu1 }
 0x2f5   :  { %v6010_v23 = vadd.f32 %v6009_v18, %v6008_v21  ;;  %v4801_v36 = vadd.f32 %v6007_v17, %v8201_v33 }
 0x2f7   :  { %v4804_v44 = vadd.f32 %v6010_v23, %v8231_v9 }
 0x30d   :  { %v4841_v25 = vpop.f32.mrb[48].mxu1 }
 0x30e   :  { %v4842_v26 = vadd.f32 %v4841_v25, %v4793_v27  ;;  %v4843_v29 = vpop.f32.mrb[49].mxu1 }
 0x30f   :  { %v4844_v31 = vpop.f32.mrb[50].mxu1 }
 0x310   :  { %v4878_v62 = vmax.f32 %v4842_v26, 0.0  ;;  %v4845_v32 = vadd.f32 %v4844_v31, %v4796_v24  ;;  %v4846_v3 = vpop.f32.mrb[51].mxu1 }
 0x312   :  { %v5946_v7 = vpack.c.bf16 %v4878_v62, %v4878_v62  ;;  %v4901_v34 = vmax.f32 %v4845_v32, 0.0 }
 0x314   :  { %5239 = vst [vmem:[%s9324_s3 + $0x58] sm:$0xf] %v5946_v7  ;;  %v5958_v37 = vpack.c.bf16 %v4901_v34, %v4901_v34 }
 0x315   :  { %v4849_v39 = vpop.f32.mrb[52].mxu1 }
 0x316   :  { %5251 = vst [vmem:[%s9324_s3 + $0xb4] sm:$0xf] %v5958_v37  ;;  %v4850_v40 = vadd.f32 %v4849_v39, %v4801_v36  ;;  %v4851_v38 = vpop.f32.mrb[53].mxu1 }
 0x317   :  { %v4852_v41 = vpop.f32.mrb[54].mxu1 }
 0x318   :  { %v4924_v42 = vmax.f32 %v4850_v40, 0.0  ;;  %v4853_v43 = vadd.f32 %v4852_v41, %v4804_v44  ;;  %v4854_v45 = vpop.f32.mrb[55].mxu1 }
 0x31a   :  { %v5970_v46 = vpack.c.bf16 %v4924_v42, %v4924_v42  ;;  %v4947_v50 = vmax.f32 %v4853_v43, 0.0 }
 0x31c   :  { %5263 = vst [vmem:[%s9324_s3 + $0x110] sm:$0xf] %v5970_v46  ;;  %v5982_v48 = vpack.c.bf16 %v4947_v50, %v4947_v50 }
 0x31e   :  { %5275 = vst [vmem:[%s9324_s3 + $0x16c] sm:$0xf] %v5982_v48 }
 0x32d   :  { %v4739_v55 = vpop.f32.mrb[40].mxu0 }
 0x32e   :  { %v6091_v51 = vadd.f32 %v4739_v55, %v8166_v22  ;;  %v4741_v49 = vpop.f32.mrb[41].mxu0 }
 0x32f   :  { %v6092_v52 = vadd.f32 %v4741_v49, %v8166_v22  ;;  %v4743_v57 = vpop.f32.mrb[42].mxu0 }
 0x330   :  { %v4876_v53 = vmax.f32 %v6091_v51, 0.0  ;;  %v6093_v54 = vadd.f32 %v4743_v57, %v8193_v30  ;;  %v4745_v56 = vpop.f32.mrb[43].mxu0 }
 0x331   :  { %v4877_v58 = vmax.f32 %v6092_v52, 0.0  ;;  %v6094_v60 = vadd.f32 %v4745_v56, %v8193_v30 }
 0x332   :  { %v4899_v61 = vmax.f32 %v6093_v54, 0.0 }
 0x333   :  { %v5945_v63 = vpack.c.bf16 %v4877_v58, %v4876_v53  ;;  %v4900_v0 = vmax.f32 %v6094_v60, 0.0 }
 0x335   :  { %5238 = vst [vmem:[%s9324_s3 + $0x50] sm:$0xff] %v5945_v63  ;;  %v5957_v1 = vpack.c.bf16 %v4900_v0, %v4899_v61  ;;  %v4749_v2 = vpop.f32.mrb[44].mxu0 }
 0x336   :  { %v6095_v6 = vadd.f32 %v4749_v2, %v8201_v33  ;;  %v4751_v22 = vpop.f32.mrb[45].mxu0 }
 0x337   :  { %5250 = vst [vmem:[%s9324_s3 + $0xac] sm:$0xff] %v5957_v1  ;;  %v6096_v47 = vadd.f32 %v4751_v22, %v8201_v33  ;;  %v4753_v4 = vpop.f32.mrb[46].mxu0 }
 0x338   :  { %v4922_v30 = vmax.f32 %v6095_v6, 0.0  ;;  %v6097_v5 = vadd.f32 %v4753_v4, %v8231_v9  ;;  %v4755_v59 = vpop.f32.mrb[47].mxu0 }
 0x339   :  { %v4923_v19 = vmax.f32 %v6096_v47, 0.0  ;;  %v6098_v20 = vadd.f32 %v4755_v59, %v8231_v9 }
 0x33a   :  { %v4945_v8 = vmax.f32 %v6097_v5, 0.0 }
 0x33b   :  { %v5969_v28 = vpack.c.bf16 %v4923_v19, %v4922_v30  ;;  %v4946_v10 = vmax.f32 %v6098_v20, 0.0 }
 0x33d   :  { %5262 = vst [vmem:[%s9324_s3 + $0x108] sm:$0xff] %v5969_v28  ;;  %v5981_v35 = vpack.c.bf16 %v4946_v10, %v4945_v8 }
 0x33f   :  { %5274 = vst [vmem:[%s9324_s3 + $0x164] sm:$0xff] %v5981_v35 }

// kernel: network_forward.18
= control target key start
LH: loop header
LB: loop body
LE: loop exit
PB: predicated region body
PF: predicated region fallthrough
CT: control target
= control target key end

     0   :  { %v1775_v1 = vmov 0   ;;  %vm715_vm0 = vcmask 261120   ;;  %s2351_s1 = inlined_call_operand.vmem [shape: bf16[288,640], index: 1, kind: input, shape index: {}]   ;;  %s2352_s0 = inlined_call_operand.vmem [shape: bf16[64,288], index: 0, kind: input, shape index: {}]   ;;  %s2353_s2 = inlined_call_operand.vmem [shape: f32[64,1], index: 2, kind: input, shape index: {}]   ;;  %s2354_s3 = inlined_call_operand.vmem [shape: bf16[64,640], index: 3, kind: output, shape index: {}]  }
   0x1   :  { %v1633_v0 = vld [vmem:[%s2351_s1 + $0x4] ss:$20 sps:$4 sm:$0xff]   ;;  %833 = vmatprep.mubr.bf16.mxu1 %v1775_v1  ;;  %1631 = vset.pattern.permute.xlu0 %v1775_v1  ;;  %v1637_v3 = vld [vmem:[%s2351_s1] ss:$20 sps:$4 sm:$0xff]   ;;  %v1643_v7 = vld [vmem:[%s2351_s1 + $0x28] ss:$20 sps:$4 sm:$0xff]  }
   0x2   :  { %v1635_v2 = vld [vmem:[%s2351_s1 + $0x284] ss:$20 sps:$4 sm:$0xff]   ;;  %1632 = vset.pattern.permute.xlu1 %v1775_v1  ;;  %728 = vmatprep.subr.bf16.mxu0 %v1633_v0  ;;  %v1638_v4 = vld [vmem:[%s2351_s1 + $0x280] ss:$20 sps:$4 sm:$0xff]   ;;  %v1644_v8 = vld [vmem:[%s2351_s1 + $0x2a8] ss:$20 sps:$4 sm:$0xff]  }
   0x3   :  { %801 = vmatprep.subr.bf16.mxu1 %v1635_v2  ;;  %v1639_v5 = vld [vmem:[%s2351_s1 + $0x2c] ss:$20 sps:$4 sm:$0xff]   ;;  %729 = vmatpush1.bf16.msra.mxu0 %v1637_v3  ;;  %v1645_v9 = vld [vmem:[%s2351_s1 + $0x54] ss:$20 sps:$4 sm:$0xff]   ;;  %v1650_v12 = vld [vmem:[%s2351_s1 + $0x50] ss:$20 sps:$4 sm:$0xff]  }
   0x4   :  { %802 = vmatpush1.bf16.msra.mxu1 %v1638_v4  ;;  %v1641_v6 = vld [vmem:[%s2351_s1 + $0x2ac] ss:$20 sps:$4 sm:$0xff]   ;;  %730 = vmatprep.subr.bf16.mxu0 %v1639_v5  ;;  %v1647_v10 = vld [vmem:[%s2351_s1 + $0x8] ss:$20 sps:$4 sm:$0xff]   ;;  %v1654_v15 = vld [vmem:[%s2351_s1 + $0x30] ss:$20 sps:$4 sm:$0xff]  }
   0x5   :  { %803 = vmatprep.subr.bf16.mxu1 %v1641_v6  ;;  %v1649_v11 = vld [vmem:[%s2351_s1 + $0xc] ss:$20 sps:$4 sm:$0xff]   ;;  %v1838_v13 = vld [vmem:[%s2352_s0 + $0x8] ss:$12 sps:$4 sm:$0xff]   ;;  %v1652_v14 = vld [vmem:[%s2351_s1 + $0x7c] ss:$20 sps:$4 sm:$0xff]  }
   0x6   :  { %v1656_v16 = vld [vmem:[%s2351_s1 + $0x34] ss:$20 sps:$4 sm:$0xff]   ;;  %v1657_v17 = vld [vmem:[%s2351_s1 + $0x78] ss:$20 sps:$4 sm:$0xff]   ;;  %v1662_v19 = vld [vmem:[%s2351_s1 + $0x5c] ss:$20 sps:$4 sm:$0xff]  }
   0x7   :  { %731 = vmatpush1.bf16.msra.mxu0 %v1643_v7  ;;  %v1658_v18 = vld [vmem:[%s2351_s1 + $0xa4] ss:$20 sps:$4 sm:$0xff]   ;;  %v1663_v21 = vld [vmem:[%s2351_s1 + $0xa0] ss:$20 sps:$4 sm:$0xff]   ;;  %v1669_v25 = vld [vmem:[%s2351_s1 + $0xc8] ss:$20 sps:$4 sm:$0xff]  }
   0x8   :  { %804 = vmatpush1.bf16.msra.mxu1 %v1644_v8  ;;  %732 = vmatprep.subr.bf16.mxu0 %v1645_v9  ;;  %v1660_v20 = vld [vmem:[%s2351_s1 + $0x58] ss:$20 sps:$4 sm:$0xff]   ;;  %v1666_v24 = vld [vmem:[%s2351_s1 + $0x80] ss:$20 sps:$4 sm:$0xff]   ;;  %v1672_v28 = vld [vmem:[%s2351_s1 + $0xa8] ss:$20 sps:$4 sm:$0xff]  }
   0x9   :  { %874 = vmatprep.subr.bf16.mxu1 %v1649_v11  ;;  %v1664_v22 = vld [vmem:[%s2351_s1 + $0xcc] ss:$20 sps:$4 sm:$0xff]   ;;  %v1668_v23 = vld [vmem:[%s2351_s1 + $0x84] ss:$20 sps:$4 sm:$0xff]   ;;  %v1670_v26 = vld [vmem:[%s2351_s1 + $0xf4] ss:$20 sps:$4 sm:$0xff]  }
   0xa   :  { %v1674_v27 = vld [vmem:[%s2351_s1 + $0xac] ss:$20 sps:$4 sm:$0xff]   ;;  %v1675_v29 = vld [vmem:[%s2351_s1 + $0xf0] ss:$20 sps:$4 sm:$0xff]   ;;  %v1680_v31 = vld [vmem:[%s2351_s1 + $0xd4] ss:$20 sps:$4 sm:$0xff]  }
   0xb   :  { %1448 = vmatmul.mubr.msk.bf16.vlgmr.msra.gmra.mrb[0].mxu1 %vm715_vm0, %v1838_v13  ;;  %733 = vmatpush1.bf16.msra.mxu0 %v1650_v12  ;;  %v1676_v30 = vld [vmem:[%s2351_s1 + $0x11c] ss:$20 sps:$4 sm:$0xff]   ;;  %v1681_v33 = vld [vmem:[%s2351_s1 + $0x118] ss:$20 sps:$4 sm:$0xff]   ;;  %v1687_v37 = vld [vmem:[%s2351_s1 + $0x140] ss:$20 sps:$4 sm:$0xff]  }
   0xc   :  { %875 = vmatpush1.bf16.msra.mxu1 %v1647_v10  ;;  %734 = vmatprep.subr.bf16.mxu0 %v1652_v14  ;;  %v1678_v32 = vld [vmem:[%s2351_s1 + $0xd0] ss:$20 sps:$4 sm:$0xff]   ;;  %v1684_v36 = vld [vmem:[%s2351_s1 + $0xf8] ss:$20 sps:$4 sm:$0xff]   ;;  %v1690_v41 = vld [vmem:[%s2351_s1 + $0x120] ss:$20 sps:$4 sm:$0xff]  }
   0xd   :  { %876 = vmatprep.subr.bf16.mxu1 %v1656_v16  ;;  %843 = vmatprep.mubr.bf16.mxu1 %v1775_v1  ;;  %v1682_v34 = vld [vmem:[%s2351_s1 + $0x144] ss:$20 sps:$4 sm:$0xff]   ;;  %v1686_v35 = vld [vmem:[%s2351_s1 + $0xfc] ss:$20 sps:$4 sm:$0xff]   ;;  %v1688_v38 = vld [vmem:[%s2351_s1 + $0x16c] ss:$20 sps:$4 sm:$0xff]  }
   0xe   :  { %v1692_v39 = vld [vmem:[%s2351_s1 + $0x124] ss:$20 sps:$4 sm:$0xff]   ;;  %v1924_v40 = vld [vmem:[%s2352_s0 + $0x20] ss:$12 sps:$4 sm:$0xff]   ;;  %v1693_v42 = vld [vmem:[%s2351_s1 + $0x168] ss:$20 sps:$4 sm:$0xff]  }
   0xf   :  { %735 = vmatpush1.bf16.msra.mxu0 %v1657_v17  ;;  %v1694_v43 = vld [vmem:[%s2351_s1 + $0x194] ss:$20 sps:$4 sm:$0xff]   ;;  %v1698_v44 = vld [vmem:[%s2351_s1 + $0x14c] ss:$20 sps:$4 sm:$0xff]   ;;  %v1699_v46 = vld [vmem:[%s2351_s1 + $0x190] ss:$20 sps:$4 sm:$0xff]  }
  0x10   :  { %877 = vmatpush1.bf16.msra.mxu1 %v1654_v15  ;;  %736 = vmatprep.subr.bf16.mxu0 %v1658_v18  ;;  %v1696_v45 = vld [vmem:[%s2351_s1 + $0x148] ss:$20 sps:$4 sm:$0xff]   ;;  %v1956_v49 = vld [vmem:[%s2352_s0 + $0x38] ss:$12 sps:$4 sm:$0xff]   ;;  %v1712_v56 = vld [vmem:[%s2351_s1 + $0x1e0] ss:$20 sps:$4 sm:$0xff]  }
  0x11   :  { %878 = vmatprep.subr.bf16.mxu1 %v1662_v19  ;;  %v1700_v47 = vld [vmem:[%s2351_s1 + $0x1bc] ss:$20 sps:$4 sm:$0xff]   ;;  %v1704_v48 = vld [vmem:[%s2351_s1 + $0x174] ss:$20 sps:$4 sm:$0xff]   ;;  %v1705_v51 = vld [vmem:[%s2351_s1 + $0x1b8] ss:$20 sps:$4 sm:$0xff]  }
  0x12   :  { %v1702_v50 = vld [vmem:[%s2351_s1 + $0x170] ss:$20 sps:$4 sm:$0xff]   ;;  %v1709_v54 = vld [vmem:[%s2351_s1 + $0x198] ss:$20 sps:$4 sm:$0xff]   ;;  %v1715_v60 = vld [vmem:[%s2351_s1 + $0x1c0] ss:$20 sps:$4 sm:$0xff]  }
  0x13   :  { %737 = vmatpush1.bf16.msra.mxu0 %v1663_v21  ;;  %1449 = vmatmul.mubr.msk.bf16.gmra.mrb[4].mxu1 %vm715_vm0, %v1924_v40  ;;  %v1706_v52 = vld [vmem:[%s2351_s1 + $0x1e4] ss:$20 sps:$4 sm:$0xff]   ;;  %v1711_v53 = vld [vmem:[%s2351_s1 + $0x19c] ss:$20 sps:$4 sm:$0xff]   ;;  %v1713_v57 = vld [vmem:[%s2351_s1 + $0x20c] ss:$20 sps:$4 sm:$0xff]  }
  0x14   :  { %879 = vmatpush1.bf16.msra.mxu1 %v1660_v20  ;;  %738 = vmatprep.subr.bf16.mxu0 %v1664_v22  ;;  %v1978_v55 = vld [vmem:[%s2352_s0 + $0x4] ss:$12 sps:$4 sm:$0xff]   ;;  %v1718_v61 = vld [vmem:[%s2351_s1 + $0x208] ss:$20 sps:$4 sm:$0xff]   ;;  %v1724_v63 = vld [vmem:[%s2351_s1 + $0x1ec] ss:$20 sps:$4 sm:$0xff]  }
  0x15   :  { %880 = vmatprep.subr.bf16.mxu1 %v1668_v23  ;;  %853 = vmatprep.mubr.bf16.mxu1 %v1775_v1  ;;  %v1717_v58 = vld [vmem:[%s2351_s1 + $0x1c4] ss:$20 sps:$4 sm:$0xff]   ;;  %v1994_v59 = vld [vmem:[%s2352_s0 + $0x50] ss:$12 sps:$4 sm:$0xff]   ;;  %v1719_v62 = vld [vmem:[%s2351_s1 + $0x234] ss:$20 sps:$4 sm:$0xff]  }
  0x16   :  { %760 = vmatprep.mubr.bf16.mxu0 %v1978_v55  ;;  %v1722_v0 = vld [vmem:[%s2351_s1 + $0x1e8] ss:$20 sps:$4 sm:$0xff]   ;;  %v1725_v2 = vld [vmem:[%s2351_s1 + $0x230] ss:$20 sps:$4 sm:$0xff]   ;;  %v1731_v6 = vld [vmem:[%s2351_s1 + $0x258] ss:$20 sps:$4 sm:$0xff]  }
  0x17   :  { %739 = vmatpush1.bf16.msra.mxu0 %v1669_v25  ;;  %v1726_v3 = vld [vmem:[%s2351_s1 + $0x25c] ss:$20 sps:$4 sm:$0xff]   ;;  %v1730_v4 = vld [vmem:[%s2351_s1 + $0x214] ss:$20 sps:$4 sm:$0xff]   ;;  %v2038_v9 = vld [vmem:[%s2352_s0] ss:$12 sps:$4 sm:$0xff]  }
  0x18   :  { %881 = vmatpush1.bf16.msra.mxu1 %v1666_v24  ;;  %740 = vmatprep.subr.bf16.mxu0 %v1670_v26  ;;  %v1728_v5 = vld [vmem:[%s2351_s1 + $0x210] ss:$20 sps:$4 sm:$0xff]   ;;  %v1736_v10 = vld [vmem:[%s2351_s1 + $0x238] ss:$20 sps:$4 sm:$0xff]   ;;  %v2055_v15 = vld [vmem:[%s2352_s0 + $0x1c] ss:$12 sps:$4 sm:$0xff]  }
  0x19   :  { %882 = vmatprep.subr.bf16.mxu1 %v1674_v27  ;;  %v1738_v7 = vld [vmem:[%s2351_s1 + $0x23c] ss:$20 sps:$4 sm:$0xff]   ;;  %v1743_v12 = vld [vmem:[%s2351_s1 + $0x264] ss:$20 sps:$4 sm:$0xff]   ;;  %v1741_v16 = vld [vmem:[%s2351_s1 + $0x260] ss:$20 sps:$4 sm:$0xff]  }
  0x1a   :  { %v1739_v8 = vld [vmem:[%s2351_s1 + $0x150] ss:$20 sps:$4 sm:$0xff]   ;;  %v1744_v14 = vld [vmem:[%s2351_s1 + $0x178] ss:$20 sps:$4 sm:$0xff]   ;;  %v1749_v18 = vld [vmem:[%s2351_s1 + $0x1a0] ss:$20 sps:$4 sm:$0xff]  }
  0x1b   :  { %741 = vmatpush1.bf16.msra.mxu0 %v1675_v29  ;;  %1450 = vmatmul.mubr.msk.bf16.gmra.mrb[8].mxu1 %vm715_vm0, %v1956_v49  ;;  %v1740_v11 = vld [vmem:[%s2351_s1 + $0x10] ss:$20 sps:$4 sm:$0xff]   ;;  %v1745_v17 = vld [vmem:[%s2351_s1 + $0x38] ss:$20 sps:$4 sm:$0xff]   ;;  %v1750_v21 = vld [vmem:[%s2351_s1 + $0x60] ss:$20 sps:$4 sm:$0xff]  }
  0x1c   :  { %883 = vmatpush1.bf16.msra.mxu1 %v1672_v28  ;;  %742 = vmatprep.subr.bf16.mxu0 %v1676_v30  ;;  %v1758_v19 = vld [vmem:[%s2351_s1 + $0x28c] ss:$20 sps:$4 sm:$0xff]   ;;  %v2074_v20 = vld [vmem:[%s2352_s0 + $0x18] ss:$12 sps:$4 sm:$0xff]   ;;  %v1751_v23 = vld [vmem:[%s2351_s1 + $0x1c8] ss:$20 sps:$4 sm:$0xff]  }
  0x1d   :  { %884 = vmatprep.subr.bf16.mxu1 %v1680_v31  ;;  %863 = vmatprep.mubr.bf16.mxu1 %v1775_v1  ;;  %v2082_v22 = vld [vmem:[%s2352_s0 + $0x34] ss:$12 sps:$4 sm:$0xff]   ;;  %v1756_v24 = vld [vmem:[%s2351_s1 + $0x288] ss:$20 sps:$4 sm:$0xff]   ;;  %v1759_v29 = vld [vmem:[%s2351_s1 + $0x1f0] ss:$20 sps:$4 sm:$0xff]  }
  0x1e   :  { %v1772_v25 = vld [vmem:[%s2351_s1 + $0x2b4] ss:$20 sps:$4 sm:$0xff]   ;;  %v139_v26 = vld [vmem:[%s2353_s2] sm:$0xff]  ;;  %v1755_v31 = vld [vmem:[%s2352_s0 + $0x30] ss:$12 sps:$4 sm:$0xff]  }
  0x1f   :  { %743 = vmatpush1.bf16.msra.mxu0 %v1681_v33  ;;  %v1752_v27 = vld [vmem:[%s2351_s1 + $0x88] ss:$20 sps:$4 sm:$0xff]   ;;  %v141_v28 = vld [vmem:[%s2353_s2 + $0x10] sm:$0xff]  ;;  %149 = vperm.xlu0 %1631, %v139_v26  }
  0x20   :  { %885 = vmatpush1.bf16.msra.mxu1 %v1678_v32  ;;  %744 = vmatprep.subr.bf16.mxu0 %v1682_v34  ;;  %v1770_v30 = vld [vmem:[%s2351_s1 + $0x2b0] ss:$20 sps:$4 sm:$0xff]   ;;  %v140_v32 = vld [vmem:[%s2353_s2 + $0x8] sm:$0xff] }
  0x21   :  { %886 = vmatprep.subr.bf16.mxu1 %v1686_v35  ;;  %159 = vperm.xlu1 %1632, %v141_v28   ;;  %v1760_v33 = vld [vmem:[%s2351_s1 + $0xb0] ss:$20 sps:$4 sm:$0xff]   ;;  %v1763_v34 = vld [vmem:[%s2352_s0 + $0x4c] ss:$12 sps:$4 sm:$0xff]  }
  0x22   :  { %v1761_v35 = vld [vmem:[%s2351_s1 + $0x218] ss:$20 sps:$4 sm:$0xff]  }
  0x23   :  { %745 = vmatpush1.bf16.msra.mxu0 %v1687_v37  ;;  %1451 = vmatmul.mubr.msk.bf16.gmra.mrb[12].mxu1 %vm715_vm0, %v1994_v59  ;;  %v143_v37 = vld [vmem:[%s2353_s2 + $0x20] sm:$0xff] }
  0x24   :  { %887 = vmatpush1.bf16.msra.mxu1 %v1684_v36  ;;  %746 = vmatprep.subr.bf16.mxu0 %v1688_v38  ;;  %v142_v36 = vld [vmem:[%s2353_s2 + $0x18] sm:$0xff] }
  0x25   :  { %888 = vmatprep.subr.bf16.mxu1 %v1692_v39  ;;  %906 = vmatprep.mubr.bf16.mxu1 %v1978_v55  ;;  %v1762_v38 = vld [vmem:[%s2351_s1 + $0xd8] ss:$20 sps:$4 sm:$0xff]   ;;  %v1766_v39 = vld [vmem:[%s2351_s1 + $0x240] ss:$20 sps:$4 sm:$0xff]  }
  0x26   :  { %154 = vperm.xlu0 %1631, %v140_v32   ;;  %164 = vperm.xlu1 %1632, %v142_v36  }
  0x27   :  { %747 = vmatpush1.bf16.msra.mxu0 %v1693_v42  ;;  %v144_v42 = vld [vmem:[%s2353_s2 + $0x28] sm:$0xff] }
  0x28   :  { %889 = vmatpush1.bf16.msra.mxu1 %v1690_v41  ;;  %748 = vmatprep.subr.bf16.mxu0 %v1694_v43  ;;  %v1765_v41 = vld [vmem:[%s2352_s0 + $0x48] ss:$12 sps:$4 sm:$0xff]  }
  0x29   :  { %890 = vmatprep.subr.bf16.mxu1 %v1698_v44  ;;  %v145_v43 = vld [vmem:[%s2353_s2 + $0x30] sm:$0xff] }
  0x2a   :  { %169 = vperm.xlu0 %1631, %v143_v37   ;;  %v1767_v44 = vld [vmem:[%s2351_s1 + $0x100] ss:$20 sps:$4 sm:$0xff]   ;;  %174 = vperm.xlu1 %1632, %v144_v42  }
  0x2b   :  { %749 = vmatpush1.bf16.msra.mxu0 %v1699_v46  ;;  %v146_v46 = vld [vmem:[%s2353_s2 + $0x38] sm:$0xff] }
  0x2c   :  { %891 = vmatpush1.bf16.msra.mxu1 %v1696_v45  ;;  %750 = vmatprep.subr.bf16.mxu0 %v1700_v47  ;;  %v1768_v45 = vld [vmem:[%s2351_s1 + $0x268] ss:$20 sps:$4 sm:$0xff]  }
  0x2d   :  { %892 = vmatprep.subr.bf16.mxu1 %v1704_v48  ;;  %v1769_v47 = vld [vmem:[%s2351_s1 + $0x128] ss:$20 sps:$4 sm:$0xff]   ;;  %v1773_v48 = vld [vmem:[%s2351_s1 + $0x290] ss:$20 sps:$4 sm:$0xff]  }
  0x2e   :  { %179 = vperm.xlu0 %1631, %v145_v43   ;;  %184 = vperm.xlu1 %1632, %v146_v46  }
  0x2f   :  { %751 = vmatpush1.bf16.msra.mxu0 %v1705_v51 }
  0x30   :  { %893 = vmatpush1.bf16.msra.mxu1 %v1702_v50  ;;  %752 = vmatprep.subr.bf16.mxu0 %v1706_v52  ;;  %v1774_v50 = vld [vmem:[%s2351_s1 + $0x2b8] ss:$20 sps:$4 sm:$0xff]  }
  0x31   :  { %894 = vmatprep.subr.bf16.mxu1 %v1711_v53 }
  0x33   :  { %753 = vmatpush1.bf16.msra.mxu0 %v1712_v56 }
  0x34   :  { %895 = vmatpush1.bf16.msra.mxu1 %v1709_v54  ;;  %754 = vmatprep.subr.bf16.mxu0 %v1713_v57 }
  0x35   :  { %896 = vmatprep.subr.bf16.mxu1 %v1717_v58 }
  0x37   :  { %755 = vmatpush1.bf16.msra.mxu0 %v1718_v61 }
  0x38   :  { %897 = vmatpush1.bf16.msra.mxu1 %v1715_v60  ;;  %756 = vmatprep.subr.bf16.mxu0 %v1719_v62 }
  0x39   :  { %898 = vmatprep.subr.bf16.mxu1 %v1724_v63 }
  0x3b   :  { %757 = vmatpush1.bf16.msra.mxu0 %v1725_v2 }
  0x3c   :  { %899 = vmatpush1.bf16.msra.mxu1 %v1722_v0  ;;  %758 = vmatprep.subr.bf16.mxu0 %v1726_v3 }
  0x3d   :  { %900 = vmatprep.subr.bf16.mxu1 %v1730_v4 }
  0x3f   :  { %759 = vmatpush1.bf16.msra.mxu0 %v1731_v6 }
  0x40   :  { %901 = vmatpush1.bf16.msra.mxu1 %v1728_v5  ;;  %1508 = vmatprep.subr.bf16.mxu0 %v1739_v8 }
  0x41   :  { %902 = vmatprep.subr.bf16.mxu1 %v1738_v7 }
  0x42   :  { %761 = vmatmul.mubr.bf16.vlgmr.msra.gmra.mrb[0].mxu0 %v2038_v9 }
  0x43   :  { %1509 = vmatpush3.bf16.msra.mxu0 %v1740_v11  ;;  %770 = vmatprep.mubr.bf16.mxu0 %v2055_v15 }
  0x44   :  { %903 = vmatpush1.bf16.msra.mxu1 %v1736_v10  ;;  %1510 = vmatprep.subr.bf16.mxu0 %v1744_v14 }
  0x45   :  { %904 = vmatprep.subr.bf16.mxu1 %v1743_v12 }
  0x47   :  { %1511 = vmatpush3.bf16.msra.mxu0 %v1745_v17 }
  0x48   :  { %905 = vmatpush1.bf16.msra.mxu1 %v1741_v16  ;;  %1512 = vmatprep.subr.bf16.mxu0 %v1749_v18 }
  0x49   :  { %947 = vmatprep.subr.bf16.mxu1 %v1758_v19 }
  0x4a   :  { %771 = vmatmul.mubr.bf16.gmra.mrb[4].mxu0 %v2074_v20 }
  0x4b   :  { %907 = vmatmul.mubr.bf16.vlgmr.msra.gmra.mrb[16].mxu1 %v2038_v9  ;;  %1513 = vmatpush3.bf16.msra.mxu0 %v1750_v21 }
  0x4c   :  { %780 = vmatprep.mubr.bf16.mxu0 %v2082_v22  ;;  %1514 = vmatprep.subr.bf16.mxu0 %v1751_v23 }
  0x4d   :  { %916 = vmatprep.mubr.bf16.mxu1 %v2055_v15  ;;  %948 = vmatpush1.bf16.msra.mxu1 %v1756_v24 }
  0x4e   :  { %949 = vmatprep.subr.bf16.mxu1 %v1772_v25 }
  0x4f   :  { %1515 = vmatpush3.bf16.msra.mxu0 %v1752_v27 }
  0x50   :  { %1516 = vmatprep.subr.bf16.mxu0 %v1759_v29 }
  0x51   :  { %950 = vmatpush1.bf16.msra.mxu1 %v1770_v30 }
  0x52   :  { %781 = vmatmul.mubr.bf16.gmra.mrb[8].mxu0 %v1755_v31 }
  0x53   :  { %917 = vmatmul.mubr.bf16.gmra.mrb[20].mxu1 %v2074_v20  ;;  %1517 = vmatpush3.bf16.msra.mxu0 %v1760_v33 }
  0x54   :  { %790 = vmatprep.mubr.bf16.mxu0 %v1763_v34  ;;  %1518 = vmatprep.subr.bf16.mxu0 %v1761_v35 }
  0x55   :  { %926 = vmatprep.mubr.bf16.mxu1 %v2082_v22 }
  0x57   :  { %1519 = vmatpush3.bf16.msra.mxu0 %v1762_v38 }
  0x58   :  { %1520 = vmatprep.subr.bf16.mxu0 %v1766_v39 }
  0x5a   :  { %791 = vmatmul.mubr.bf16.gmra.mrb[12].mxu0 %v1765_v41 }
  0x5b   :  { %927 = vmatmul.mubr.bf16.gmra.mrb[24].mxu1 %v1755_v31  ;;  %1521 = vmatpush3.bf16.msra.mxu0 %v1767_v44 }
  0x5c   :  { %936 = vmatprep.mubr.bf16.mxu1 %v1763_v34  ;;  %1522 = vmatprep.subr.bf16.mxu0 %v1768_v45 }
  0x5d   :  { %1052 = vmatprep.mubr.bf16.mxu0 %v1978_v55 }
  0x5f   :  { %1523 = vmatpush3.bf16.msra.mxu0 %v1769_v47 }
  0x60   :  { %1554 = vmatprep.subr.bf16.mxu0 %v1773_v48 }
  0x62   :  { %1053 = vmatmul.mubr.bf16.vlgmr.msra.gmra.mrb[16].mxu0 %v2038_v9 }
  0x63   :  { %937 = vmatmul.mubr.bf16.gmra.mrb[28].mxu1 %v1765_v41  ;;  %1555 = vmatpush3.bf16.msra.mxu0 %v1773_v48 }
  0x64   :  { %979 = vmatprep.mubr.bf16.mxu1 %v1775_v1  ;;  %1060 = vmatprep.mubr.bf16.mxu0 %v2055_v15 }
  0x65   :  { %1556 = vmatprep.subr.bf16.mxu0 %v1774_v50 }
  0x67   :  { %1557 = vmatpush3.bf16.msra.mxu0 %v1774_v50 }
  0x6a   :  { %1061 = vmatmul.mubr.bf16.gmra.mrb[20].mxu0 %v2074_v20 }
  0x6b   :  { %1452 = vmatmul.mubr.msk.bf16.vlgmr.msra.gmra.mrb[16].mxu1 %vm715_vm0, %v1838_v13  ;;  %1068 = vmatprep.mubr.bf16.mxu0 %v2082_v22 }
  0x6c   :  { %989 = vmatprep.mubr.bf16.mxu1 %v1775_v1 }
  0x72   :  { %1069 = vmatmul.mubr.bf16.gmra.mrb[24].mxu0 %v1755_v31 }
  0x73   :  { %1453 = vmatmul.mubr.msk.bf16.gmra.mrb[20].mxu1 %vm715_vm0, %v1924_v40  ;;  %1076 = vmatprep.mubr.bf16.mxu0 %v1763_v34 }
  0x74   :  { %999 = vmatprep.mubr.bf16.mxu1 %v1775_v1 }
  0x7a   :  { %1077 = vmatmul.mubr.bf16.gmra.mrb[28].mxu0 %v1765_v41 }
  0x7b   :  { %1454 = vmatmul.mubr.msk.bf16.gmra.mrb[24].mxu1 %vm715_vm0, %v1956_v49  ;;  %1558 = vmatprep.mubr.msk.bf16.mxu0 %vm715_vm0, %v1838_v13 }
  0x7c   :  { %1009 = vmatprep.mubr.bf16.mxu1 %v1775_v1 }
  0x82   :  { %1559 = vmatmul.mubr.msk.bf16.vlgmr.msra.gmra.mrb[32].mxu0 %vm715_vm0, %v1924_v40 }
  0x83   :  { %1455 = vmatmul.mubr.msk.bf16.gmra.mrb[28].mxu1 %vm715_vm0, %v1994_v59  ;;  %1562 = vmatprep.mubr.msk.bf16.mxu0 %vm715_vm0, %v1956_v49 }
  0x8a   :  { %1563 = vmatmul.mubr.msk.bf16.gmra.mrb[36].mxu0 %vm715_vm0, %v1994_v59 }
  0x9e   :  { %v2205_v63 = vpop.permute.xlu0 %149 }
  0xa0   :  { %v2211_v7 = vpop.permute.xlu1 %159 }
  0xa5   :  { %v2207_v2 = vpop.permute.xlu0 %154  ;;  %v2215_v22 = vpop.permute.xlu1 %164 }
  0xa9   :  { %v2227_v37 = vpop.permute.xlu0 %169  ;;  %v2229_v43 = vpop.permute.xlu1 %174 }
  0xde   :  { %v835_v51 = vpop.f32.mrb[0].mxu1 }
  0xdf   :  { %v837_v52 = vpop.f32.mrb[1].mxu1 }
  0xe0   :  { %v839_v53 = vpop.f32.mrb[2].mxu1 }
  0xe1   :  { %v841_v54 = vpop.f32.mrb[3].mxu1 }
  0xe6   :  { %v845_v1 = vpop.f32.mrb[4].mxu1 }
  0xe7   :  { %v847_v55 = vpop.f32.mrb[5].mxu1 }
  0xe8   :  { %v849_v56 = vpop.f32.mrb[6].mxu1 }
  0xe9   :  { %v851_v13 = vpop.f32.mrb[7].mxu1 }
  0xee   :  { %v855_v57 = vpop.f32.mrb[8].mxu1 }
  0xef   :  { %v857_v58 = vpop.f32.mrb[9].mxu1 }
  0xf0   :  { %v2193_v60 = vpop.f32.mrb[10].mxu1 }
  0xf1   :  { %v2195_v61 = vpop.f32.mrb[11].mxu1 }
  0xf6   :  { %v2197_v40 = vpop.f32.mrb[12].mxu1 }
  0xf7   :  { %v2199_v49 = vpop.f32.mrb[13].mxu1 }
  0xf8   :  { %v2201_v62 = vpop.f32.mrb[14].mxu1 }
  0xf9   :  { %v2203_v59 = vpop.f32.mrb[15].mxu1 }
 0x115   :  { %v762_v0 = vpop.f32.mrb[0].mxu0 }
 0x116   :  { %v763_v3 = vadd.f32 %v762_v0, %v2205_v63  ;;  %v764_v4 = vpop.f32.mrb[1].mxu0  ;;  %v2243_v0 = vpop.permute.xlu0 %179 }
 0x117   :  { %v765_v5 = vadd.f32 %v764_v4, %v2205_v63  ;;  %v766_v6 = vpop.f32.mrb[2].mxu0 }
 0x118   :  { %v836_v8 = vadd.f32 %v835_v51, %v763_v3  ;;  %v767_v9 = vadd.f32 %v766_v6, %v2207_v2  ;;  %v768_v10 = vpop.f32.mrb[3].mxu0  ;;  %v2245_v6 = vpop.permute.xlu1 %184 }
 0x119   :  { %v838_v11 = vadd.f32 %v837_v52, %v765_v5  ;;  %v769_v12 = vadd.f32 %v768_v10, %v2207_v2 }
 0x11a   :  { %v1150_v14 = vmax.f32 %v836_v8, 0.0  ;;  %v840_v15 = vadd.f32 %v839_v53, %v767_v9 }
 0x11b   :  { %v1151_v16 = vmax.f32 %v838_v11, 0.0  ;;  %v842_v17 = vadd.f32 %v841_v54, %v769_v12 }
 0x11c   :  { %v1155_v18 = vmax.f32 %v840_v15, 0.0 }
 0x11d   :  { %v1484_v19 = vpack.c.bf16 %v1151_v16, %v1150_v14  ;;  %v1156_v20 = vmax.f32 %v842_v17, 0.0  ;;  %v772_v21 = vpop.f32.mrb[4].mxu0 }
 0x11e   :  { %v773_v23 = vadd.f32 %v772_v21, %v2211_v7  ;;  %v774_v24 = vpop.f32.mrb[5].mxu0 }
 0x11f   :  { %1318 = vst [vmem:[%s2354_s3] sm:$0xff] %v1484_v19  ;;  %v1487_v25 = vpack.c.bf16 %v1156_v20, %v1155_v18  ;;  %v775_v26 = vadd.f32 %v774_v24, %v2211_v7  ;;  %v776_v27 = vpop.f32.mrb[6].mxu0 }
 0x120   :  { %v846_v28 = vadd.f32 %v845_v1, %v773_v23  ;;  %v777_v29 = vadd.f32 %v776_v27, %v2215_v22  ;;  %v778_v30 = vpop.f32.mrb[7].mxu0 }
 0x121   :  { %1321 = vst [vmem:[%s2354_s3 + $0x14] sm:$0xff] %v1487_v25  ;;  %v848_v31 = vadd.f32 %v847_v55, %v775_v26  ;;  %v779_v32 = vadd.f32 %v778_v30, %v2215_v22 }
 0x122   :  { %v1160_v33 = vmax.f32 %v846_v28, 0.0  ;;  %v850_v34 = vadd.f32 %v849_v56, %v777_v29 }
 0x123   :  { %v1161_v35 = vmax.f32 %v848_v31, 0.0  ;;  %v852_v36 = vadd.f32 %v851_v13, %v779_v32 }
 0x124   :  { %v1165_v38 = vmax.f32 %v850_v34, 0.0 }
 0x125   :  { %v1490_v39 = vpack.c.bf16 %v1161_v35, %v1160_v33  ;;  %v1166_v41 = vmax.f32 %v852_v36, 0.0  ;;  %v782_v42 = vpop.f32.mrb[8].mxu0 }
 0x126   :  { %v783_v44 = vadd.f32 %v782_v42, %v2227_v37  ;;  %v784_v45 = vpop.f32.mrb[9].mxu0 }
 0x127   :  { %1324 = vst [vmem:[%s2354_s3 + $0x28] sm:$0xff] %v1490_v39  ;;  %v1493_v46 = vpack.c.bf16 %v1166_v41, %v1165_v38  ;;  %v785_v47 = vadd.f32 %v784_v45, %v2227_v37  ;;  %v786_v48 = vpop.f32.mrb[10].mxu0 }
 0x128   :  { %v856_v50 = vadd.f32 %v855_v57, %v783_v44  ;;  %v787_v51 = vadd.f32 %v786_v48, %v2229_v43  ;;  %v788_v52 = vpop.f32.mrb[11].mxu0 }
 0x129   :  { %1327 = vst [vmem:[%s2354_s3 + $0x3c] sm:$0xff] %v1493_v46  ;;  %v858_v53 = vadd.f32 %v857_v58, %v785_v47  ;;  %v789_v54 = vadd.f32 %v788_v52, %v2229_v43 }
 0x12a   :  { %v1170_v1 = vmax.f32 %v856_v50, 0.0  ;;  %v860_v55 = vadd.f32 %v2193_v60, %v787_v51 }
 0x12b   :  { %v1171_v56 = vmax.f32 %v858_v53, 0.0  ;;  %v862_v13 = vadd.f32 %v2195_v61, %v789_v54 }
 0x12c   :  { %v1175_v3 = vmax.f32 %v860_v55, 0.0 }
 0x12d   :  { %v1496_v57 = vpack.c.bf16 %v1171_v56, %v1170_v1  ;;  %v1176_v4 = vmax.f32 %v862_v13, 0.0  ;;  %v792_v5 = vpop.f32.mrb[12].mxu0 }
 0x12e   :  { %v793_v8 = vadd.f32 %v792_v5, %v2243_v0  ;;  %v794_v9 = vpop.f32.mrb[13].mxu0 }
 0x12f   :  { %1330 = vst [vmem:[%s2354_s3 + $0x50] sm:$0xff] %v1496_v57  ;;  %v1499_v58 = vpack.c.bf16 %v1176_v4, %v1175_v3  ;;  %v795_v60 = vadd.f32 %v794_v9, %v2243_v0  ;;  %v796_v10 = vpop.f32.mrb[14].mxu0 }
 0x130   :  { %v866_v61 = vadd.f32 %v2197_v40, %v793_v8  ;;  %v797_v11 = vadd.f32 %v796_v10, %v2245_v6  ;;  %v798_v12 = vpop.f32.mrb[15].mxu0 }
 0x131   :  { %1333 = vst [vmem:[%s2354_s3 + $0x64] sm:$0xff] %v1499_v58  ;;  %v868_v14 = vadd.f32 %v2199_v49, %v795_v60  ;;  %v799_v15 = vadd.f32 %v798_v12, %v2245_v6 }
 0x132   :  { %v1180_v16 = vmax.f32 %v866_v61, 0.0  ;;  %v870_v17 = vadd.f32 %v2201_v62, %v797_v11 }
 0x133   :  { %v1181_v18 = vmax.f32 %v868_v14, 0.0  ;;  %v872_v19 = vadd.f32 %v2203_v59, %v799_v15 }
 0x134   :  { %v1185_v20 = vmax.f32 %v870_v17, 0.0 }
 0x135   :  { %v1502_v21 = vpack.c.bf16 %v1181_v18, %v1180_v16  ;;  %v1186_v40 = vmax.f32 %v872_v19, 0.0  ;;  %v1524_v23 = vpop.f32.mrb[16].mxu0 }
 0x136   :  { %v1525_v24 = vpop.f32.mrb[17].mxu0 }
 0x137   :  { %1336 = vst [vmem:[%s2354_s3 + $0x78] sm:$0xff] %v1502_v21  ;;  %v1505_v25 = vpack.c.bf16 %v1186_v40, %v1185_v20  ;;  %v1526_v26 = vadd.f32 %v1525_v24, %v1524_v23  ;;  %v1527_v49 = vpop.f32.mrb[18].mxu0 }
 0x138   :  { %v1528_v27 = vpop.f32.mrb[19].mxu0 }
 0x139   :  { %1339 = vst [vmem:[%s2354_s3 + $0x8c] sm:$0xff] %v1505_v25  ;;  %v2267_v62 = vadd.f32 %v1528_v27, %v1527_v49  ;;  %v2270_v59 = vadd.f32 %v1526_v26, %v2205_v63 }
 0x13d   :  { %v1530_v29 = vpop.f32.mrb[20].mxu0 }
 0x13e   :  { %v981_v28 = vpop.f32.mrb[16].mxu1  ;;  %v1531_v32 = vpop.f32.mrb[21].mxu0 }
 0x13f   :  { %v1598_v30 = vadd.f32 %v981_v28, %v2205_v63  ;;  %v983_v31 = vpop.f32.mrb[17].mxu1  ;;  %v1532_v34 = vadd.f32 %v1531_v32, %v1530_v29  ;;  %v1533_v36 = vpop.f32.mrb[22].mxu0 }
 0x140   :  { %v1599_v33 = vadd.f32 %v983_v31, %v2205_v63  ;;  %v985_v35 = vpop.f32.mrb[18].mxu1  ;;  %v1534_v42 = vpop.f32.mrb[23].mxu0 }
 0x141   :  { %v1152_v38 = vmax.f32 %v1598_v30, 0.0  ;;  %v1600_v39 = vadd.f32 %v985_v35, %v2207_v2  ;;  %v987_v41 = vpop.f32.mrb[19].mxu1  ;;  %v1535_v46 = vadd.f32 %v1534_v42, %v1533_v36  ;;  %v1063_v32 = vadd.f32 %v1532_v34, %v2211_v7 }
 0x142   :  { %v1153_v44 = vmax.f32 %v1599_v33, 0.0  ;;  %v1601_v45 = vadd.f32 %v987_v41, %v2207_v2 }
 0x143   :  { %v1157_v47 = vmax.f32 %v1600_v39, 0.0 }
 0x144   :  { %v1485_v48 = vpack.c.bf16 %v1153_v44, %v1152_v38  ;;  %v1158_v50 = vmax.f32 %v1601_v45, 0.0  ;;  %v1066_v44 = vadd.f32 %v1535_v46, %v2215_v22 }
 0x145   :  { %v1536_v52 = vpop.f32.mrb[24].mxu0 }
 0x146   :  { %1319 = vst [vmem:[%s2354_s3 + $0x8] sm:$0xff] %v1485_v48  ;;  %v1488_v63 = vpack.c.bf16 %v1158_v50, %v1157_v47  ;;  %v991_v51 = vpop.f32.mrb[20].mxu1  ;;  %v1537_v1 = vpop.f32.mrb[25].mxu0  ;;  %v1058_v48 = vadd.f32 %v2267_v62, %v2207_v2 }
 0x147   :  { %v1602_v53 = vadd.f32 %v991_v51, %v2211_v7  ;;  %v993_v54 = vpop.f32.mrb[21].mxu1  ;;  %v2284_v56 = vadd.f32 %v1537_v1, %v1536_v52  ;;  %v1539_v3 = vpop.f32.mrb[26].mxu0 }
 0x148   :  { %1322 = vst [vmem:[%s2354_s3 + $0x1c] sm:$0xff] %v1488_v63  ;;  %v1603_v55 = vadd.f32 %v993_v54, %v2211_v7  ;;  %v995_v13 = vpop.f32.mrb[22].mxu1  ;;  %v1540_v8 = vpop.f32.mrb[27].mxu0 }
 0x149   :  { %v1162_v57 = vmax.f32 %v1602_v53, 0.0  ;;  %v1604_v4 = vadd.f32 %v995_v13, %v2215_v22  ;;  %v997_v5 = vpop.f32.mrb[23].mxu1  ;;  %v2288_v60 = vadd.f32 %v1540_v8, %v1539_v3 }
 0x14a   :  { %v1163_v9 = vmax.f32 %v1603_v55, 0.0  ;;  %v1605_v58 = vadd.f32 %v997_v5, %v2215_v22 }
 0x14b   :  { %v1167_v10 = vmax.f32 %v1604_v4, 0.0 }
 0x14c   :  { %v1491_v61 = vpack.c.bf16 %v1163_v9, %v1162_v57  ;;  %v1168_v11 = vmax.f32 %v1605_v58, 0.0 }
 0x14d   :  { %v1542_v15 = vpop.f32.mrb[28].mxu0 }
 0x14e   :  { %1325 = vst [vmem:[%s2354_s3 + $0x30] sm:$0xff] %v1491_v61  ;;  %v1494_v12 = vpack.c.bf16 %v1168_v11, %v1167_v10  ;;  %v1001_v14 = vpop.f32.mrb[24].mxu1  ;;  %v1543_v18 = vpop.f32.mrb[29].mxu0  ;;  %v1071_v61 = vadd.f32 %v2284_v56, %v2227_v37 }
 0x14f   :  { %v1606_v16 = vadd.f32 %v1001_v14, %v2227_v37  ;;  %v1003_v17 = vpop.f32.mrb[25].mxu1  ;;  %v1544_v20 = vadd.f32 %v1543_v18, %v1542_v15  ;;  %v1545_v40 = vpop.f32.mrb[30].mxu0 }
 0x150   :  { %1328 = vst [vmem:[%s2354_s3 + $0x44] sm:$0xff] %v1494_v12  ;;  %v1607_v19 = vadd.f32 %v1003_v17, %v2227_v37  ;;  %v1005_v21 = vpop.f32.mrb[26].mxu1  ;;  %v1546_v26 = vpop.f32.mrb[31].mxu0  ;;  %v1074_v37 = vadd.f32 %v2288_v60, %v2229_v43 }
 0x151   :  { %v1172_v23 = vmax.f32 %v1606_v16, 0.0  ;;  %v1608_v24 = vadd.f32 %v1005_v21, %v2229_v43  ;;  %v1007_v25 = vpop.f32.mrb[27].mxu1  ;;  %v1547_v28 = vadd.f32 %v1546_v26, %v1545_v40  ;;  %v1079_v62 = vadd.f32 %v1544_v20, %v2243_v0 }
 0x152   :  { %v1173_v49 = vmax.f32 %v1607_v19, 0.0  ;;  %v1609_v27 = vadd.f32 %v1007_v25, %v2229_v43 }
 0x153   :  { %v1177_v29 = vmax.f32 %v1608_v24, 0.0  ;;  %v1082_v12 = vadd.f32 %v1547_v28, %v2245_v6 }
 0x154   :  { %v1497_v30 = vpack.c.bf16 %v1173_v49, %v1172_v23  ;;  %v1178_v31 = vmax.f32 %v1609_v27, 0.0 }
 0x155   :  { %v1560_v36 = vpop.f32.mrb[32].mxu0 }
 0x156   :  { %1331 = vst [vmem:[%s2354_s3 + $0x58] sm:$0xff] %v1497_v30  ;;  %v1500_v33 = vpack.c.bf16 %v1178_v31, %v1177_v29  ;;  %v1011_v35 = vpop.f32.mrb[28].mxu1  ;;  %v1128_v39 = vadd.f32 %v1560_v36, %v1063_v32  ;;  %v1119_v42 = vpop.f32.mrb[33].mxu0 }
 0x157   :  { %v1610_v38 = vadd.f32 %v1011_v35, %v2243_v0  ;;  %v1013_v41 = vpop.f32.mrb[29].mxu1  ;;  %v1120_v34 = vadd.f32 %v1119_v42, %v2270_v59  ;;  %v1561_v47 = vpop.f32.mrb[34].mxu0 }
 0x158   :  { %1334 = vst [vmem:[%s2354_s3 + $0x6c] sm:$0xff] %v1500_v33  ;;  %v1611_v7 = vadd.f32 %v1013_v41, %v2243_v0  ;;  %v1015_v45 = vpop.f32.mrb[30].mxu1  ;;  %v1164_v63 = vmax.f32 %v1128_v39, 0.0  ;;  %v1131_v52 = vadd.f32 %v1561_v47, %v1066_v44  ;;  %v1122_v22 = vpop.f32.mrb[35].mxu0 }
 0x159   :  { %v1182_v50 = vmax.f32 %v1610_v38, 0.0  ;;  %v1612_v51 = vadd.f32 %v1015_v45, %v2245_v6  ;;  %v1017_v53 = vpop.f32.mrb[31].mxu1  ;;  %v1154_v54 = vmax.f32 %v1120_v34, 0.0  ;;  %v1123_v55 = vadd.f32 %v1122_v22, %v1058_v48 }
 0x15a   :  { %v1183_v46 = vmax.f32 %v1611_v7, 0.0  ;;  %v1613_v1 = vadd.f32 %v1017_v53, %v2245_v6  ;;  %v1492_v13 = vpack.c.bf16 %v1164_v63, %v1164_v63  ;;  %v1169_v59 = vmax.f32 %v1131_v52, 0.0 }
 0x15b   :  { %v1187_v3 = vmax.f32 %v1612_v51, 0.0  ;;  %v1486_v4 = vpack.c.bf16 %v1154_v54, %v1154_v54  ;;  %v1159_v8 = vmax.f32 %v1123_v55, 0.0 }
 0x15c   :  { %v1503_v57 = vpack.c.bf16 %v1183_v46, %v1182_v50  ;;  %v1188_v5 = vmax.f32 %v1613_v1, 0.0  ;;  %1326 = vst [vmem:[%s2354_s3 + $0x38] sm:$0xf] %v1492_v13  ;;  %v1495_v2 = vpack.c.bf16 %v1169_v59, %v1169_v59 }
 0x15d   :  { %1320 = vst [vmem:[%s2354_s3 + $0x10] sm:$0xf] %v1486_v4  ;;  %v1489_v58 = vpack.c.bf16 %v1159_v8, %v1159_v8  ;;  %v1564_v10 = vpop.f32.mrb[36].mxu0 }
 0x15e   :  { %1337 = vst [vmem:[%s2354_s3 + $0x80] sm:$0xff] %v1503_v57  ;;  %v1506_v9 = vpack.c.bf16 %v1188_v5, %v1187_v3  ;;  %1329 = vst [vmem:[%s2354_s3 + $0x4c] sm:$0xf] %v1495_v2  ;;  %v1144_v11 = vadd.f32 %v1564_v10, %v1079_v62  ;;  %v1135_v0 = vpop.f32.mrb[37].mxu0 }
 0x15f   :  { %1323 = vst [vmem:[%s2354_s3 + $0x24] sm:$0xf] %v1489_v58  ;;  %v1136_v14 = vadd.f32 %v1135_v0, %v1071_v61  ;;  %v1565_v15 = vpop.f32.mrb[38].mxu0 }
 0x160   :  { %1340 = vst [vmem:[%s2354_s3 + $0x94] sm:$0xff] %v1506_v9  ;;  %v1184_v56 = vmax.f32 %v1144_v11, 0.0  ;;  %v1147_v16 = vadd.f32 %v1565_v15, %v1082_v12  ;;  %v1138_v17 = vpop.f32.mrb[39].mxu0 }
 0x161   :  { %v1174_v18 = vmax.f32 %v1136_v14, 0.0  ;;  %v1139_v19 = vadd.f32 %v1138_v17, %v1074_v37 }
 0x162   :  { %v1504_v20 = vpack.c.bf16 %v1184_v56, %v1184_v56  ;;  %v1189_v6 = vmax.f32 %v1147_v16, 0.0 }
 0x163   :  { %v1498_v21 = vpack.c.bf16 %v1174_v18, %v1174_v18  ;;  %v1179_v40 = vmax.f32 %v1139_v19, 0.0 }
 0x164   :  { %1338 = vst [vmem:[%s2354_s3 + $0x88] sm:$0xf] %v1504_v20  ;;  %v1507_v23 = vpack.c.bf16 %v1189_v6, %v1189_v6 }
 0x165   :  { %1332 = vst [vmem:[%s2354_s3 + $0x60] sm:$0xf] %v1498_v21  ;;  %v1501_v24 = vpack.c.bf16 %v1179_v40, %v1179_v40 }
 0x166   :  { %1341 = vst [vmem:[%s2354_s3 + $0x9c] sm:$0xf] %v1507_v23 }
 0x167   :  { %1335 = vst [vmem:[%s2354_s3 + $0x74] sm:$0xf] %v1501_v24 }

// kernel: network_forward.19
= control target key start
LH: loop header
LB: loop body
LE: loop exit
PB: predicated region body
PF: predicated region fallthrough
CT: control target
= control target key end

     0   :  { %v1493_v1 = vmov 0   ;;  %vm647_vm0 = vcmask 523264   ;;  %s1855_s1 = inlined_call_operand.vmem [shape: bf16[576,128], index: 1, kind: input, shape index: {}]   ;;  %s1856_s0 = inlined_call_operand.vmem [shape: bf16[128,576], index: 0, kind: input, shape index: {}]   ;;  %s1857_s2 = inlined_call_operand.vmem [shape: f32[128,1], index: 2, kind: input, shape index: {}]   ;;  %s1858_s3 = inlined_call_operand.vmem [shape: bf16[128,128], index: 3, kind: output, shape index: {}]  }
   0x1   :  { %v1401_v0 = vld [vmem:[%s1855_s1 + $0x40] sm:$0xff]   ;;  %1399 = vset.pattern.permute.xlu0 %v1493_v1  ;;  %1400 = vset.pattern.permute.xlu1 %v1493_v1  ;;  %v1405_v5 = vld [vmem:[%s1855_s1 + $0x48] sm:$0xff]   ;;  %v1409_v9 = vld [vmem:[%s1855_s1 + $0x50] sm:$0xff]  }
   0x2   :  { %v1402_v2 = vld [vmem:[%s1855_s1 + $0xc0] sm:$0xff]   ;;  %1226 = vmatprep.subr.bf16.mxu0 %v1401_v0  ;;  %v1406_v6 = vld [vmem:[%s1855_s1 + $0xc8] sm:$0xff]   ;;  %v1410_v10 = vld [vmem:[%s1855_s1 + $0xd0] sm:$0xff]  }
   0x3   :  { %v1403_v3 = vld [vmem:[%s1855_s1] sm:$0xff]   ;;  %1290 = vmatprep.subr.bf16.mxu1 %v1402_v2  ;;  %v1407_v7 = vld [vmem:[%s1855_s1 + $0x8] sm:$0xff]   ;;  %v1411_v11 = vld [vmem:[%s1855_s1 + $0x10] sm:$0xff]  }
   0x4   :  { %v1404_v4 = vld [vmem:[%s1855_s1 + $0x80] sm:$0xff]   ;;  %1227 = vmatpush3.bf16.msra.mxu0 %v1403_v3  ;;  %v1408_v8 = vld [vmem:[%s1855_s1 + $0x88] sm:$0xff]   ;;  %v1412_v12 = vld [vmem:[%s1855_s1 + $0x90] sm:$0xff]  }
   0x5   :  { %1291 = vmatpush3.bf16.msra.mxu1 %v1404_v4  ;;  %1228 = vmatprep.subr.bf16.mxu0 %v1405_v5  ;;  %v1413_v13 = vld [vmem:[%s1855_s1 + $0x58] sm:$0xff]   ;;  %v1417_v17 = vld [vmem:[%s1855_s1 + $0x60] sm:$0xff]   ;;  %v1421_v21 = vld [vmem:[%s1855_s1 + $0x68] sm:$0xff]  }
   0x6   :  { %1292 = vmatprep.subr.bf16.mxu1 %v1406_v6  ;;  %v1414_v14 = vld [vmem:[%s1855_s1 + $0xd8] sm:$0xff]   ;;  %v1418_v18 = vld [vmem:[%s1855_s1 + $0xe0] sm:$0xff]   ;;  %v1422_v22 = vld [vmem:[%s1855_s1 + $0xe8] sm:$0xff]  }
   0x7   :  { %v1415_v15 = vld [vmem:[%s1855_s1 + $0x18] sm:$0xff]   ;;  %v1419_v19 = vld [vmem:[%s1855_s1 + $0x20] sm:$0xff]   ;;  %v1423_v23 = vld [vmem:[%s1855_s1 + $0x28] sm:$0xff]  }
   0x8   :  { %1229 = vmatpush3.bf16.msra.mxu0 %v1407_v7  ;;  %v1416_v16 = vld [vmem:[%s1855_s1 + $0x98] sm:$0xff]   ;;  %v1420_v20 = vld [vmem:[%s1855_s1 + $0xa0] sm:$0xff]   ;;  %v1424_v24 = vld [vmem:[%s1855_s1 + $0xa8] sm:$0xff]  }
   0x9   :  { %1293 = vmatpush3.bf16.msra.mxu1 %v1408_v8  ;;  %1230 = vmatprep.subr.bf16.mxu0 %v1409_v9  ;;  %v1425_v25 = vld [vmem:[%s1855_s1 + $0x70] sm:$0xff]   ;;  %v1429_v29 = vld [vmem:[%s1855_s1 + $0x78] sm:$0xff]   ;;  %v1438_v36 = vld [vmem:[%s1856_s0 + $0xc] ss:$20 sps:$4 sm:$0xff]  }
   0xa   :  { %1294 = vmatprep.subr.bf16.mxu1 %v1410_v10  ;;  %v1426_v26 = vld [vmem:[%s1855_s1 + $0xf0] sm:$0xff]   ;;  %v1430_v30 = vld [vmem:[%s1855_s1 + $0xf8] sm:$0xff]   ;;  %v1439_v37 = vld [vmem:[%s1855_s1 + $0x100] sm:$0xff]   ;;  %801 = vmatprep.mubr.bf16.mxu1 %v1438_v36 }
   0xb   :  { %v1427_v27 = vld [vmem:[%s1855_s1 + $0x30] sm:$0xff]   ;;  %v1431_v31 = vld [vmem:[%s1855_s1 + $0x38] sm:$0xff]   ;;  %v1440_v38 = vld [vmem:[%s1856_s0 + $0x2c] ss:$20 sps:$4 sm:$0xff]  }
   0xc   :  { %1231 = vmatpush3.bf16.msra.mxu0 %v1411_v11  ;;  %v1428_v28 = vld [vmem:[%s1855_s1 + $0xb0] sm:$0xff]   ;;  %v1432_v32 = vld [vmem:[%s1855_s1 + $0xb8] sm:$0xff]   ;;  %v1452_v43 = vld [vmem:[%s1855_s1 + $0x108] sm:$0xff]  }
   0xd   :  { %1295 = vmatpush3.bf16.msra.mxu1 %v1412_v12  ;;  %1232 = vmatprep.subr.bf16.mxu0 %v1413_v13  ;;  %v1433_v33 = vld [vmem:[%s1856_s0] ss:$20 sps:$4 sm:$0xff]   ;;  %v1435_v34 = vld [vmem:[%s1856_s0 + $0x4] ss:$20 sps:$4 sm:$0xff]   ;;  %v1436_v35 = vld [vmem:[%s1856_s0 + $0x8] ss:$20 sps:$4 sm:$0xff]  }
   0xe   :  { %1296 = vmatprep.subr.bf16.mxu1 %v1414_v14  ;;  %704 = vmatprep.mubr.bf16.mxu0 %v1435_v34  ;;  %v1442_v39 = vld [vmem:[%s1856_s0 + $0x34] ss:$20 sps:$4 sm:$0xff]   ;;  %v1445_v41 = vld [vmem:[%s1856_s0 + $0x30] ss:$20 sps:$4 sm:$0xff]   ;;  %v1451_v46 = vld [vmem:[%s1856_s0 + $0x58] ss:$20 sps:$4 sm:$0xff]  }
   0xf   :  { %v1444_v40 = vld [vmem:[%s1856_s0 + $0x28] ss:$20 sps:$4 sm:$0xff]   ;;  %v1450_v45 = vld [vmem:[%s1856_s0 + $0x50] ss:$20 sps:$4 sm:$0xff]   ;;  %v1457_v51 = vld [vmem:[%s1856_s0 + $0x78] ss:$20 sps:$4 sm:$0xff]  }
  0x10   :  { %1233 = vmatpush3.bf16.msra.mxu0 %v1415_v15  ;;  %v1446_v42 = vld [vmem:[%s1856_s0 + $0x54] ss:$20 sps:$4 sm:$0xff]   ;;  %v1448_v44 = vld [vmem:[%s1856_s0 + $0x5c] ss:$20 sps:$4 sm:$0xff]   ;;  %v1455_v49 = vld [vmem:[%s1856_s0 + $0x84] ss:$20 sps:$4 sm:$0xff]  }
  0x11   :  { %1297 = vmatpush3.bf16.msra.mxu1 %v1416_v16  ;;  %1234 = vmatprep.subr.bf16.mxu0 %v1417_v17  ;;  %v1465_v47 = vld [vmem:[%s1855_s1 + $0x110] sm:$0xff]   ;;  %v1478_v50 = vld [vmem:[%s1855_s1 + $0x118] sm:$0xff]   ;;  %v1461_v54 = vld [vmem:[%s1856_s0 + $0xac] ss:$20 sps:$4 sm:$0xff]  }
  0x12   :  { %1298 = vmatprep.subr.bf16.mxu1 %v1418_v18  ;;  %v1453_v48 = vld [vmem:[%s1856_s0 + $0x7c] ss:$20 sps:$4 sm:$0xff]   ;;  %v1458_v52 = vld [vmem:[%s1856_s0 + $0x80] ss:$20 sps:$4 sm:$0xff]   ;;  %v1459_v53 = vld [vmem:[%s1856_s0 + $0xa4] ss:$20 sps:$4 sm:$0xff]  }
  0x13   :  { %v1463_v55 = vld [vmem:[%s1856_s0 + $0xa0] ss:$20 sps:$4 sm:$0xff]   ;;  %v1464_v56 = vld [vmem:[%s1856_s0 + $0xa8] ss:$20 sps:$4 sm:$0xff]   ;;  %v1471_v2 = vld [vmem:[%s1856_s0 + $0xd0] ss:$20 sps:$4 sm:$0xff]  }
  0x14   :  { %1235 = vmatpush3.bf16.msra.mxu0 %v1419_v19  ;;  %v1466_v57 = vld [vmem:[%s1856_s0 + $0xcc] ss:$20 sps:$4 sm:$0xff]   ;;  %v1468_v59 = vld [vmem:[%s1856_s0 + $0xd4] ss:$20 sps:$4 sm:$0xff]   ;;  %v138_v62 = vld [vmem:[%s1857_s2 + $0x18] sm:$0xff] }
  0x15   :  { %1299 = vmatpush3.bf16.msra.mxu1 %v1420_v20  ;;  %1236 = vmatprep.subr.bf16.mxu0 %v1421_v21  ;;  %v135_v58 = vld [vmem:[%s1857_s2] sm:$0xff]  ;;  %v137_v60 = vld [vmem:[%s1857_s2 + $0x10] sm:$0xff]  ;;  %v136_v61 = vld [vmem:[%s1857_s2 + $0x8] sm:$0xff] }
  0x16   :  { %1300 = vmatprep.subr.bf16.mxu1 %v1422_v22  ;;  %153 = vperm.xlu0 %1399, %v135_v58   ;;  %v139_v63 = vld [vmem:[%s1857_s2 + $0x20] sm:$0xff]  ;;  %v1470_v0 = vld [vmem:[%s1856_s0 + $0xc8] ss:$20 sps:$4 sm:$0xff]   ;;  %v141_v5 = vld [vmem:[%s1857_s2 + $0x30] sm:$0xff] }
  0x17   :  { %163 = vperm.xlu1 %1400, %v137_v60   ;;  %v140_v1 = vld [vmem:[%s1857_s2 + $0x28] sm:$0xff]  ;;  %v1474_v4 = vld [vmem:[%s1856_s0 + $0xfc] ss:$20 sps:$4 sm:$0xff]   ;;  %v143_v7 = vld [vmem:[%s1857_s2 + $0x40] sm:$0xff] }
  0x18   :  { %1237 = vmatpush3.bf16.msra.mxu0 %v1423_v23  ;;  %v1472_v3 = vld [vmem:[%s1856_s0 + $0xf4] ss:$20 sps:$4 sm:$0xff]   ;;  %v142_v6 = vld [vmem:[%s1857_s2 + $0x38] sm:$0xff]  ;;  %v1476_v8 = vld [vmem:[%s1856_s0 + $0xf0] ss:$20 sps:$4 sm:$0xff]  }
  0x19   :  { %1301 = vmatpush3.bf16.msra.mxu1 %v1424_v24  ;;  %1238 = vmatprep.subr.bf16.mxu0 %v1425_v25  ;;  %v144_v9 = vld [vmem:[%s1857_s2 + $0x48] sm:$0xff]  ;;  %v1479_v11 = vld [vmem:[%s1856_s0 + $0x11c] ss:$20 sps:$4 sm:$0xff]   ;;  %v1481_v12 = vld [vmem:[%s1856_s0 + $0x124] ss:$20 sps:$4 sm:$0xff]  }
  0x1a   :  { %1302 = vmatprep.subr.bf16.mxu1 %v1426_v26  ;;  %158 = vperm.xlu0 %1399, %v136_v61   ;;  %v1477_v10 = vld [vmem:[%s1856_s0 + $0xf8] ss:$20 sps:$4 sm:$0xff]   ;;  %v145_v13 = vld [vmem:[%s1857_s2 + $0x50] sm:$0xff]  ;;  %v147_v15 = vld [vmem:[%s1857_s2 + $0x60] sm:$0xff] }
  0x1b   :  { %168 = vperm.xlu1 %1400, %v138_v62   ;;  %v146_v14 = vld [vmem:[%s1857_s2 + $0x58] sm:$0xff]  ;;  %v148_v17 = vld [vmem:[%s1857_s2 + $0x68] sm:$0xff]  ;;  %v1484_v18 = vld [vmem:[%s1856_s0 + $0x120] ss:$20 sps:$4 sm:$0xff]  }
  0x1c   :  { %1239 = vmatpush3.bf16.msra.mxu0 %v1427_v27  ;;  %v1483_v16 = vld [vmem:[%s1856_s0 + $0x118] ss:$20 sps:$4 sm:$0xff]   ;;  %v1485_v19 = vld [vmem:[%s1856_s0 + $0x10] ss:$20 sps:$4 sm:$0xff]   ;;  %v1489_v25 = vld [vmem:[%s1856_s0 + $0x60] ss:$20 sps:$4 sm:$0xff]  }
  0x1d   :  { %1303 = vmatpush3.bf16.msra.mxu1 %v1428_v28  ;;  %1240 = vmatprep.subr.bf16.mxu0 %v1429_v29  ;;  %v1486_v20 = vld [vmem:[%s1856_s0 + $0xb0] ss:$20 sps:$4 sm:$0xff]   ;;  %v150_v22 = vld [vmem:[%s1857_s2 + $0x78] sm:$0xff]  ;;  %v1490_v26 = vld [vmem:[%s1856_s0 + $0x100] ss:$20 sps:$4 sm:$0xff]  }
  0x1e   :  { %1304 = vmatprep.subr.bf16.mxu1 %v1430_v30  ;;  %173 = vperm.xlu0 %1399, %v139_v63   ;;  %v149_v21 = vld [vmem:[%s1857_s2 + $0x70] sm:$0xff]  ;;  %v1487_v23 = vld [vmem:[%s1856_s0 + $0x38] ss:$20 sps:$4 sm:$0xff]   ;;  %v1491_v27 = vld [vmem:[%s1856_s0 + $0x88] ss:$20 sps:$4 sm:$0xff]  }
  0x1f   :  { %178 = vperm.xlu1 %1400, %v140_v1   ;;  %v1488_v24 = vld [vmem:[%s1856_s0 + $0xd8] ss:$20 sps:$4 sm:$0xff]   ;;  %v1492_v28 = vld [vmem:[%s1856_s0 + $0x128] ss:$20 sps:$4 sm:$0xff]  }
  0x20   :  { %1241 = vmatpush3.bf16.msra.mxu0 %v1431_v31 }
  0x21   :  { %1305 = vmatpush3.bf16.msra.mxu1 %v1432_v32  ;;  %1366 = vmatprep.subr.bf16.mxu0 %v1439_v37 }
  0x22   :  { %1390 = vmatprep.subr.bf16.mxu1 %v1439_v37  ;;  %183 = vperm.xlu0 %1399, %v141_v5  }
  0x23   :  { %705 = vmatmul.mubr.bf16.vlgmr.msra.gmra.mrb[0].mxu0 %v1433_v33  ;;  %188 = vperm.xlu1 %1400, %v142_v6  }
  0x24   :  { %802 = vmatmul.mubr.bf16.vlgmr.msra.gmra.mrb[0].mxu1 %v1436_v35  ;;  %1367 = vmatpush3.bf16.msra.mxu0 %v1439_v37 }
  0x25   :  { %1394 = vmatpush3.bf16.msra.mxu1 %v1439_v37  ;;  %712 = vmatprep.mubr.bf16.mxu0 %v1440_v38 }
  0x26   :  { %809 = vmatprep.mubr.bf16.mxu1 %v1442_v39  ;;  %1368 = vmatprep.subr.bf16.mxu0 %v1452_v43 }
  0x27   :  { %1391 = vmatprep.subr.bf16.mxu1 %v1452_v43  ;;  %193 = vperm.xlu0 %1399, %v143_v7  }
  0x28   :  { %1369 = vmatpush3.bf16.msra.mxu0 %v1452_v43  ;;  %198 = vperm.xlu1 %1400, %v144_v9  }
  0x29   :  { %1395 = vmatpush3.bf16.msra.mxu1 %v1452_v43  ;;  %1370 = vmatprep.subr.bf16.mxu0 %v1465_v47 }
  0x2a   :  { %1392 = vmatprep.subr.bf16.mxu1 %v1465_v47 }
  0x2b   :  { %713 = vmatmul.mubr.bf16.gmra.mrb[4].mxu0 %v1444_v40  ;;  %203 = vperm.xlu0 %1399, %v145_v13  }
  0x2c   :  { %810 = vmatmul.mubr.bf16.gmra.mrb[4].mxu1 %v1445_v41  ;;  %720 = vmatprep.mubr.bf16.mxu0 %v1446_v42 }
  0x2d   :  { %817 = vmatprep.mubr.bf16.mxu1 %v1448_v44  ;;  %1371 = vmatpush3.bf16.msra.mxu0 %v1465_v47 }
  0x2e   :  { %1396 = vmatpush3.bf16.msra.mxu1 %v1465_v47  ;;  %1372 = vmatprep.subr.bf16.mxu0 %v1478_v50 }
  0x2f   :  { %1393 = vmatprep.subr.bf16.mxu1 %v1478_v50  ;;  %208 = vperm.xlu1 %1400, %v146_v14  }
  0x30   :  { %213 = vperm.xlu0 %1399, %v147_v15  }
  0x31   :  { %1373 = vmatpush3.bf16.msra.mxu0 %v1478_v50 }
  0x32   :  { %1397 = vmatpush3.bf16.msra.mxu1 %v1478_v50 }
  0x33   :  { %721 = vmatmul.mubr.bf16.gmra.mrb[8].mxu0 %v1450_v45  ;;  %218 = vperm.xlu1 %1400, %v148_v17  }
  0x34   :  { %818 = vmatmul.mubr.bf16.gmra.mrb[8].mxu1 %v1451_v46  ;;  %728 = vmatprep.mubr.bf16.mxu0 %v1453_v48 }
  0x35   :  { %825 = vmatprep.mubr.bf16.mxu1 %v1455_v49  ;;  %223 = vperm.xlu0 %1399, %v149_v21  }
  0x37   :  { %228 = vperm.xlu1 %1400, %v150_v22  }
  0x3b   :  { %729 = vmatmul.mubr.bf16.gmra.mrb[12].mxu0 %v1457_v51 }
  0x3c   :  { %826 = vmatmul.mubr.bf16.gmra.mrb[12].mxu1 %v1458_v52  ;;  %736 = vmatprep.mubr.bf16.mxu0 %v1459_v53 }
  0x3d   :  { %833 = vmatprep.mubr.bf16.mxu1 %v1461_v54 }
  0x43   :  { %737 = vmatmul.mubr.bf16.gmra.mrb[16].mxu0 %v1463_v55 }
  0x44   :  { %834 = vmatmul.mubr.bf16.gmra.mrb[16].mxu1 %v1464_v56  ;;  %744 = vmatprep.mubr.bf16.mxu0 %v1466_v57 }
  0x45   :  { %841 = vmatprep.mubr.bf16.mxu1 %v1468_v59 }
  0x4b   :  { %745 = vmatmul.mubr.bf16.gmra.mrb[20].mxu0 %v1470_v0 }
  0x4c   :  { %842 = vmatmul.mubr.bf16.gmra.mrb[20].mxu1 %v1471_v2  ;;  %752 = vmatprep.mubr.bf16.mxu0 %v1472_v3 }
  0x4d   :  { %849 = vmatprep.mubr.bf16.mxu1 %v1474_v4 }
  0x53   :  { %753 = vmatmul.mubr.bf16.gmra.mrb[24].mxu0 %v1476_v8 }
  0x54   :  { %850 = vmatmul.mubr.bf16.gmra.mrb[24].mxu1 %v1477_v10  ;;  %760 = vmatprep.mubr.bf16.mxu0 %v1479_v11 }
  0x55   :  { %857 = vmatprep.mubr.bf16.mxu1 %v1481_v12 }
  0x5b   :  { %761 = vmatmul.mubr.bf16.gmra.mrb[28].mxu0 %v1483_v16 }
  0x5c   :  { %858 = vmatmul.mubr.bf16.gmra.mrb[28].mxu1 %v1484_v18  ;;  %1374 = vmatprep.mubr.msk.bf16.mxu0 %vm647_vm0, %v1485_v19 }
  0x5d   :  { %1382 = vmatprep.mubr.msk.bf16.mxu1 %vm647_vm0, %v1486_v20 }
  0x63   :  { %1375 = vmatmul.mubr.msk.bf16.vlgmr.msra.gmra.mrb[32].mxu0 %vm647_vm0, %v1487_v23 }
  0x64   :  { %1383 = vmatmul.mubr.msk.bf16.vlgmr.msra.gmra.mrb[32].mxu1 %vm647_vm0, %v1488_v24  ;;  %1378 = vmatprep.mubr.msk.bf16.mxu0 %vm647_vm0, %v1489_v25 }
  0x65   :  { %1386 = vmatprep.mubr.msk.bf16.mxu1 %vm647_vm0, %v1490_v26 }
  0x6b   :  { %1379 = vmatmul.mubr.msk.bf16.gmra.mrb[36].mxu0 %vm647_vm0, %v1491_v27 }
  0x6c   :  { %1387 = vmatmul.mubr.msk.bf16.gmra.mrb[36].mxu1 %vm647_vm0, %v1492_v28 }
  0x95   :  { %v154_v29 = vpop.permute.xlu0 %153 }
  0x96   :  { %v164_v30 = vpop.permute.xlu1 %163 }
  0x99   :  { %v159_v32 = vpop.permute.xlu0 %158 }
  0x9a   :  { %v169_v48 = vpop.permute.xlu1 %168 }
  0x9d   :  { %v174_v0 = vpop.permute.xlu0 %173 }
  0x9e   :  { %v179_v2 = vpop.permute.xlu1 %178 }
  0xa1   :  { %v184_v19 = vpop.permute.xlu0 %183 }
  0xf6   :  { %v1242_v31 = vpop.f32.mrb[0].mxu0 }
  0xf7   :  { %v1306_v33 = vpop.f32.mrb[0].mxu1  ;;  %v1243_v34 = vpop.f32.mrb[1].mxu0 }
  0xf8   :  { %v1244_v35 = vadd.f32 %v1243_v34, %v1242_v31  ;;  %v1307_v36 = vpop.f32.mrb[1].mxu1  ;;  %v1245_v37 = vpop.f32.mrb[2].mxu0 }
  0xf9   :  { %v1308_v38 = vadd.f32 %v1307_v36, %v1306_v33  ;;  %v1309_v39 = vpop.f32.mrb[2].mxu1  ;;  %v1246_v40 = vpop.f32.mrb[3].mxu0 }
  0xfa   :  { %v707_v41 = vadd.f32 %v1244_v35, %v154_v29  ;;  %v1247_v42 = vadd.f32 %v1246_v40, %v1245_v37  ;;  %v1310_v43 = vpop.f32.mrb[3].mxu1  ;;  %v189_v33 = vpop.permute.xlu1 %188 }
  0xfb   :  { %v1311_v44 = vadd.f32 %v1310_v43, %v1309_v39  ;;  %v194_v36 = vpop.permute.xlu0 %193 }
  0xfc   :  { %v710_v45 = vadd.f32 %v1247_v42, %v159_v32  ;;  %v1798_v46 = vadd.f32 %v1308_v38, %v707_v41 }
  0xfe   :  { %v1248_v47 = vpop.f32.mrb[4].mxu0  ;;  %v1800_v49 = vadd.f32 %v1311_v44, %v710_v45 }
  0xff   :  { %v1312_v50 = vpop.f32.mrb[4].mxu1  ;;  %v1249_v51 = vpop.f32.mrb[5].mxu0 }
 0x100   :  { %v1250_v52 = vadd.f32 %v1249_v51, %v1248_v47  ;;  %v1313_v53 = vpop.f32.mrb[5].mxu1  ;;  %v1251_v54 = vpop.f32.mrb[6].mxu0 }
 0x101   :  { %v1314_v55 = vadd.f32 %v1313_v53, %v1312_v50  ;;  %v1315_v56 = vpop.f32.mrb[6].mxu1  ;;  %v1252_v57 = vpop.f32.mrb[7].mxu0 }
 0x102   :  { %v715_v58 = vadd.f32 %v1250_v52, %v164_v30  ;;  %v1253_v59 = vadd.f32 %v1252_v57, %v1251_v54  ;;  %v1316_v60 = vpop.f32.mrb[7].mxu1  ;;  %v199_v52 = vpop.permute.xlu1 %198 }
 0x103   :  { %v1317_v61 = vadd.f32 %v1316_v60, %v1315_v56  ;;  %v204_v56 = vpop.permute.xlu0 %203 }
 0x104   :  { %v718_v62 = vadd.f32 %v1253_v59, %v169_v48  ;;  %v1802_v63 = vadd.f32 %v1314_v55, %v715_v58 }
 0x106   :  { %v1254_v1 = vpop.f32.mrb[8].mxu0  ;;  %v1804_v3 = vadd.f32 %v1317_v61, %v718_v62 }
 0x107   :  { %v1318_v4 = vpop.f32.mrb[8].mxu1  ;;  %v1255_v5 = vpop.f32.mrb[9].mxu0 }
 0x108   :  { %v1256_v6 = vadd.f32 %v1255_v5, %v1254_v1  ;;  %v1319_v7 = vpop.f32.mrb[9].mxu1  ;;  %v1257_v8 = vpop.f32.mrb[10].mxu0 }
 0x109   :  { %v1320_v9 = vadd.f32 %v1319_v7, %v1318_v4  ;;  %v1321_v10 = vpop.f32.mrb[10].mxu1  ;;  %v1258_v11 = vpop.f32.mrb[11].mxu0 }
 0x10a   :  { %v723_v12 = vadd.f32 %v1256_v6, %v174_v0  ;;  %v1259_v13 = vadd.f32 %v1258_v11, %v1257_v8  ;;  %v1322_v14 = vpop.f32.mrb[11].mxu1  ;;  %v209_v8 = vpop.permute.xlu1 %208 }
 0x10b   :  { %v1323_v15 = vadd.f32 %v1322_v14, %v1321_v10 }
 0x10c   :  { %v726_v16 = vadd.f32 %v1259_v13, %v179_v2  ;;  %v1806_v17 = vadd.f32 %v1320_v9, %v723_v12  ;;  %v214_v12 = vpop.permute.xlu0 %213 }
 0x10e   :  { %v1260_v18 = vpop.f32.mrb[12].mxu0  ;;  %v1808_v20 = vadd.f32 %v1323_v15, %v726_v16 }
 0x10f   :  { %v1324_v21 = vpop.f32.mrb[12].mxu1  ;;  %v1261_v22 = vpop.f32.mrb[13].mxu0 }
 0x110   :  { %v1262_v23 = vadd.f32 %v1261_v22, %v1260_v18  ;;  %v1325_v24 = vpop.f32.mrb[13].mxu1  ;;  %v1263_v25 = vpop.f32.mrb[14].mxu0 }
 0x111   :  { %v1326_v26 = vadd.f32 %v1325_v24, %v1324_v21  ;;  %v1327_v27 = vpop.f32.mrb[14].mxu1  ;;  %v1264_v28 = vpop.f32.mrb[15].mxu0 }
 0x112   :  { %v731_v29 = vadd.f32 %v1262_v23, %v184_v19  ;;  %v1265_v30 = vadd.f32 %v1264_v28, %v1263_v25  ;;  %v1328_v31 = vpop.f32.mrb[15].mxu1  ;;  %v219_v28 = vpop.permute.xlu1 %218 }
 0x113   :  { %v1329_v32 = vadd.f32 %v1328_v31, %v1327_v27 }
 0x114   :  { %v734_v34 = vadd.f32 %v1265_v30, %v189_v33  ;;  %v1810_v35 = vadd.f32 %v1326_v26, %v731_v29 }
 0x116   :  { %v1266_v37 = vpop.f32.mrb[16].mxu0  ;;  %v1812_v38 = vadd.f32 %v1329_v32, %v734_v34  ;;  %v224_v32 = vpop.permute.xlu0 %223 }
 0x117   :  { %v1330_v39 = vpop.f32.mrb[16].mxu1  ;;  %v1267_v40 = vpop.f32.mrb[17].mxu0 }
 0x118   :  { %v1268_v41 = vadd.f32 %v1267_v40, %v1266_v37  ;;  %v1331_v42 = vpop.f32.mrb[17].mxu1  ;;  %v1269_v43 = vpop.f32.mrb[18].mxu0 }
 0x119   :  { %v1332_v44 = vadd.f32 %v1331_v42, %v1330_v39  ;;  %v1333_v45 = vpop.f32.mrb[18].mxu1  ;;  %v1270_v47 = vpop.f32.mrb[19].mxu0 }
 0x11a   :  { %v739_v48 = vadd.f32 %v1268_v41, %v194_v36  ;;  %v1271_v50 = vadd.f32 %v1270_v47, %v1269_v43  ;;  %v1334_v51 = vpop.f32.mrb[19].mxu1 }
 0x11b   :  { %v1335_v53 = vadd.f32 %v1334_v51, %v1333_v45 }
 0x11c   :  { %v742_v54 = vadd.f32 %v1271_v50, %v199_v52  ;;  %v1814_v55 = vadd.f32 %v1332_v44, %v739_v48  ;;  %v229_v50 = vpop.permute.xlu1 %228 }
 0x11e   :  { %v1272_v57 = vpop.f32.mrb[20].mxu0  ;;  %v1816_v58 = vadd.f32 %v1335_v53, %v742_v54 }
 0x11f   :  { %v1336_v59 = vpop.f32.mrb[20].mxu1  ;;  %v1273_v60 = vpop.f32.mrb[21].mxu0 }
 0x120   :  { %v1274_v61 = vadd.f32 %v1273_v60, %v1272_v57  ;;  %v1337_v62 = vpop.f32.mrb[21].mxu1  ;;  %v1275_v0 = vpop.f32.mrb[22].mxu0 }
 0x121   :  { %v1338_v1 = vadd.f32 %v1337_v62, %v1336_v59  ;;  %v1339_v2 = vpop.f32.mrb[22].mxu1  ;;  %v1276_v4 = vpop.f32.mrb[23].mxu0 }
 0x122   :  { %v747_v5 = vadd.f32 %v1274_v61, %v204_v56  ;;  %v1277_v6 = vadd.f32 %v1276_v4, %v1275_v0  ;;  %v1340_v7 = vpop.f32.mrb[23].mxu1 }
 0x123   :  { %v1341_v9 = vadd.f32 %v1340_v7, %v1339_v2 }
 0x124   :  { %v750_v10 = vadd.f32 %v1277_v6, %v209_v8  ;;  %v844_v11 = vadd.f32 %v1338_v1, %v747_v5 }
 0x126   :  { %v1278_v13 = vpop.f32.mrb[24].mxu0  ;;  %v847_v14 = vadd.f32 %v1341_v9, %v750_v10 }
 0x127   :  { %v1342_v15 = vpop.f32.mrb[24].mxu1  ;;  %v1279_v16 = vpop.f32.mrb[25].mxu0 }
 0x128   :  { %v1280_v18 = vadd.f32 %v1279_v16, %v1278_v13  ;;  %v1343_v19 = vpop.f32.mrb[25].mxu1  ;;  %v1281_v21 = vpop.f32.mrb[26].mxu0 }
 0x129   :  { %v1344_v22 = vadd.f32 %v1343_v19, %v1342_v15  ;;  %v1345_v23 = vpop.f32.mrb[26].mxu1  ;;  %v1282_v24 = vpop.f32.mrb[27].mxu0 }
 0x12a   :  { %v755_v25 = vadd.f32 %v1280_v18, %v214_v12  ;;  %v1283_v26 = vadd.f32 %v1282_v24, %v1281_v21  ;;  %v1346_v27 = vpop.f32.mrb[27].mxu1 }
 0x12b   :  { %v1347_v29 = vadd.f32 %v1346_v27, %v1345_v23 }
 0x12c   :  { %v758_v30 = vadd.f32 %v1283_v26, %v219_v28  ;;  %v852_v31 = vadd.f32 %v1344_v22, %v755_v25 }
 0x12e   :  { %v1284_v33 = vpop.f32.mrb[28].mxu0  ;;  %v1818_v34 = vadd.f32 %v1347_v29, %v758_v30 }
 0x12f   :  { %v1348_v36 = vpop.f32.mrb[28].mxu1  ;;  %v1285_v37 = vpop.f32.mrb[29].mxu0 }
 0x130   :  { %v1286_v39 = vadd.f32 %v1285_v37, %v1284_v33  ;;  %v1349_v40 = vpop.f32.mrb[29].mxu1  ;;  %v1287_v41 = vpop.f32.mrb[30].mxu0 }
 0x131   :  { %v1350_v42 = vadd.f32 %v1349_v40, %v1348_v36  ;;  %v1351_v43 = vpop.f32.mrb[30].mxu1  ;;  %v1288_v44 = vpop.f32.mrb[31].mxu0 }
 0x132   :  { %v763_v45 = vadd.f32 %v1286_v39, %v224_v32  ;;  %v1289_v47 = vadd.f32 %v1288_v44, %v1287_v41  ;;  %v1352_v48 = vpop.f32.mrb[31].mxu1 }
 0x133   :  { %v1353_v51 = vadd.f32 %v1352_v48, %v1351_v43 }
 0x134   :  { %v766_v52 = vadd.f32 %v1289_v47, %v229_v50  ;;  %v860_v53 = vadd.f32 %v1350_v42, %v763_v45 }
 0x136   :  { %v1376_v54 = vpop.f32.mrb[32].mxu0  ;;  %v863_v56 = vadd.f32 %v1353_v51, %v766_v52 }
 0x137   :  { %v909_v57 = vadd.f32 %v1376_v54, %v1802_v63  ;;  %v1384_v59 = vpop.f32.mrb[32].mxu1  ;;  %v900_v60 = vpop.f32.mrb[33].mxu0 }
 0x138   :  { %v941_v61 = vadd.f32 %v1384_v59, %v844_v11  ;;  %v901_v62 = vadd.f32 %v900_v60, %v1798_v46  ;;  %v932_v0 = vpop.f32.mrb[33].mxu1  ;;  %v1377_v1 = vpop.f32.mrb[34].mxu0 }
 0x139   :  { %v933_v2 = vadd.f32 %v932_v0, %v1814_v55  ;;  %v912_v4 = vadd.f32 %v1377_v1, %v1804_v3  ;;  %v1385_v5 = vpop.f32.mrb[34].mxu1  ;;  %v903_v6 = vpop.f32.mrb[35].mxu0  ;;  %v965_v10 = vmax.f32 %v909_v57, 0.0 }
 0x13a   :  { %v944_v7 = vadd.f32 %v1385_v5, %v847_v14  ;;  %v904_v8 = vadd.f32 %v903_v6, %v1800_v49  ;;  %v935_v9 = vpop.f32.mrb[35].mxu1  ;;  %v973_v13 = vmax.f32 %v941_v61, 0.0  ;;  %v963_v11 = vmax.f32 %v901_v62, 0.0 }
 0x13b   :  { %v966_v12 = vmax.f32 %v912_v4, 0.0  ;;  %v936_v63 = vadd.f32 %v935_v9, %v1816_v58  ;;  %v971_v16 = vmax.f32 %v933_v2, 0.0 }
 0x13c   :  { %v974_v15 = vmax.f32 %v944_v7, 0.0  ;;  %v964_v46 = vmax.f32 %v904_v8, 0.0 }
 0x13d   :  { %v1187_v18 = vpack.c.bf16 %v966_v12, %v965_v10  ;;  %v972_v19 = vmax.f32 %v936_v63, 0.0 }
 0x13e   :  { %v1207_v55 = vpack.c.bf16 %v974_v15, %v973_v13  ;;  %v1182_v21 = vpack.c.bf16 %v964_v46, %v963_v11  ;;  %v1380_v3 = vpop.f32.mrb[36].mxu0 }
 0x13f   :  { %1219 = vst [vmem:[%s1858_s3 + $0x8] sm:$0xff] %v1187_v18   ;;  %v1202_v49 = vpack.c.bf16 %v972_v19, %v971_v16  ;;  %v925_v14 = vadd.f32 %v1380_v3, %v1810_v35  ;;  %v1388_v22 = vpop.f32.mrb[36].mxu1  ;;  %v916_v23 = vpop.f32.mrb[37].mxu0 }
 0x140   :  { %1223 = vst [vmem:[%s1858_s3 + $0x28] sm:$0xff] %v1207_v55   ;;  %1183 = vst [vmem:[%s1858_s3] sm:$0xff] %v1182_v21   ;;  %v957_v58 = vadd.f32 %v1388_v22, %v860_v53  ;;  %v917_v24 = vadd.f32 %v916_v23, %v1806_v17  ;;  %v948_v25 = vpop.f32.mrb[37].mxu1  ;;  %v1381_v26 = vpop.f32.mrb[38].mxu0 }
 0x141   :  { %1222 = vst [vmem:[%s1858_s3 + $0x20] sm:$0xff] %v1202_v49   ;;  %v949_v35 = vadd.f32 %v948_v25, %v852_v31  ;;  %v928_v27 = vadd.f32 %v1381_v26, %v1812_v38  ;;  %v1389_v28 = vpop.f32.mrb[38].mxu1  ;;  %v919_v29 = vpop.f32.mrb[39].mxu0  ;;  %v969_v36 = vmax.f32 %v925_v14, 0.0 }
 0x142   :  { %v960_v30 = vadd.f32 %v1389_v28, %v863_v56  ;;  %v920_v32 = vadd.f32 %v919_v29, %v1808_v20  ;;  %v951_v33 = vpop.f32.mrb[39].mxu1  ;;  %v977_v17 = vmax.f32 %v957_v58, 0.0  ;;  %v967_v40 = vmax.f32 %v917_v24, 0.0 }
 0x143   :  { %v970_v37 = vmax.f32 %v928_v27, 0.0  ;;  %v952_v39 = vadd.f32 %v951_v33, %v1818_v34  ;;  %v975_v43 = vmax.f32 %v949_v35, 0.0 }
 0x144   :  { %v978_v41 = vmax.f32 %v960_v30, 0.0  ;;  %v968_v42 = vmax.f32 %v920_v32, 0.0 }
 0x145   :  { %v1197_v44 = vpack.c.bf16 %v970_v37, %v969_v36  ;;  %v976_v45 = vmax.f32 %v952_v39, 0.0 }
 0x146   :  { %v1217_v31 = vpack.c.bf16 %v978_v41, %v977_v17  ;;  %v1192_v47 = vpack.c.bf16 %v968_v42, %v967_v40 }
 0x147   :  { %1221 = vst [vmem:[%s1858_s3 + $0x18] sm:$0xff] %v1197_v44   ;;  %v1212_v38 = vpack.c.bf16 %v976_v45, %v975_v43 }
 0x148   :  { %1225 = vst [vmem:[%s1858_s3 + $0x38] sm:$0xff] %v1217_v31   ;;  %1220 = vst [vmem:[%s1858_s3 + $0x10] sm:$0xff] %v1192_v47  }
 0x149   :  { %1224 = vst [vmem:[%s1858_s3 + $0x30] sm:$0xff] %v1212_v38  }

// kernel: network_forward.20
= control target key start
LH: loop header
LB: loop body
LE: loop exit
PB: predicated region body
PF: predicated region fallthrough
CT: control target
= control target key end

     0   :  { %v1171_v1 = vmov 0   ;;  %vm1173_vm0 = vmmov 0   ;;  %s1449_s1 = inlined_call_operand.vmem [shape: bf16[1152,128], index: 1, kind: input, shape index: {}]   ;;  %s1450_s0 = inlined_call_operand.vmem [shape: bf16[10,1152], index: 0, kind: input, shape index: {}]   ;;  %s1451_s2 = inlined_call_operand.vmem [shape: f32[10,1], index: 2, kind: input, shape index: {}]   ;;  %s1452_s3 = inlined_call_operand.vmem [shape: bf16[10,128], index: 3, kind: output, shape index: {}]  }
   0x1   :  { %v1086_v0 = vld [vmem:[%s1449_s1 + $0x40] sm:$0xff]   ;;  %1085 = vset.pattern.permute.xlu0 %v1171_v1  ;;  %v1090_v5 = vld [vmem:[%s1449_s1 + $0x48] sm:$0xff]   ;;  %v1094_v9 = vld [vmem:[%s1449_s1 + $0x50] sm:$0xff]  }
   0x2   :  { %v1087_v2 = vld [vmem:[%s1449_s1] sm:$0xff]   ;;  %965 = vmatprep.subr.bf16.mxu0 %v1086_v0  ;;  %v1091_v6 = vld [vmem:[%s1449_s1 + $0x8] sm:$0xff]   ;;  %v1095_v10 = vld [vmem:[%s1449_s1 + $0x10] sm:$0xff]  }
   0x3   :  { %v1088_v3 = vld [vmem:[%s1449_s1 + $0xc0] sm:$0xff]   ;;  %966 = vmatpush3.bf16.msra.mxu0 %v1087_v2  ;;  %v1092_v7 = vld [vmem:[%s1449_s1 + $0xc8] sm:$0xff]   ;;  %v1096_v11 = vld [vmem:[%s1449_s1 + $0xd0] sm:$0xff]  }
   0x4   :  { %v1089_v4 = vld [vmem:[%s1449_s1 + $0x80] sm:$0xff]   ;;  %987 = vmatprep.subr.bf16.mxu1 %v1088_v3  ;;  %967 = vmatprep.subr.bf16.mxu0 %v1090_v5  ;;  %v1093_v8 = vld [vmem:[%s1449_s1 + $0x88] sm:$0xff]   ;;  %v1097_v12 = vld [vmem:[%s1449_s1 + $0x90] sm:$0xff]  }
   0x5   :  { %988 = vmatpush3.bf16.msra.mxu1 %v1089_v4  ;;  %v1098_v13 = vld [vmem:[%s1449_s1 + $0x58] sm:$0xff]   ;;  %v1102_v17 = vld [vmem:[%s1449_s1 + $0x60] sm:$0xff]   ;;  %v1106_v21 = vld [vmem:[%s1449_s1 + $0x68] sm:$0xff]  }
   0x6   :  { %989 = vmatprep.subr.bf16.mxu1 %v1092_v7  ;;  %v1099_v14 = vld [vmem:[%s1449_s1 + $0x18] sm:$0xff]   ;;  %v1103_v18 = vld [vmem:[%s1449_s1 + $0x20] sm:$0xff]   ;;  %v1107_v22 = vld [vmem:[%s1449_s1 + $0x28] sm:$0xff]   ;;  %v1172_v7 = vmov 0.0  }
   0x7   :  { %968 = vmatpush3.bf16.msra.mxu0 %v1091_v6  ;;  %v1100_v15 = vld [vmem:[%s1449_s1 + $0xd8] sm:$0xff]   ;;  %v1104_v19 = vld [vmem:[%s1449_s1 + $0xe0] sm:$0xff]   ;;  %v1108_v23 = vld [vmem:[%s1449_s1 + $0xe8] sm:$0xff]  }
   0x8   :  { %969 = vmatprep.subr.bf16.mxu0 %v1094_v9  ;;  %v1101_v16 = vld [vmem:[%s1449_s1 + $0x98] sm:$0xff]   ;;  %v1105_v20 = vld [vmem:[%s1449_s1 + $0xa0] sm:$0xff]   ;;  %v1109_v24 = vld [vmem:[%s1449_s1 + $0xa8] sm:$0xff]  }
   0x9   :  { %990 = vmatpush3.bf16.msra.mxu1 %v1093_v8  ;;  %v1110_v25 = vld [vmem:[%s1449_s1 + $0x70] sm:$0xff]   ;;  %v1114_v29 = vld [vmem:[%s1449_s1 + $0x78] sm:$0xff]   ;;  %v1117_v32 = vld [vmem:[%s1450_s0] ss:$36 sps:$4 sm:$0x1f]  }
   0xa   :  { %991 = vmatprep.subr.bf16.mxu1 %v1096_v11  ;;  %v1111_v26 = vld [vmem:[%s1449_s1 + $0x30] sm:$0xff]   ;;  %v1115_v30 = vld [vmem:[%s1449_s1 + $0x38] sm:$0xff]   ;;  %v1119_v33 = vld [vmem:[%s1450_s0 + $0x4] ss:$36 sps:$4 sm:$0x1f]  }
   0xb   :  { %970 = vmatpush3.bf16.msra.mxu0 %v1095_v10  ;;  %v1112_v27 = vld [vmem:[%s1449_s1 + $0xf0] sm:$0xff]   ;;  %v1116_v31 = vld [vmem:[%s1449_s1 + $0xf8] sm:$0xff]   ;;  %691 = vmatprep.mubr.bf16.mxu0 %v1119_v33  ;;  %v1121_v35 = vld [vmem:[%s1449_s1 + $0x140] sm:$0xff]  }
   0xc   :  { %971 = vmatprep.subr.bf16.mxu0 %v1098_v13  ;;  %v1113_v28 = vld [vmem:[%s1449_s1 + $0xb0] sm:$0xff]   ;;  %v1120_v34 = vld [vmem:[%s1449_s1 + $0xb8] sm:$0xff]   ;;  %v1122_v36 = vld [vmem:[%s1450_s0 + $0x8] ss:$36 sps:$4 sm:$0x1f]  }
   0xd   :  { %992 = vmatpush3.bf16.msra.mxu1 %v1097_v12  ;;  %v1124_v37 = vld [vmem:[%s1450_s0 + $0xc] ss:$36 sps:$4 sm:$0x1f]   ;;  %v1125_v38 = vld [vmem:[%s1449_s1 + $0x100] sm:$0xff]   ;;  %v1136_v49 = vld [vmem:[%s1449_s1 + $0x158] sm:$0xff]  }
   0xe   :  { %993 = vmatprep.subr.bf16.mxu1 %v1100_v15  ;;  %732 = vmatprep.mubr.bf16.mxu1 %v1124_v37  ;;  %v1126_v39 = vld [vmem:[%s1449_s1 + $0x1c0] sm:$0xff]   ;;  %v1128_v41 = vld [vmem:[%s1449_s1 + $0x148] sm:$0xff]   ;;  %v1132_v45 = vld [vmem:[%s1449_s1 + $0x150] sm:$0xff]  }
   0xf   :  { %972 = vmatpush3.bf16.msra.mxu0 %v1099_v14  ;;  %v1127_v40 = vld [vmem:[%s1449_s1 + $0x180] sm:$0xff]   ;;  %v1129_v42 = vld [vmem:[%s1449_s1 + $0x108] sm:$0xff]   ;;  %v1133_v46 = vld [vmem:[%s1449_s1 + $0x110] sm:$0xff]  }
  0x10   :  { %973 = vmatprep.subr.bf16.mxu0 %v1102_v17  ;;  %v1130_v43 = vld [vmem:[%s1449_s1 + $0x1c8] sm:$0xff]   ;;  %v1134_v47 = vld [vmem:[%s1449_s1 + $0x1d0] sm:$0xff]   ;;  %v1137_v50 = vld [vmem:[%s1449_s1 + $0x118] sm:$0xff]  }
  0x11   :  { %994 = vmatpush3.bf16.msra.mxu1 %v1101_v16  ;;  %v1131_v44 = vld [vmem:[%s1449_s1 + $0x188] sm:$0xff]   ;;  %v1135_v48 = vld [vmem:[%s1449_s1 + $0x190] sm:$0xff]   ;;  %v1138_v51 = vld [vmem:[%s1449_s1 + $0x1d8] sm:$0xff]  }
  0x12   :  { %995 = vmatprep.subr.bf16.mxu1 %v1104_v19  ;;  %v1139_v52 = vld [vmem:[%s1449_s1 + $0x198] sm:$0xff]   ;;  %v1140_v53 = vld [vmem:[%s1449_s1 + $0x160] sm:$0xff]   ;;  %v1144_v57 = vld [vmem:[%s1449_s1 + $0x168] sm:$0xff]  }
  0x13   :  { %974 = vmatpush3.bf16.msra.mxu0 %v1103_v18  ;;  %v1141_v54 = vld [vmem:[%s1449_s1 + $0x120] sm:$0xff]   ;;  %v1145_v58 = vld [vmem:[%s1449_s1 + $0x128] sm:$0xff]   ;;  %v1148_v61 = vld [vmem:[%s1449_s1 + $0x170] sm:$0xff]  }
  0x14   :  { %975 = vmatprep.subr.bf16.mxu0 %v1106_v21  ;;  %v1142_v55 = vld [vmem:[%s1449_s1 + $0x1e0] sm:$0xff]   ;;  %v1146_v59 = vld [vmem:[%s1449_s1 + $0x1e8] sm:$0xff]   ;;  %v1149_v62 = vld [vmem:[%s1449_s1 + $0x130] sm:$0xff]  }
  0x15   :  { %996 = vmatpush3.bf16.msra.mxu1 %v1105_v20  ;;  %v1143_v56 = vld [vmem:[%s1449_s1 + $0x1a0] sm:$0xff]   ;;  %v1147_v60 = vld [vmem:[%s1449_s1 + $0x1a8] sm:$0xff]   ;;  %v1150_v63 = vld [vmem:[%s1449_s1 + $0x1f0] sm:$0xff]  }
  0x16   :  { %997 = vmatprep.subr.bf16.mxu1 %v1108_v23  ;;  %v1151_v0 = vld [vmem:[%s1449_s1 + $0x1b0] sm:$0xff]   ;;  %v1152_v1 = vld [vmem:[%s1449_s1 + $0x178] sm:$0xff]   ;;  %v1162_v10 = vld [vmem:[%s1449_s1 + $0x200] sm:$0xff]  }
  0x17   :  { %976 = vmatpush3.bf16.msra.mxu0 %v1107_v22  ;;  %v1153_v2 = vld [vmem:[%s1449_s1 + $0x138] sm:$0xff]   ;;  %v1155_v4 = vld [vmem:[%s1450_s0 + $0x10] ss:$36 sps:$4 sm:$0x1f]   ;;  %v1163_v11 = vld [vmem:[%s1449_s1 + $0x208] sm:$0xff]  }
  0x18   :  { %977 = vmatprep.subr.bf16.mxu0 %v1110_v25  ;;  %v1154_v3 = vld [vmem:[%s1449_s1 + $0x1f8] sm:$0xff]   ;;  %v1164_v12 = vld [vmem:[%s1449_s1 + $0x210] sm:$0xff]   ;;  %v169_v13 = vld [vmem:[%s1451_s2] sm:$0xff] }
  0x19   :  { %998 = vmatpush3.bf16.msra.mxu1 %v1109_v24  ;;  %v1157_v5 = vld [vmem:[%s1450_s0 + $0x14] ss:$36 sps:$4 sm:$0x1f]   ;;  %v1161_v9 = vld [vmem:[%s1450_s0 + $0x1c] ss:$36 sps:$4 sm:$0x1f]   ;;  %173 = vperm.xlu0 %1085, %v169_v13  }
  0x1a   :  { %999 = vmatprep.subr.bf16.mxu1 %v1112_v27  ;;  %v1158_v6 = vld [vmem:[%s1449_s1 + $0x1b8] sm:$0xff]   ;;  %v170_v15 = vld [vmem:[%s1451_s2 + $0x8] sm:$0x3]  ;;  %v1166_v16 = vld [vmem:[%s1449_s1 + $0x220] sm:$0xff]  }
  0x1b   :  { %978 = vmatpush3.bf16.msra.mxu0 %v1111_v26  ;;  %v1159_v8 = vld [vmem:[%s1450_s0 + $0x18] ss:$36 sps:$4 sm:$0x1f]   ;;  %v1167_v17 = vld [vmem:[%s1449_s1 + $0x228] sm:$0xff]   ;;  %v1168_v18 = vld [vmem:[%s1449_s1 + $0x230] sm:$0xff]  }
  0x1c   :  { %979 = vmatprep.subr.bf16.mxu0 %v1114_v29  ;;  %v1165_v14 = vld [vmem:[%s1449_s1 + $0x218] sm:$0xff]   ;;  %v1170_v20 = vld [vmem:[%s1450_s0 + $0x20] ss:$36 sps:$4 sm:$0x1f]  }
  0x1d   :  { %1000 = vmatpush3.bf16.msra.mxu1 %v1113_v28  ;;  %178 = vperm.xlu0 %1085, %v170_v15   ;;  %v1169_v19 = vld [vmem:[%s1449_s1 + $0x238] sm:$0xff]  }
  0x1e   :  { %1001 = vmatprep.subr.bf16.mxu1 %v1116_v31 }
  0x1f   :  { %980 = vmatpush3.bf16.msra.mxu0 %v1115_v30 }
  0x20   :  { %1009 = vmatprep.subr.bf16.mxu0 %v1121_v35 }
  0x21   :  { %1002 = vmatpush3.bf16.msra.mxu1 %v1120_v34 }
  0x22   :  { %692 = vmatmul.mubr.bf16.vlgmr.msra.gmra.mrb[0].mxu0 %v1117_v32  ;;  %1031 = vmatprep.subr.bf16.mxu1 %v1126_v39 }
  0x23   :  { %1010 = vmatpush3.bf16.msra.mxu0 %v1125_v38  ;;  %773 = vmatprep.mubr.bf16.mxu0 %v1157_v5 }
  0x24   :  { %733 = vmatmul.mubr.bf16.vlgmr.msra.gmra.mrb[0].mxu1 %v1122_v36  ;;  %1011 = vmatprep.subr.bf16.mxu0 %v1128_v41 }
  0x25   :  { %1032 = vmatpush3.bf16.msra.mxu1 %v1127_v40  ;;  %814 = vmatprep.mubr.bf16.mxu1 %v1161_v9 }
  0x26   :  { %1033 = vmatprep.subr.bf16.mxu1 %v1130_v43 }
  0x27   :  { %1012 = vmatpush3.bf16.msra.mxu0 %v1129_v42 }
  0x28   :  { %1013 = vmatprep.subr.bf16.mxu0 %v1132_v45 }
  0x29   :  { %1034 = vmatpush3.bf16.msra.mxu1 %v1131_v44 }
  0x2a   :  { %1035 = vmatprep.subr.bf16.mxu1 %v1134_v47 }
  0x2b   :  { %1014 = vmatpush3.bf16.msra.mxu0 %v1133_v46 }
  0x2c   :  { %1015 = vmatprep.subr.bf16.mxu0 %v1136_v49 }
  0x2d   :  { %1036 = vmatpush3.bf16.msra.mxu1 %v1135_v48 }
  0x2e   :  { %1037 = vmatprep.subr.bf16.mxu1 %v1138_v51 }
  0x2f   :  { %1016 = vmatpush3.bf16.msra.mxu0 %v1137_v50 }
  0x30   :  { %1017 = vmatprep.subr.bf16.mxu0 %v1140_v53 }
  0x31   :  { %1038 = vmatpush3.bf16.msra.mxu1 %v1139_v52 }
  0x32   :  { %1039 = vmatprep.subr.bf16.mxu1 %v1142_v55 }
  0x33   :  { %1018 = vmatpush3.bf16.msra.mxu0 %v1141_v54 }
  0x34   :  { %1019 = vmatprep.subr.bf16.mxu0 %v1144_v57 }
  0x35   :  { %1040 = vmatpush3.bf16.msra.mxu1 %v1143_v56 }
  0x36   :  { %1041 = vmatprep.subr.bf16.mxu1 %v1146_v59 }
  0x37   :  { %1020 = vmatpush3.bf16.msra.mxu0 %v1145_v58 }
  0x38   :  { %1021 = vmatprep.subr.bf16.mxu0 %v1148_v61 }
  0x39   :  { %1042 = vmatpush3.bf16.msra.mxu1 %v1147_v60 }
  0x3a   :  { %1043 = vmatprep.subr.bf16.mxu1 %v1150_v63 }
  0x3b   :  { %1022 = vmatpush3.bf16.msra.mxu0 %v1149_v62 }
  0x3c   :  { %1023 = vmatprep.subr.bf16.mxu0 %v1152_v1 }
  0x3d   :  { %1044 = vmatpush3.bf16.msra.mxu1 %v1151_v0 }
  0x3e   :  { %1045 = vmatprep.subr.bf16.mxu1 %v1154_v3 }
  0x3f   :  { %1024 = vmatpush3.bf16.msra.mxu0 %v1153_v2 }
  0x40   :  { %1062 = vmatprep.subr.bf16.mxu0 %v1172_v7 }
  0x41   :  { %1046 = vmatpush3.bf16.msra.mxu1 %v1158_v6 }
  0x42   :  { %774 = vmatmul.mubr.bf16.vlgmr.msra.gmra.mrb[4].mxu0 %v1155_v4 }
  0x43   :  { %1078 = vmatprep.mubr.msk.bf16.mxu0 %vm1173_vm0, %v1172_v7  ;;  %1063 = vmatpush3.bf16.msra.mxu0 %v1162_v10 }
  0x44   :  { %815 = vmatmul.mubr.bf16.vlgmr.msra.gmra.mrb[4].mxu1 %v1159_v8  ;;  %1064 = vmatprep.subr.bf16.mxu0 %v1172_v7 }
  0x47   :  { %1065 = vmatpush3.bf16.msra.mxu0 %v1163_v11 }
  0x48   :  { %1066 = vmatprep.subr.bf16.mxu0 %v1172_v7 }
  0x4b   :  { %1067 = vmatpush3.bf16.msra.mxu0 %v1164_v12 }
  0x4c   :  { %1068 = vmatprep.subr.bf16.mxu0 %v1172_v7 }
  0x4f   :  { %1069 = vmatpush3.bf16.msra.mxu0 %v1165_v14 }
  0x50   :  { %1070 = vmatprep.subr.bf16.mxu0 %v1172_v7 }
  0x53   :  { %1071 = vmatpush3.bf16.msra.mxu0 %v1166_v16 }
  0x54   :  { %1072 = vmatprep.subr.bf16.mxu0 %v1172_v7 }
  0x57   :  { %1073 = vmatpush3.bf16.msra.mxu0 %v1167_v17 }
  0x58   :  { %1074 = vmatprep.subr.bf16.mxu0 %v1172_v7 }
  0x5b   :  { %1075 = vmatpush3.bf16.msra.mxu0 %v1168_v18 }
  0x5c   :  { %1076 = vmatprep.subr.bf16.mxu0 %v1172_v7 }
  0x5f   :  { %1077 = vmatpush3.bf16.msra.mxu0 %v1169_v19 }
  0x62   :  { %1079 = vmatmul.mubr.bf16.vlgmr.msra.gmra.mrb[8].mxu0 %v1170_v20 }
  0x98   :  { %v174_v21 = vpop.permute.xlu0 %173 }
  0x9c   :  { %v179_v26 = vpop.permute.xlu0 %178 }
  0xf5   :  { %v981_v22 = vpop.f32.mrb[0].mxu0 }
  0xf6   :  { %v982_v23 = vpop.f32.mrb[1].mxu0 }
  0xf7   :  { %v983_v24 = vadd.f32 %v982_v23, %v981_v22  ;;  %v984_v25 = vpop.f32.mrb[2].mxu0  ;;  %v1003_v27 = vpop.f32.mrb[0].mxu1 }
  0xf8   :  { %v985_v28 = vpop.f32.mrb[3].mxu0  ;;  %v1004_v31 = vpop.f32.mrb[1].mxu1 }
  0xf9   :  { %v694_v29 = vadd.f32 %v983_v24, %v174_v21  ;;  %v986_v30 = vadd.f32 %v985_v28, %v984_v25  ;;  %v1005_v32 = vadd.f32 %v1004_v31, %v1003_v27  ;;  %v1006_v33 = vpop.f32.mrb[2].mxu1 }
  0xfa   :  { %v1007_v35 = vpop.f32.mrb[3].mxu1 }
  0xfb   :  { %v697_v34 = vadd.f32 %v986_v30, %v179_v26  ;;  %v735_v36 = vadd.f32 %v1005_v32, %v694_v29  ;;  %v1008_v37 = vadd.f32 %v1007_v35, %v1006_v33 }
  0xfd   :  { %v738_v38 = vadd.f32 %v1008_v37, %v697_v34 }
 0x115   :  { %v1025_v39 = vpop.f32.mrb[4].mxu0 }
 0x116   :  { %v1026_v40 = vpop.f32.mrb[5].mxu0 }
 0x117   :  { %v1027_v41 = vadd.f32 %v1026_v40, %v1025_v39  ;;  %v1028_v42 = vpop.f32.mrb[6].mxu0  ;;  %v1047_v43 = vpop.f32.mrb[4].mxu1 }
 0x118   :  { %v1029_v44 = vpop.f32.mrb[7].mxu0  ;;  %v1048_v45 = vpop.f32.mrb[5].mxu1 }
 0x119   :  { %v776_v46 = vadd.f32 %v1027_v41, %v735_v36  ;;  %v1030_v47 = vadd.f32 %v1029_v44, %v1028_v42  ;;  %v1049_v48 = vadd.f32 %v1048_v45, %v1047_v43  ;;  %v1050_v49 = vpop.f32.mrb[6].mxu1 }
 0x11a   :  { %v1051_v50 = vpop.f32.mrb[7].mxu1 }
 0x11b   :  { %v779_v51 = vadd.f32 %v1030_v47, %v738_v38  ;;  %v1052_v52 = vadd.f32 %v1051_v50, %v1050_v49  ;;  %v817_v53 = vadd.f32 %v1049_v48, %v776_v46 }
 0x11d   :  { %v820_v54 = vadd.f32 %v1052_v52, %v779_v51 }
 0x135   :  { %v857_v55 = vpop.f32.mrb[8].mxu0 }
 0x136   :  { %v858_v56 = vadd.f32 %v857_v55, %v817_v53  ;;  %v1080_v57 = vpop.f32.mrb[9].mxu0 }
 0x137   :  { %v860_v58 = vpop.f32.mrb[10].mxu0 }
 0x138   :  { %v864_v59 = vmax.f32 %v858_v56, 0.0  ;;  %v861_v60 = vadd.f32 %v860_v58, %v820_v54  ;;  %v1081_v61 = vpop.f32.mrb[11].mxu0 }
 0x13a   :  { %v963_v62 = vpack.c.bf16 %v864_v59, %v864_v59  ;;  %v865_v63 = vmax.f32 %v861_v60, 0.0 }
 0x13c   :  { %874 = vst [vmem:[%s1452_s3] sm:$0xf] %v963_v62  ;;  %v964_v0 = vpack.c.bf16 %v865_v63, %v865_v63 }
 0x13e   :  { %875 = vst [vmem:[%s1452_s3 + $0x4] sm:$0x1] %v964_v0 }

// kernel: network_forward.11
= control target key start
LH: loop header
LB: loop body
LE: loop exit
PB: predicated region body
PF: predicated region fallthrough
CT: control target
= control target key end

     0   :  { %s2007_s12 = smov 0   ;;  %s2009_s13 = smov 0   ;;  %s2477_s0 = inlined_call_operand.vmem [shape: bf16[16,25], index: 0, kind: input, shape index: {}]   ;;  %s2478_s1 = inlined_call_operand.vmem [shape: bf16[25,14336], index: 1, kind: input, shape index: {}]   ;;  %s2479_s2 = inlined_call_operand.vmem [shape: f32[16,1], index: 2, kind: input, shape index: {}]   ;;  %s2480_s3 = inlined_call_operand.vmem [shape: bf16[16,14336], index: 3, kind: output, shape index: {}]  }
   0x1   :  { %s2011_s14 = smov 0  }
   0x2 LB: > { %s1708_s15 = sadd.s32 4294967295, %s1983_s14   ;;  %s2024_s16 = sadd.s32 1, %s1983_s14   ;;  %s1983_s14 = sphi %s2011_s14, %s2484_s14   ;;  %s1979_s13 = sphi %s2009_s13, %s2483_s13   ;;  %s1975_s12 = sphi %s2007_s12, %s2482_s12  }
   0x3   : > { %s38_s17 = ssub.s32 %s1983_s14, %s2024_s16  ;;  %s41_s18 = sadd.s32 1, %s1979_s13 }
   0x4   : > { %p39_p0 = scmp.eq.s32.totalorder %s38_s17, 0  ;;  %p48_p1 = scmp.ne.s32.totalorder %s1979_s13, %s1975_s12 }
   0x5   : > { %p49_p2 = scmp.eq.s32.totalorder %s1983_s14, 0  ;;  %p99_p3 = scmp.eq.s32.totalorder %s1708_s15, 3 }
   0x6   : > { %s2035_s19 = scalar_select %p39_p0, %s1979_s13, %s41_s18  }
   0x7   : > { %p50_p4 = por %p49_p2, %p48_p1  ;;  %p2037_p5 = por %p99_p3, %p48_p1 }
   0x8   : > { %p1711_p6 = scmp.ge.s32.totalorder %s1983_s14, 4 }
   0xa   : > { %127 = sbr.rel (%p1711_p6) target bundleno = 50 (0x32), region = 24 }
  0x11   : > { %130 = sbr.rel (!%p50_p4) target bundleno = 50 (0x32), region = 28  ;;  %s132_s21 = sand.u32 (%p50_p4), 1, %s1979_s13  }
  0x12   : > { %s1816_s22 = smul.u32 (%p50_p4), 112, %s1983_s14 }
  0x13   : > { %s1846_s23 = smul.u32 (%p50_p4), 448, %s132_s21 }
  0x14   : > { %s2047_s26 = scalar_lea.vmem (%p50_p4), %s2478_s1, %s1816_s22 }
  0x15   : > { %v150_v0 = vld [vmem:[%s2047_s26] sm:$0xff] (%p50_p4)  ;;  %v152_v1 = vld [vmem:[%s2047_s26 + $0x8] sm:$0xff] (%p50_p4)  ;;  %v154_v2 = vld [vmem:[%s2047_s26 + $0x10] sm:$0xff] (%p50_p4)  ;;  %s2052_s27 = scalar_lea.vmem (%p50_p4), [#allocation2], %s1846_s23 }
  0x16   : > { %151 = vst [vmem:[%s2052_s27] sm:$0xff] (%p50_p4), %v150_v0  ;;  %153 = vst [vmem:[%s2052_s27 + $0x8] sm:$0xff] (%p50_p4), %v152_v1  ;;  %v156_v3 = vld [vmem:[%s2047_s26 + $0x18] sm:$0xff] (%p50_p4)  ;;  %v158_v4 = vld [vmem:[%s2047_s26 + $0x20] sm:$0xff] (%p50_p4) }
  0x17   : > { %155 = vst [vmem:[%s2052_s27 + $0x10] sm:$0xff] (%p50_p4), %v154_v2  ;;  %v160_v5 = vld [vmem:[%s2047_s26 + $0x28] sm:$0xff] (%p50_p4)  ;;  %157 = vst [vmem:[%s2052_s27 + $0x18] sm:$0xff] (%p50_p4), %v156_v3  ;;  %v162_v6 = vld [vmem:[%s2047_s26 + $0x30] sm:$0xff] (%p50_p4) }
  0x18   : > { %159 = vst [vmem:[%s2052_s27 + $0x20] sm:$0xff] %v158_v4  ;;  %161 = vst [vmem:[%s2052_s27 + $0x28] sm:$0xff] %v160_v5  ;;  %v164_v7 = vld [vmem:[%s2047_s26 + $0x38] sm:$0xff]  ;;  %v166_v8 = vld [vmem:[%s2047_s26 + $0x40] sm:$0xff] }
  0x19   : > { %163 = vst [vmem:[%s2052_s27 + $0x30] sm:$0xff] %v162_v6  ;;  %165 = vst [vmem:[%s2052_s27 + $0x38] sm:$0xff] %v164_v7  ;;  %v168_v9 = vld [vmem:[%s2047_s26 + $0x48] sm:$0xff]  ;;  %v170_v10 = vld [vmem:[%s2047_s26 + $0x50] sm:$0xff] }
  0x1a   : > { %167 = vst [vmem:[%s2052_s27 + $0x40] sm:$0xff] %v166_v8  ;;  %v172_v11 = vld [vmem:[%s2047_s26 + $0x58] sm:$0xff]  ;;  %169 = vst [vmem:[%s2052_s27 + $0x48] sm:$0xff] %v168_v9  ;;  %v174_v12 = vld [vmem:[%s2047_s26 + $0x60] sm:$0xff] }
  0x1b   : > { %171 = vst [vmem:[%s2052_s27 + $0x50] sm:$0xff] %v170_v10  ;;  %173 = vst [vmem:[%s2052_s27 + $0x58] sm:$0xff] %v172_v11  ;;  %v176_v13 = vld [vmem:[%s2047_s26 + $0x68] sm:$0xff]  ;;  %v178_v14 = vld [vmem:[%s2047_s26 + $0x1c0] sm:$0xff] }
  0x1c   : > { %175 = vst [vmem:[%s2052_s27 + $0x60] sm:$0xff] %v174_v12  ;;  %177 = vst [vmem:[%s2052_s27 + $0x68] sm:$0xff] %v176_v13  ;;  %v180_v15 = vld [vmem:[%s2047_s26 + $0x1c8] sm:$0xff]  ;;  %v182_v16 = vld [vmem:[%s2047_s26 + $0x1d0] sm:$0xff] }
  0x1d   : > { %179 = vst [vmem:[%s2052_s27 + $0x70] sm:$0xff] %v178_v14  ;;  %v184_v17 = vld [vmem:[%s2047_s26 + $0x1d8] sm:$0xff]  ;;  %181 = vst [vmem:[%s2052_s27 + $0x78] sm:$0xff] %v180_v15  ;;  %v186_v18 = vld [vmem:[%s2047_s26 + $0x1e0] sm:$0xff] }
  0x1e   : > { %183 = vst [vmem:[%s2052_s27 + $0x80] sm:$0xff] %v182_v16  ;;  %185 = vst [vmem:[%s2052_s27 + $0x88] sm:$0xff] %v184_v17  ;;  %v188_v19 = vld [vmem:[%s2047_s26 + $0x1e8] sm:$0xff]  ;;  %v190_v20 = vld [vmem:[%s2047_s26 + $0x1f0] sm:$0xff] }
  0x1f   : > { %187 = vst [vmem:[%s2052_s27 + $0x90] sm:$0xff] %v186_v18  ;;  %189 = vst [vmem:[%s2052_s27 + $0x98] sm:$0xff] %v188_v19  ;;  %v192_v21 = vld [vmem:[%s2047_s26 + $0x1f8] sm:$0xff]  ;;  %v194_v22 = vld [vmem:[%s2047_s26 + $0x200] sm:$0xff] }
  0x20   : > { %191 = vst [vmem:[%s2052_s27 + $0xa0] sm:$0xff] %v190_v20  ;;  %v196_v23 = vld [vmem:[%s2047_s26 + $0x208] sm:$0xff]  ;;  %193 = vst [vmem:[%s2052_s27 + $0xa8] sm:$0xff] %v192_v21  ;;  %v198_v24 = vld [vmem:[%s2047_s26 + $0x210] sm:$0xff] }
  0x21   : > { %195 = vst [vmem:[%s2052_s27 + $0xb0] sm:$0xff] %v194_v22  ;;  %197 = vst [vmem:[%s2052_s27 + $0xb8] sm:$0xff] %v196_v23  ;;  %v200_v25 = vld [vmem:[%s2047_s26 + $0x218] sm:$0xff]  ;;  %v202_v26 = vld [vmem:[%s2047_s26 + $0x220] sm:$0xff] }
  0x22   : > { %199 = vst [vmem:[%s2052_s27 + $0xc0] sm:$0xff] %v198_v24  ;;  %201 = vst [vmem:[%s2052_s27 + $0xc8] sm:$0xff] %v200_v25  ;;  %v204_v27 = vld [vmem:[%s2047_s26 + $0x228] sm:$0xff]  ;;  %v206_v28 = vld [vmem:[%s2047_s26 + $0x380] sm:$0xff] }
  0x23   : > { %203 = vst [vmem:[%s2052_s27 + $0xd0] sm:$0xff] %v202_v26  ;;  %v208_v29 = vld [vmem:[%s2047_s26 + $0x388] sm:$0xff]  ;;  %205 = vst [vmem:[%s2052_s27 + $0xd8] sm:$0xff] %v204_v27  ;;  %v210_v30 = vld [vmem:[%s2047_s26 + $0x390] sm:$0xff] }
  0x24   : > { %207 = vst [vmem:[%s2052_s27 + $0xe0] sm:$0xff] %v206_v28  ;;  %209 = vst [vmem:[%s2052_s27 + $0xe8] sm:$0xff] %v208_v29  ;;  %v212_v31 = vld [vmem:[%s2047_s26 + $0x398] sm:$0xff]  ;;  %v214_v32 = vld [vmem:[%s2047_s26 + $0x3a0] sm:$0xff] }
  0x25   : > { %211 = vst [vmem:[%s2052_s27 + $0xf0] sm:$0xff] %v210_v30  ;;  %213 = vst [vmem:[%s2052_s27 + $0xf8] sm:$0xff] %v212_v31  ;;  %v216_v33 = vld [vmem:[%s2047_s26 + $0x3a8] sm:$0xff]  ;;  %v218_v34 = vld [vmem:[%s2047_s26 + $0x3b0] sm:$0xff] }
  0x26   : > { %215 = vst [vmem:[%s2052_s27 + $0x100] sm:$0xff] %v214_v32  ;;  %v220_v35 = vld [vmem:[%s2047_s26 + $0x3b8] sm:$0xff]  ;;  %217 = vst [vmem:[%s2052_s27 + $0x108] sm:$0xff] %v216_v33  ;;  %v222_v36 = vld [vmem:[%s2047_s26 + $0x3c0] sm:$0xff] }
  0x27   : > { %219 = vst [vmem:[%s2052_s27 + $0x110] sm:$0xff] %v218_v34  ;;  %221 = vst [vmem:[%s2052_s27 + $0x118] sm:$0xff] %v220_v35  ;;  %v224_v37 = vld [vmem:[%s2047_s26 + $0x3c8] sm:$0xff]  ;;  %v226_v38 = vld [vmem:[%s2047_s26 + $0x3d0] sm:$0xff] }
  0x28   : > { %223 = vst [vmem:[%s2052_s27 + $0x120] sm:$0xff] %v222_v36  ;;  %225 = vst [vmem:[%s2052_s27 + $0x128] sm:$0xff] %v224_v37  ;;  %v228_v39 = vld [vmem:[%s2047_s26 + $0x3d8] sm:$0xff]  ;;  %v230_v40 = vld [vmem:[%s2047_s26 + $0x3e0] sm:$0xff] }
  0x29   : > { %227 = vst [vmem:[%s2052_s27 + $0x130] sm:$0xff] %v226_v38  ;;  %v232_v41 = vld [vmem:[%s2047_s26 + $0x3e8] sm:$0xff]  ;;  %229 = vst [vmem:[%s2052_s27 + $0x138] sm:$0xff] %v228_v39  ;;  %v234_v42 = vld [vmem:[%s2047_s26 + $0x540] sm:$0xff] }
  0x2a   : > { %231 = vst [vmem:[%s2052_s27 + $0x140] sm:$0xff] %v230_v40  ;;  %233 = vst [vmem:[%s2052_s27 + $0x148] sm:$0xff] %v232_v41  ;;  %v236_v43 = vld [vmem:[%s2047_s26 + $0x548] sm:$0xff]  ;;  %v238_v44 = vld [vmem:[%s2047_s26 + $0x550] sm:$0xff] }
  0x2b   : > { %235 = vst [vmem:[%s2052_s27 + $0x150] sm:$0xff] %v234_v42  ;;  %237 = vst [vmem:[%s2052_s27 + $0x158] sm:$0xff] %v236_v43  ;;  %v240_v45 = vld [vmem:[%s2047_s26 + $0x558] sm:$0xff]  ;;  %v242_v46 = vld [vmem:[%s2047_s26 + $0x560] sm:$0xff] }
  0x2c   : > { %239 = vst [vmem:[%s2052_s27 + $0x160] sm:$0xff] %v238_v44  ;;  %v244_v47 = vld [vmem:[%s2047_s26 + $0x568] sm:$0xff]  ;;  %241 = vst [vmem:[%s2052_s27 + $0x168] sm:$0xff] %v240_v45  ;;  %v246_v48 = vld [vmem:[%s2047_s26 + $0x570] sm:$0xff] }
  0x2d   : > { %243 = vst [vmem:[%s2052_s27 + $0x170] sm:$0xff] %v242_v46  ;;  %245 = vst [vmem:[%s2052_s27 + $0x178] sm:$0xff] %v244_v47  ;;  %v248_v49 = vld [vmem:[%s2047_s26 + $0x578] sm:$0xff]  ;;  %v250_v50 = vld [vmem:[%s2047_s26 + $0x580] sm:$0xff] }
  0x2e   : > { %247 = vst [vmem:[%s2052_s27 + $0x180] sm:$0xff] %v246_v48  ;;  %249 = vst [vmem:[%s2052_s27 + $0x188] sm:$0xff] %v248_v49  ;;  %v252_v51 = vld [vmem:[%s2047_s26 + $0x588] sm:$0xff]  ;;  %v254_v52 = vld [vmem:[%s2047_s26 + $0x590] sm:$0xff] }
  0x2f   : > { %251 = vst [vmem:[%s2052_s27 + $0x190] sm:$0xff] %v250_v50  ;;  %v256_v53 = vld [vmem:[%s2047_s26 + $0x598] sm:$0xff]  ;;  %253 = vst [vmem:[%s2052_s27 + $0x198] sm:$0xff] %v252_v51  ;;  %v258_v54 = vld [vmem:[%s2047_s26 + $0x5a0] sm:$0xff] }
  0x30   : > { %255 = vst [vmem:[%s2052_s27 + $0x1a0] sm:$0xff] %v254_v52  ;;  %257 = vst [vmem:[%s2052_s27 + $0x1a8] sm:$0xff] %v256_v53  ;;  %v260_v55 = vld [vmem:[%s2047_s26 + $0x5a8] sm:$0xff] }
  0x31   : > { %259 = vst [vmem:[%s2052_s27 + $0x1b0] sm:$0xff] %v258_v54  ;;  %261 = vst [vmem:[%s2052_s27 + $0x1b8] sm:$0xff] %v260_v55 }
  0x32 PF: > { %p1713_p7 = scmp.ge.s32.totalorder %s1983_s14, 1  ;;  %p266_p8 = scmp.lt.s32.totalorder %s1983_s14, 5 }
  0x34   : > { %p267_p9 = pnand %p1713_p7, %p266_p8 }
  0x35   : > { %s273_s28 = sand.u32 (!%p267_p9), 1, %s1975_s12   ;;  %vm629_vm0 = vcmask (!%p267_p9), 1043456   ;;  %v1985_v56 = vmov (!%p267_p9), 0   ;;  %v356_v57 = vld [vmem:[%s2479_s2] sm:$0xff] (!%p267_p9)  ;;  %vm630_vm1 = vcmask (!%p267_p9), 1044480   ;;  %v1986_v58 = vmov (!%p267_p9), 65535  }
  0x36   : > { %270 = sbr.rel (%p267_p9) target bundleno = 346 (0x15a), region = 51  ;;  %749 = vmatprep.mubr.bf16.mxu0 (!%p267_p9), %v1985_v56  ;;  %792 = vmatprep.mubr.bf16.mxu1 (!%p267_p9), %v1985_v56  ;;  %v631_v59 = vsel (!%p267_p9), %vm629_vm0, 4294967295, %v1986_v58  ;;  %v357_v60 = vld [vmem:[%s2479_s2 + $0x8] sm:$0xff] (!%p267_p9)  ;;  %v2194_v8 = vld [vmem:[%s2477_s0] sm:$0xff] (!%p267_p9)   ;;  %vm625_vm2 = vcmask (!%p267_p9), 203776  }
  0x37   : > { %s1847_s29 = smul.u32 (!%p267_p9), 448, %s273_s28  ;;  %1875 = vset.pattern.permute.xlu0 (!%p267_p9), %v1985_v56  ;;  %v2183_v1 = vsel (!%p267_p9), %vm630_vm1, %v631_v59, 0 }
  0x38   : > { %360 = vperm.xlu0 (!%p267_p9), %1875, %v356_v57   ;;  %s1848_s10 = smul.u32 (!%p267_p9), 224, %s273_s28 }
  0x39   : > { %s2177_s7 = scalar_lea.vmem (!%p267_p9), [#allocation2], %s1847_s29 }
  0x3a   : > { %v1876_v61 = vld [vmem:[%s2177_s7 + $0x4] ss:$112 sps:$4 sm:$0xff] (!%p267_p9)   ;;  %v1878_v62 = vld [vmem:[%s2177_s7 + $0xc] ss:$112 sps:$4 sm:$0xff] (!%p267_p9)   ;;  %v1880_v63 = vld [vmem:[%s2177_s7] ss:$112 sps:$4 sm:$0xff] (!%p267_p9)  }
  0x3b   : > { %717 = vmatprep.subr.bf16.mxu0 (!%p267_p9), %v1876_v61  ;;  %v1881_v0 = vld [vmem:[%s2177_s7 + $0x8] ss:$112 sps:$4 sm:$0xff] (!%p267_p9)   ;;  %760 = vmatprep.subr.bf16.mxu1 (!%p267_p9), %v1878_v62  ;;  %v1882_v2 = vld [vmem:[%s2177_s7 + $0xe4] ss:$112 sps:$4 sm:$0x1f] (!%p267_p9)   ;;  %s2324_s11 = scalar_lea.vmem (!%p267_p9), [#allocation3], %s1848_s10 }
  0x3c   : > { %365 = vperm.xlu0 (!%p267_p9), %1875, %v357_v60   ;;  %718 = vmatpush1.bf16.msra.mxu0 (!%p267_p9), %v1880_v63  ;;  %v1884_v3 = vld [vmem:[%s2177_s7 + $0xec] ss:$112 sps:$4 sm:$0x1f] (!%p267_p9)   ;;  %v637_v4 = vand.u32 (!%p267_p9), %v1882_v2, %v2183_v1  ;;  %v1886_v5 = vld [vmem:[%s2177_s7 + $0xe0] ss:$112 sps:$4 sm:$0x1f] (!%p267_p9)  }
  0x3d   : > { %761 = vmatpush1.bf16.msra.mxu1 %v1881_v0  ;;  %v1887_v6 = vld [vmem:[%s2177_s7 + $0xe8] ss:$112 sps:$4 sm:$0x1f]   ;;  %v643_v7 = vand.u32 %v1884_v3, %v2183_v1  ;;  %v1891_v9 = vld [vmem:[%s2177_s7 + $0x14] ss:$112 sps:$4 sm:$0xff]   ;;  %v634_v10 = vand.u32 %v1886_v5, %v2183_v1  ;;  %s1845_s12 = smul.u32 (%p2037_p5), 112, %s1708_s15 }
  0x3e   : > { %719 = vmatprep.subr.bf16.mxu0 %v637_v4  ;;  %v640_v11 = vand.u32 %v1887_v6, %v2183_v1  ;;  %v1889_v12 = vld [vmem:[%s2177_s7 + $0x10] ss:$112 sps:$4 sm:$0xff]   ;;  %v1892_v13 = vld [vmem:[%s2177_s7 + $0x18] ss:$112 sps:$4 sm:$0xff]   ;;  %v1894_v14 = vld [vmem:[%s2177_s7 + $0x1c] ss:$112 sps:$4 sm:$0xff]  }
  0x3f   : > { %762 = vmatprep.subr.bf16.mxu1 %v643_v7  ;;  %v1895_v15 = vld [vmem:[%s2177_s7 + $0xf0] ss:$112 sps:$4 sm:$0x1f]   ;;  %v1897_v16 = vld [vmem:[%s2177_s7 + $0xf4] ss:$112 sps:$4 sm:$0x1f]   ;;  %s2415_s18 = scalar_lea.vmem (%p2037_p5), %s2480_s3, %s1845_s12 }
  0x40   : > { %720 = vmatpush1.bf16.msra.mxu0 %v634_v10  ;;  %v1898_v17 = vld [vmem:[%s2177_s7 + $0xf8] ss:$112 sps:$4 sm:$0x1f]   ;;  %v649_v18 = vand.u32 %v1897_v16, %v2183_v1  ;;  %v1900_v19 = vld [vmem:[%s2177_s7 + $0xfc] ss:$112 sps:$4 sm:$0x1f]   ;;  %v646_v21 = vand.u32 %v1895_v15, %v2183_v1 }
  0x41   : > { %763 = vmatpush1.bf16.msra.mxu1 %v640_v11  ;;  %803 = vmatprep.subr.bf16.mxu0 %v1891_v9  ;;  %v655_v20 = vand.u32 %v1900_v19, %v2183_v1  ;;  %v652_v22 = vand.u32 %v1898_v17, %v2183_v1  ;;  %v1903_v23 = vld [vmem:[%s2177_s7 + $0x24] ss:$112 sps:$4 sm:$0xff]   ;;  %v1906_v24 = vld [vmem:[%s2177_s7 + $0x2c] ss:$112 sps:$4 sm:$0xff]   ;;  %v1901_v25 = vld [vmem:[%s2177_s7 + $0x20] ss:$112 sps:$4 sm:$0xff]  }
  0x42   : > { %846 = vmatprep.subr.bf16.mxu1 %v1894_v14  ;;  %v1904_v26 = vld [vmem:[%s2177_s7 + $0x28] ss:$112 sps:$4 sm:$0xff]   ;;  %v1909_v27 = vld [vmem:[%s2177_s7 + $0x104] ss:$112 sps:$4 sm:$0x1f]  }
  0x43   : > { %1771 = vmatmul.mubr.msk.bf16.vlgmr.msra.gmra.mrb[0].mxu0 %vm625_vm2, %v2194_v8  ;;  %v1907_v28 = vld [vmem:[%s2177_s7 + $0x100] ss:$112 sps:$4 sm:$0x1f]   ;;  %v1912_v29 = vld [vmem:[%s2177_s7 + $0x10c] ss:$112 sps:$4 sm:$0x1f]   ;;  %v661_v31 = vand.u32 %v1909_v27, %v2183_v1 }
  0x44   : > { %1772 = vmatmul.mubr.msk.bf16.vlgmr.msra.gmra.mrb[0].mxu1 %vm625_vm2, %v2194_v8  ;;  %804 = vmatpush1.bf16.msra.mxu0 %v1889_v12  ;;  %v1910_v30 = vld [vmem:[%s2177_s7 + $0x108] ss:$112 sps:$4 sm:$0x1f]   ;;  %v667_v32 = vand.u32 %v1912_v29, %v2183_v1  ;;  %v1915_v33 = vld [vmem:[%s2177_s7 + $0x34] ss:$112 sps:$4 sm:$0xff]   ;;  %v658_v34 = vand.u32 %v1907_v28, %v2183_v1 }
  0x45   : > { %847 = vmatpush1.bf16.msra.mxu1 %v1892_v13  ;;  %805 = vmatprep.subr.bf16.mxu0 %v649_v18  ;;  %v664_v35 = vand.u32 %v1910_v30, %v2183_v1  ;;  %v1918_v36 = vld [vmem:[%s2177_s7 + $0x3c] ss:$112 sps:$4 sm:$0xff]   ;;  %v1921_v37 = vld [vmem:[%s2177_s7 + $0x114] ss:$112 sps:$4 sm:$0x1f]  }
  0x46   : > { %835 = vmatprep.mubr.bf16.mxu0 %v1985_v56  ;;  %848 = vmatprep.subr.bf16.mxu1 %v655_v20  ;;  %v1924_v38 = vld [vmem:[%s2177_s7 + $0x11c] ss:$112 sps:$4 sm:$0x1f]   ;;  %v1913_v39 = vld [vmem:[%s2177_s7 + $0x30] ss:$112 sps:$4 sm:$0xff]   ;;  %v673_v43 = vand.u32 %v1921_v37, %v2183_v1 }
  0x47   : > { %878 = vmatprep.mubr.bf16.mxu1 %v1985_v56  ;;  %v1916_v40 = vld [vmem:[%s2177_s7 + $0x38] ss:$112 sps:$4 sm:$0xff]   ;;  %v1919_v41 = vld [vmem:[%s2177_s7 + $0x110] ss:$112 sps:$4 sm:$0x1f]   ;;  %v679_v44 = vand.u32 %v1924_v38, %v2183_v1 }
  0x48   : > { %806 = vmatpush1.bf16.msra.mxu0 %v646_v21  ;;  %v1922_v42 = vld [vmem:[%s2177_s7 + $0x118] ss:$112 sps:$4 sm:$0x1f]   ;;  %v670_v45 = vand.u32 %v1919_v41, %v2183_v1  ;;  %v1927_v47 = vld [vmem:[%s2177_s7 + $0x44] ss:$112 sps:$4 sm:$0xff]  }
  0x49   : > { %849 = vmatpush1.bf16.msra.mxu1 %v652_v22  ;;  %889 = vmatprep.subr.bf16.mxu0 %v1903_v23  ;;  %v676_v46 = vand.u32 %v1922_v42, %v2183_v1  ;;  %v1933_v48 = vld [vmem:[%s2177_s7 + $0x124] ss:$112 sps:$4 sm:$0x1f]   ;;  %v1930_v49 = vld [vmem:[%s2177_s7 + $0x4c] ss:$112 sps:$4 sm:$0xff]  }
  0x4a   : > { %932 = vmatprep.subr.bf16.mxu1 %v1906_v24  ;;  %v1936_v50 = vld [vmem:[%s2177_s7 + $0x12c] ss:$112 sps:$4 sm:$0x1f]   ;;  %v1925_v51 = vld [vmem:[%s2177_s7 + $0x40] ss:$112 sps:$4 sm:$0xff]   ;;  %v685_v55 = vand.u32 %v1933_v48, %v2183_v1 }
  0x4b   : > { %1773 = vmatmul.mubr.msk.bf16.vlgmr.msra.gmra.mrb[4].mxu0 %vm625_vm2, %v2194_v8  ;;  %v1928_v52 = vld [vmem:[%s2177_s7 + $0x48] ss:$112 sps:$4 sm:$0xff]   ;;  %v1931_v53 = vld [vmem:[%s2177_s7 + $0x120] ss:$112 sps:$4 sm:$0x1f]   ;;  %v691_v57 = vand.u32 %v1936_v50, %v2183_v1 }
  0x4c   : > { %1774 = vmatmul.mubr.msk.bf16.vlgmr.msra.gmra.mrb[4].mxu1 %vm625_vm2, %v2194_v8  ;;  %890 = vmatpush1.bf16.msra.mxu0 %v1901_v25  ;;  %v1934_v54 = vld [vmem:[%s2177_s7 + $0x128] ss:$112 sps:$4 sm:$0x1f]   ;;  %v1939_v58 = vld [vmem:[%s2177_s7 + $0x54] ss:$112 sps:$4 sm:$0xff]   ;;  %v682_v60 = vand.u32 %v1931_v53, %v2183_v1 }
  0x4d   : > { %933 = vmatpush1.bf16.msra.mxu1 %v1904_v26  ;;  %891 = vmatprep.subr.bf16.mxu0 %v661_v31  ;;  %v1942_v59 = vld [vmem:[%s2177_s7 + $0x5c] ss:$112 sps:$4 sm:$0xff]   ;;  %v688_v61 = vand.u32 %v1934_v54, %v2183_v1  ;;  %v1945_v62 = vld [vmem:[%s2177_s7 + $0x134] ss:$112 sps:$4 sm:$0x1f]  }
  0x4e   : > { %934 = vmatprep.subr.bf16.mxu1 %v667_v32  ;;  %921 = vmatprep.mubr.bf16.mxu0 %v1985_v56  ;;  %v1948_v63 = vld [vmem:[%s2177_s7 + $0x13c] ss:$112 sps:$4 sm:$0x1f]   ;;  %v1937_v0 = vld [vmem:[%s2177_s7 + $0x50] ss:$112 sps:$4 sm:$0xff]   ;;  %v697_v5 = vand.u32 %v1945_v62, %v2183_v1 }
  0x4f   : > { %964 = vmatprep.mubr.bf16.mxu1 %v1985_v56  ;;  %v1940_v2 = vld [vmem:[%s2177_s7 + $0x58] ss:$112 sps:$4 sm:$0xff]   ;;  %v1943_v3 = vld [vmem:[%s2177_s7 + $0x130] ss:$112 sps:$4 sm:$0x1f]   ;;  %v703_v6 = vand.u32 %v1948_v63, %v2183_v1 }
  0x50   : > { %892 = vmatpush1.bf16.msra.mxu0 %v658_v34  ;;  %v1946_v4 = vld [vmem:[%s2177_s7 + $0x138] ss:$112 sps:$4 sm:$0x1f]   ;;  %v694_v7 = vand.u32 %v1943_v3, %v2183_v1  ;;  %v1951_v10 = vld [vmem:[%s2177_s7 + $0x64] ss:$112 sps:$4 sm:$0xff]  }
  0x51   : > { %935 = vmatpush1.bf16.msra.mxu1 %v664_v35  ;;  %975 = vmatprep.subr.bf16.mxu0 %v1915_v33  ;;  %v700_v9 = vand.u32 %v1946_v4, %v2183_v1  ;;  %v1954_v11 = vld [vmem:[%s2177_s7 + $0x6c] ss:$112 sps:$4 sm:$0xff]   ;;  %v1957_v12 = vld [vmem:[%s2177_s7 + $0x144] ss:$112 sps:$4 sm:$0x1f]  }
  0x52   : > { %1018 = vmatprep.subr.bf16.mxu1 %v1918_v36  ;;  %v1960_v13 = vld [vmem:[%s2177_s7 + $0x14c] ss:$112 sps:$4 sm:$0x1f]   ;;  %v1949_v14 = vld [vmem:[%s2177_s7 + $0x60] ss:$112 sps:$4 sm:$0xff]   ;;  %v709_v18 = vand.u32 %v1957_v12, %v2183_v1 }
  0x53   : > { %1775 = vmatmul.mubr.msk.bf16.vlgmr.msra.gmra.mrb[8].mxu0 %vm625_vm2, %v2194_v8  ;;  %v1952_v15 = vld [vmem:[%s2177_s7 + $0x68] ss:$112 sps:$4 sm:$0xff]   ;;  %v1955_v16 = vld [vmem:[%s2177_s7 + $0x140] ss:$112 sps:$4 sm:$0x1f]   ;;  %v715_v19 = vand.u32 %v1960_v13, %v2183_v1 }
  0x54   : > { %1776 = vmatmul.mubr.msk.bf16.vlgmr.msra.gmra.mrb[8].mxu1 %vm625_vm2, %v2194_v8  ;;  %976 = vmatpush1.bf16.msra.mxu0 %v1913_v39  ;;  %v1958_v17 = vld [vmem:[%s2177_s7 + $0x148] ss:$112 sps:$4 sm:$0x1f]   ;;  %v706_v20 = vand.u32 %v1955_v16, %v2183_v1 }
  0x55   : > { %1019 = vmatpush1.bf16.msra.mxu1 %v1916_v40  ;;  %977 = vmatprep.subr.bf16.mxu0 %v673_v43  ;;  %v712_v21 = vand.u32 %v1958_v17, %v2183_v1 }
  0x56   : > { %1020 = vmatprep.subr.bf16.mxu1 %v679_v44  ;;  %1007 = vmatprep.mubr.bf16.mxu0 %v1985_v56 }
  0x57   : > { %1050 = vmatprep.mubr.bf16.mxu1 %v1985_v56 }
  0x58   : > { %978 = vmatpush1.bf16.msra.mxu0 %v670_v45 }
  0x59   : > { %1021 = vmatpush1.bf16.msra.mxu1 %v676_v46  ;;  %1061 = vmatprep.subr.bf16.mxu0 %v1927_v47 }
  0x5a   : > { %1104 = vmatprep.subr.bf16.mxu1 %v1930_v49 }
  0x5b   : > { %1777 = vmatmul.mubr.msk.bf16.vlgmr.msra.gmra.mrb[12].mxu0 %vm625_vm2, %v2194_v8 }
  0x5c   : > { %1778 = vmatmul.mubr.msk.bf16.vlgmr.msra.gmra.mrb[12].mxu1 %vm625_vm2, %v2194_v8  ;;  %1062 = vmatpush1.bf16.msra.mxu0 %v1925_v51 }
  0x5d   : > { %1105 = vmatpush1.bf16.msra.mxu1 %v1928_v52  ;;  %1063 = vmatprep.subr.bf16.mxu0 %v685_v55 }
  0x5e   : > { %1106 = vmatprep.subr.bf16.mxu1 %v691_v57  ;;  %1093 = vmatprep.mubr.bf16.mxu0 %v1985_v56 }
  0x5f   : > { %1136 = vmatprep.mubr.bf16.mxu1 %v1985_v56 }
  0x60   : > { %1064 = vmatpush1.bf16.msra.mxu0 %v682_v60 }
  0x61   : > { %1107 = vmatpush1.bf16.msra.mxu1 %v688_v61  ;;  %1147 = vmatprep.subr.bf16.mxu0 %v1939_v58 }
  0x62   : > { %1190 = vmatprep.subr.bf16.mxu1 %v1942_v59 }
  0x63   : > { %1779 = vmatmul.mubr.msk.bf16.vlgmr.msra.gmra.mrb[16].mxu0 %vm625_vm2, %v2194_v8 }
  0x64   : > { %1780 = vmatmul.mubr.msk.bf16.vlgmr.msra.gmra.mrb[16].mxu1 %vm625_vm2, %v2194_v8  ;;  %1148 = vmatpush1.bf16.msra.mxu0 %v1937_v0 }
  0x65   : > { %1191 = vmatpush1.bf16.msra.mxu1 %v1940_v2  ;;  %1149 = vmatprep.subr.bf16.mxu0 %v697_v5 }
  0x66   : > { %1192 = vmatprep.subr.bf16.mxu1 %v703_v6  ;;  %1179 = vmatprep.mubr.bf16.mxu0 %v1985_v56 }
  0x67   : > { %1222 = vmatprep.mubr.bf16.mxu1 %v1985_v56 }
  0x68   : > { %1150 = vmatpush1.bf16.msra.mxu0 %v694_v7 }
  0x69   : > { %1193 = vmatpush1.bf16.msra.mxu1 %v700_v9  ;;  %1233 = vmatprep.subr.bf16.mxu0 %v1951_v10 }
  0x6a   : > { %1276 = vmatprep.subr.bf16.mxu1 %v1954_v11 }
  0x6b   : > { %1781 = vmatmul.mubr.msk.bf16.vlgmr.msra.gmra.mrb[20].mxu0 %vm625_vm2, %v2194_v8 }
  0x6c   : > { %1782 = vmatmul.mubr.msk.bf16.vlgmr.msra.gmra.mrb[20].mxu1 %vm625_vm2, %v2194_v8  ;;  %1234 = vmatpush1.bf16.msra.mxu0 %v1949_v14 }
  0x6d   : > { %1277 = vmatpush1.bf16.msra.mxu1 %v1952_v15  ;;  %1235 = vmatprep.subr.bf16.mxu0 %v709_v18 }
  0x6e   : > { %1278 = vmatprep.subr.bf16.mxu1 %v715_v19  ;;  %1265 = vmatprep.mubr.bf16.mxu0 %v1985_v56 }
  0x6f   : > { %1308 = vmatprep.mubr.bf16.mxu1 %v1985_v56 }
  0x70   : > { %1236 = vmatpush1.bf16.msra.mxu0 %v706_v20 }
  0x71   : > { %1279 = vmatpush1.bf16.msra.mxu1 %v712_v21 }
  0x73   : > { %1783 = vmatmul.mubr.msk.bf16.vlgmr.msra.gmra.mrb[24].mxu0 %vm625_vm2, %v2194_v8 }
  0x74   : > { %1784 = vmatmul.mubr.msk.bf16.vlgmr.msra.gmra.mrb[24].mxu1 %vm625_vm2, %v2194_v8 }
  0xb7   : > { %v2310_v22 = vpop.permute.xlu0 %360 }
  0xbb   : > { %v2312_v23 = vpop.permute.xlu0 %365 }
 0x116   : > { %v751_v24 = vpop.f32.mrb[0].mxu0 }
 0x117   : > { %v794_v1 = vpop.f32.mrb[0].mxu1  ;;  %v752_v25 = vadd.f32 %v751_v24, %v2310_v22  ;;  %v753_v56 = vpop.f32.mrb[1].mxu0 }
 0x118   : > { %v795_v26 = vadd.f32 %v794_v1, %v2310_v22  ;;  %v796_v27 = vpop.f32.mrb[1].mxu1  ;;  %v754_v28 = vadd.f32 %v753_v56, %v2310_v22  ;;  %v755_v30 = vpop.f32.mrb[2].mxu0 }
 0x119   : > { %v797_v29 = vadd.f32 %v796_v27, %v2310_v22  ;;  %v798_v8 = vpop.f32.mrb[2].mxu1  ;;  %v1319_v31 = vmax.f32 %v752_v25, 0.0  ;;  %v756_v33 = vadd.f32 %v755_v30, %v2312_v23  ;;  %v757_v35 = vpop.f32.mrb[3].mxu0 }
 0x11a   : > { %v1321_v32 = vmax.f32 %v795_v26, 0.0  ;;  %v799_v34 = vadd.f32 %v798_v8, %v2312_v23  ;;  %v800_v36 = vpop.f32.mrb[3].mxu1  ;;  %v1320_v37 = vmax.f32 %v754_v28, 0.0  ;;  %v758_v39 = vadd.f32 %v757_v35, %v2312_v23 }
 0x11b   : > { %v1322_v38 = vmax.f32 %v797_v29, 0.0  ;;  %v801_v40 = vadd.f32 %v800_v36, %v2312_v23  ;;  %v1347_v41 = vmax.f32 %v756_v33, 0.0 }
 0x11c   : > { %v1349_v42 = vmax.f32 %v799_v34, 0.0  ;;  %v1817_v43 = vpack.c.bf16 %v1320_v37, %v1319_v31  ;;  %v1348_v45 = vmax.f32 %v758_v39, 0.0 }
 0x11d   : > { %v1818_v44 = vpack.c.bf16 %v1322_v38, %v1321_v32  ;;  %v1350_v46 = vmax.f32 %v801_v40, 0.0 }
 0x11e   : > { %1543 = vst [vmem:[%s2324_s11] sm:$0xff] %v1817_v43  ;;  %v1831_v47 = vpack.c.bf16 %v1348_v45, %v1347_v41  ;;  %v837_v49 = vpop.f32.mrb[4].mxu0 }
 0x11f   : > { %1544 = vst [vmem:[%s2324_s11 + $0x8] sm:$0xff] %v1818_v44  ;;  %v1832_v48 = vpack.c.bf16 %v1350_v46, %v1349_v42  ;;  %v880_v50 = vpop.f32.mrb[4].mxu1  ;;  %v838_v51 = vadd.f32 %v837_v49, %v2310_v22  ;;  %v839_v53 = vpop.f32.mrb[5].mxu0 }
 0x120   : > { %v881_v52 = vadd.f32 %v880_v50, %v2310_v22  ;;  %v882_v54 = vpop.f32.mrb[5].mxu1  ;;  %1557 = vst [vmem:[%s2324_s11 + $0x70] sm:$0xff] %v1831_v47  ;;  %v840_v55 = vadd.f32 %v839_v53, %v2310_v22  ;;  %v841_v58 = vpop.f32.mrb[6].mxu0 }
 0x121   : > { %1558 = vst [vmem:[%s2324_s11 + $0x78] sm:$0xff] %v1832_v48  ;;  %v883_v57 = vadd.f32 %v882_v54, %v2310_v22  ;;  %v884_v59 = vpop.f32.mrb[6].mxu1  ;;  %v1323_v60 = vmax.f32 %v838_v51, 0.0  ;;  %v842_v62 = vadd.f32 %v841_v58, %v2312_v23  ;;  %v843_v0 = vpop.f32.mrb[7].mxu0 }
 0x122   : > { %v1325_v61 = vmax.f32 %v881_v52, 0.0  ;;  %v885_v63 = vadd.f32 %v884_v59, %v2312_v23  ;;  %v886_v2 = vpop.f32.mrb[7].mxu1  ;;  %v1324_v3 = vmax.f32 %v840_v55, 0.0  ;;  %v844_v5 = vadd.f32 %v843_v0, %v2312_v23 }
 0x123   : > { %v1326_v4 = vmax.f32 %v883_v57, 0.0  ;;  %v887_v6 = vadd.f32 %v886_v2, %v2312_v23  ;;  %v1351_v7 = vmax.f32 %v842_v62, 0.0 }
 0x124   : > { %v1353_v9 = vmax.f32 %v885_v63, 0.0  ;;  %v1819_v10 = vpack.c.bf16 %v1324_v3, %v1323_v60  ;;  %v1352_v12 = vmax.f32 %v844_v5, 0.0 }
 0x125   : > { %v1820_v11 = vpack.c.bf16 %v1326_v4, %v1325_v61  ;;  %v1354_v13 = vmax.f32 %v887_v6, 0.0 }
 0x126   : > { %1545 = vst [vmem:[%s2324_s11 + $0x10] sm:$0xff] %v1819_v10  ;;  %v1833_v14 = vpack.c.bf16 %v1352_v12, %v1351_v7  ;;  %v923_v16 = vpop.f32.mrb[8].mxu0 }
 0x127   : > { %1546 = vst [vmem:[%s2324_s11 + $0x18] sm:$0xff] %v1820_v11  ;;  %v1834_v15 = vpack.c.bf16 %v1354_v13, %v1353_v9  ;;  %v966_v17 = vpop.f32.mrb[8].mxu1  ;;  %v924_v18 = vadd.f32 %v923_v16, %v2310_v22  ;;  %v925_v20 = vpop.f32.mrb[9].mxu0 }
 0x128   : > { %v967_v19 = vadd.f32 %v966_v17, %v2310_v22  ;;  %v968_v21 = vpop.f32.mrb[9].mxu1  ;;  %1559 = vst [vmem:[%s2324_s11 + $0x80] sm:$0xff] %v1833_v14  ;;  %v926_v24 = vadd.f32 %v925_v20, %v2310_v22  ;;  %v927_v25 = vpop.f32.mrb[10].mxu0 }
 0x129   : > { %1560 = vst [vmem:[%s2324_s11 + $0x88] sm:$0xff] %v1834_v15  ;;  %v969_v1 = vadd.f32 %v968_v21, %v2310_v22  ;;  %v970_v26 = vpop.f32.mrb[10].mxu1  ;;  %v1327_v56 = vmax.f32 %v924_v18, 0.0  ;;  %v928_v28 = vadd.f32 %v927_v25, %v2312_v23  ;;  %v929_v30 = vpop.f32.mrb[11].mxu0 }
 0x12a   : > { %v1329_v27 = vmax.f32 %v967_v19, 0.0  ;;  %v971_v29 = vadd.f32 %v970_v26, %v2312_v23  ;;  %v972_v8 = vpop.f32.mrb[11].mxu1  ;;  %v1328_v31 = vmax.f32 %v926_v24, 0.0  ;;  %v930_v33 = vadd.f32 %v929_v30, %v2312_v23 }
 0x12b   : > { %v1330_v32 = vmax.f32 %v969_v1, 0.0  ;;  %v973_v34 = vadd.f32 %v972_v8, %v2312_v23  ;;  %v1355_v35 = vmax.f32 %v928_v28, 0.0 }
 0x12c   : > { %v1357_v36 = vmax.f32 %v971_v29, 0.0  ;;  %v1821_v37 = vpack.c.bf16 %v1328_v31, %v1327_v56  ;;  %v1356_v39 = vmax.f32 %v930_v33, 0.0 }
 0x12d   : > { %v1822_v38 = vpack.c.bf16 %v1330_v32, %v1329_v27  ;;  %v1358_v40 = vmax.f32 %v973_v34, 0.0 }
 0x12e   : > { %1547 = vst [vmem:[%s2324_s11 + $0x20] sm:$0xff] %v1821_v37  ;;  %v1835_v41 = vpack.c.bf16 %v1356_v39, %v1355_v35  ;;  %v1009_v43 = vpop.f32.mrb[12].mxu0 }
 0x12f   : > { %1548 = vst [vmem:[%s2324_s11 + $0x28] sm:$0xff] %v1822_v38  ;;  %v1836_v42 = vpack.c.bf16 %v1358_v40, %v1357_v36  ;;  %v1052_v44 = vpop.f32.mrb[12].mxu1  ;;  %v1010_v45 = vadd.f32 %v1009_v43, %v2310_v22  ;;  %v1011_v47 = vpop.f32.mrb[13].mxu0 }
 0x130   : > { %v1053_v46 = vadd.f32 %v1052_v44, %v2310_v22  ;;  %v1054_v48 = vpop.f32.mrb[13].mxu1  ;;  %1561 = vst [vmem:[%s2324_s11 + $0x90] sm:$0xff] %v1835_v41  ;;  %v1012_v49 = vadd.f32 %v1011_v47, %v2310_v22  ;;  %v1013_v51 = vpop.f32.mrb[14].mxu0 }
 0x131   : > { %1562 = vst [vmem:[%s2324_s11 + $0x98] sm:$0xff] %v1836_v42  ;;  %v1055_v50 = vadd.f32 %v1054_v48, %v2310_v22  ;;  %v1056_v52 = vpop.f32.mrb[14].mxu1  ;;  %v1331_v53 = vmax.f32 %v1010_v45, 0.0  ;;  %v1014_v55 = vadd.f32 %v1013_v51, %v2312_v23  ;;  %v1015_v58 = vpop.f32.mrb[15].mxu0 }
 0x132   : > { %v1333_v54 = vmax.f32 %v1053_v46, 0.0  ;;  %v1057_v57 = vadd.f32 %v1056_v52, %v2312_v23  ;;  %v1058_v59 = vpop.f32.mrb[15].mxu1  ;;  %v1332_v60 = vmax.f32 %v1012_v49, 0.0  ;;  %v1016_v62 = vadd.f32 %v1015_v58, %v2312_v23 }
 0x133   : > { %v1334_v61 = vmax.f32 %v1055_v50, 0.0  ;;  %v1059_v63 = vadd.f32 %v1058_v59, %v2312_v23  ;;  %v1359_v0 = vmax.f32 %v1014_v55, 0.0 }
 0x134   : > { %v1361_v2 = vmax.f32 %v1057_v57, 0.0  ;;  %v1823_v3 = vpack.c.bf16 %v1332_v60, %v1331_v53  ;;  %v1360_v5 = vmax.f32 %v1016_v62, 0.0 }
 0x135   : > { %v1824_v4 = vpack.c.bf16 %v1334_v61, %v1333_v54  ;;  %v1362_v6 = vmax.f32 %v1059_v63, 0.0 }
 0x136   : > { %1549 = vst [vmem:[%s2324_s11 + $0x30] sm:$0xff] %v1823_v3  ;;  %v1837_v7 = vpack.c.bf16 %v1360_v5, %v1359_v0  ;;  %v1095_v10 = vpop.f32.mrb[16].mxu0 }
 0x137   : > { %1550 = vst [vmem:[%s2324_s11 + $0x38] sm:$0xff] %v1824_v4  ;;  %v1838_v9 = vpack.c.bf16 %v1362_v6, %v1361_v2  ;;  %v1138_v11 = vpop.f32.mrb[16].mxu1  ;;  %v1096_v12 = vadd.f32 %v1095_v10, %v2310_v22  ;;  %v1097_v14 = vpop.f32.mrb[17].mxu0 }
 0x138   : > { %v1139_v13 = vadd.f32 %v1138_v11, %v2310_v22  ;;  %v1140_v15 = vpop.f32.mrb[17].mxu1  ;;  %1563 = vst [vmem:[%s2324_s11 + $0xa0] sm:$0xff] %v1837_v7  ;;  %v1098_v16 = vadd.f32 %v1097_v14, %v2310_v22  ;;  %v1099_v18 = vpop.f32.mrb[18].mxu0 }
 0x139   : > { %1564 = vst [vmem:[%s2324_s11 + $0xa8] sm:$0xff] %v1838_v9  ;;  %v1141_v17 = vadd.f32 %v1140_v15, %v2310_v22  ;;  %v1142_v19 = vpop.f32.mrb[18].mxu1  ;;  %v1335_v20 = vmax.f32 %v1096_v12, 0.0  ;;  %v1100_v24 = vadd.f32 %v1099_v18, %v2312_v23  ;;  %v1101_v25 = vpop.f32.mrb[19].mxu0 }
 0x13a   : > { %v1337_v21 = vmax.f32 %v1139_v13, 0.0  ;;  %v1143_v1 = vadd.f32 %v1142_v19, %v2312_v23  ;;  %v1144_v26 = vpop.f32.mrb[19].mxu1  ;;  %v1336_v56 = vmax.f32 %v1098_v16, 0.0  ;;  %v1102_v28 = vadd.f32 %v1101_v25, %v2312_v23 }
 0x13b   : > { %v1338_v27 = vmax.f32 %v1141_v17, 0.0  ;;  %v1145_v29 = vadd.f32 %v1144_v26, %v2312_v23  ;;  %v1363_v30 = vmax.f32 %v1100_v24, 0.0 }
 0x13c   : > { %v1365_v8 = vmax.f32 %v1143_v1, 0.0  ;;  %v1825_v31 = vpack.c.bf16 %v1336_v56, %v1335_v20  ;;  %v1364_v33 = vmax.f32 %v1102_v28, 0.0 }
 0x13d   : > { %v1826_v32 = vpack.c.bf16 %v1338_v27, %v1337_v21  ;;  %v1366_v34 = vmax.f32 %v1145_v29, 0.0 }
 0x13e   : > { %1551 = vst [vmem:[%s2324_s11 + $0x40] sm:$0xff] %v1825_v31  ;;  %v1839_v35 = vpack.c.bf16 %v1364_v33, %v1363_v30  ;;  %v1181_v37 = vpop.f32.mrb[20].mxu0  ;;  %v1597_v31 = vld [vmem:[%s2324_s11 + $0x10] sm:$0xff] (%p2037_p5)  ;;  %v1601_v33 = vld [vmem:[%s2324_s11 + $0x20] sm:$0xff] (%p2037_p5) }
 0x13f   : > { %1552 = vst [vmem:[%s2324_s11 + $0x48] sm:$0xff] %v1826_v32  ;;  %v1840_v36 = vpack.c.bf16 %v1366_v34, %v1365_v8  ;;  %v1224_v38 = vpop.f32.mrb[20].mxu1  ;;  %v1182_v39 = vadd.f32 %v1181_v37, %v2310_v22  ;;  %v1183_v41 = vpop.f32.mrb[21].mxu0  ;;  %v1595_v8 = vld [vmem:[%s2324_s11 + $0x8] sm:$0xff] (%p2037_p5)  ;;  %v1599_v32 = vld [vmem:[%s2324_s11 + $0x18] sm:$0xff] (%p2037_p5)  ;;  %1598 = vst [vmem:[%s2415_s18 + $0x10] sm:$0xff] (%p2037_p5), %v1597_v31 }
 0x140   : > { %v1225_v40 = vadd.f32 %v1224_v38, %v2310_v22  ;;  %v1226_v42 = vpop.f32.mrb[21].mxu1  ;;  %1565 = vst [vmem:[%s2324_s11 + $0xb0] sm:$0xff] %v1839_v35  ;;  %v1184_v43 = vadd.f32 %v1183_v41, %v2310_v22  ;;  %v1185_v45 = vpop.f32.mrb[22].mxu0  ;;  %v1603_v34 = vld [vmem:[%s2324_s11 + $0x28] sm:$0xff] (%p2037_p5)  ;;  %v1605_v35 = vld [vmem:[%s2324_s11 + $0x30] sm:$0xff] (%p2037_p5)  ;;  %1596 = vst [vmem:[%s2415_s18 + $0x8] sm:$0xff] (%p2037_p5), %v1595_v8 }
 0x141   : > { %1566 = vst [vmem:[%s2324_s11 + $0xb8] sm:$0xff] %v1840_v36  ;;  %v1227_v44 = vadd.f32 %v1226_v42, %v2310_v22  ;;  %v1228_v46 = vpop.f32.mrb[22].mxu1  ;;  %v1339_v47 = vmax.f32 %v1182_v39, 0.0  ;;  %v1186_v49 = vadd.f32 %v1185_v45, %v2312_v23  ;;  %v1187_v51 = vpop.f32.mrb[23].mxu0  ;;  %v1607_v36 = vld [vmem:[%s2324_s11 + $0x38] sm:$0xff] (%p2037_p5)  ;;  %1600 = vst [vmem:[%s2415_s18 + $0x18] sm:$0xff] (%p2037_p5), %v1599_v32 }
 0x142   : > { %v1341_v48 = vmax.f32 %v1225_v40, 0.0  ;;  %v1229_v50 = vadd.f32 %v1228_v46, %v2312_v23  ;;  %v1230_v52 = vpop.f32.mrb[23].mxu1  ;;  %v1340_v53 = vmax.f32 %v1184_v43, 0.0  ;;  %v1188_v55 = vadd.f32 %v1187_v51, %v2312_v23  ;;  %1602 = vst [vmem:[%s2415_s18 + $0x20] sm:$0xff] (%p2037_p5), %v1601_v33  ;;  %1604 = vst [vmem:[%s2415_s18 + $0x28] sm:$0xff] (%p2037_p5), %v1603_v34  ;;  %v1621_v43 = vld [vmem:[%s2324_s11 + $0x70] sm:$0xff] (%p2037_p5) }
 0x143   : > { %v1342_v54 = vmax.f32 %v1227_v44, 0.0  ;;  %v1231_v57 = vadd.f32 %v1230_v52, %v2312_v23  ;;  %v1367_v58 = vmax.f32 %v1186_v49, 0.0  ;;  %1606 = vst [vmem:[%s2415_s18 + $0x30] sm:$0xff] (%p2037_p5), %v1605_v35  ;;  %1608 = vst [vmem:[%s2415_s18 + $0x38] sm:$0xff] (%p2037_p5), %v1607_v36  ;;  %v1623_v44 = vld [vmem:[%s2324_s11 + $0x78] sm:$0xff] (%p2037_p5)  ;;  %v1625_v45 = vld [vmem:[%s2324_s11 + $0x80] sm:$0xff] (%p2037_p5) }
 0x144   : > { %v1369_v59 = vmax.f32 %v1229_v50, 0.0  ;;  %v1827_v60 = vpack.c.bf16 %v1340_v53, %v1339_v47  ;;  %v1368_v62 = vmax.f32 %v1188_v55, 0.0  ;;  %1622 = vst [vmem:[%s2415_s18 + $0x1c0] sm:$0xff] (%p2037_p5), %v1621_v43  ;;  %v1627_v46 = vld [vmem:[%s2324_s11 + $0x88] sm:$0xff] (%p2037_p5)  ;;  %1624 = vst [vmem:[%s2415_s18 + $0x1c8] sm:$0xff] (%p2037_p5), %v1623_v44  ;;  %v1629_v47 = vld [vmem:[%s2324_s11 + $0x90] sm:$0xff] (%p2037_p5) }
 0x145   : > { %v1828_v61 = vpack.c.bf16 %v1342_v54, %v1341_v48  ;;  %v1370_v63 = vmax.f32 %v1231_v57, 0.0  ;;  %v1609_v37 = vld [vmem:[%s2324_s11 + $0x40] sm:$0xff] (%p2037_p5)  ;;  %1626 = vst [vmem:[%s2415_s18 + $0x1d0] sm:$0xff] (%p2037_p5), %v1625_v45  ;;  %1628 = vst [vmem:[%s2415_s18 + $0x1d8] sm:$0xff] (%p2037_p5), %v1627_v46  ;;  %v1631_v48 = vld [vmem:[%s2324_s11 + $0x98] sm:$0xff] (%p2037_p5) }
 0x146   : > { %1553 = vst [vmem:[%s2324_s11 + $0x50] sm:$0xff] %v1827_v60  ;;  %v1841_v0 = vpack.c.bf16 %v1368_v62, %v1367_v58  ;;  %v1267_v3 = vpop.f32.mrb[24].mxu0  ;;  %1610 = vst [vmem:[%s2415_s18 + $0x40] sm:$0xff] (%p2037_p5), %v1609_v37  ;;  %v1611_v38 = vld [vmem:[%s2324_s11 + $0x48] sm:$0xff] (%p2037_p5)  ;;  %v1633_v49 = vld [vmem:[%s2324_s11 + $0xa0] sm:$0xff] (%p2037_p5) }
 0x147   : > { %1554 = vst [vmem:[%s2324_s11 + $0x58] sm:$0xff] %v1828_v61  ;;  %v1842_v2 = vpack.c.bf16 %v1370_v63, %v1369_v59  ;;  %v1310_v4 = vpop.f32.mrb[24].mxu1  ;;  %v1268_v5 = vadd.f32 %v1267_v3, %v2310_v22  ;;  %v1269_v7 = vpop.f32.mrb[25].mxu0  ;;  %1612 = vst [vmem:[%s2415_s18 + $0x48] sm:$0xff] (%p2037_p5), %v1611_v38  ;;  %v1635_v50 = vld [vmem:[%s2324_s11 + $0xa8] sm:$0xff] (%p2037_p5)  ;;  %v1637_v51 = vld [vmem:[%s2324_s11 + $0xb0] sm:$0xff] (%p2037_p5) }
 0x148   : > { %v1311_v6 = vadd.f32 %v1310_v4, %v2310_v22  ;;  %v1312_v9 = vpop.f32.mrb[25].mxu1  ;;  %1567 = vst [vmem:[%s2324_s11 + $0xc0] sm:$0xff] %v1841_v0  ;;  %v1270_v10 = vadd.f32 %v1269_v7, %v2310_v22  ;;  %v1271_v12 = vpop.f32.mrb[26].mxu0  ;;  %1630 = vst [vmem:[%s2415_s18 + $0x1e0] sm:$0xff] (%p2037_p5), %v1629_v47  ;;  %v1639_v52 = vld [vmem:[%s2324_s11 + $0xb8] sm:$0xff] (%p2037_p5) }
 0x149   : > { %1568 = vst [vmem:[%s2324_s11 + $0xc8] sm:$0xff] %v1842_v2  ;;  %v1313_v11 = vadd.f32 %v1312_v9, %v2310_v22  ;;  %v1314_v13 = vpop.f32.mrb[26].mxu1  ;;  %v1343_v14 = vmax.f32 %v1268_v5, 0.0  ;;  %v1272_v16 = vadd.f32 %v1271_v12, %v2312_v23  ;;  %v1273_v18 = vpop.f32.mrb[27].mxu0  ;;  %1632 = vst [vmem:[%s2415_s18 + $0x1e8] sm:$0xff] (%p2037_p5), %v1631_v48 }
 0x14a   : > { %v1345_v15 = vmax.f32 %v1311_v6, 0.0  ;;  %v1315_v17 = vadd.f32 %v1314_v13, %v2312_v23  ;;  %v1316_v19 = vpop.f32.mrb[27].mxu1  ;;  %v1344_v20 = vmax.f32 %v1270_v10, 0.0  ;;  %v1274_v24 = vadd.f32 %v1273_v18, %v2312_v23  ;;  %1634 = vst [vmem:[%s2415_s18 + $0x1f0] sm:$0xff] (%p2037_p5), %v1633_v49  ;;  %1636 = vst [vmem:[%s2415_s18 + $0x1f8] sm:$0xff] (%p2037_p5), %v1635_v50 }
 0x14b   : > { %v1346_v21 = vmax.f32 %v1313_v11, 0.0  ;;  %v1317_v22 = vadd.f32 %v1316_v19, %v2312_v23  ;;  %v1371_v1 = vmax.f32 %v1272_v16, 0.0  ;;  %1577 = sbr.rel (!%p2037_p5) target bundleno = 346 (0x15a), region = 59  ;;  %v1593_v23 = vld [vmem:[%s2324_s11] sm:$0xff] (%p2037_p5)  ;;  %1638 = vst [vmem:[%s2415_s18 + $0x200] sm:$0xff] (%p2037_p5), %v1637_v51  ;;  %1640 = vst [vmem:[%s2415_s18 + $0x208] sm:$0xff] (%p2037_p5), %v1639_v52 }
 0x14c   : > { %v1373_v25 = vmax.f32 %v1315_v17, 0.0  ;;  %v1829_v26 = vpack.c.bf16 %v1344_v20, %v1343_v14  ;;  %v1372_v27 = vmax.f32 %v1274_v24, 0.0  ;;  %1594 = vst [vmem:[%s2415_s18] sm:$0xff] (%p2037_p5), %v1593_v23 }
 0x14d   : > { %v1830_v56 = vpack.c.bf16 %v1346_v21, %v1345_v15  ;;  %v1374_v28 = vmax.f32 %v1317_v22, 0.0  ;;  %v1613_v39 = vld [vmem:[%s2324_s11 + $0x50] sm:$0xff] (%p2037_p5) }
 0x14e   : > { %1555 = vst [vmem:[%s2324_s11 + $0x60] sm:$0xff] %v1829_v26  ;;  %v1843_v29 = vpack.c.bf16 %v1372_v27, %v1371_v1  ;;  %v1615_v40 = vld [vmem:[%s2324_s11 + $0x58] sm:$0xff] (%p2037_p5)  ;;  %1614 = vst [vmem:[%s2415_s18 + $0x50] sm:$0xff] (%p2037_p5), %v1613_v39 }
 0x14f   : > { %1556 = vst [vmem:[%s2324_s11 + $0x68] sm:$0xff] %v1830_v56  ;;  %v1844_v30 = vpack.c.bf16 %v1374_v28, %v1373_v25  ;;  %1616 = vst [vmem:[%s2415_s18 + $0x58] sm:$0xff] (%p2037_p5), %v1615_v40  ;;  %v1641_v53 = vld [vmem:[%s2324_s11 + $0xc0] sm:$0xff] (%p2037_p5) }
 0x150   : > { %1569 = vst [vmem:[%s2324_s11 + $0xd0] sm:$0xff] %v1843_v29  ;;  %v1643_v54 = vld [vmem:[%s2324_s11 + $0xc8] sm:$0xff] (%p2037_p5)  ;;  %1642 = vst [vmem:[%s2415_s18 + $0x210] sm:$0xff] (%p2037_p5), %v1641_v53 }
 0x151   : > { %1570 = vst [vmem:[%s2324_s11 + $0xd8] sm:$0xff] %v1844_v30  ;;  %1644 = vst [vmem:[%s2415_s18 + $0x218] sm:$0xff] (%p2037_p5), %v1643_v54 }
 0x155   : > { %v1617_v41 = vld [vmem:[%s2324_s11 + $0x60] sm:$0xff] }
 0x156   : > { %v1619_v42 = vld [vmem:[%s2324_s11 + $0x68] sm:$0xff]  ;;  %1618 = vst [vmem:[%s2415_s18 + $0x60] sm:$0xff] %v1617_v41 }
 0x157   : > { %1620 = vst [vmem:[%s2415_s18 + $0x68] sm:$0xff] %v1619_v42  ;;  %v1645_v55 = vld [vmem:[%s2324_s11 + $0xd0] sm:$0xff] }
 0x158   : > { %1646 = vst [vmem:[%s2415_s18 + $0x220] sm:$0xff] %v1645_v55  ;;  %v1647_v57 = vld [vmem:[%s2324_s11 + $0xd8] sm:$0xff] }
 0x159   : > { %1648 = vst [vmem:[%s2415_s18 + $0x228] sm:$0xff] %v1647_v57 }
 0x15a PF: > { %p10_p10 = scmp.ge.s32.totalorder %s2024_s16, 6   ;;  %s2482_s12 = smov %s1979_s13 }
 0x15b   : > { %s2483_s13 = smov %s2035_s19  ;;  %s2484_s14 = smov %s2024_s16 }
 0x15c   :  { %12 = sbr.rel (!%p10_p10) target bundleno = 2 (0x2), region = 113 }

// kernel: network_forward.21
= control target key start
LH: loop header
LB: loop body
LE: loop exit
PB: predicated region body
PF: predicated region fallthrough
CT: control target
= control target key end

     0   :  { %s2842_s21 = smov 0   ;;  %s3188_s0 = inlined_call_operand.vmem [shape: f32[2,10,16], index: 0, kind: input, shape index: {}]   ;;  %s3189_s1 = inlined_call_operand.vmem [shape: f32[2,10,16], index: 1, kind: input, shape index: {}]   ;;  %s3190_s2 = inlined_call_operand.vmem [shape: f32[6,16,16], index: 2, kind: input, shape index: {}]   ;;  %s3191_s3 = inlined_call_operand.vmem [shape: f32[2,32,160], index: 3, kind: input, shape index: {}]   ;;  %s3192_s4 = inlined_call_operand.vmem [shape: f32[2,160], index: 4, kind: input, shape index: {}]   ;;  %s3193_s5 = inlined_call_operand.vmem [shape: f32[2,160], index: 5, kind: input, shape index: {}]   ;;  %s3194_s6 = inlined_call_operand.vmem [shape: f32[2,1], index: 6, kind: input, shape index: {}]   ;;  %s3195_s7 = inlined_call_operand.vmem [shape: f32[2,16,160], index: 7, kind: input, shape index: {}]   ;;  %s3196_s8 = inlined_call_operand.vmem [shape: f32[2,160], index: 8, kind: input, shape index: {}]   ;;  %s3197_s9 = inlined_call_operand.vmem [shape: f32[2,160], index: 9, kind: input, shape index: {}]   ;;  %s3198_s10 = inlined_call_operand.vmem [shape: f32[2,1], index: 10, kind: input, shape index: {}]   ;;  %s3199_s11 = inlined_call_operand.vmem [shape: f32[2,10,10], index: 11, kind: output, shape index: {0}]   ;;  %s3200_s12 = inlined_call_operand.vmem [shape: f32[2,10,10], index: 12, kind: output, shape index: {1}]   ;;  %s3201_s13 = inlined_call_operand.vmem [shape: f32[2,10,1], index: 13, kind: output, shape index: {2}]   ;;  %s3202_s14 = inlined_call_operand.vmem [shape: f32[2,10,1], index: 14, kind: output, shape index: {3}]   ;;  %s3203_s15 = inlined_call_operand.vmem [shape: f32[2,10,1], index: 15, kind: output, shape index: {4}]   ;;  %s3204_s16 = inlined_call_operand.vmem [shape: f32[2,10,1], index: 16, kind: output, shape index: {5}]  }
   0x1   :  { %3205 = sst [smem:[#allocation2_spill]] %s3188_s0 }
   0x2 LB: > { %s2432_s22 = sadd.s32 4294967295, %s2753_s21   ;;  %p2436_p0 = scmp.ge.s32.totalorder %s2753_s21, 1  ;;  %s2753_s21 = sphi %s2842_s21, %s27_s21  }
   0x3   : > { %p483_p1 = scmp.lt.s32.totalorder %s2753_s21, 3 }
   0x5   : > { %p484_p2 = pnand %p2436_p0, %p483_p1 }
   0x6   : > { %v2455_v0 = vld [vmem:[%s3190_s2 + $0x10] sm:$0xff] (!%p484_p2)  ;;  %v2456_v1 = vld [vmem:[%s3190_s2 + $0x18] sm:$0xff] (!%p484_p2)  ;;  %p563_p3 = scmp.lt.s32.totalorder (!%p484_p2), %s2432_s22, 1  ;;  %v607_v2 = vld [vmem:[%s3190_s2] sm:$0xff] (!%p484_p2)  ;;  %vm609_vm0 = vcmask (!%p484_p2), 130048   ;;  %s3206_s19 = sld [smem:[#allocation2_spill]] (!%p484_p2) }
   0x7   : > { %487 = sbr.rel (%p484_p2) target bundleno = 2115 (0x843), region = 64  ;;  %v2645_v3 = vpack.c.bf16 (!%p484_p2), %v2456_v1, %v2455_v0  ;;  %v608_v4 = vld [vmem:[%s3190_s2 + $0x8] sm:$0xff] (!%p484_p2)  ;;  %vm2892_vm1 = vmpackc.low (!%p484_p2), %vm609_vm0, %vm609_vm0  ;;  %v2459_v16 = vld [vmem:[%s3190_s2 + $0x20] sm:$0xff] (!%p484_p2)  ;;  %vm940_vm2 = vcmask (!%p484_p2), 80896   ;;  %vm944_vm3 = vcmask (!%p484_p2), 74752   ;;  %vm972_vm4 = vcmask (!%p484_p2), 1041408  }
   0x8   : > { %v2641_v5 = vpack.c.bf16 (!%p484_p2), %v608_v4, %v607_v2  ;;  %v2460_v17 = vld [vmem:[%s3190_s2 + $0x28] sm:$0xff] (!%p484_p2)  ;;  %v2474_v33 = vld [vmem:[%s3190_s2 + $0x40] sm:$0xff] (!%p484_p2)  ;;  %vm2755_vm5 = vmmov (!%p484_p2), 1   ;;  %v2470_v40 = vld [vmem:[%s3190_s2 + $0x30] sm:$0xff] (!%p484_p2)  ;;  %vm1688_vm7 = vcmask (!%p484_p2), 261120   ;;  %vm1694_vm8 = vcmask (!%p484_p2), 254976  }
   0x9   : > { %2646 = vmatprep.subr.bf16.mxu1 (!%p484_p2), %v2645_v3  ;;  %v2649_v18 = vpack.c.bf16 (!%p484_p2), %v2460_v17, %v2459_v16  ;;  %v2475_v34 = vld [vmem:[%s3190_s2 + $0x48] sm:$0xff] (!%p484_p2)  ;;  %vm2923_vm6 = vmpackc.low (!%p484_p2), %vm972_vm4, %vm2755_vm5  ;;  %v2471_v41 = vld [vmem:[%s3190_s2 + $0x38] sm:$0xff] (!%p484_p2)  ;;  %vm1706_vm9 = vcmask (!%p484_p2), 7168   ;;  %vm1708_vm10 = vcmask (!%p484_p2), 1024  }
   0xa   : > { %2648 = vmatpush3.bf16.msra.mxu1 (!%p484_p2), %v2645_v3  ;;  %2642 = vmatprep.subr.bf16.mxu0 (!%p484_p2), %v2641_v5  ;;  %v2669_v35 = vpack.c.bf16 (!%p484_p2), %v2475_v34, %v2474_v33  ;;  %v2665_v42 = vpack.c.bf16 (!%p484_p2), %v2471_v41, %v2470_v40  ;;  %v2478_v58 = vld [vmem:[%s3190_s2 + $0x50] sm:$0xff] (!%p484_p2)  ;;  %v2479_v59 = vld [vmem:[%s3190_s2 + $0x58] sm:$0xff] (!%p484_p2)  ;;  %v1488_v39 = vld [vmem:[%s3191_s3 + $0x20] sm:$0xff] (!%p484_p2) }
   0xb   : > { %2644 = vmatpush3.bf16.msra.mxu0 (!%p484_p2), %v2641_v5  ;;  %v2673_v60 = vpack.c.bf16 (!%p484_p2), %v2479_v59, %v2478_v58  ;;  %v1490_v40 = vld [vmem:[%s3191_s3 + $0x30] sm:$0xff] (!%p484_p2)  ;;  %v2515_v59 = vld [vmem:[%s3195_s7 + $0x38] sm:$0xff] (!%p484_p2) }
   0xc   : > { %2650 = vmatprep.subr.bf16.mxu0 (!%p484_p2), %v2649_v18 }
   0xe   : > { %s3212_s22 = smov (!%p563_p3, %s2432_s22), 1 }
   0xf   : > { %s2862_s0 = sshll.u32 %s3212_s22, 4 }
  0x10   : > { %s567_s20 = scalar_lea.vmem %s3206_s19, %s2862_s0  ;;  %s572_s25 = scalar_lea.vmem %s3189_s1, %s2862_s0 }
  0x11   : > { %v2872_v6 = vld [vmem:[%s567_s20] sm:$0xff]  ;;  %v2874_v7 = vld [vmem:[%s567_s20 + $0x8] sm:$0x3]  ;;  %s577_s26 = scalar_lea.vmem %s3199_s11, %s2862_s0  ;;  %s582_s27 = scalar_lea.vmem %s3200_s12, %s2862_s0 }
  0x12   : > { %v2876_v8 = vld [vmem:[%s572_s25] sm:$0xff]  ;;  %2582 = vmatprep.mubr.msk.f32.mxu1 %vm609_vm0, %v2872_v6  ;;  %v2882_v9 = vld [vmem:[%s572_s25 + $0x8] sm:$0x3]  ;;  %s587_s30 = scalar_lea.vmem %s3201_s13, %s2862_s0  ;;  %s592_s20 = scalar_lea.vmem %s3202_s14, %s2862_s0 }
  0x13   : > { %2575 = vmatprep.mubr.msk.f32.mxu0 %vm609_vm0, %v2876_v8  ;;  %2583 = vmatmul.mubr.msk.f32.vlgmr.msra.gmra.mrb[0].mxu1 %vm609_vm0, %v2874_v7 }
  0x14   : > { %2576 = vmatmul.mubr.msk.f32.vlgmr.msra.gmra.mrb[0].mxu0 %vm609_vm0, %v2882_v9 }
  0x15   : > { %2589 = vmatprep.mubr.msk.f32.mxu0 %vm609_vm0, %v2872_v6  ;;  %2652 = vmatpush3.bf16.msra.mxu0 %v2649_v18  ;;  %v1489_v18 = vld [vmem:[%s3191_s3 + $0x28] sm:$0xff] }
  0x18   : > { %2590 = vmatmul.mubr.msk.f32.vlgmr.msra.gmra.mrb[2].mxu0 %vm609_vm0, %v2874_v7 }
  0xe6   : > { %v2584_v10 = vpop.f32.mrb[0].mxu1 }
  0xe7   : > { %v2577_v11 = vpop.f32.mrb[0].mxu0  ;;  %v766_v12 = vpop.f32.mrb[1].mxu1 }
  0xe8   : > { %v682_v14 = vpop.f32.mrb[1].mxu0  ;;  %v2653_v15 = vpack.c.bf16 %v2584_v10, %v766_v12 }
  0xe9   : > { %2596 = vmatprep.mubr.msk.f32.mxu1 %vm609_vm0, %v682_v14 }
  0xea   : > { %2655 = vmatprep.subr.msk.bf16.mxu1 %vm2892_vm1, %v2653_v15 }
  0xeb   : > { %2658 = vmatpush3.bf16.xpose.msk.msra.mxu1 %vm2892_vm1, %v2653_v15  ;;  %v2591_v36 = vpop.f32.mrb[2].mxu0 }
  0xec   : > { %2670 = vmatprep.subr.bf16.mxu1 %v2669_v35  ;;  %v844_v37 = vpop.f32.mrb[3].mxu0 }
  0xed   : > { %v2659_v38 = vpack.c.bf16 %v2591_v36, %v844_v37 }
  0xef   : > { %2661 = vmatprep.subr.msk.bf16.mxu0 %vm2923_vm6, %v2659_v38 }
  0xf0   : > { %2664 = vmatpush3.bf16.msk.msra.mxu0 %vm2923_vm6, %v2659_v38 }
  0xf1   : > { %2666 = vmatprep.subr.bf16.mxu0 %v2665_v42 }
  0xf2   : > { %2597 = vmatmul.mubr.msk.f32.vlgmr.msra.gmra.mrb[2].mxu1 %vm609_vm0, %v2577_v11 }
  0xf3   : > { %2617 = vmatprep.mubr.msk.f32.mxu1 %vm609_vm0, %v2876_v8  ;;  %2672 = vmatpush3.bf16.msra.mxu1 %v2669_v35 }
  0xf6   : > { %2618 = vmatmul.mubr.msk.f32.vlgmr.msra.gmra.mrb[4].mxu1 %vm609_vm0, %v2882_v9 }
 0x1c5   : > { %v2598_v19 = vpop.f32.mrb[2].mxu1 }
 0x1c6   : > { %v931_v20 = vpop.f32.mrb[3].mxu1  ;;  %v945_v22 = vsel %vm944_vm3, %v2598_v19, -inf }
 0x1c7   : > { %v941_v21 = vsel %vm940_vm2, %v931_v20, -inf }
 0x1c8   : > { %942 = vmax.xlane.f32.xlu0 %v941_v21  ;;  %v2756_v21 = vmov 0.0  }
 0x1c9   : > { %v2619_v51 = vpop.f32.mrb[4].mxu1 }
 0x1ca   : > { %v1198_v52 = vpop.f32.mrb[5].mxu1 }
 0x1cb   : > { %v2677_v53 = vpack.c.bf16 %v2619_v51, %v1198_v52  ;;  %v1938_v51 = vld [vmem:[%s3195_s7 + $0x18] sm:$0xff] }
 0x1cc   : > { %946 = vmax.xlane.f32.xlu0 %v945_v22  ;;  %v2499_v22 = vld [vmem:[%s3191_s3 + $0x68] sm:$0xff] }
 0x1cd   : > { %2679 = vmatprep.subr.msk.bf16.mxu1 %vm2892_vm1, %v2677_v53 }
 0x1ce   : > { %2682 = vmatpush3.bf16.xpose.msk.msra.mxu1 %vm2892_vm1, %v2677_v53 }
 0x255   : > { %v943_v23 = vpop.xlane.xlu0 %942 }
 0x256   : > { %v948_v24 = vsub.f32 %v931_v20, %v943_v23  ;;  %v2501_v23 = vld [vmem:[%s3191_s3 + $0x78] sm:$0xff] }
 0x258   : > { %v950_v25 = vmul.f32 1.442695, %v948_v24  ;;  %v2498_v24 = vld [vmem:[%s3191_s3 + $0x60] sm:$0xff] }
 0x259   : > { %v947_v26 = vpop.xlane.xlu0 %946 }
 0x25a   : > { %2731 = vpow2.f32 %v950_v25  ;;  %v949_v27 = vsub.f32 %v2598_v19, %v947_v26  ;;  %v1491_v19 = vld [vmem:[%s3191_s3 + $0x38] sm:$0xff]  ;;  %v2697_v25 = vpack.c.bf16 %v2501_v23, %v2499_v22  ;;  %v2500_v26 = vld [vmem:[%s3191_s3 + $0x70] sm:$0xff] }
 0x25b   : > { %v2689_v20 = vpack.c.bf16 %v1491_v19, %v1489_v18 }
 0x25c   : > { %v952_v28 = vmul.f32 1.442695, %v949_v27  ;;  %v2495_v27 = vld [vmem:[%s3191_s3 + $0x48] sm:$0xff]  ;;  %2698 = vmatprep.subr.bf16.mxu1 %v2697_v25 }
 0x25e   : > { %2733 = vpow2.f32 %v952_v28  ;;  %v2497_v28 = vld [vmem:[%s3191_s3 + $0x58] sm:$0xff] }
 0x264   : > { %v2732_v29 = vpop.eup %2731 }
 0x265   : > { %v954_v30 = vsel %vm940_vm2, %v2732_v29, 0.0 }
 0x266   : > { %955 = vadd.xlane.f32.xlu1 %v954_v30  ;;  %v2701_v30 = vpack.c.bf16 %v2497_v28, %v2495_v27 }
 0x268   : > { %v2734_v31 = vpop.eup %2733 }
 0x269   : > { %v957_v32 = vsel %vm944_vm3, %v2734_v31, 0.0 }
 0x26a   : > { %958 = vadd.xlane.f32.xlu1 %v957_v32  ;;  %v2496_v32 = vld [vmem:[%s3191_s3 + $0x50] sm:$0xff] }
 0x2f3   : > { %v956_v43 = vpop.xlane.xlu1 %955 }
 0x2f4   : > { %2735 = vrcp.f32 %v956_v43  ;;  %v1487_v43 = vld [vmem:[%s3191_s3 + $0x18] sm:$0xff] }
 0x2f7   : > { %v959_v44 = vpop.xlane.xlu1 %958 }
 0x2f8   : > { %2737 = vrcp.f32 %v959_v44 }
 0x2fe   : > { %v2736_v45 = vpop.eup %2735 }
 0x2ff   : > { %v961_v46 = vmul.f32 %v2736_v45, %v2732_v29  ;;  %v2699_v29 = vpack.c.bf16 %v2500_v26, %v2498_v24  ;;  %v2691_v45 = vpack.c.bf16 %v1490_v40, %v1488_v39  ;;  %v2032_v39 = vld [vmem:[%s3197_s9] ss:$2 sm:$0x3] }
 0x301   : > { %v964_v47 = vmul.f32 0.25, %v961_v46  ;;  %1480 = vst.msk [vmem:[%s577_s26] sm:$0xff] %vm940_vm2, %v961_v46 }
 0x302   : > { %v2738_v48 = vpop.eup %2737 }
 0x303   : > { %v963_v49 = vmul.f32 %v2738_v48, %v2734_v31  ;;  %2603 = vmatprep.mubr.msk.f32.mxu0 %vm940_vm2, %v964_v47  ;;  %v2494_v31 = vld [vmem:[%s3191_s3 + $0x40] sm:$0xff] }
 0x304   : > { %v2703_v33 = vpack.c.bf16 %v2496_v32, %v2494_v31  ;;  %v1484_v48 = vld [vmem:[%s3191_s3] sm:$0xff] }
 0x305   : > { %1481 = vst.msk [vmem:[%s577_s26 + $0x8] sm:$0x3] %vm944_vm3, %v963_v49  ;;  %v965_v50 = vmul.f32 0.25, %v963_v49  ;;  %v1486_v49 = vld [vmem:[%s3191_s3 + $0x10] sm:$0xff]  ;;  %s602_s26 = scalar_lea.vmem %s3204_s16, %s2862_s0 }
 0x306   : > { %v2695_v52 = vpack.c.bf16 %v1486_v49, %v1484_v48 }
 0x307   : > { %2604 = vmatmul.mubr.msk.f32.vlgmr.msra.gmra.mrb[4].mxu0 %vm940_vm2, %v965_v50  ;;  %v1936_v50 = vld [vmem:[%s3195_s7 + $0x8] sm:$0xff] }
 0x308   : > { %2668 = vmatpush3.bf16.msra.mxu0 %v2665_v42  ;;  %2610 = vmatprep.mubr.msk.f32.mxu0 %vm609_vm0, %v2872_v6  ;;  %v1485_v42 = vld [vmem:[%s3191_s3 + $0x8] sm:$0xff]  ;;  %v2705_v53 = vpack.c.bf16 %v1938_v51, %v1936_v50 }
 0x309   : > { %2674 = vmatprep.subr.bf16.mxu0 %v2673_v60  ;;  %v2693_v47 = vpack.c.bf16 %v1487_v43, %v1485_v42 }
 0x30b   : > { %2611 = vmatmul.mubr.msk.f32.vlgmr.msra.gmra.mrb[6].mxu0 %vm609_vm0, %v2874_v7 }
 0x30c   : > { %2624 = vmatprep.mubr.msk.f32.mxu0 %vm609_vm0, %v2876_v8  ;;  %2676 = vmatpush3.bf16.msra.mxu0 %v2673_v60 }
 0x30f   : > { %2625 = vmatmul.mubr.msk.f32.vlgmr.msra.gmra.mrb[8].mxu0 %vm609_vm0, %v2882_v9 }
 0x3da   : > { %v2957_v54 = vpop.f32.mrb[4].mxu0 }
 0x3db   : > { %v2959_v55 = vpop.f32.mrb[5].mxu0 }
 0x3de   : > { %v2612_v56 = vpop.f32.mrb[6].mxu0 }
 0x3df   : > { %v1120_v57 = vpop.f32.mrb[7].mxu0 }
 0x3e0   : > { %2631 = vmatprep.mubr.msk.f32.mxu1 %vm609_vm0, %v1120_v57  ;;  %v1937_v57 = vld [vmem:[%s3195_s7 + $0x10] sm:$0xff] }
 0x3e1   : > { %2632 = vmatmul.mubr.msk.f32.vlgmr.msra.gmra.mrb[6].mxu1 %vm609_vm0, %v2612_v56  ;;  %v1935_v56 = vld [vmem:[%s3195_s7] sm:$0xff] }
 0x3e2   : > { %v2626_v15 = vpop.f32.mrb[8].mxu0  ;;  %1783 = vmatprep.mubr.f32.mxu1 %v2756_v21  ;;  %2700 = vmatpush1.bf16.msra.mxu1 %v2699_v29  ;;  %v2707_v58 = vpack.c.bf16 %v1937_v57, %v1935_v56 }
 0x3e3   : > { %v1276_v16 = vpop.f32.mrb[9].mxu0  ;;  %2702 = vmatprep.subr.bf16.mxu1 %v2701_v30 }
 0x3e4   : > { %v2683_v17 = vpack.c.bf16 %v2626_v15, %v1276_v16 }
 0x3e5   : > { %2502 = vmatmul.mubr.msk.f32.vlgmr.msra.gmra.mrb[8].mxu1 %vm609_vm0, %v2876_v8 }
 0x3e6   : > { %2685 = vmatprep.subr.msk.bf16.mxu0 %vm2923_vm6, %v2683_v17  ;;  %2704 = vmatpush1.bf16.msra.mxu1 %v2703_v33 }
 0x3e7   : > { %2688 = vmatpush3.bf16.msk.msra.mxu0 %vm2923_vm6, %v2683_v17  ;;  %1789 = vmatprep.mubr.f32.mxu1 %v2756_v21 }
 0x3e8   : > { %2690 = vmatprep.subr.bf16.mxu0 %v2689_v20 }
 0x3e9   : > { %2503 = vmatmul.mubr.msk.f32.gmra.mrb[10].mxu1 %vm609_vm0, %v2882_v9 }
 0x3ea   : > { %1866 = vmatprep.mubr.f32.mxu1 %v2756_v21 }
 0x4b4   : > { %v2633_v61 = vpop.f32.mrb[6].mxu1 }
 0x4b5   : > { %v1363_v62 = vpop.f32.mrb[7].mxu1  ;;  %v1375_v63 = vsel %vm944_vm3, %v2633_v61, -inf }
 0x4b6   : > { %1376 = vmax.xlane.f32.xlu1 %v1375_v63  ;;  %v1372_v0 = vsel %vm940_vm2, %v1363_v62, -inf }
 0x4b7   : > { %1373 = vmax.xlane.f32.xlu0 %v1372_v0 }
 0x543   : > { %v1377_v1 = vpop.xlane.xlu1 %1376 }
 0x544   : > { %v1379_v2 = vsub.f32 %v2633_v61, %v1377_v1  ;;  %v1374_v3 = vpop.xlane.xlu0 %1373  ;;  %v1654_v61 = vlaneseq }
 0x545   : > { %v1378_v4 = vsub.f32 %v1363_v62, %v1374_v3 }
 0x546   : > { %v1382_v5 = vmul.f32 1.442695, %v1379_v2  ;;  %v1655_v0 = vshrl.u32 %v1654_v61, 7  ;;  %v1652_v2 = vld [vmem:[%s3192_s4] ss:$2 sm:$0x3] }
 0x547   : > { %v1380_v10 = vmul.f32 1.442695, %v1378_v4 }
 0x548   : > { %2739 = vpow2.f32 %v1382_v5  ;;  %v3086_v1 = vsub.s32 0, %v1655_v0  ;;  %v3092_v3 = vsub.s32 1, %v1655_v0 }
 0x549   : > { %2741 = vpow2.f32 %v1380_v10  ;;  %v1672_v10 = vld [vmem:[%s3193_s5] ss:$2 sm:$0x3] }
 0x54a   : > { %v1657_v4 = vrot.slane %v1652_v2, %v3086_v1  ;;  %v1661_v5 = vrot.slane %v1652_v2, %v3092_v3  ;;  %v1681_v15 = vrot.slane %v1672_v10, %v3092_v3  ;;  %v2037_v43 = vrot.slane %v2032_v39, %v3086_v1  ;;  %v2507_v2 = vld [vmem:[%s3193_s5 + $0x1] ss:$2 sm:$0x3] }
 0x552   : > { %v2740_v11 = vpop.eup %2739 }
 0x553   : > { %v2742_v12 = vpop.eup %2741  ;;  %v1387_v13 = vsel %vm944_vm3, %v2740_v11, 0.0 }
 0x554   : > { %1388 = vadd.xlane.f32.xlu1 %v1387_v13  ;;  %v1384_v14 = vsel %vm940_vm2, %v2742_v12, 0.0 }
 0x555   : > { %1385 = vadd.xlane.f32.xlu0 %v1384_v14 }
 0x5e1   : > { %v1389_v34 = vpop.xlane.xlu1 %1388 }
 0x5e2   : > { %2743 = vrcp.f32 %v1389_v34  ;;  %v1386_v35 = vpop.xlane.xlu0 %1385  ;;  %v1939_v34 = vld [vmem:[%s3196_s8] ss:$2 sm:$0x3] }
 0x5e3   : > { %2745 = vrcp.f32 %v1386_v35  ;;  %v1948_v35 = vrot.slane %v1939_v34, %v3092_v3 }
 0x5ec   : > { %v2744_v36 = vpop.eup %2743 }
 0x5ed   : > { %v2746_v37 = vpop.eup %2745  ;;  %v1393_v38 = vmul.f32 %v2744_v36, %v2740_v11  ;;  %v1944_v36 = vrot.slane %v1939_v34, %v3086_v1 }
 0x5ee   : > { %v1391_v41 = vmul.f32 %v2746_v37, %v2742_v12 }
 0x5ef   : > { %1483 = vst.msk [vmem:[%s582_s27 + $0x8] sm:$0x3] %vm944_vm3, %v1393_v38  ;;  %v1395_v46 = vmul.f32 0.25, %v1393_v38 }
 0x5f0   : > { %v1394_v44 = vmul.f32 0.25, %v1391_v41  ;;  %1482 = vst.msk [vmem:[%s582_s27] sm:$0xff] %vm940_vm2, %v1391_v41  ;;  %v2041_v41 = vrot.slane %v2032_v39, %v3092_v3 }
 0x5f2   : > { %2638 = vmatprep.mubr.msk.f32.mxu0 %vm940_vm2, %v1394_v44 }
 0x5f3   : > { %2639 = vmatmul.mubr.msk.f32.vlgmr.msra.gmra.mrb[10].mxu0 %vm940_vm2, %v1395_v46 }
 0x5f4   : > { %2692 = vmatpush1.bf16.msra.mxu0 %v2691_v45  ;;  %1556 = vmatprep.mubr.f32.mxu0 %v2756_v21 }
 0x5f5   : > { %2694 = vmatprep.subr.bf16.mxu0 %v2693_v47 }
 0x5f7   : > { %2489 = vmatmul.mubr.msk.f32.vlgmr.msra.gmra.mrb[12].mxu0 %vm609_vm0, %v2872_v6 }
 0x5f8   : > { %1562 = vmatprep.mubr.f32.mxu0 %v2756_v21  ;;  %2696 = vmatpush1.bf16.msra.mxu0 %v2695_v52 }
 0x5f9   : > { %2706 = vmatprep.subr.bf16.mxu0 %v2705_v53 }
 0x5fb   : > { %2490 = vmatmul.mubr.msk.f32.gmra.mrb[14].mxu0 %vm609_vm0, %v2874_v7 }
 0x5fc   : > { %1639 = vmatprep.mubr.f32.mxu0 %v2756_v21 }
 0x5ff   : > { %2491 = vmatmul.mubr.msk.f32.vlgmr.msra.gmra.mrb[12].mxu0 %vm609_vm0, %v2959_v55  ;;  %v2513_v55 = vld [vmem:[%s3195_s7 + $0x28] sm:$0xff] }
 0x600   : > { %1645 = vmatprep.mubr.f32.mxu0 %v2756_v21  ;;  %2708 = vmatpush1.bf16.msra.mxu0 %v2707_v58  ;;  %v2709_v60 = vpack.c.bf16 %v2515_v59, %v2513_v55 }
 0x602   : > { %2710 = vmatprep.subr.bf16.mxu1 %v2709_v60  ;;  %v2493_v60 = vld [vmem:[%s3194_s6] ss:$0 sm:$0xff] }
 0x603   : > { %2492 = vmatmul.mubr.msk.f32.gmra.mrb[14].mxu0 %vm609_vm0, %v2957_v54  ;;  %v2512_v54 = vld [vmem:[%s3195_s7 + $0x20] sm:$0xff] }
 0x604   : > { %2015 = vmatprep.mubr.f32.mxu0 %v2756_v21 }
 0x607   : > { %2509 = vmatmul.mubr.msk.f32.vlgmr.msra.gmra.mrb[16].mxu0 %vm609_vm0, %v2872_v6  ;;  %v2514_v6 = vld [vmem:[%s3195_s7 + $0x30] sm:$0xff] }
 0x608   : > { %2021 = vmatprep.mubr.f32.mxu0 %v2756_v21 }
 0x60b   : > { %2510 = vmatmul.mubr.msk.f32.gmra.mrb[18].mxu0 %vm609_vm0, %v2874_v7  ;;  %v2711_v7 = vpack.c.bf16 %v2514_v6, %v2512_v54 }
 0x6c6   : > { %v2640_v62 = vpop.f32.mrb[10].mxu0 }
 0x6c7   : > { %v1471_v63 = vpop.f32.mrb[11].mxu0 }
 0x6c8   : > { %2504 = vmatmul.mubr.msk.f32.vlgmr.msra.gmra.mrb[8].mxu1 %vm609_vm0, %v1471_v63 }
 0x6c9   : > { %2712 = vmatpush1.bf16.msra.mxu1 %v2711_v7  ;;  %1872 = vmatprep.mubr.f32.mxu1 %v2756_v21 }
 0x6cc   : > { %2505 = vmatmul.mubr.msk.f32.gmra.mrb[10].mxu1 %vm609_vm0, %v2640_v62  ;;  %v2506_v62 = vld [vmem:[%s3192_s4 + $0x1] ss:$2 sm:$0x3] }
 0x6cd   : > { %2148 = vmatprep.mubr.f32.mxu1 %v2756_v21  ;;  %v1885_v63 = vrot.slane %v2506_v62, %v3086_v1  ;;  %v1889_v0 = vrot.slane %v2506_v62, %v3092_v3  ;;  %v2520_v62 = vld [vmem:[%s3198_s10 + $0x1] ss:$0 sm:$0xff] }
 0x6d0   : > { %2517 = vmatmul.mubr.msk.f32.vlgmr.msra.gmra.mrb[12].mxu1 %vm609_vm0, %v2876_v8  ;;  %v1677_v8 = vrot.slane %v1672_v10, %v3086_v1 }
 0x6d1   : > { %2154 = vmatprep.mubr.f32.mxu1 %v2756_v21 }
 0x6d2   : > { %v1641_v11 = vpop.f32.mrb[12].mxu0 }
 0x6d3   : > { %v1664_v12 = vadd.f32 %v1657_v4, %v1641_v11  ;;  %v1643_v13 = vpop.f32.mrb[13].mxu0 }
 0x6d4   : > { %v1665_v14 = vadd.f32 %v1661_v5, %v1643_v13  ;;  %2518 = vmatmul.mubr.msk.f32.gmra.mrb[14].mxu1 %vm609_vm0, %v2882_v9  ;;  %v2516_v13 = vld [vmem:[%s3196_s8 + $0x1] ss:$2 sm:$0x3] }
 0x6d5   : > { %v1668_v16 = vmax.f32 %v1664_v12, 0.0  ;;  %v1910_v12 = vrot.slane %v2507_v2, %v3092_v3 }
 0x6d6   : > { %v1669_v17 = vmax.f32 %v1665_v14, 0.0  ;;  %v1647_v18 = vpop.f32.mrb[14].mxu0 }
 0x6d7   : > { %v1666_v19 = vadd.f32 %v1657_v4, %v1647_v18  ;;  %v1649_v20 = vpop.f32.mrb[15].mxu0  ;;  %v1684_v21 = vmul.f32 %v1677_v8, %v1668_v16 }
 0x6d8   : > { %v1685_v22 = vmul.f32 %v1681_v15, %v1669_v17  ;;  %v1667_v23 = vadd.f32 %v1661_v5, %v1649_v20 }
 0x6d9   : > { %v1670_v24 = vmax.f32 %v1666_v19, 0.0  ;;  %v2077_v19 = vrot.slane %v2516_v13, %v3086_v1 }
 0x6da   : > { %v1671_v25 = vmax.f32 %v1667_v23, 0.0  ;;  %v1689_v26 = vsel %vm1688_vm7, %v1685_v22, 0.0  ;;  %v2017_v32 = vpop.f32.mrb[16].mxu0  ;;  %v2081_v23 = vrot.slane %v2516_v13, %v3092_v3 }
 0x6db   : > { %v1686_v27 = vmul.f32 %v1677_v8, %v1670_v24  ;;  %v1690_v28 = vadd.f32 %v1689_v26, %v1684_v21  ;;  %v2019_v33 = vpop.f32.mrb[17].mxu0  ;;  %v2018_v38 = vadd.f32 %v2017_v32, %v1944_v36 }
 0x6dc   : > { %v1687_v29 = vmul.f32 %v1681_v15, %v1671_v25  ;;  %v2020_v37 = vadd.f32 %v2019_v33, %v1948_v35  ;;  %v1906_v15 = vrot.slane %v2507_v2, %v3086_v1  ;;  %v2519_v25 = vld [vmem:[%s3197_s9 + $0x1] ss:$2 sm:$0x3] }
 0x6dd   : > { %1691 = vadd.xlane.f32.xlu0 %v1690_v28  ;;  %v1693_v9 = vsel %vm972_vm4, %v1686_v27, 0.0  ;;  %v2028_v42 = vmax.f32 %v2018_v38, 0.0  ;;  %v2175_v34 = vrot.slane %v2519_v25, %v3092_v3 }
 0x6de   : > { %v1695_v30 = vsel %vm1694_vm8, %v1687_v29, 0.0  ;;  %v2029_v40 = vmax.f32 %v2020_v37, 0.0  ;;  %v2023_v45 = vpop.f32.mrb[18].mxu0 }
 0x6df   : > { %v1696_v31 = vadd.f32 %v1695_v30, %v1693_v9  ;;  %v2044_v46 = vmul.f32 %v2037_v43, %v2028_v42  ;;  %v2025_v47 = vpop.f32.mrb[19].mxu0  ;;  %v2024_v48 = vadd.f32 %v2023_v45, %v1944_v36  ;;  %v2171_v36 = vrot.slane %v2519_v25, %v3086_v1 }
 0x6e0   : > { %v2045_v44 = vmul.f32 %v2041_v41, %v2029_v40  ;;  %v2026_v49 = vadd.f32 %v2025_v47, %v1948_v35 }
 0x6e1   : > { %1697 = vadd.xlane.f32.xlu1 %v1696_v31  ;;  %v2030_v50 = vmax.f32 %v2024_v48, 0.0 }
 0x6e2   : > { %v2031_v51 = vmax.f32 %v2026_v49, 0.0  ;;  %v2048_v52 = vsel %vm1688_vm7, %v2045_v44, 0.0 }
 0x6e3   : > { %v2049_v53 = vadd.f32 %v2048_v52, %v2044_v46  ;;  %v2046_v56 = vmul.f32 %v2037_v43, %v2030_v50 }
 0x6e4   : > { %v2047_v57 = vmul.f32 %v2041_v41, %v2031_v51  ;;  %v2511_v51 = vld [vmem:[%s3198_s10] ss:$0 sm:$0xff] }
 0x6e5   : > { %2050 = vadd.xlane.f32.xlu0 %v2049_v53  ;;  %v2052_v58 = vsel %vm972_vm4, %v2046_v56, 0.0 }
 0x6e6   : > { %v2053_v55 = vsel %vm1694_vm8, %v2047_v57, 0.0 }
 0x6e7   : > { %v2054_v59 = vadd.f32 %v2053_v55, %v2052_v58 }
 0x6e9   : > { %2055 = vadd.xlane.f32.xlu1 %v2054_v59 }
 0x76a   : > { %v1692_v54 = vpop.xlane.xlu0 %1691 }
 0x76b   : > { %v1704_v6 = vadd.f32 %v2493_v60, %v1692_v54 }
 0x76d   : > { %1707 = vst.msk [vmem:[%s587_s30] sm:$0xff] %vm1706_vm9, %v1704_v6 }
 0x76e   : > { %v1698_v61 = vpop.xlane.xlu1 %1697 }
 0x76f   : > { %v1705_v7 = vadd.f32 %v2493_v60, %v1698_v61  ;;  %v2508_v60 = vld [vmem:[%s3194_s6 + $0x1] ss:$0 sm:$0xff] }
 0x771   : > { %1709 = vst.msk [vmem:[%s587_s30 + $0x8] sm:$0x3] %vm1708_vm10, %v1705_v7  ;;  %s597_s30 = scalar_lea.vmem %s3203_s15, %s2862_s0 }
 0x772   : > { %v2051_v56 = vpop.xlane.xlu0 %2050 }
 0x773   : > { %v2062_v58 = vadd.f32 %v2511_v51, %v2051_v56 }
 0x775   : > { %2064 = vst.msk [vmem:[%s597_s30] sm:$0xff] %vm1706_vm9, %v2062_v58 }
 0x776   : > { %v2056_v55 = vpop.xlane.xlu1 %2055 }
 0x777   : > { %v2063_v59 = vadd.f32 %v2511_v51, %v2056_v55 }
 0x779   : > { %2065 = vst.msk [vmem:[%s597_s30 + $0x8] sm:$0x3] %vm1708_vm10, %v2063_v59 }
 0x79b   : > { %v1868_v4 = vpop.f32.mrb[8].mxu1 }
 0x79c   : > { %v1892_v5 = vadd.f32 %v1885_v63, %v1868_v4  ;;  %v1870_v10 = vpop.f32.mrb[9].mxu1 }
 0x79d   : > { %v1893_v11 = vadd.f32 %v1889_v0, %v1870_v10 }
 0x79e   : > { %v1896_v14 = vmax.f32 %v1892_v5, 0.0 }
 0x79f   : > { %v1897_v16 = vmax.f32 %v1893_v11, 0.0  ;;  %v1874_v8 = vpop.f32.mrb[10].mxu1 }
 0x7a0   : > { %v1894_v17 = vadd.f32 %v1885_v63, %v1874_v8  ;;  %v1876_v18 = vpop.f32.mrb[11].mxu1  ;;  %v1913_v21 = vmul.f32 %v1906_v15, %v1896_v14 }
 0x7a1   : > { %v1914_v20 = vmul.f32 %v1910_v12, %v1897_v16  ;;  %v1895_v22 = vadd.f32 %v1889_v0, %v1876_v18 }
 0x7a2   : > { %v1898_v24 = vmax.f32 %v1894_v17, 0.0 }
 0x7a3   : > { %v1899_v26 = vmax.f32 %v1895_v22, 0.0  ;;  %v2150_v27 = vpop.f32.mrb[12].mxu1  ;;  %v1917_v28 = vsel %vm1688_vm7, %v1914_v20, 0.0 }
 0x7a4   : > { %v1915_v29 = vmul.f32 %v1906_v15, %v1898_v24  ;;  %v2151_v9 = vadd.f32 %v2150_v27, %v2077_v19  ;;  %v2152_v30 = vpop.f32.mrb[13].mxu1  ;;  %v1918_v31 = vadd.f32 %v1917_v28, %v1913_v21 }
 0x7a5   : > { %v1916_v32 = vmul.f32 %v1910_v12, %v1899_v26  ;;  %v2153_v33 = vadd.f32 %v2152_v30, %v2081_v23 }
 0x7a6   : > { %v2161_v35 = vmax.f32 %v2151_v9, 0.0  ;;  %1919 = vadd.xlane.f32.xlu0 %v1918_v31  ;;  %v1921_v37 = vsel %vm972_vm4, %v1915_v29, 0.0 }
 0x7a7   : > { %v2162_v38 = vmax.f32 %v2153_v33, 0.0  ;;  %v2156_v39 = vpop.f32.mrb[14].mxu1  ;;  %v1922_v40 = vsel %vm1694_vm8, %v1916_v32, 0.0 }
 0x7a8   : > { %v2157_v41 = vadd.f32 %v2156_v39, %v2077_v19  ;;  %v2158_v42 = vpop.f32.mrb[15].mxu1  ;;  %v1923_v43 = vadd.f32 %v1922_v40, %v1921_v37  ;;  %v2178_v46 = vmul.f32 %v2171_v36, %v2161_v35 }
 0x7a9   : > { %v2179_v44 = vmul.f32 %v2175_v34, %v2162_v38  ;;  %v2159_v45 = vadd.f32 %v2158_v42, %v2081_v23 }
 0x7aa   : > { %v2163_v47 = vmax.f32 %v2157_v41, 0.0  ;;  %1924 = vadd.xlane.f32.xlu1 %v1923_v43 }
 0x7ab   : > { %v2164_v3 = vmax.f32 %v2159_v45, 0.0  ;;  %v2182_v48 = vsel %vm1688_vm7, %v2179_v44, 0.0 }
 0x7ac   : > { %v2180_v1 = vmul.f32 %v2171_v36, %v2163_v47  ;;  %v2183_v49 = vadd.f32 %v2182_v48, %v2178_v46 }
 0x7ad   : > { %v2181_v50 = vmul.f32 %v2175_v34, %v2164_v3 }
 0x7ae   : > { %2184 = vadd.xlane.f32.xlu0 %v2183_v49  ;;  %v2186_v52 = vsel %vm972_vm4, %v2180_v1, 0.0 }
 0x7af   : > { %v2187_v53 = vsel %vm1694_vm8, %v2181_v50, 0.0 }
 0x7b0   : > { %v2188_v57 = vadd.f32 %v2187_v53, %v2186_v52 }
 0x7b2   : > { %2189 = vadd.xlane.f32.xlu1 %v2188_v57 }
 0x833   : > { %v1920_v54 = vpop.xlane.xlu0 %1919 }
 0x834   : > { %v1931_v6 = vadd.f32 %v2508_v60, %v1920_v54 }
 0x836   : > { %1933 = vst.msk [vmem:[%s592_s20] sm:$0xff] %vm1706_vm9, %v1931_v6 }
 0x837   : > { %v1925_v61 = vpop.xlane.xlu1 %1924 }
 0x838   : > { %v1932_v7 = vadd.f32 %v2508_v60, %v1925_v61 }
 0x83a   : > { %1934 = vst.msk [vmem:[%s592_s20 + $0x8] sm:$0x3] %vm1708_vm10, %v1932_v7 }
 0x83b   : > { %v2185_v63 = vpop.xlane.xlu0 %2184 }
 0x83c   : > { %v2196_v0 = vadd.f32 %v2520_v62, %v2185_v63 }
 0x83e   : > { %2198 = vst.msk [vmem:[%s602_s26] sm:$0xff] %vm1706_vm9, %v2196_v0 }
 0x83f   : > { %v2190_v2 = vpop.xlane.xlu1 %2189 }
 0x840   : > { %v2197_v4 = vadd.f32 %v2520_v62, %v2190_v2 }
 0x842   : > { %2199 = vst.msk [vmem:[%s602_s26 + $0x8] sm:$0x3] %vm1708_vm10, %v2197_v4 }
 0x843 PF: > { %s27_s21 = sadd.s32 1, %s2753_s21  }
 0x844   : > { %p24_p4 = scmp.ge.s32.totalorder %s27_s21, 4  }
 0x846   :  { %26 = sbr.rel (!%p24_p4) target bundleno = 2 (0x2), region = 168 }

</bundles_post_ra>
